<compile_context>
chip_gen: v5e
topology: v5e:2x2
jax: 0.10.0
libtpu: 0.0.40
codegen_flags: <defaults>
</compile_context>

<pallas_src>
import jax
import jax.numpy as jnp
from jax.experimental import pallas as pl
from jax.experimental.pallas import tpu as pltpu


# ----------------------------- Pallas kernel --------------------------------

def _basic_block_kernel(x_ref, w1_ref, s1_ref, b1_ref, w2_ref, s2_ref, b2_ref,
                        out_ref, xp_ref, hp_ref, slab1_ref, slab2_ref):
    """Fused conv1+bn1+relu -> conv2+bn2+add+relu for one whole-image tile."""
    _, H, W, Cin = x_ref.shape
    Cmid = hp_ref.shape[-1]
    Cout = out_ref.shape[-1]
    f32 = jnp.float32

    # ---- zero-padded x tile (pad=1 each side) in VMEM ----------------------
    # Scratch persists across grid steps and is per-core, so the edge zeroing
    # is done every step (cheap) rather than gated on program_id (unsafe under
    # megacore splitting).
    xz_row = jnp.zeros((1, W + 2, Cin), xp_ref.dtype)
    xz_col = jnp.zeros((H + 2, 1, Cin), xp_ref.dtype)
    xp_ref[0:1, :, :] = xz_row
    xp_ref[H + 1:H + 2, :, :] = xz_row
    xp_ref[:, 0:1, :] = xz_col
    xp_ref[:, W + 1:W + 2, :] = xz_col
    xp_ref[1:H + 1, 1:W + 1, :] = x_ref[0]            # x already bf16

    # ---- conv1: build im2col slab (H, W, 9*Cin), ONE MXU dot (K = 9*Cin) ---
    for dy in range(3):
        for dx in range(3):
            idx = dy * 3 + dx
            slab1_ref[:, :, idx * Cin:(idx + 1) * Cin] = (
                xp_ref[dy:dy + H, dx:dx + W, :])
    h = jnp.dot(slab1_ref[...].reshape(H * W, 9 * Cin), w1_ref[...],
                preferred_element_type=f32)
    h = jnp.maximum(h * s1_ref[...] + b1_ref[...], 0.0)   # folded BN1 + ReLU (f32)

    # ---- zero-padded h tile (stays in VMEM, never hits HBM) ----------------
    hz_row = jnp.zeros((1, W + 2, Cmid), hp_ref.dtype)
    hz_col = jnp.zeros((H + 2, 1, Cmid), hp_ref.dtype)
    hp_ref[0:1, :, :] = hz_row
    hp_ref[H + 1:H + 2, :, :] = hz_row
    hp_ref[:, 0:1, :] = hz_col
    hp_ref[:, W + 1:W + 2, :] = hz_col
    hp_ref[1:H + 1, 1:W + 1, :] = h.reshape(H, W, Cmid).astype(hp_ref.dtype)

    # ---- conv2: im2col slab, ONE MXU dot, BN2 + residual + ReLU epilogue ---
    for dy in range(3):
        for dx in range(3):
            idx = dy * 3 + dx
            slab2_ref[:, :, idx * Cmid:(idx + 1) * Cmid] = (
                hp_ref[dy:dy + H, dx:dx + W, :])
    y = jnp.dot(slab2_ref[...].reshape(H * W, 9 * Cmid), w2_ref[...],
                preferred_element_type=f32)
    res = x_ref[0].reshape(H * W, Cin).astype(f32)         # identity residual
    y = jnp.maximum(y * s2_ref[...] + b2_ref[...] + res, 0.0)
    out_ref[...] = y.reshape(1, H, W, Cout).astype(out_ref.dtype)


# ------------------------------ Wrapper --------------------------------------

def _fold_bn(gamma, beta, mean, var, eps=1e-5):
    scale = gamma / jnp.sqrt(var + eps)
    shift = beta - mean * scale
    return (scale.reshape(1, -1).astype(jnp.float32),
            shift.reshape(1, -1).astype(jnp.float32))


@jax.jit
def basic_block_forward(x_nchw, params):
    """BasicBlock forward (stride=1, expansion=1, identity residual, eval BN).

    x_nchw: (N, Cin, H, W) float32 — PyTorch convention.
    TODO(synk): keep activations NHWC across consecutive blocks (transpose once
    at network entry/exit) instead of per-block NCHW<->NHWC round trips; the
    transposes are only kept here to match the PyTorch interface.
    """
    x = jnp.transpose(x_nchw, (0, 2, 3, 1)).astype(jnp.bfloat16)  # NCHW->NHWC, bf16 once
    N, H, W, Cin = x.shape
    Cmid = params["w1"].shape[-1]
    Cout = params["w2"].shape[-1]
    if Cin != Cout:
        # TODO(synk): downsample branch / stride != 1 not implemented.
        raise ValueError("identity residual requires in_channels == out_channels*expansion")

    # Fold weights for the im2col contraction: HWIO (3,3,Ci,Co) -> (9*Ci, Co).
    w1f = params["w1"].reshape(9 * Cin, Cmid).astype(jnp.bfloat16)
    w2f = params["w2"].reshape(9 * Cmid, Cout).astype(jnp.bfloat16)
    s1, b1 = _fold_bn(**params["bn1"])
    s2, b2 = _fold_bn(**params["bn2"])

    # Explicit VMEM budget for the whole-image tile (sized per call, with
    # headroom; clamped below v7x's 64 MiB/TC physical VMEM).
    est = (2 * 2 * H * W * Cin                        # x block, bf16, double-buffered
           + 2 * 4 * H * W * Cout                     # out block, f32, double-buffered
           + 2 * (H + 2) * (W + 2) * (Cin + Cmid)     # padded x / h scratch (bf16)
           + 2 * H * W * 9 * (Cin + Cmid)             # im2col slabs (bf16)
           + 2 * 4 * H * W * max(Cmid, Cout)          # f32 intermediates headroom
           + 2 * 9 * (Cin * Cmid + Cmid * Cout))      # weights (bf16)
    if est > 48 * 1024 * 1024:
        # TODO(synk): row-block tiling with halo DMA for feature maps too large
        # for a whole-image VMEM tile (not needed at standard ResNet layer sizes).
        raise ValueError("feature map too large for whole-image VMEM tiling")
    vmem_limit = int(min(max(2 * est, 16 * 1024 * 1024), 60 * 1024 * 1024))

    out = pl.pallas_call(
        _basic_block_kernel,
        out_shape=jax.ShapeDtypeStruct((N, H, W, Cout), jnp.float32),
        grid_spec=pltpu.PrefetchScalarGridSpec(
            num_scalar_prefetch=0,
            grid=(N,),                                  # whole image per grid step
            in_specs=[
                pl.BlockSpec((1, H, W, Cin), lambda n: (n, 0, 0, 0)),   # x (auto-pipelined)
                pl.BlockSpec((9 * Cin, Cmid), lambda n: (0, 0)),        # w1
                pl.BlockSpec((1, Cmid), lambda n: (0, 0)),              # bn1 scale
                pl.BlockSpec((1, Cmid), lambda n: (0, 0)),              # bn1 shift
                pl.BlockSpec((9 * Cmid, Cout), lambda n: (0, 0)),       # w2
                pl.BlockSpec((1, Cout), lambda n: (0, 0)),              # bn2 scale
                pl.BlockSpec((1, Cout), lambda n: (0, 0)),              # bn2 shift
            ],
            out_specs=pl.BlockSpec((1, H, W, Cout), lambda n: (n, 0, 0, 0)),
            scratch_shapes=[
                pltpu.VMEM((H + 2, W + 2, Cin), jnp.bfloat16),    # padded x tile
                pltpu.VMEM((H + 2, W + 2, Cmid), jnp.bfloat16),   # padded h tile
                pltpu.VMEM((H, W, 9 * Cin), jnp.bfloat16),        # conv1 im2col slab
                pltpu.VMEM((H, W, 9 * Cmid), jnp.bfloat16),       # conv2 im2col slab
            ],
        ),
        compiler_params=pltpu.CompilerParams(
            dimension_semantics=("parallel",),          # megacore splits the batch
            vmem_limit_bytes=vmem_limit),
    )(x, w1f, s1, b1, w2f, s2, b2)

    return jnp.transpose(out, (0, 3, 1, 2))             # NHWC -> NCHW


# --------------------------- Params / reference ------------------------------

def init_basic_block_params(key, in_channels, out_channels, expansion=1):
    """Deterministic synthetic parameters (shapes match nn.Conv2d/BatchNorm2d)."""
    c_mid = out_channels
    c_out = out_channels * expansion
    k = jax.random.split(key, 8)
    # conv weights stored HWIO: (3, 3, Cin, Cout)
    w1 = 0.1 * jax.random.normal(k[0], (3, 3, in_channels, c_mid), jnp.float32)
    w2 = 0.1 * jax.random.normal(k[1], (3, 3, c_mid, c_out), jnp.float32)
    bn1 = dict(gamma=1.0 + 0.1 * jax.random.normal(k[2], (c_mid,)),
               beta=0.1 * jax.random.normal(k[3], (c_mid,)),
               mean=0.05 * jax.random.normal(k[4], (c_mid,)),
               var=1.0 + 0.1 * jnp.abs(jax.random.normal(k[5], (c_mid,))))
    bn2 = dict(gamma=1.0 + 0.1 * jax.random.normal(k[6], (c_out,)),
               beta=0.1 * jax.random.normal(k[7], (c_out,)),
               mean=jnp.zeros((c_out,)),
               var=jnp.ones((c_out,)))
    return dict(w1=w1, w2=w2, bn1=bn1, bn2=bn2)


def _reference_forward(x_nchw, params):
    x = jnp.transpose(x_nchw, (0, 2, 3, 1))

    def conv(inp, w):
        return jax.lax.conv_general_dilated(
            inp, w, window_strides=(1, 1), padding=((1, 1), (1, 1)),
            dimension_numbers=("NHWC", "HWIO", "NHWC"))

    s1, b1 = _fold_bn(**params["bn1"])
    s2, b2 = _fold_bn(**params["bn2"])
    h = jnp.maximum(conv(x, params["w1"]) * s1 + b1, 0.0)
    o = jnp.maximum(conv(h, params["w2"]) * s2 + b2 + x, 0.0)
    return jnp.transpose(o, (0, 3, 1, 2))


# --------------------------------- Main ---------------------------------------

if __name__ == "__main__":
    key = jax.random.PRNGKey(0)
    kx, kp = jax.random.split(key)

    N, C, H, W = 2, 4, 16, 16              # in_channels = out_channels = 4
    x = jax.random.normal(kx, (N, C, H, W), jnp.float32)
    params = init_basic_block_params(kp, in_channels=C, out_channels=C)

    out = jax.block_until_ready(basic_block_forward(x, params))
    ref = jax.block_until_ready(_reference_forward(x, params))

    assert out.shape == (N, C, H, W)
    # bf16 MXU operands / bf16 x (with f32 accumulation) -> bf16-level tolerance.
    max_err = float(jnp.max(jnp.abs(out - ref)))
    assert jnp.allclose(out, ref, rtol=3e-2, atol=3e-2), (
        f"mismatch vs reference (max abs err {max_err})")

    print("KERNEL_OK")
</pallas_src>

<mosaic_0001>
module attributes {stable_mosaic.version = 11 : i64} {
  func.func @_basic_block_kernel(%arg0: i32, %arg1: memref<1x16x16x4xbf16, #tpu.memory_space<vmem>>, %arg2: memref<36x4xbf16, #tpu.memory_space<vmem>>, %arg3: memref<1x4xf32, #tpu.memory_space<vmem>>, %arg4: memref<1x4xf32, #tpu.memory_space<vmem>>, %arg5: memref<36x4xbf16, #tpu.memory_space<vmem>>, %arg6: memref<1x4xf32, #tpu.memory_space<vmem>>, %arg7: memref<1x4xf32, #tpu.memory_space<vmem>>, %arg8: memref<1x16x16x4xf32, #tpu.memory_space<vmem>>, %arg9: memref<18x18x4xbf16, #tpu.memory_space<vmem>>, %arg10: memref<18x18x4xbf16, #tpu.memory_space<vmem>>, %arg11: memref<16x16x36xbf16, #tpu.memory_space<vmem>>, %arg12: memref<16x16x36xbf16, #tpu.memory_space<vmem>>) attributes {dimension_semantics = [#tpu.dimension_semantics<parallel>], iteration_bounds = array<i64: 2>, scalar_prefetch = 0 : i64, scratch_operands = 4 : i64, tpu.core_type = #tpu.core_type<tc>, window_params = [{transform_indices = @transform_0, window_bounds = array<i64: 1, 16, 16, 4>}, {pipeline_mode = #tpu.pipeline_mode<synchronous>, transform_indices = @transform_1, window_bounds = array<i64: 36, 4>}, {pipeline_mode = #tpu.pipeline_mode<synchronous>, transform_indices = @transform_2, window_bounds = array<i64: 1, 4>}, {pipeline_mode = #tpu.pipeline_mode<synchronous>, transform_indices = @transform_3, window_bounds = array<i64: 1, 4>}, {pipeline_mode = #tpu.pipeline_mode<synchronous>, transform_indices = @transform_4, window_bounds = array<i64: 36, 4>}, {pipeline_mode = #tpu.pipeline_mode<synchronous>, transform_indices = @transform_5, window_bounds = array<i64: 1, 4>}, {pipeline_mode = #tpu.pipeline_mode<synchronous>, transform_indices = @transform_6, window_bounds = array<i64: 1, 4>}, {transform_indices = @transform_7, window_bounds = array<i64: 1, 16, 16, 4>}]} {
    %cst = arith.constant 0.000000e+00 : bf16
    %0 = vector.broadcast %cst : bf16 to vector<1x18x4xbf16>
    %cst_0 = arith.constant 0.000000e+00 : bf16
    %1 = vector.broadcast %cst_0 : bf16 to vector<18x1x4xbf16>
    %c0 = arith.constant 0 : index
    %c0_1 = arith.constant 0 : index
    %c0_2 = arith.constant 0 : index
    %2 = vector.load %arg9[%c0, %c0_1, %c0_2] : memref<18x18x4xbf16, #tpu.memory_space<vmem>>, vector<1x18x4xbf16>
    tpu.vector_store %arg9[%c0, %c0_1, %c0_2], %0 {strides = array<i32>} : memref<18x18x4xbf16, #tpu.memory_space<vmem>>, vector<1x18x4xbf16>,
    %c17 = arith.constant 17 : index
    %c0_3 = arith.constant 0 : index
    %c0_4 = arith.constant 0 : index
    %3 = vector.load %arg9[%c17, %c0_3, %c0_4] : memref<18x18x4xbf16, #tpu.memory_space<vmem>>, vector<1x18x4xbf16>
    tpu.vector_store %arg9[%c17, %c0_3, %c0_4], %0 {strides = array<i32>} : memref<18x18x4xbf16, #tpu.memory_space<vmem>>, vector<1x18x4xbf16>,
    %c0_5 = arith.constant 0 : index
    %c0_6 = arith.constant 0 : index
    %c0_7 = arith.constant 0 : index
    %4 = vector.load %arg9[%c0_5, %c0_6, %c0_7] : memref<18x18x4xbf16, #tpu.memory_space<vmem>>, vector<18x1x4xbf16>
    tpu.vector_store %arg9[%c0_5, %c0_6, %c0_7], %1 {strides = array<i32>} : memref<18x18x4xbf16, #tpu.memory_space<vmem>>, vector<18x1x4xbf16>,
    %c0_8 = arith.constant 0 : index
    %c17_9 = arith.constant 17 : index
    %c0_10 = arith.constant 0 : index
    %5 = vector.load %arg9[%c0_8, %c17_9, %c0_10] : memref<18x18x4xbf16, #tpu.memory_space<vmem>>, vector<18x1x4xbf16>
    tpu.vector_store %arg9[%c0_8, %c17_9, %c0_10], %1 {strides = array<i32>} : memref<18x18x4xbf16, #tpu.memory_space<vmem>>, vector<18x1x4xbf16>,
    %c0_11 = arith.constant 0 : index
    %c0_12 = arith.constant 0 : index
    %c0_13 = arith.constant 0 : index
    %c0_14 = arith.constant 0 : index
    %6 = vector.load %arg1[%c0_11, %c0_12, %c0_13, %c0_14] : memref<1x16x16x4xbf16, #tpu.memory_space<vmem>>, vector<1x16x16x4xbf16>
    %7 = vector.shape_cast %6 : vector<1x16x16x4xbf16> to vector<16x16x4xbf16>
    %c1 = arith.constant 1 : index
    %c1_15 = arith.constant 1 : index
    %c0_16 = arith.constant 0 : index
    %8 = vector.load %arg9[%c1, %c1_15, %c0_16] : memref<18x18x4xbf16, #tpu.memory_space<vmem>>, vector<16x16x4xbf16>
    tpu.vector_store %arg9[%c1, %c1_15, %c0_16], %7 {strides = array<i32>} : memref<18x18x4xbf16, #tpu.memory_space<vmem>>, vector<16x16x4xbf16>,
    %c0_17 = arith.constant 0 : index
    %c0_18 = arith.constant 0 : index
    %c0_19 = arith.constant 0 : index
    %9 = vector.load %arg9[%c0_17, %c0_18, %c0_19] : memref<18x18x4xbf16, #tpu.memory_space<vmem>>, vector<16x16x4xbf16>
    %c0_20 = arith.constant 0 : index
    %c0_21 = arith.constant 0 : index
    %c0_22 = arith.constant 0 : index
    %10 = vector.load %arg11[%c0_20, %c0_21, %c0_22] : memref<16x16x36xbf16, #tpu.memory_space<vmem>>, vector<16x16x4xbf16>
    tpu.vector_store %arg11[%c0_20, %c0_21, %c0_22], %9 {strides = array<i32>} : memref<16x16x36xbf16, #tpu.memory_space<vmem>>, vector<16x16x4xbf16>,
    %c0_23 = arith.constant 0 : index
    %c1_24 = arith.constant 1 : index
    %c0_25 = arith.constant 0 : index
    %11 = vector.load %arg9[%c0_23, %c1_24, %c0_25] : memref<18x18x4xbf16, #tpu.memory_space<vmem>>, vector<16x16x4xbf16>
    %c0_26 = arith.constant 0 : index
    %c0_27 = arith.constant 0 : index
    %c4 = arith.constant 4 : index
    %12 = vector.load %arg11[%c0_26, %c0_27, %c4] : memref<16x16x36xbf16, #tpu.memory_space<vmem>>, vector<16x16x4xbf16>
    tpu.vector_store %arg11[%c0_26, %c0_27, %c4], %11 {strides = array<i32>} : memref<16x16x36xbf16, #tpu.memory_space<vmem>>, vector<16x16x4xbf16>,
    %c0_28 = arith.constant 0 : index
    %c2 = arith.constant 2 : index
    %c0_29 = arith.constant 0 : index
    %13 = vector.load %arg9[%c0_28, %c2, %c0_29] : memref<18x18x4xbf16, #tpu.memory_space<vmem>>, vector<16x16x4xbf16>
    %c0_30 = arith.constant 0 : index
    %c0_31 = arith.constant 0 : index
    %c8 = arith.constant 8 : index
    %14 = vector.load %arg11[%c0_30, %c0_31, %c8] : memref<16x16x36xbf16, #tpu.memory_space<vmem>>, vector<16x16x4xbf16>
    tpu.vector_store %arg11[%c0_30, %c0_31, %c8], %13 {strides = array<i32>} : memref<16x16x36xbf16, #tpu.memory_space<vmem>>, vector<16x16x4xbf16>,
    %c1_32 = arith.constant 1 : index
    %c0_33 = arith.constant 0 : index
    %c0_34 = arith.constant 0 : index
    %15 = vector.load %arg9[%c1_32, %c0_33, %c0_34] : memref<18x18x4xbf16, #tpu.memory_space<vmem>>, vector<16x16x4xbf16>
    %c0_35 = arith.constant 0 : index
    %c0_36 = arith.constant 0 : index
    %c12 = arith.constant 12 : index
    %16 = vector.load %arg11[%c0_35, %c0_36, %c12] : memref<16x16x36xbf16, #tpu.memory_space<vmem>>, vector<16x16x4xbf16>
    tpu.vector_store %arg11[%c0_35, %c0_36, %c12], %15 {strides = array<i32>} : memref<16x16x36xbf16, #tpu.memory_space<vmem>>, vector<16x16x4xbf16>,
    %c1_37 = arith.constant 1 : index
    %c1_38 = arith.constant 1 : index
    %c0_39 = arith.constant 0 : index
    %17 = vector.load %arg9[%c1_37, %c1_38, %c0_39] : memref<18x18x4xbf16, #tpu.memory_space<vmem>>, vector<16x16x4xbf16>
    %c0_40 = arith.constant 0 : index
    %c0_41 = arith.constant 0 : index
    %c16 = arith.constant 16 : index
    %18 = vector.load %arg11[%c0_40, %c0_41, %c16] : memref<16x16x36xbf16, #tpu.memory_space<vmem>>, vector<16x16x4xbf16>
    tpu.vector_store %arg11[%c0_40, %c0_41, %c16], %17 {strides = array<i32>} : memref<16x16x36xbf16, #tpu.memory_space<vmem>>, vector<16x16x4xbf16>,
    %c1_42 = arith.constant 1 : index
    %c2_43 = arith.constant 2 : index
    %c0_44 = arith.constant 0 : index
    %19 = vector.load %arg9[%c1_42, %c2_43, %c0_44] : memref<18x18x4xbf16, #tpu.memory_space<vmem>>, vector<16x16x4xbf16>
    %c0_45 = arith.constant 0 : index
    %c0_46 = arith.constant 0 : index
    %c20 = arith.constant 20 : index
    %20 = vector.load %arg11[%c0_45, %c0_46, %c20] : memref<16x16x36xbf16, #tpu.memory_space<vmem>>, vector<16x16x4xbf16>
    tpu.vector_store %arg11[%c0_45, %c0_46, %c20], %19 {strides = array<i32>} : memref<16x16x36xbf16, #tpu.memory_space<vmem>>, vector<16x16x4xbf16>,
    %c2_47 = arith.constant 2 : index
    %c0_48 = arith.constant 0 : index
    %c0_49 = arith.constant 0 : index
    %21 = vector.load %arg9[%c2_47, %c0_48, %c0_49] : memref<18x18x4xbf16, #tpu.memory_space<vmem>>, vector<16x16x4xbf16>
    %c0_50 = arith.constant 0 : index
    %c0_51 = arith.constant 0 : index
    %c24 = arith.constant 24 : index
    %22 = vector.load %arg11[%c0_50, %c0_51, %c24] : memref<16x16x36xbf16, #tpu.memory_space<vmem>>, vector<16x16x4xbf16>
    tpu.vector_store %arg11[%c0_50, %c0_51, %c24], %21 {strides = array<i32>} : memref<16x16x36xbf16, #tpu.memory_space<vmem>>, vector<16x16x4xbf16>,
    %c2_52 = arith.constant 2 : index
    %c1_53 = arith.constant 1 : index
    %c0_54 = arith.constant 0 : index
    %23 = vector.load %arg9[%c2_52, %c1_53, %c0_54] : memref<18x18x4xbf16, #tpu.memory_space<vmem>>, vector<16x16x4xbf16>
    %c0_55 = arith.constant 0 : index
    %c0_56 = arith.constant 0 : index
    %c28 = arith.constant 28 : index
    %24 = vector.load %arg11[%c0_55, %c0_56, %c28] : memref<16x16x36xbf16, #tpu.memory_space<vmem>>, vector<16x16x4xbf16>
    tpu.vector_store %arg11[%c0_55, %c0_56, %c28], %23 {strides = array<i32>} : memref<16x16x36xbf16, #tpu.memory_space<vmem>>, vector<16x16x4xbf16>,
    %c2_57 = arith.constant 2 : index
    %c2_58 = arith.constant 2 : index
    %c0_59 = arith.constant 0 : index
    %25 = vector.load %arg9[%c2_57, %c2_58, %c0_59] : memref<18x18x4xbf16, #tpu.memory_space<vmem>>, vector<16x16x4xbf16>
    %c0_60 = arith.constant 0 : index
    %c0_61 = arith.constant 0 : index
    %c32 = arith.constant 32 : index
    %26 = vector.load %arg11[%c0_60, %c0_61, %c32] : memref<16x16x36xbf16, #tpu.memory_space<vmem>>, vector<16x16x4xbf16>
    tpu.vector_store %arg11[%c0_60, %c0_61, %c32], %25 {strides = array<i32>} : memref<16x16x36xbf16, #tpu.memory_space<vmem>>, vector<16x16x4xbf16>,
    %c0_62 = arith.constant 0 : index
    %c0_63 = arith.constant 0 : index
    %c0_64 = arith.constant 0 : index
    %27 = vector.load %arg11[%c0_62, %c0_63, %c0_64] : memref<16x16x36xbf16, #tpu.memory_space<vmem>>, vector<16x16x36xbf16>
    %28 = vector.shape_cast %27 : vector<16x16x36xbf16> to vector<256x36xbf16>
    %c0_65 = arith.constant 0 : index
    %c0_66 = arith.constant 0 : index
    %29 = vector.load %arg2[%c0_65, %c0_66] : memref<36x4xbf16, #tpu.memory_space<vmem>>, vector<36x4xbf16>
    %cst_67 = arith.constant dense<0.000000e+00> : vector<256x4xf32>
    %30 = tpu.matmul %28, %29, %cst_67 {dimension_numbers = #tpu.dot_dimension_numbers<[1], [0], [0], [1], [0, 0, 1, 1], [], []>} : vector<256x36xbf16>, vector<36x4xbf16>, vector<256x4xf32> -> vector<256x4xf32>
    %c0_68 = arith.constant 0 : index
    %c0_69 = arith.constant 0 : index
    %31 = vector.load %arg3[%c0_68, %c0_69] : memref<1x4xf32, #tpu.memory_space<vmem>>, vector<1x4xf32>
    %32 = vector.broadcast %31 : vector<1x4xf32> to vector<256x4xf32>
    %33 = arith.mulf %30, %32 : vector<256x4xf32>
    %c0_70 = arith.constant 0 : index
    %c0_71 = arith.constant 0 : index
    %34 = vector.load %arg4[%c0_70, %c0_71] : memref<1x4xf32, #tpu.memory_space<vmem>>, vector<1x4xf32>
    %35 = vector.broadcast %34 : vector<1x4xf32> to vector<256x4xf32>
    %36 = arith.addf %33, %35 : vector<256x4xf32>
    %cst_72 = arith.constant 0.000000e+00 : f32
    %37 = vector.broadcast %cst_72 : f32 to vector<256x4xf32>
    %38 = arith.maximumf %36, %37 : vector<256x4xf32>
    %cst_73 = arith.constant 0.000000e+00 : bf16
    %39 = vector.broadcast %cst_73 : bf16 to vector<1x18x4xbf16>
    %cst_74 = arith.constant 0.000000e+00 : bf16
    %40 = vector.broadcast %cst_74 : bf16 to vector<18x1x4xbf16>
    %c0_75 = arith.constant 0 : index
    %c0_76 = arith.constant 0 : index
    %c0_77 = arith.constant 0 : index
    %41 = vector.load %arg10[%c0_75, %c0_76, %c0_77] : memref<18x18x4xbf16, #tpu.memory_space<vmem>>, vector<1x18x4xbf16>
    tpu.vector_store %arg10[%c0_75, %c0_76, %c0_77], %39 {strides = array<i32>} : memref<18x18x4xbf16, #tpu.memory_space<vmem>>, vector<1x18x4xbf16>,
    %c17_78 = arith.constant 17 : index
    %c0_79 = arith.constant 0 : index
    %c0_80 = arith.constant 0 : index
    %42 = vector.load %arg10[%c17_78, %c0_79, %c0_80] : memref<18x18x4xbf16, #tpu.memory_space<vmem>>, vector<1x18x4xbf16>
    tpu.vector_store %arg10[%c17_78, %c0_79, %c0_80], %39 {strides = array<i32>} : memref<18x18x4xbf16, #tpu.memory_space<vmem>>, vector<1x18x4xbf16>,
    %c0_81 = arith.constant 0 : index
    %c0_82 = arith.constant 0 : index
    %c0_83 = arith.constant 0 : index
    %43 = vector.load %arg10[%c0_81, %c0_82, %c0_83] : memref<18x18x4xbf16, #tpu.memory_space<vmem>>, vector<18x1x4xbf16>
    tpu.vector_store %arg10[%c0_81, %c0_82, %c0_83], %40 {strides = array<i32>} : memref<18x18x4xbf16, #tpu.memory_space<vmem>>, vector<18x1x4xbf16>,
    %c0_84 = arith.constant 0 : index
    %c17_85 = arith.constant 17 : index
    %c0_86 = arith.constant 0 : index
    %44 = vector.load %arg10[%c0_84, %c17_85, %c0_86] : memref<18x18x4xbf16, #tpu.memory_space<vmem>>, vector<18x1x4xbf16>
    tpu.vector_store %arg10[%c0_84, %c17_85, %c0_86], %40 {strides = array<i32>} : memref<18x18x4xbf16, #tpu.memory_space<vmem>>, vector<18x1x4xbf16>,
    %45 = vector.shape_cast %38 : vector<256x4xf32> to vector<16x16x4xf32>
    %46 = arith.truncf %45 : vector<16x16x4xf32> to vector<16x16x4xbf16>
    %c1_87 = arith.constant 1 : index
    %c1_88 = arith.constant 1 : index
    %c0_89 = arith.constant 0 : index
    %47 = vector.load %arg10[%c1_87, %c1_88, %c0_89] : memref<18x18x4xbf16, #tpu.memory_space<vmem>>, vector<16x16x4xbf16>
    tpu.vector_store %arg10[%c1_87, %c1_88, %c0_89], %46 {strides = array<i32>} : memref<18x18x4xbf16, #tpu.memory_space<vmem>>, vector<16x16x4xbf16>,
    %c0_90 = arith.constant 0 : index
    %c0_91 = arith.constant 0 : index
    %c0_92 = arith.constant 0 : index
    %48 = vector.load %arg10[%c0_90, %c0_91, %c0_92] : memref<18x18x4xbf16, #tpu.memory_space<vmem>>, vector<16x16x4xbf16>
    %c0_93 = arith.constant 0 : index
    %c0_94 = arith.constant 0 : index
    %c0_95 = arith.constant 0 : index
    %49 = vector.load %arg12[%c0_93, %c0_94, %c0_95] : memref<16x16x36xbf16, #tpu.memory_space<vmem>>, vector<16x16x4xbf16>
    tpu.vector_store %arg12[%c0_93, %c0_94, %c0_95], %48 {strides = array<i32>} : memref<16x16x36xbf16, #tpu.memory_space<vmem>>, vector<16x16x4xbf16>,
    %c0_96 = arith.constant 0 : index
    %c1_97 = arith.constant 1 : index
    %c0_98 = arith.constant 0 : index
    %50 = vector.load %arg10[%c0_96, %c1_97, %c0_98] : memref<18x18x4xbf16, #tpu.memory_space<vmem>>, vector<16x16x4xbf16>
    %c0_99 = arith.constant 0 : index
    %c0_100 = arith.constant 0 : index
    %c4_101 = arith.constant 4 : index
    %51 = vector.load %arg12[%c0_99, %c0_100, %c4_101] : memref<16x16x36xbf16, #tpu.memory_space<vmem>>, vector<16x16x4xbf16>
    tpu.vector_store %arg12[%c0_99, %c0_100, %c4_101], %50 {strides = array<i32>} : memref<16x16x36xbf16, #tpu.memory_space<vmem>>, vector<16x16x4xbf16>,
    %c0_102 = arith.constant 0 : index
    %c2_103 = arith.constant 2 : index
    %c0_104 = arith.constant 0 : index
    %52 = vector.load %arg10[%c0_102, %c2_103, %c0_104] : memref<18x18x4xbf16, #tpu.memory_space<vmem>>, vector<16x16x4xbf16>
    %c0_105 = arith.constant 0 : index
    %c0_106 = arith.constant 0 : index
    %c8_107 = arith.constant 8 : index
    %53 = vector.load %arg12[%c0_105, %c0_106, %c8_107] : memref<16x16x36xbf16, #tpu.memory_space<vmem>>, vector<16x16x4xbf16>
    tpu.vector_store %arg12[%c0_105, %c0_106, %c8_107], %52 {strides = array<i32>} : memref<16x16x36xbf16, #tpu.memory_space<vmem>>, vector<16x16x4xbf16>,
    %c1_108 = arith.constant 1 : index
    %c0_109 = arith.constant 0 : index
    %c0_110 = arith.constant 0 : index
    %54 = vector.load %arg10[%c1_108, %c0_109, %c0_110] : memref<18x18x4xbf16, #tpu.memory_space<vmem>>, vector<16x16x4xbf16>
    %c0_111 = arith.constant 0 : index
    %c0_112 = arith.constant 0 : index
    %c12_113 = arith.constant 12 : index
    %55 = vector.load %arg12[%c0_111, %c0_112, %c12_113] : memref<16x16x36xbf16, #tpu.memory_space<vmem>>, vector<16x16x4xbf16>
    tpu.vector_store %arg12[%c0_111, %c0_112, %c12_113], %54 {strides = array<i32>} : memref<16x16x36xbf16, #tpu.memory_space<vmem>>, vector<16x16x4xbf16>,
    %c1_114 = arith.constant 1 : index
    %c1_115 = arith.constant 1 : index
    %c0_116 = arith.constant 0 : index
    %56 = vector.load %arg10[%c1_114, %c1_115, %c0_116] : memref<18x18x4xbf16, #tpu.memory_space<vmem>>, vector<16x16x4xbf16>
    %c0_117 = arith.constant 0 : index
    %c0_118 = arith.constant 0 : index
    %c16_119 = arith.constant 16 : index
    %57 = vector.load %arg12[%c0_117, %c0_118, %c16_119] : memref<16x16x36xbf16, #tpu.memory_space<vmem>>, vector<16x16x4xbf16>
    tpu.vector_store %arg12[%c0_117, %c0_118, %c16_119], %56 {strides = array<i32>} : memref<16x16x36xbf16, #tpu.memory_space<vmem>>, vector<16x16x4xbf16>,
    %c1_120 = arith.constant 1 : index
    %c2_121 = arith.constant 2 : index
    %c0_122 = arith.constant 0 : index
    %58 = vector.load %arg10[%c1_120, %c2_121, %c0_122] : memref<18x18x4xbf16, #tpu.memory_space<vmem>>, vector<16x16x4xbf16>
    %c0_123 = arith.constant 0 : index
    %c0_124 = arith.constant 0 : index
    %c20_125 = arith.constant 20 : index
    %59 = vector.load %arg12[%c0_123, %c0_124, %c20_125] : memref<16x16x36xbf16, #tpu.memory_space<vmem>>, vector<16x16x4xbf16>
    tpu.vector_store %arg12[%c0_123, %c0_124, %c20_125], %58 {strides = array<i32>} : memref<16x16x36xbf16, #tpu.memory_space<vmem>>, vector<16x16x4xbf16>,
    %c2_126 = arith.constant 2 : index
    %c0_127 = arith.constant 0 : index
    %c0_128 = arith.constant 0 : index
    %60 = vector.load %arg10[%c2_126, %c0_127, %c0_128] : memref<18x18x4xbf16, #tpu.memory_space<vmem>>, vector<16x16x4xbf16>
    %c0_129 = arith.constant 0 : index
    %c0_130 = arith.constant 0 : index
    %c24_131 = arith.constant 24 : index
    %61 = vector.load %arg12[%c0_129, %c0_130, %c24_131] : memref<16x16x36xbf16, #tpu.memory_space<vmem>>, vector<16x16x4xbf16>
    tpu.vector_store %arg12[%c0_129, %c0_130, %c24_131], %60 {strides = array<i32>} : memref<16x16x36xbf16, #tpu.memory_space<vmem>>, vector<16x16x4xbf16>,
    %c2_132 = arith.constant 2 : index
    %c1_133 = arith.constant 1 : index
    %c0_134 = arith.constant 0 : index
    %62 = vector.load %arg10[%c2_132, %c1_133, %c0_134] : memref<18x18x4xbf16, #tpu.memory_space<vmem>>, vector<16x16x4xbf16>
    %c0_135 = arith.constant 0 : index
    %c0_136 = arith.constant 0 : index
    %c28_137 = arith.constant 28 : index
    %63 = vector.load %arg12[%c0_135, %c0_136, %c28_137] : memref<16x16x36xbf16, #tpu.memory_space<vmem>>, vector<16x16x4xbf16>
    tpu.vector_store %arg12[%c0_135, %c0_136, %c28_137], %62 {strides = array<i32>} : memref<16x16x36xbf16, #tpu.memory_space<vmem>>, vector<16x16x4xbf16>,
    %c2_138 = arith.constant 2 : index
    %c2_139 = arith.constant 2 : index
    %c0_140 = arith.constant 0 : index
    %64 = vector.load %arg10[%c2_138, %c2_139, %c0_140] : memref<18x18x4xbf16, #tpu.memory_space<vmem>>, vector<16x16x4xbf16>
    %c0_141 = arith.constant 0 : index
    %c0_142 = arith.constant 0 : index
    %c32_143 = arith.constant 32 : index
    %65 = vector.load %arg12[%c0_141, %c0_142, %c32_143] : memref<16x16x36xbf16, #tpu.memory_space<vmem>>, vector<16x16x4xbf16>
    tpu.vector_store %arg12[%c0_141, %c0_142, %c32_143], %64 {strides = array<i32>} : memref<16x16x36xbf16, #tpu.memory_space<vmem>>, vector<16x16x4xbf16>,
    %c0_144 = arith.constant 0 : index
    %c0_145 = arith.constant 0 : index
    %c0_146 = arith.constant 0 : index
    %66 = vector.load %arg12[%c0_144, %c0_145, %c0_146] : memref<16x16x36xbf16, #tpu.memory_space<vmem>>, vector<16x16x36xbf16>
    %67 = vector.shape_cast %66 : vector<16x16x36xbf16> to vector<256x36xbf16>
    %c0_147 = arith.constant 0 : index
    %c0_148 = arith.constant 0 : index
    %68 = vector.load %arg5[%c0_147, %c0_148] : memref<36x4xbf16, #tpu.memory_space<vmem>>, vector<36x4xbf16>
    %cst_149 = arith.constant dense<0.000000e+00> : vector<256x4xf32>
    %69 = tpu.matmul %67, %68, %cst_149 {dimension_numbers = #tpu.dot_dimension_numbers<[1], [0], [0], [1], [0, 0, 1, 1], [], []>} : vector<256x36xbf16>, vector<36x4xbf16>, vector<256x4xf32> -> vector<256x4xf32>
    %c0_150 = arith.constant 0 : index
    %c0_151 = arith.constant 0 : index
    %c0_152 = arith.constant 0 : index
    %c0_153 = arith.constant 0 : index
    %70 = vector.load %arg1[%c0_150, %c0_151, %c0_152, %c0_153] : memref<1x16x16x4xbf16, #tpu.memory_space<vmem>>, vector<1x16x16x4xbf16>
    %71 = vector.shape_cast %70 : vector<1x16x16x4xbf16> to vector<16x16x4xbf16>
    %72 = vector.shape_cast %71 : vector<16x16x4xbf16> to vector<256x4xbf16>
    %73 = arith.extf %72 : vector<256x4xbf16> to vector<256x4xf32>
    %c0_154 = arith.constant 0 : index
    %c0_155 = arith.constant 0 : index
    %74 = vector.load %arg6[%c0_154, %c0_155] : memref<1x4xf32, #tpu.memory_space<vmem>>, vector<1x4xf32>
    %75 = vector.broadcast %74 : vector<1x4xf32> to vector<256x4xf32>
    %76 = arith.mulf %69, %75 : vector<256x4xf32>
    %c0_156 = arith.constant 0 : index
    %c0_157 = arith.constant 0 : index
    %77 = vector.load %arg7[%c0_156, %c0_157] : memref<1x4xf32, #tpu.memory_space<vmem>>, vector<1x4xf32>
    %78 = vector.broadcast %77 : vector<1x4xf32> to vector<256x4xf32>
    %79 = arith.addf %76, %78 : vector<256x4xf32>
    %80 = arith.addf %79, %73 : vector<256x4xf32>
    %cst_158 = arith.constant 0.000000e+00 : f32
    %81 = vector.broadcast %cst_158 : f32 to vector<256x4xf32>
    %82 = arith.maximumf %80, %81 : vector<256x4xf32>
    %83 = vector.shape_cast %82 : vector<256x4xf32> to vector<1x16x16x4xf32>
    %c0_159 = arith.constant 0 : index
    %c0_160 = arith.constant 0 : index
    %c0_161 = arith.constant 0 : index
    %c0_162 = arith.constant 0 : index
    %84 = vector.load %arg8[%c0_159, %c0_160, %c0_161, %c0_162] : memref<1x16x16x4xf32, #tpu.memory_space<vmem>>, vector<1x16x16x4xf32>
    tpu.vector_store %arg8[%c0_159, %c0_160, %c0_161, %c0_162], %83 {strides = array<i32>} : memref<1x16x16x4xf32, #tpu.memory_space<vmem>>, vector<1x16x16x4xf32>,
    return
  }
  func.func @transform_0(%arg0: i32) -> (i32, i32, i32, i32) {
    %c0_i32 = arith.constant 0 : i32
    %c0_i32_0 = arith.constant 0 : i32
    %c0_i32_1 = arith.constant 0 : i32
    %c0_i32_2 = arith.constant 0 : i32
    return %arg0, %c0_i32, %c0_i32_0, %c0_i32_1 : i32, i32, i32, i32
  }
  func.func @transform_1(%arg0: i32) -> (i32, i32) {
    %c0_i32 = arith.constant 0 : i32
    %c0_i32_0 = arith.constant 0 : i32
    %c0_i32_1 = arith.constant 0 : i32
    return %c0_i32, %c0_i32_0 : i32, i32
  }
  func.func @transform_2(%arg0: i32) -> (i32, i32) {
    %c0_i32 = arith.constant 0 : i32
    %c0_i32_0 = arith.constant 0 : i32
    %c0_i32_1 = arith.constant 0 : i32
    return %c0_i32, %c0_i32_0 : i32, i32
  }
  func.func @transform_3(%arg0: i32) -> (i32, i32) {
    %c0_i32 = arith.constant 0 : i32
    %c0_i32_0 = arith.constant 0 : i32
    %c0_i32_1 = arith.constant 0 : i32
    return %c0_i32, %c0_i32_0 : i32, i32
  }
  func.func @transform_4(%arg0: i32) -> (i32, i32) {
    %c0_i32 = arith.constant 0 : i32
    %c0_i32_0 = arith.constant 0 : i32
    %c0_i32_1 = arith.constant 0 : i32
    return %c0_i32, %c0_i32_0 : i32, i32
  }
  func.func @transform_5(%arg0: i32) -> (i32, i32) {
    %c0_i32 = arith.constant 0 : i32
    %c0_i32_0 = arith.constant 0 : i32
    %c0_i32_1 = arith.constant 0 : i32
    return %c0_i32, %c0_i32_0 : i32, i32
  }
  func.func @transform_6(%arg0: i32) -> (i32, i32) {
    %c0_i32 = arith.constant 0 : i32
    %c0_i32_0 = arith.constant 0 : i32
    %c0_i32_1 = arith.constant 0 : i32
    return %c0_i32, %c0_i32_0 : i32, i32
  }
  func.func @transform_7(%arg0: i32) -> (i32, i32, i32, i32) {
    %c0_i32 = arith.constant 0 : i32
    %c0_i32_0 = arith.constant 0 : i32
    %c0_i32_1 = arith.constant 0 : i32
    %c0_i32_2 = arith.constant 0 : i32
    return %arg0, %c0_i32, %c0_i32_0, %c0_i32_1 : i32, i32, i32, i32
  }
}

</mosaic_0001>

<bundles_post_ra>
// kernel: basic_block_forward.1
= control target key start
LH: loop header
LB: loop body
LE: loop exit
PB: predicated region body
PF: predicated region fallthrough
CT: control target
= control target key end

     0   :  { %s9165_s24 = smov 0   ;;  %s12459_s0 = inlined_call_operand.vmem [shape: bf16[2,16,16,4], index: 0, kind: input, shape index: {}]   ;;  %s12460_s1 = inlined_call_operand.vmem [shape: bf16[36,4], index: 1, kind: input, shape index: {}]   ;;  %s12461_s2 = inlined_call_operand.vmem [shape: f32[1,4], index: 2, kind: input, shape index: {}]   ;;  %s12462_s3 = inlined_call_operand.vmem [shape: f32[1,4], index: 3, kind: input, shape index: {}]   ;;  %s12463_s4 = inlined_call_operand.vmem [shape: bf16[36,4], index: 4, kind: input, shape index: {}]   ;;  %s12464_s5 = inlined_call_operand.vmem [shape: f32[1,4], index: 5, kind: input, shape index: {}]   ;;  %s12465_s6 = inlined_call_operand.vmem [shape: f32[1,4], index: 6, kind: input, shape index: {}]   ;;  %s12466_s7 = inlined_call_operand.vmem [shape: f32[2,16,16,4], index: 7, kind: output, shape index: {}]  }
   0x1 LB: > { %s8677_s25 = sadd.s32 4294967295, %s9114_s24   ;;  %p8681_p0 = scmp.ge.s32.totalorder %s9114_s24, 1  ;;  %s9114_s24 = sphi %s9165_s24, %s17_s24  }
   0x2   : > { %p237_p1 = scmp.lt.s32.totalorder %s9114_s24, 3 }
   0x4   : > { %p238_p2 = pnand %p8681_p0, %p237_p1 }
   0x5   : > { %p269_p3 = scmp.lt.s32.totalorder (!%p238_p2), %s8677_s25, 1  ;;  %s9117_s30 = smov (!%p238_p2), 4  }
   0x6   : > { %241 = sbr.rel (%p238_p2) target bundleno = 1980 (0x7bc), region = 48  ;;  %s9118_s8 = smov (!%p238_p2), 8  }
   0x7   : > { %s9119_s9 = smov (!%p238_p2), 12   ;;  %s9120_s10 = smov (!%p238_p2), 16  }
   0x8   : > { %s9121_s11 = smov (!%p238_p2), 20   ;;  %s9122_s12 = smov (!%p238_p2), 24  }
   0x9   : > { %s9123_s13 = smov (!%p238_p2), 28   ;;  %s9124_s14 = smov (!%p238_p2), 32  }
   0xb   : > { %vm280_vm0 = vcmask 27648   ;;  %vm283_vm1 = vcmask 24576   ;;  %vm290_vm2 = vsmask.f32 256  ;;  %v9116_v0 = vmov 0   ;;  %s12482_s25 = smov (!%p269_p3, %s8677_s25), 1 }
   0xc   : > { %282 = vst.msk [vmem:[#allocation2 + $0x4] sm:$0xf] %vm280_vm0, %v9116_v0  ;;  %vm9177_vm3 = vmand %vm283_vm1, %vm290_vm2  ;;  %vm346_vm4 = vsmask.f32 7938  ;;  %v295_v2 = vld [vmem:[#allocation2 + $0xc] sm:$0x1] }
   0xd   : > { %284 = vst.msk [vmem:[#allocation2 + $0x8] sm:$0x1] %vm283_vm1, %v9116_v0  ;;  %v301_v3 = vld [vmem:[#allocation2 + $0x24] sm:$0x1]  ;;  %v296_v4 = vsel %vm9177_vm3, 0, %v295_v2  ;;  %vm9190_vm6 = vmand %vm283_vm1, %vm346_vm4  ;;  %s8960_s26 = sshll.u32 %s12482_s25, 7 }
   0xe   : > { %281 = vst.msk [vmem:[#allocation2] sm:$0xf] %vm280_vm0, %v9116_v0  ;;  %vm434_vm5 = vsmask.f32 4368  ;;  %v351_v5 = vld [vmem:[#allocation2 + $0x14] sm:$0x1]  ;;  %s9202_s29 = scalar_lea.vmem %s12459_s0, %s8960_s26  ;;  %vm9247_vm11 = vmand %vm280_vm0, %vm346_vm4 }
   0xf   : > { %286 = vst.msk [vmem:[#allocation2 + $0xcc] sm:$0xf] %vm280_vm0, %v9116_v0  ;;  %v302_v7 = vsel %vm9177_vm3, 0, %v301_v3  ;;  %v360_v8 = vld [vmem:[#allocation2 + $0x38] sm:$0x1]  ;;  %v352_v9 = vsel %vm9190_vm6, 0, %v351_v5  ;;  %vm9228_vm9 = vmor %vm290_vm2, %vm434_vm5 }
  0x10   : > { %287 = vst.msk [vmem:[#allocation2 + $0xd0] sm:$0xf] %vm280_vm0, %v9116_v0  ;;  %v361_v10 = vsel %vm9190_vm6, 0, %v360_v8  ;;  %v357_v11 = vld [vmem:[#allocation2 + $0x2c] sm:$0x1]  ;;  %vm1595_vm12 = vcmask 1042432  }
  0x11   : > { %288 = vst.msk [vmem:[#allocation2 + $0xd4] sm:$0x1] %vm283_vm1, %v9116_v0  ;;  %vm983_vm7 = vsmask.f32 3328  ;;  %vm984_vm8 = vsmask.f32 7440 }
  0x12   : > { %4400 = vst.msk [vmem:[#allocation3] sm:$0xf] %vm280_vm0, %v9116_v0  ;;  %v402_v13 = vld [vmem:[%s9202_s29] sm:$0xf]  ;;  %v403_v24 = vld [vmem:[%s9202_s29 + $0x4] sm:$0xf]  ;;  %vm9239_vm10 = vmor %vm983_vm7, %vm984_vm8 }
  0x13   : > { %v936_v12 = vld [vmem:[#allocation2 + $0x4] sm:$0xf]  ;;  %4401 = vst.msk [vmem:[#allocation3 + $0x4] sm:$0xf] %vm280_vm0, %v9116_v0  ;;  %v437_v19 = vshrl.u32 %v402_v13, 16  ;;  %v440_v23 = vshll.u32 %v402_v13, 16 }
  0x14   : > { %v348_v14 = vld [vmem:[#allocation2 + $0x8] sm:$0x1]  ;;  %v996_v15 = vshll.u32 %v936_v12, 16  ;;  %v1000_v16 = vshrl.u32 %v936_v12, 16  ;;  %4402 = vst.msk [vmem:[#allocation3 + $0x8] sm:$0x1] %vm283_vm1, %v9116_v0 }
  0x15   : > { %v349_v17 = vsel %vm9190_vm6, 0, %v348_v14  ;;  %4404 = vst.msk [vmem:[#allocation3 + $0xcc] sm:$0xf] %vm280_vm0, %v9116_v0  ;;  %v292_v18 = vld [vmem:[#allocation2] sm:$0x1]  ;;  %v439_v25 = vrot.slane %v437_v19, 7 }
  0x16   : > { %350 = vst [vmem:[#allocation2 + $0x8] sm:$0x1] %v349_v17  ;;  %v9214_v20 = vrot.slane %v996_v15, 5  ;;  %v1002_v21 = vrot.slane %v1000_v16, 4  ;;  %v293_v22 = vsel %vm9177_vm3, 0, %v292_v18  ;;  %v358_v26 = vsel %vm9190_vm6, 0, %v357_v11 }
  0x17   : > { %4405 = vst.msk [vmem:[#allocation3 + $0xd0] sm:$0xf] %vm280_vm0, %v9116_v0  ;;  %v445_v28 = vshrl.u32 %v403_v24, 16  ;;  %v448_v29 = vshll.u32 %v403_v24, 16  ;;  %v406_v30 = vld [vmem:[%s9202_s29 + $0x10] sm:$0xf]  ;;  %v442_v47 = vor.u32 %v440_v23, %v439_v25 }
  0x18   : > { %v1003_v27 = vor.u32 %v1002_v21, %v9214_v20  ;;  %4406 = vst.msk [vmem:[#allocation3 + $0xd4] sm:$0x1] %vm283_vm1, %v9116_v0  ;;  %v443_v31 = vrot.slane %v439_v25, 4  ;;  %v407_v32 = vld [vmem:[%s9202_s29 + $0x14] sm:$0xf]  ;;  %v471_v33 = vshrl.u32 %v406_v30, 16 }
  0x19   : > { %294 = vst [vmem:[#allocation2] sm:$0x1] %v293_v22  ;;  %v447_v35 = vrot.slane %v445_v28, 7  ;;  %v474_v36 = vshll.u32 %v406_v30, 16  ;;  %v479_v37 = vshrl.u32 %v407_v32, 16  ;;  %v482_v40 = vshll.u32 %v407_v32, 16 }
  0x1a   : > { %v1004_v34 = vrot.slane %v1003_v27, 4  ;;  %297 = vst [vmem:[#allocation2 + $0xc] sm:$0x1] %v296_v4  ;;  %v473_v39 = vrot.slane %v471_v33, 7  ;;  %v9233_v41 = vld [vmem:[%s9202_s29 + $0x18] sm:$0xf] }
  0x1b   : > { %303 = vst [vmem:[#allocation2 + $0x24] sm:$0x1] %v302_v7  ;;  %v450_v42 = vor.u32 %v448_v29, %v447_v35  ;;  %v481_v43 = vrot.slane %v479_v37, 7  ;;  %v452_v44 = vrot.slane %v447_v35, 4  ;;  %v409_v45 = vld [vmem:[%s9202_s29 + $0x1c] sm:$0xf] }
  0x1c   : > { %353 = vst [vmem:[#allocation2 + $0x14] sm:$0x1] %v352_v9  ;;  %v477_v48 = vrot.slane %v473_v39, 4  ;;  %v488_v49 = vshrl.u32 %v9233_v41, 16  ;;  %v476_v53 = vor.u32 %v474_v36, %v473_v39  ;;  %v310_v55 = vld [vmem:[#allocation2 + $0x48] sm:$0x1] }
  0x1d   : > { %v937_v46 = vld [vmem:[#allocation2 + $0x8] sm:$0x1]  ;;  %362 = vst [vmem:[#allocation2 + $0x38] sm:$0x1] %v361_v10  ;;  %v451_v52 = vsel %vm9228_vm9, %v443_v31, %v450_v42  ;;  %v484_v54 = vor.u32 %v482_v40, %v481_v43  ;;  %v496_v58 = vshrl.u32 %v409_v45, 16  ;;  %v499_v59 = vshll.u32 %v409_v45, 16 }
  0x1e   : > { %v1006_v51 = vshll.u32 %v937_v46, 16  ;;  %359 = vst [vmem:[#allocation2 + $0x2c] sm:$0x1] %v358_v26  ;;  %v9252_v57 = vrot.slane %v488_v49, 7  ;;  %v486_v60 = vrot.slane %v481_v43, 4  ;;  %v311_v0 = vsel %vm9177_vm3, 0, %v310_v55 }
  0x1f   : > { %762 = vst.msk [vmem:[#allocation2 + $0x10] sm:$0xf] %vm280_vm0, %v451_v52  ;;  %v485_v63 = vsel %vm9228_vm9, %v477_v48, %v484_v54  ;;  %v412_v2 = vld [vmem:[%s9202_s29 + $0x28] sm:$0xf]  ;;  %v498_v11 = vrot.slane %v496_v58, 7  ;;  %vm1596_vm13 = vcmask 1046532  }
  0x20   : > { %v1008_v61 = vrot.slane %v1006_v51, 5  ;;  %v935_v62 = vld [vmem:[#allocation2] sm:$0xf]  ;;  %776 = vst.msk [vmem:[#allocation2 + $0x28] sm:$0xf] %vm280_vm0, %v485_v63  ;;  %v494_v10 = vrot.slane %v9252_v57, 4  ;;  %vm9656_vm14 = vmor %vm1595_vm12, %vm1596_vm13 }
  0x21   : > { %v987_v3 = vshrl.u32 %v935_v62, 16  ;;  %v990_v4 = vshll.u32 %v935_v62, 16  ;;  %v759_v5 = vld [vmem:[#allocation2 + $0xc] sm:$0xf]  ;;  %312 = vst [vmem:[#allocation2 + $0x48] sm:$0x1] %v311_v0  ;;  %v501_v17 = vor.u32 %v499_v59, %v498_v11 }
  0x22   : > { %v1009_v7 = vsel %vm9239_vm10, %v1004_v34, %v1008_v61  ;;  %v760_v8 = vsel %vm9247_vm11, %v442_v47, %v759_v5  ;;  %v773_v9 = vld [vmem:[#allocation2 + $0x24] sm:$0xf]  ;;  %v503_v18 = vrot.slane %v498_v11, 4  ;;  %v522_v21 = vshrl.u32 %v412_v2, 16  ;;  %v413_v24 = vld [vmem:[%s9202_s29 + $0x2c] sm:$0xf] }
  0x23   : > { %1372 = vrot.lane.b32.xlu0 %v1009_v7, %s9117_s30  ;;  %v989_v12 = vrot.slane %v987_v3, 4  ;;  %v992_v13 = vrot.slane %v990_v4, 5  ;;  %761 = vst [vmem:[#allocation2 + $0xc] sm:$0xf] %v760_v8  ;;  %v774_v14 = vsel %vm9247_vm11, %v476_v53, %v773_v9  ;;  %v763_v15 = vld [vmem:[#allocation2 + $0x14] sm:$0x1]  ;;  %v502_v26 = vsel %vm9228_vm9, %v494_v10, %v501_v17 }
  0x24   : > { %775 = vst [vmem:[#allocation2 + $0x24] sm:$0xf] %v774_v14  ;;  %v764_v16 = vsel %vm9177_vm3, %v452_v44, %v763_v15  ;;  %v784_v19 = vld [vmem:[#allocation2 + $0x38] sm:$0x1]  ;;  %v524_v29 = vrot.slane %v522_v21, 7  ;;  %v525_v33 = vshll.u32 %v412_v2, 16 }
  0x25   : > { %v993_v22 = vor.u32 %v992_v13, %v989_v12  ;;  %765 = vst [vmem:[#allocation2 + $0x14] sm:$0x1] %v764_v16  ;;  %v777_v23 = vld [vmem:[#allocation2 + $0x2c] sm:$0x1]  ;;  %v785_v27 = vsel %vm9177_vm3, %v503_v18, %v784_v19  ;;  %v530_v35 = vshrl.u32 %v413_v24, 16  ;;  %v533_v46 = vshll.u32 %v413_v24, 16 }
  0x26   : > { %v939_v25 = vld [vmem:[#allocation2 + $0x10] sm:$0xf]  ;;  %v778_v28 = vsel %vm9177_vm3, %v486_v60, %v777_v23  ;;  %783 = vst.msk [vmem:[#allocation2 + $0x34] sm:$0xf] %vm280_vm0, %v502_v26  ;;  %v528_v40 = vrot.slane %v524_v29, 4  ;;  %v527_v51 = vor.u32 %v525_v33, %v524_v29  ;;  %vm1466_vm15 = vcmask 60448  }
  0x27   : > { %v994_v30 = vrot.slane %v993_v22, 4  ;;  %v1020_v31 = vshll.u32 %v939_v25, 16  ;;  %v1024_v32 = vshrl.u32 %v939_v25, 16  ;;  %v945_v34 = vld [vmem:[#allocation2 + $0x28] sm:$0xf]  ;;  %v9281_v45 = vrot.slane %v530_v35, 7 }
  0x28   : > { %786 = vst [vmem:[#allocation2 + $0x38] sm:$0x1] %v785_v27  ;;  %v1068_v39 = vshll.u32 %v945_v34, 16  ;;  %v1072_v44 = vshrl.u32 %v945_v34, 16  ;;  %v794_v62 = vld [vmem:[#allocation2 + $0x48] sm:$0xf] }
  0x29   : > { %v999_v36 = vsel %vm9239_vm10, %v994_v30, %v9214_v20  ;;  %v1026_v37 = vrot.slane %v1024_v32, 4  ;;  %779 = vst [vmem:[#allocation2 + $0x2c] sm:$0x1] %v778_v28  ;;  %v1022_v43 = vrot.slane %v1020_v31, 5  ;;  %v535_v55 = vor.u32 %v533_v46, %v9281_v45  ;;  %v298_v63 = vld [vmem:[#allocation2 + $0x18] sm:$0x1] }
  0x2a   : > { %v938_v42 = vld [vmem:[#allocation2 + $0xc] sm:$0xf]  ;;  %v1070_v60 = vrot.slane %v1068_v39, 5  ;;  %v1074_v61 = vrot.slane %v1072_v44, 4  ;;  %v404_v11 = vld [vmem:[%s9202_s29 + $0x8] sm:$0xf]  ;;  %v795_v16 = vsel %vm9247_vm11, %v527_v51, %v794_v62 }
  0x2b   : > { %1370 = vrot.lane.b32.xlu0 %v999_v36, %s9117_s30  ;;  %v1011_v47 = vshrl.u32 %v938_v42, 16  ;;  %v1014_v48 = vshll.u32 %v938_v42, 16  ;;  %v944_v49 = vld [vmem:[#allocation2 + $0x24] sm:$0xf]  ;;  %v1027_v20 = vor.u32 %v1026_v37, %v1022_v43  ;;  %v536_v5 = vsel %vm9228_vm9, %v528_v40, %v535_v55  ;;  %796 = vst [vmem:[#allocation2 + $0x48] sm:$0xf] %v795_v16 }
  0x2c   : > { %v1059_v52 = vshrl.u32 %v944_v49, 16  ;;  %v1062_v53 = vshll.u32 %v944_v49, 16  ;;  %v940_v54 = vld [vmem:[#allocation2 + $0x14] sm:$0x1]  ;;  %797 = vst.msk [vmem:[#allocation2 + $0x4c] sm:$0xf] %vm280_vm0, %v536_v5  ;;  %v1075_v21 = vor.u32 %v1074_v61, %v1070_v60 }
  0x2d   : > { %v1013_v58 = vrot.slane %v1011_v47, 4  ;;  %v1016_v59 = vrot.slane %v1014_v48, 5  ;;  %v1030_v3 = vshll.u32 %v940_v54, 16  ;;  %v948_v4 = vld [vmem:[#allocation2 + $0x34] sm:$0xf]  ;;  %v9288_v13 = vrot.slane %v1027_v20, 4 }
  0x2e   : > { %v1061_v0 = vrot.slane %v1059_v52, 4  ;;  %v1064_v2 = vrot.slane %v1062_v53, 5  ;;  %v1092_v9 = vshll.u32 %v948_v4, 16  ;;  %v1096_v10 = vshrl.u32 %v948_v4, 16  ;;  %v405_v26 = vld [vmem:[%s9202_s29 + $0xc] sm:$0xf] }
  0x2f   : > { %v1017_v7 = vor.u32 %v1016_v59, %v1013_v58  ;;  %v949_v8 = vld [vmem:[#allocation2 + $0x38] sm:$0x1]  ;;  %v1032_v23 = vrot.slane %v1030_v3, 5  ;;  %v299_v25 = vsel %vm9177_vm3, 0, %v298_v63  ;;  %v454_v29 = vshrl.u32 %v404_v11, 16  ;;  %s8961_s27 = sshll.u32 %s12482_s25, 8 }
  0x30   : > { %v1065_v12 = vor.u32 %v1064_v2, %v1061_v0  ;;  %v1102_v14 = vshll.u32 %v949_v8, 16  ;;  %v946_v15 = vld [vmem:[#allocation2 + $0x2c] sm:$0x1]  ;;  %v9293_v18 = vrot.slane %v1092_v9, 5  ;;  %v1098_v19 = vrot.slane %v1096_v10, 4  ;;  %s12264_s15 = scalar_lea.vmem %s12466_s7, %s8961_s27 }
  0x31   : > { %v1018_v17 = vrot.slane %v1017_v7, 4  ;;  %300 = vst [vmem:[#allocation2 + $0x18] sm:$0x1] %v299_v25  ;;  %v457_v30 = vshll.u32 %v404_v11, 16  ;;  %v307_v31 = vld [vmem:[#allocation2 + $0x3c] sm:$0x1]  ;;  %v1033_v49 = vsel %vm9239_vm10, %v9288_v13, %v1032_v23 }
  0x32   : > { %v1066_v22 = vrot.slane %v1065_v12, 4  ;;  %v1104_v24 = vrot.slane %v1102_v14, 5  ;;  %v1099_v28 = vor.u32 %v1098_v19, %v9293_v18  ;;  %v1078_v33 = vshll.u32 %v946_v15, 16  ;;  %v410_v36 = vld [vmem:[%s9202_s29 + $0x20] sm:$0xf] }
  0x33   : > { %v1023_v27 = vsel %vm9239_vm10, %v1018_v17, %v1022_v43  ;;  %v462_v34 = vshrl.u32 %v405_v26, 16  ;;  %v465_v35 = vshll.u32 %v405_v26, 16  ;;  %v456_v39 = vrot.slane %v454_v29, 7  ;;  %v411_v42 = vld [vmem:[%s9202_s29 + $0x24] sm:$0xf] }
  0x34   : > { %1374 = vrot.lane.b32.xlu1 %v1023_v27, %s9117_s30  ;;  %v1071_v32 = vsel %vm9239_vm10, %v1066_v22, %v1070_v60  ;;  %v1100_v37 = vrot.slane %v1099_v28, 4  ;;  %v308_v40 = vsel %vm9177_vm3, 0, %v307_v31  ;;  %v505_v43 = vshrl.u32 %v410_v36, 16  ;;  %v954_v51 = vld [vmem:[#allocation2 + $0x4c] sm:$0xf] }
  0x35   : > { %1382 = vrot.lane.b32.xlu0 %v1071_v32, %s9117_s30  ;;  %v9309_v44 = vrot.slane %v1075_v21, 4  ;;  %v9311_v46 = vrot.slane %v462_v34, 7  ;;  %309 = vst [vmem:[#allocation2 + $0x3c] sm:$0x1] %v308_v40  ;;  %v508_v47 = vshll.u32 %v410_v36, 16  ;;  %v513_v48 = vshrl.u32 %v411_v42, 16 }
  0x36   : > { %v459_v52 = vor.u32 %v457_v30, %v456_v39  ;;  %v460_v53 = vrot.slane %v456_v39, 4  ;;  %v507_v54 = vrot.slane %v505_v43, 7  ;;  %v369_v20 = vld [vmem:[#allocation2 + $0x5c] sm:$0x1]  ;;  %v1105_v55 = vsel %vm9239_vm10, %v1100_v37, %v1104_v24  ;;  %v953_v59 = vld [vmem:[#allocation2 + $0x48] sm:$0xf] }
  0x37   : > { %v1080_v58 = vrot.slane %v1078_v33, 5  ;;  %v467_v60 = vor.u32 %v465_v35, %v9311_v46  ;;  %v9319_v61 = vrot.slane %v513_v48, 7  ;;  %v1131_v62 = vshrl.u32 %v953_v59, 16  ;;  %v9322_v3 = vld [vmem:[%s9202_s29 + $0x30] sm:$0xf] }
  0x38   : > { %v1134_v63 = vshll.u32 %v953_v59, 16  ;;  %v1140_v0 = vshll.u32 %v954_v51, 16  ;;  %v510_v2 = vor.u32 %v508_v47, %v507_v54  ;;  %v766_v5 = vld [vmem:[#allocation2 + $0x18] sm:$0xf]  ;;  %v511_v7 = vrot.slane %v507_v54, 4 }
  0x39   : > { %v468_v4 = vsel %vm9228_vm9, %v460_v53, %v467_v60  ;;  %v516_v8 = vshll.u32 %v411_v42, 16  ;;  %v370_v9 = vsel %vm9190_vm6, 0, %v369_v20  ;;  %v1133_v10 = vrot.slane %v1131_v62, 4  ;;  %v415_v13 = vld [vmem:[%s9202_s29 + $0x34] sm:$0xf] }
  0x3a   : > { %v1136_v11 = vrot.slane %v1134_v63, 5  ;;  %v767_v12 = vsel %vm9247_vm11, %v459_v52, %v766_v5  ;;  %769 = vst.msk [vmem:[#allocation2 + $0x1c] sm:$0xf] %vm280_vm0, %v468_v4  ;;  %v1144_v14 = vshrl.u32 %v954_v51, 16  ;;  %v539_v16 = vshrl.u32 %v9322_v3, 16 }
  0x3b   : > { %768 = vst [vmem:[#allocation2 + $0x18] sm:$0xf] %v767_v12  ;;  %v518_v15 = vor.u32 %v516_v8, %v9319_v61  ;;  %v547_v17 = vshrl.u32 %v415_v13, 16  ;;  %v1142_v21 = vrot.slane %v1140_v0, 5  ;;  %v550_v23 = vshll.u32 %v415_v13, 16 }
  0x3c   : > { %1376 = vrot.lane.b32.xlu1 %v1033_v49, %s9117_s30  ;;  %v1137_v19 = vor.u32 %v1136_v11, %v1133_v10  ;;  %v787_v22 = vld [vmem:[#allocation2 + $0x3c] sm:$0xf]  ;;  %371 = vst [vmem:[#allocation2 + $0x5c] sm:$0x1] %v370_v9  ;;  %v9340_v26 = vrot.slane %v539_v16, 7  ;;  %v469_v32 = vrot.slane %v9311_v46, 4  ;;  %v1081_v39 = vsel %vm9239_vm10, %v9309_v44, %v1080_v58 }
  0x3d   : > { %1388 = vrot.lane.b32.xlu0 %v1105_v55, %s9117_s30  ;;  %v519_v24 = vsel %vm9228_vm9, %v511_v7, %v518_v15  ;;  %v788_v25 = vsel %vm9247_vm11, %v510_v2, %v787_v22  ;;  %v549_v27 = vrot.slane %v547_v17, 7  ;;  %v354_v28 = vld [vmem:[#allocation2 + $0x20] sm:$0x1]  ;;  %v366_v29 = vld [vmem:[#allocation2 + $0x50] sm:$0x1]  ;;  %v1146_v37 = vrot.slane %v1144_v14, 4 }
  0x3e   : > { %v1138_v30 = vrot.slane %v1137_v19, 4  ;;  %789 = vst [vmem:[#allocation2 + $0x3c] sm:$0xf] %v788_v25  ;;  %v355_v31 = vsel %vm9190_vm6, 0, %v354_v28  ;;  %v367_v33 = vsel %vm9190_vm6, 0, %v366_v29  ;;  %v545_v34 = vrot.slane %v9340_v26, 4 }
  0x3f   : > { %790 = vst.msk [vmem:[#allocation2 + $0x40] sm:$0xf] %vm280_vm0, %v519_v24  ;;  %v552_v35 = vor.u32 %v550_v23, %v549_v27  ;;  %v554_v36 = vrot.slane %v549_v27, 4  ;;  %v319_v40 = vld [vmem:[#allocation2 + $0x6c] sm:$0x1]  ;;  %v537_v55 = vrot.slane %v9281_v45, 4  ;;  %v1147_v58 = vor.u32 %v1146_v37, %v1142_v21 }
  0x40   : > { %356 = vst [vmem:[#allocation2 + $0x20] sm:$0x1] %v355_v31  ;;  %v418_v42 = vld [vmem:[%s9202_s29 + $0x40] sm:$0xf]  ;;  %v1143_v43 = vsel %vm9239_vm10, %v1138_v30, %v1142_v21  ;;  %v320_v48 = vsel %vm9177_vm3, 0, %v319_v40  ;;  %v491_v5 = vshll.u32 %v9233_v41, 16 }
  0x41   : > { %v942_v46 = vld [vmem:[#allocation2 + $0x1c] sm:$0xf]  ;;  %v553_v47 = vsel %vm9228_vm9, %v545_v34, %v552_v35  ;;  %368 = vst [vmem:[#allocation2 + $0x50] sm:$0x1] %v367_v33  ;;  %v573_v49 = vshrl.u32 %v418_v42, 16  ;;  %v576_v9 = vshll.u32 %v418_v42, 16 }
  0x42   : > { %v941_v51 = vld [vmem:[#allocation2 + $0x18] sm:$0xf]  ;;  %v1044_v52 = vshll.u32 %v942_v46, 16  ;;  %v1048_v53 = vshrl.u32 %v942_v46, 16  ;;  %804 = vst.msk [vmem:[#allocation2 + $0x58] sm:$0xf] %vm280_vm0, %v553_v47 }
  0x43   : > { %v1035_v44 = vshrl.u32 %v941_v51, 16  ;;  %v1038_v54 = vshll.u32 %v941_v51, 16  ;;  %v805_v20 = vld [vmem:[#allocation2 + $0x5c] sm:$0x1]  ;;  %321 = vst [vmem:[#allocation2 + $0x6c] sm:$0x1] %v320_v48 }
  0x44   : > { %1384 = vrot.lane.b32.xlu1 %v1081_v39, %s9117_s30  ;;  %v1046_v59 = vrot.slane %v1044_v52, 5  ;;  %v1050_v60 = vrot.slane %v1048_v53, 4  ;;  %v806_v62 = vsel %vm9177_vm3, %v554_v36, %v805_v20  ;;  %v9365_v63 = vrot.slane %v573_v49, 7  ;;  %v419_v15 = vld [vmem:[%s9202_s29 + $0x44] sm:$0xf] }
  0x45   : > { %1394 = vrot.lane.b32.xlu0 %v1143_v43, %s9117_s30  ;;  %v1037_v0 = vrot.slane %v1035_v44, 4  ;;  %v1040_v2 = vrot.slane %v1038_v54, 5  ;;  %v950_v4 = vld [vmem:[#allocation2 + $0x3c] sm:$0xf]  ;;  %807 = vst [vmem:[#allocation2 + $0x5c] sm:$0x1] %v806_v62 }
  0x46   : > { %v9368_v7 = vld [vmem:[#allocation2 + $0x40] sm:$0xf]  ;;  %v1107_v45 = vshrl.u32 %v950_v4, 16  ;;  %v1110_v8 = vshll.u32 %v950_v4, 16  ;;  %v1051_v13 = vor.u32 %v1050_v60, %v1046_v59  ;;  %v9371_v14 = vrot.slane %v1147_v58, 4 }
  0x47   : > { %v1041_v10 = vor.u32 %v1040_v2, %v1037_v0  ;;  %v1116_v11 = vshll.u32 %v9368_v7, 16  ;;  %v770_v12 = vld [vmem:[#allocation2 + $0x20] sm:$0x1]  ;;  %v579_v22 = vrot.slane %v9365_v63, 4  ;;  %v578_v28 = vor.u32 %v576_v9, %v9365_v63  ;;  %v304_v37 = vld [vmem:[#allocation2 + $0x30] sm:$0x1] }
  0x48   : > { %v1109_v16 = vrot.slane %v1107_v45, 4  ;;  %v1112_v17 = vrot.slane %v1110_v8, 5  ;;  %v771_v19 = vsel %vm9177_vm3, %v469_v32, %v770_v12  ;;  %v798_v21 = vld [vmem:[#allocation2 + $0x50] sm:$0x1]  ;;  %v581_v33 = vshrl.u32 %v419_v15, 16 }
  0x49   : > { %v1042_v23 = vrot.slane %v1041_v10, 4  ;;  %v9377_v24 = vrot.slane %v1116_v11, 5  ;;  %v957_v25 = vld [vmem:[#allocation2 + $0x58] sm:$0xf]  ;;  %772 = vst [vmem:[#allocation2 + $0x20] sm:$0x1] %v771_v19  ;;  %v799_v27 = vsel %vm9177_vm3, %v537_v55, %v798_v21  ;;  %v493_v12 = vor.u32 %v491_v5, %v9252_v57 }
  0x4a   : > { %v1113_v29 = vor.u32 %v1112_v17, %v1109_v16  ;;  %v1164_v30 = vshll.u32 %v957_v25, 16  ;;  %v1168_v31 = vshrl.u32 %v957_v25, 16  ;;  %800 = vst [vmem:[#allocation2 + $0x50] sm:$0x1] %v799_v27  ;;  %v1052_v34 = vrot.slane %v1051_v13, 4 }
  0x4b   : > { %v1047_v32 = vsel %vm9239_vm10, %v1042_v23, %v1046_v59  ;;  %v584_v35 = vshll.u32 %v419_v15, 16  ;;  %v815_v36 = vld [vmem:[#allocation2 + $0x6c] sm:$0xf]  ;;  %v9387_v46 = vrot.slane %v581_v33, 7  ;;  %v305_v49 = vsel %vm9177_vm3, 0, %v304_v37 }
  0x4c   : > { %1378 = vrot.lane.b32.xlu2 %v1047_v32, %s9117_s30  ;;  %v1114_v39 = vrot.slane %v1113_v29, 4  ;;  %v958_v40 = vld [vmem:[#allocation2 + $0x5c] sm:$0x1]  ;;  %v9385_v42 = vrot.slane %v1164_v30, 5  ;;  %v1170_v43 = vrot.slane %v1168_v31, 4  ;;  %v816_v48 = vsel %vm9247_vm11, %v578_v28, %v815_v36 }
  0x4d   : > { %v1174_v47 = vshll.u32 %v958_v40, 16  ;;  %v316_v51 = vld [vmem:[#allocation2 + $0x60] sm:$0x1]  ;;  %v416_v52 = vld [vmem:[%s9202_s29 + $0x38] sm:$0xf]  ;;  %v586_v54 = vor.u32 %v584_v35, %v9387_v46  ;;  %v1120_v17 = vshrl.u32 %v9368_v7, 16 }
  0x4e   : > { %v1119_v53 = vsel %vm9239_vm10, %v1114_v39, %v9377_v24  ;;  %v1171_v44 = vor.u32 %v1170_v43, %v9385_v42  ;;  %817 = vst [vmem:[#allocation2 + $0x6c] sm:$0xf] %v816_v48  ;;  %v317_v20 = vsel %vm9177_vm3, 0, %v316_v51  ;;  %v417_v55 = vld [vmem:[%s9202_s29 + $0x3c] sm:$0xf]  ;;  %v556_v59 = vshrl.u32 %v416_v52, 16 }
  0x4f   : > { %1390 = vrot.lane.b32.xlu1 %v1119_v53, %s9117_s30  ;;  %v1176_v58 = vrot.slane %v1174_v47, 5  ;;  %306 = vst [vmem:[#allocation2 + $0x30] sm:$0x1] %v305_v49  ;;  %v559_v60 = vshll.u32 %v416_v52, 16  ;;  %v564_v62 = vshrl.u32 %v417_v55, 16  ;;  %v587_v2 = vsel %vm9228_vm9, %v579_v22, %v586_v54 }
  0x50   : > { %v1172_v63 = vrot.slane %v1171_v44, 4  ;;  %v943_v0 = vld [vmem:[#allocation2 + $0x20] sm:$0x1]  ;;  %318 = vst [vmem:[#allocation2 + $0x60] sm:$0x1] %v317_v20  ;;  %v567_v4 = vshll.u32 %v417_v55, 16 }
  0x51   : > { %v1054_v45 = vshll.u32 %v943_v0, 16  ;;  %v955_v8 = vld [vmem:[#allocation2 + $0x50] sm:$0x1]  ;;  %818 = vst.msk [vmem:[#allocation2 + $0x70] sm:$0xf] %vm280_vm0, %v587_v2  ;;  %v558_v9 = vrot.slane %v556_v59, 7 }
  0x52   : > { %v1177_v10 = vsel %vm9239_vm10, %v1172_v63, %v1176_v58  ;;  %v1150_v11 = vshll.u32 %v955_v8, 16  ;;  %v9411_v13 = vrot.slane %v564_v62, 7  ;;  %v378_v15 = vld [vmem:[#allocation2 + $0x80] sm:$0x1]  ;;  %v9414_v16 = vld [vmem:[%s9202_s29 + $0x48] sm:$0xf] }
  0x53   : > { %1400 = vrot.lane.b32.xlu0 %v1177_v10, %s9117_s30  ;;  %v1056_v19 = vrot.slane %v1054_v45, 5  ;;  %v562_v21 = vrot.slane %v558_v9, 4  ;;  %v379_v22 = vsel %vm9190_vm6, 0, %v378_v15  ;;  %v421_v23 = vld [vmem:[%s9202_s29 + $0x4c] sm:$0xf]  ;;  %v561_v27 = vor.u32 %v559_v60, %v558_v9 }
  0x54   : > { %v1152_v25 = vrot.slane %v1150_v11, 5  ;;  %v569_v41 = vor.u32 %v567_v4, %v9411_v13  ;;  %380 = vst [vmem:[#allocation2 + $0x80] sm:$0x1] %v379_v22  ;;  %v590_v57 = vshrl.u32 %v9414_v16, 16  ;;  %v598_v7 = vshrl.u32 %v421_v23, 16 }
  0x55   : > { %v1057_v5 = vsel %vm9239_vm10, %v1052_v34, %v1056_v19  ;;  %v962_v28 = vld [vmem:[#allocation2 + $0x6c] sm:$0xf]  ;;  %v601_v29 = vshll.u32 %v421_v23, 16  ;;  %v363_v30 = vld [vmem:[#allocation2 + $0x44] sm:$0x1]  ;;  %v1122_v58 = vrot.slane %v1120_v17, 4 }
  0x56   : > { %1380 = vrot.lane.b32.xlu2 %v1057_v5, %s9117_s30  ;;  %v1153_v31 = vsel %vm9239_vm10, %v9371_v14, %v1152_v25  ;;  %v1203_v33 = vshrl.u32 %v962_v28, 16  ;;  %v1206_v32 = vshll.u32 %v962_v28, 16  ;;  %v780_v35 = vld [vmem:[#allocation2 + $0x30] sm:$0xf]  ;;  %v570_v36 = vsel %vm9228_vm9, %v562_v21, %v569_v41  ;;  %v375_v37 = vld [vmem:[#allocation2 + $0x74] sm:$0x1] }
  0x57   : > { %1396 = vrot.lane.b32.xlu1 %v1153_v31, %s9117_s30  ;;  %v781_v34 = vsel %vm9247_vm11, %v493_v12, %v780_v35  ;;  %v808_v39 = vld [vmem:[#allocation2 + $0x60] sm:$0xf]  ;;  %811 = vst.msk [vmem:[#allocation2 + $0x64] sm:$0xf] %vm280_vm0, %v570_v36  ;;  %v9435_v40 = vrot.slane %v590_v57, 7  ;;  %v600_v43 = vrot.slane %v598_v7, 7  ;;  %v1123_v10 = vor.u32 %v1122_v58, %v9377_v24 }
  0x58   : > { %v963_v47 = vld [vmem:[#allocation2 + $0x70] sm:$0xf]  ;;  %v1205_v14 = vrot.slane %v1203_v33, 4  ;;  %v1208_v48 = vrot.slane %v1206_v32, 5  ;;  %782 = vst [vmem:[#allocation2 + $0x30] sm:$0xf] %v781_v34  ;;  %v809_v49 = vsel %vm9247_vm11, %v561_v27, %v808_v39 }
  0x59   : > { %v1212_v51 = vshll.u32 %v963_v47, 16  ;;  %v1216_v52 = vshrl.u32 %v963_v47, 16  ;;  %810 = vst [vmem:[#allocation2 + $0x60] sm:$0xf] %v809_v49  ;;  %v596_v53 = vrot.slane %v9435_v40, 4  ;;  %v603_v44 = vor.u32 %v601_v29, %v600_v43 }
  0x5a   : > { %v1209_v54 = vor.u32 %v1208_v48, %v1205_v14  ;;  %v605_v20 = vrot.slane %v600_v43, 4  ;;  %v364_v55 = vsel %vm9190_vm6, 0, %v363_v30  ;;  %v328_v59 = vld [vmem:[#allocation2 + $0x90] sm:$0x1]  ;;  %v376_v0 = vsel %vm9190_vm6, 0, %v375_v37 }
  0x5b   : > { %v9442_v60 = vrot.slane %v1212_v51, 5  ;;  %v604_v62 = vsel %vm9228_vm9, %v596_v53, %v603_v44  ;;  %v826_v63 = vld [vmem:[#allocation2 + $0x80] sm:$0x1]  ;;  %365 = vst [vmem:[#allocation2 + $0x44] sm:$0x1] %v364_v55  ;;  %v542_v8 = vshll.u32 %v9322_v3, 16 }
  0x5c   : > { %v1210_v2 = vrot.slane %v1209_v54, 4  ;;  %825 = vst.msk [vmem:[#allocation2 + $0x7c] sm:$0xf] %vm280_vm0, %v604_v62  ;;  %v827_v4 = vsel %vm9177_vm3, %v605_v20, %v826_v63  ;;  %v424_v45 = vld [vmem:[%s9202_s29 + $0x58] sm:$0xf]  ;;  %v520_v9 = vrot.slane %v9319_v61, 4 }
  0x5d   : > { %828 = vst [vmem:[#allocation2 + $0x80] sm:$0x1] %v827_v4  ;;  %v329_v11 = vsel %vm9177_vm3, 0, %v328_v59  ;;  %v588_v17 = vrot.slane %v9387_v46, 4  ;;  %v425_v19 = vld [vmem:[%s9202_s29 + $0x5c] sm:$0xf] }
  0x5e   : > { %v1215_v12 = vsel %vm9239_vm10, %v1210_v2, %v9442_v60  ;;  %v9460_v15 = vld [vmem:[#allocation2 + $0x64] sm:$0xf]  ;;  %377 = vst [vmem:[#allocation2 + $0x74] sm:$0x1] %v376_v0  ;;  %v624_v21 = vshrl.u32 %v424_v45, 16  ;;  %v9466_v24 = vrot.slane %v1216_v52, 4 }
  0x5f   : > { %1406 = vrot.lane.b32.xlu0 %v1215_v12, %s9117_s30  ;;  %v947_v22 = vld [vmem:[#allocation2 + $0x30] sm:$0xf]  ;;  %v1188_v61 = vshll.u32 %v9460_v15, 16  ;;  %330 = vst [vmem:[#allocation2 + $0x90] sm:$0x1] %v329_v11  ;;  %v627_v57 = vshll.u32 %v424_v45, 16 }
  0x60   : > { %v1083_v23 = vshrl.u32 %v947_v22, 16  ;;  %v1086_v25 = vshll.u32 %v947_v22, 16  ;;  %v959_v27 = vld [vmem:[#allocation2 + $0x60] sm:$0xf]  ;;  %v626_v41 = vrot.slane %v624_v21, 7  ;;  %v9470_v46 = vrot.slane %v1123_v10, 4 }
  0x61   : > { %v1179_v5 = vshrl.u32 %v959_v27, 16  ;;  %v1182_v28 = vshll.u32 %v959_v27, 16  ;;  %v9468_v7 = vrot.slane %v1188_v61, 5  ;;  %v632_v39 = vshrl.u32 %v425_v19, 16  ;;  %v313_v43 = vld [vmem:[#allocation2 + $0x54] sm:$0x1] }
  0x62   : > { %v1085_v29 = vrot.slane %v1083_v23, 4  ;;  %v1088_v30 = vrot.slane %v1086_v25, 5  ;;  %v791_v31 = vld [vmem:[#allocation2 + $0x44] sm:$0x1]  ;;  %v629_v33 = vor.u32 %v627_v57, %v626_v41  ;;  %v630_v32 = vrot.slane %v626_v41, 4 }
  0x63   : > { %v1181_v35 = vrot.slane %v1179_v5, 4  ;;  %v1184_v36 = vrot.slane %v1182_v28, 5  ;;  %v966_v37 = vld [vmem:[#allocation2 + $0x7c] sm:$0xf]  ;;  %v792_v34 = vsel %vm9177_vm3, %v520_v9, %v791_v31  ;;  %v9474_v44 = vrot.slane %v632_v39, 7 }
  0x64   : > { %v1089_v47 = vor.u32 %v1088_v30, %v1085_v29  ;;  %v967_v14 = vld [vmem:[#allocation2 + $0x80] sm:$0x1]  ;;  %v1236_v48 = vshll.u32 %v966_v37, 16  ;;  %v1240_v49 = vshrl.u32 %v966_v37, 16  ;;  %793 = vst [vmem:[#allocation2 + $0x44] sm:$0x1] %v792_v34  ;;  %v1219_v21 = vor.u32 %v9466_v24, %v9442_v60 }
  0x65   : > { %v1185_v51 = vor.u32 %v1184_v36, %v1181_v35  ;;  %v1246_v52 = vshll.u32 %v967_v14, 16  ;;  %v819_v53 = vld [vmem:[#allocation2 + $0x74] sm:$0x1]  ;;  %v635_v54 = vshll.u32 %v425_v19, 16  ;;  %v325_v45 = vld [vmem:[#allocation2 + $0x84] sm:$0x1] }
  0x66   : > { %v1090_v20 = vrot.slane %v1089_v47, 4  ;;  %v9476_v55 = vrot.slane %v1236_v48, 5  ;;  %v1242_v58 = vrot.slane %v1240_v49, 4  ;;  %v820_v59 = vsel %vm9177_vm3, %v588_v17, %v819_v53  ;;  %v836_v62 = vld [vmem:[#allocation2 + $0x90] sm:$0xf] }
  0x67   : > { %v1186_v63 = vrot.slane %v1185_v51, 4  ;;  %v1248_v0 = vrot.slane %v1246_v52, 5  ;;  %821 = vst [vmem:[#allocation2 + $0x74] sm:$0x1] %v820_v59  ;;  %v637_v2 = vor.u32 %v635_v54, %v9474_v44  ;;  %v837_v4 = vsel %vm9247_vm11, %v629_v33, %v836_v62  ;;  %v422_v17 = vld [vmem:[%s9202_s29 + $0x50] sm:$0xf] }
  0x68   : > { %v1095_v9 = vsel %vm9239_vm10, %v1090_v20, %v9293_v18  ;;  %v1243_v10 = vor.u32 %v1242_v58, %v9476_v55  ;;  %838 = vst [vmem:[#allocation2 + $0x90] sm:$0xf] %v837_v4  ;;  %v314_v11 = vsel %vm9177_vm3, 0, %v313_v43  ;;  %v326_v12 = vsel %vm9177_vm3, 0, %v325_v45  ;;  %v423_v22 = vld [vmem:[%s9202_s29 + $0x54] sm:$0xf] }
  0x69   : > { %1386 = vrot.lane.b32.xlu2 %v1095_v9, %s9117_s30  ;;  %v1191_v19 = vsel %vm9239_vm10, %v1186_v63, %v9468_v7  ;;  %v638_v18 = vsel %vm9228_vm9, %v630_v32, %v637_v2  ;;  %315 = vst [vmem:[#allocation2 + $0x54] sm:$0x1] %v314_v11  ;;  %v607_v61 = vshrl.u32 %v422_v17, 16  ;;  %v1192_v23 = vshrl.u32 %v9460_v15, 16  ;;  %v387_v30 = vld [vmem:[#allocation2 + $0xa4] sm:$0x1] }
  0x6a   : > { %1402 = vrot.lane.b32.xlu1 %v1191_v19, %s9117_s30  ;;  %v1244_v25 = vrot.slane %v1243_v10, 4  ;;  %839 = vst.msk [vmem:[#allocation2 + $0x94] sm:$0xf] %vm280_vm0, %v638_v18  ;;  %v615_v27 = vshrl.u32 %v423_v22, 16  ;;  %v618_v41 = vshll.u32 %v423_v22, 16  ;;  %v610_v24 = vshll.u32 %v422_v17, 16 }
  0x6b   : > { %v952_v57 = vld [vmem:[#allocation2 + $0x44] sm:$0x1]  ;;  %327 = vst [vmem:[#allocation2 + $0x84] sm:$0x1] %v326_v12  ;;  %v609_v60 = vrot.slane %v607_v61, 7  ;;  %v544_v15 = vor.u32 %v542_v8, %v9340_v26  ;;  %v1220_v33 = vrot.slane %v1219_v21, 4 }
  0x6c   : > { %v1249_v5 = vsel %vm9239_vm10, %v1244_v25, %v1248_v0  ;;  %v1126_v28 = vshll.u32 %v952_v57, 16  ;;  %v9509_v29 = vrot.slane %v615_v27, 7  ;;  %v9512_v31 = vld [vmem:[%s9202_s29 + $0x60] sm:$0xf]  ;;  %v388_v35 = vsel %vm9190_vm6, 0, %v387_v30 }
  0x6d   : > { %1412 = vrot.lane.b32.xlu0 %v1249_v5, %s9117_s30  ;;  %v613_v32 = vrot.slane %v609_v60, 4  ;;  %v427_v36 = vld [vmem:[%s9202_s29 + $0x64] sm:$0xf]  ;;  %v641_v37 = vshrl.u32 %v9512_v31, 16  ;;  %389 = vst [vmem:[#allocation2 + $0xa4] sm:$0x1] %v388_v35  ;;  %v612_v47 = vor.u32 %v610_v24, %v609_v60 }
  0x6e   : > { %v1128_v34 = vrot.slane %v1126_v28, 5  ;;  %v964_v39 = vld [vmem:[#allocation2 + $0x74] sm:$0x1]  ;;  %v620_v3 = vor.u32 %v618_v41, %v9509_v29  ;;  %v1194_v26 = vrot.slane %v1192_v23, 4  ;;  %v649_v48 = vshrl.u32 %v427_v36, 16 }
  0x6f   : > { %v1222_v8 = vshll.u32 %v964_v39, 16  ;;  %v971_v43 = vld [vmem:[#allocation2 + $0x90] sm:$0xf]  ;;  %v9520_v14 = vrot.slane %v641_v37, 7  ;;  %v372_v20 = vld [vmem:[#allocation2 + $0x68] sm:$0x1] }
  0x70   : > { %v1129_v49 = vsel %vm9239_vm10, %v9470_v46, %v1128_v34  ;;  %v1275_v51 = vshrl.u32 %v971_v43, 16  ;;  %v1278_v52 = vshll.u32 %v971_v43, 16  ;;  %v801_v53 = vld [vmem:[#allocation2 + $0x54] sm:$0xf]  ;;  %v621_v54 = vsel %vm9228_vm9, %v613_v32, %v620_v3  ;;  %v384_v22 = vld [vmem:[#allocation2 + $0x98] sm:$0x1] }
  0x71   : > { %1392 = vrot.lane.b32.xlu2 %v1129_v49, %s9117_s30  ;;  %v1224_v58 = vrot.slane %v1222_v8, 5  ;;  %v972_v59 = vld [vmem:[#allocation2 + $0x94] sm:$0xf]  ;;  %v802_v62 = vsel %vm9247_vm11, %v544_v15, %v801_v53  ;;  %832 = vst.msk [vmem:[#allocation2 + $0x88] sm:$0xf] %vm280_vm0, %v621_v54  ;;  %v652_v63 = vshll.u32 %v427_v36, 16  ;;  %v1195_v18 = vor.u32 %v1194_v26, %v9468_v7 }
  0x72   : > { %v593_v0 = vshll.u32 %v9414_v16, 16  ;;  %v1277_v46 = vrot.slane %v1275_v51, 4  ;;  %v1280_v2 = vrot.slane %v1278_v52, 5  ;;  %v1284_v4 = vshll.u32 %v972_v59, 16  ;;  %803 = vst [vmem:[#allocation2 + $0x54] sm:$0xf] %v802_v62 }
  0x73   : > { %v1225_v45 = vsel %vm9239_vm10, %v1220_v33, %v1224_v58  ;;  %v829_v9 = vld [vmem:[#allocation2 + $0x84] sm:$0xf]  ;;  %v647_v10 = vrot.slane %v9520_v14, 4  ;;  %v651_v11 = vrot.slane %v649_v48, 7  ;;  %v373_v12 = vsel %vm9190_vm6, 0, %v372_v20 }
  0x74   : > { %1408 = vrot.lane.b32.xlu1 %v1225_v45, %s9117_s30  ;;  %v1281_v17 = vor.u32 %v1280_v2, %v1277_v46  ;;  %v9538_v19 = vrot.slane %v1284_v4, 5  ;;  %v830_v21 = vsel %vm9247_vm11, %v612_v47, %v829_v9  ;;  %374 = vst [vmem:[#allocation2 + $0x68] sm:$0x1] %v373_v12  ;;  %v847_v25 = vld [vmem:[#allocation2 + $0xa4] sm:$0x1]  ;;  %v385_v27 = vsel %vm9190_vm6, 0, %v384_v22 }
  0x75   : > { %831 = vst [vmem:[#allocation2 + $0x84] sm:$0xf] %v830_v21  ;;  %v654_v61 = vor.u32 %v652_v63, %v651_v11  ;;  %v656_v23 = vrot.slane %v651_v11, 4  ;;  %v1288_v57 = vshrl.u32 %v972_v59, 16  ;;  %v337_v60 = vld [vmem:[#allocation2 + $0xb4] sm:$0x1] }
  0x76   : > { %v1282_v41 = vrot.slane %v1281_v17, 4  ;;  %386 = vst [vmem:[#allocation2 + $0x98] sm:$0x1] %v385_v27  ;;  %v571_v7 = vrot.slane %v9411_v13, 4  ;;  %v338_v28 = vsel %vm9177_vm3, 0, %v337_v60  ;;  %v9560_v35 = vrot.slane %v1195_v18, 4 }
  0x77   : > { %v655_v24 = vsel %vm9228_vm9, %v647_v10, %v654_v61  ;;  %v848_v5 = vsel %vm9177_vm3, %v656_v23, %v847_v25  ;;  %v430_v15 = vld [vmem:[%s9202_s29 + $0x70] sm:$0xf]  ;;  %v431_v30 = vld [vmem:[%s9202_s29 + $0x74] sm:$0xf]  ;;  %v639_v34 = vrot.slane %v9474_v44, 4  ;;  %v9565_v26 = vrot.slane %v1288_v57, 4 }
  0x78   : > { %v1287_v33 = vsel %vm9239_vm10, %v1282_v41, %v9538_v19  ;;  %v9557_v32 = vld [vmem:[#allocation2 + $0x88] sm:$0xf]  ;;  %846 = vst.msk [vmem:[#allocation2 + $0xa0] sm:$0xf] %vm280_vm0, %v655_v24  ;;  %v675_v36 = vshrl.u32 %v430_v15, 16  ;;  %v678_v8 = vshll.u32 %v430_v15, 16 }
  0x79   : > { %1418 = vrot.lane.b32.xlu0 %v1287_v33, %s9117_s30  ;;  %v956_v37 = vld [vmem:[#allocation2 + $0x54] sm:$0xf]  ;;  %v1260_v13 = vshll.u32 %v9557_v32, 16  ;;  %849 = vst [vmem:[#allocation2 + $0xa4] sm:$0x1] %v848_v5  ;;  %v683_v49 = vshrl.u32 %v431_v30, 16  ;;  %v1291_v17 = vor.u32 %v9565_v26, %v9538_v19 }
  0x7a   : > { %v1155_v39 = vshrl.u32 %v956_v37, 16  ;;  %v1158_v3 = vshll.u32 %v956_v37, 16  ;;  %339 = vst [vmem:[#allocation2 + $0xb4] sm:$0x1] %v338_v28  ;;  %v677_v48 = vrot.slane %v675_v36, 7  ;;  %v686_v51 = vshll.u32 %v431_v30, 16 }
  0x7b   : > { %v9567_v43 = vrot.slane %v1260_v13, 5  ;;  %v812_v47 = vld [vmem:[#allocation2 + $0x68] sm:$0x1]  ;;  %v322_v44 = vld [vmem:[#allocation2 + $0x78] sm:$0x1]  ;;  %v9573_v4 = vrot.slane %v683_v49, 7 }
  0x7c   : > { %v1157_v52 = vrot.slane %v1155_v39, 4  ;;  %v1160_v53 = vrot.slane %v1158_v3, 5  ;;  %v968_v54 = vld [vmem:[#allocation2 + $0x84] sm:$0xf]  ;;  %v813_v20 = vsel %vm9177_vm3, %v571_v7, %v812_v47  ;;  %v681_v2 = vrot.slane %v677_v48, 4 }
  0x7d   : > { %v1251_v58 = vshrl.u32 %v968_v54, 16  ;;  %v1254_v59 = vshll.u32 %v968_v54, 16  ;;  %814 = vst [vmem:[#allocation2 + $0x68] sm:$0x1] %v813_v20  ;;  %v840_v62 = vld [vmem:[#allocation2 + $0x98] sm:$0x1]  ;;  %v680_v21 = vor.u32 %v678_v8, %v677_v48  ;;  %v688_v25 = vor.u32 %v686_v51, %v9573_v4 }
  0x7e   : > { %v1161_v63 = vor.u32 %v1160_v53, %v1157_v52  ;;  %v841_v46 = vsel %vm9177_vm3, %v639_v34, %v840_v62  ;;  %v334_v45 = vld [vmem:[#allocation2 + $0xa8] sm:$0x1]  ;;  %v323_v60 = vsel %vm9177_vm3, 0, %v322_v44  ;;  %v429_v15 = vld [vmem:[%s9202_s29 + $0x6c] sm:$0xf]  ;;  %v595_v51 = vor.u32 %v593_v0, %v9435_v40 }
  0x7f   : > { %v428_v9 = vld [vmem:[%s9202_s29 + $0x68] sm:$0xf]  ;;  %v1253_v10 = vrot.slane %v1251_v58, 4  ;;  %v1256_v11 = vrot.slane %v1254_v59, 5  ;;  %v975_v12 = vld [vmem:[#allocation2 + $0xa0] sm:$0xf]  ;;  %v689_v28 = vsel %vm9228_vm9, %v681_v2, %v688_v25 }
  0x80   : > { %842 = vst [vmem:[#allocation2 + $0x98] sm:$0x1] %v841_v46  ;;  %v1162_v18 = vrot.slane %v1161_v63, 4  ;;  %v976_v22 = vld [vmem:[#allocation2 + $0xa4] sm:$0x1]  ;;  %v1308_v61 = vshll.u32 %v975_v12, 16 }
  0x81   : > { %v1312_v23 = vshrl.u32 %v975_v12, 16  ;;  %v1257_v27 = vor.u32 %v1256_v11, %v1253_v10  ;;  %v1318_v41 = vshll.u32 %v976_v22, 16  ;;  %v857_v57 = vld [vmem:[#allocation2 + $0xb4] sm:$0xf]  ;;  %v335_v24 = vsel %vm9177_vm3, 0, %v334_v45 }
  0x82   : > { %v1167_v19 = vsel %vm9239_vm10, %v1162_v18, %v9385_v42  ;;  %v9586_v5 = vrot.slane %v1308_v61, 5  ;;  %324 = vst [vmem:[#allocation2 + $0x78] sm:$0x1] %v323_v60  ;;  %v858_v36 = vsel %vm9247_vm11, %v680_v21, %v857_v57  ;;  %v658_v37 = vshrl.u32 %v428_v9, 16  ;;  %v381_v62 = vld [vmem:[#allocation2 + $0x8c] sm:$0x1] }
  0x83   : > { %v1314_v7 = vrot.slane %v1312_v23, 4  ;;  %1398 = vrot.lane.b32.xlu2 %v1167_v19, %s9117_s30  ;;  %v1258_v30 = vrot.slane %v1257_v27, 4  ;;  %v1320_v33 = vrot.slane %v1318_v41, 5  ;;  %860 = vst.msk [vmem:[#allocation2 + $0xb8] sm:$0xf] %vm280_vm0, %v689_v28  ;;  %v661_v34 = vshll.u32 %v428_v9, 16 }
  0x84   : > { %v961_v13 = vld [vmem:[#allocation2 + $0x68] sm:$0x1]  ;;  %859 = vst [vmem:[#allocation2 + $0xb4] sm:$0xf] %v858_v36  ;;  %v666_v39 = vshrl.u32 %v429_v15, 16  ;;  %v660_v8 = vrot.slane %v658_v37, 7 }
  0x85   : > { %v1315_v42 = vor.u32 %v1314_v7, %v9586_v5  ;;  %v1263_v3 = vsel %vm9239_vm10, %v1258_v30, %v9567_v43  ;;  %v1198_v26 = vshll.u32 %v961_v13, 16  ;;  %336 = vst [vmem:[#allocation2 + $0xa8] sm:$0x1] %v335_v24  ;;  %v669_v47 = vshll.u32 %v429_v15, 16  ;;  %v393_v10 = vld [vmem:[#allocation2 + $0xbc] sm:$0x1] }
  0x86   : > { %1414 = vrot.lane.b32.xlu1 %v1263_v3, %s9117_s30  ;;  %v9603_v52 = vrot.slane %v666_v39, 7  ;;  %v1292_v54 = vrot.slane %v1291_v17, 4  ;;  %v664_v44 = vrot.slane %v660_v8, 4  ;;  %v663_v0 = vor.u32 %v661_v34, %v660_v8  ;;  %v9632_v57 = vld [vmem:[#allocation2 + $0x4] sm:$0xf] }
  0x87   : > { %v1316_v48 = vrot.slane %v1315_v42, 4  ;;  %v973_v49 = vld [vmem:[#allocation2 + $0x98] sm:$0x1]  ;;  %v1200_v53 = vrot.slane %v1198_v26, 5  ;;  %v382_v9 = vsel %vm9190_vm6, 0, %v381_v62  ;;  %v394_v61 = vsel %vm9190_vm6, 0, %v393_v10 }
  0x88   : > { %v1294_v20 = vshll.u32 %v973_v49, 16  ;;  %v671_v59 = vor.u32 %v669_v47, %v9603_v52  ;;  %383 = vst [vmem:[#allocation2 + $0x8c] sm:$0x1] %v382_v9  ;;  %v644_v23 = vshll.u32 %v9512_v31, 16  ;;  %v1264_v41 = vshrl.u32 %v9557_v32, 16 }
  0x89   : > { %v1321_v58 = vsel %vm9239_vm10, %v1316_v48, %v1320_v33  ;;  %v1201_v63 = vsel %vm9239_vm10, %v9560_v35, %v1200_v53  ;;  %v822_v40 = vld [vmem:[#allocation2 + $0x78] sm:$0xf]  ;;  %395 = vst [vmem:[#allocation2 + $0xbc] sm:$0x1] %v394_v61  ;;  %v331_v19 = vld [vmem:[#allocation2 + $0x9c] sm:$0x1] }
  0x8a   : > { %1424 = vrot.lane.b32.xlu0 %v1321_v58, %s9117_s30  ;;  %v1296_v16 = vrot.slane %v1294_v20, 5  ;;  %v9612_v46 = vld [vmem:[#allocation2 + $0xb8] sm:$0xf]  ;;  %v823_v2 = vsel %vm9247_vm11, %v595_v51, %v822_v40  ;;  %v672_v45 = vsel %vm9228_vm9, %v664_v44, %v671_v59  ;;  %v1501_v7 = vld [vmem:[#allocation2 + $0x8] sm:$0x1]  ;;  %v622_v28 = vrot.slane %v9509_v29, 4 }
  0x8b   : > { %1404 = vrot.lane.b32.xlu2 %v1201_v63, %s9117_s30  ;;  %v980_v11 = vld [vmem:[#allocation2 + $0xb4] sm:$0xf]  ;;  %v1356_v12 = vshll.u32 %v9612_v46, 16  ;;  %824 = vst [vmem:[#allocation2 + $0x78] sm:$0xf] %v823_v2  ;;  %v332_v31 = vsel %vm9177_vm3, 0, %v331_v19  ;;  %v646_v32 = vor.u32 %v644_v23, %v9520_v14 }
  0x8c   : > { %v1297_v35 = vsel %vm9239_vm10, %v1292_v54, %v1296_v16  ;;  %v1347_v17 = vshrl.u32 %v980_v11, 16  ;;  %v1350_v21 = vshll.u32 %v980_v11, 16  ;;  %v850_v18 = vld [vmem:[#allocation2 + $0xa8] sm:$0xf]  ;;  %853 = vst.msk [vmem:[#allocation2 + $0xac] sm:$0xf] %vm280_vm0, %v672_v45 }
  0x8d   : > { %v851_v22 = vsel %vm9247_vm11, %v663_v0, %v850_v18  ;;  %v9634_v24 = vrot.slane %v1356_v12, 5  ;;  %v1600_v33 = vrot.slane %v9632_v57, 5  ;;  %333 = vst [vmem:[#allocation2 + $0x9c] sm:$0x1] %v332_v31  ;;  %v1266_v13 = vrot.slane %v1264_v41, 4 }
  0x8e   : > { %1420 = vrot.lane.b32.xlu1 %v1297_v35, %s9117_s30  ;;  %v1349_v25 = vrot.slane %v1347_v17, 4  ;;  %v1352_v27 = vrot.slane %v1350_v21, 5  ;;  %852 = vst [vmem:[#allocation2 + $0xa8] sm:$0xf] %v851_v22  ;;  %v1360_v34 = vshrl.u32 %v9612_v46, 16  ;;  %v690_v3 = vrot.slane %v9573_v4, 4 }
  0x8f   : > { %v833_v39 = vld [vmem:[#allocation2 + $0x8c] sm:$0x1]  ;;  %v1603_v47 = vrot.slane %v1501_v7, 5  ;;  %v1602_v54 = vrot.slane %v1600_v33, 4  ;;  %v1267_v44 = vor.u32 %v1266_v13, %v9567_v43  ;;  %v390_v59 = vld [vmem:[#allocation2 + $0xb0] sm:$0x1] }
  0x90   : > { %v1353_v60 = vor.u32 %v1352_v27, %v1349_v25  ;;  %v834_v48 = vsel %vm9177_vm3, %v622_v28, %v833_v39  ;;  %v861_v58 = vld [vmem:[#allocation2 + $0xbc] sm:$0x1]  ;;  %v1362_v40 = vrot.slane %v1360_v34, 4  ;;  %v1505_v0 = vld [vmem:[#allocation2 + $0x18] sm:$0xe]  ;;  %v391_v45 = vsel %vm9190_vm6, 0, %v390_v59 }
  0x91   : > { %835 = vst [vmem:[#allocation2 + $0x8c] sm:$0x1] %v834_v48  ;;  %v862_v16 = vsel %vm9177_vm3, %v690_v3, %v861_v58  ;;  %v1604_v43 = vsel %vm9656_vm14, %v1602_v54, %v1603_v47  ;;  %v9669_v35 = vld [vmem:[#allocation2 + $0x1c] sm:$0xf]  ;;  %v1268_v21 = vrot.slane %v1267_v44, 4  ;;  %v8688_v61 = vrot.slane %v1505_v0, 9 }
  0x92   : > { %v1354_v15 = vrot.slane %v1353_v60, 4  ;;  %v965_v30 = vld [vmem:[#allocation2 + $0x78] sm:$0xf]  ;;  %863 = vst [vmem:[#allocation2 + $0xbc] sm:$0x1] %v862_v16  ;;  %v1363_v18 = vor.u32 %v1362_v40, %v9634_v24  ;;  %v1614_v23 = vrot.slane %v9669_v35, 5 }
  0x93   : > { %v1227_v36 = vshrl.u32 %v965_v30, 16  ;;  %v1230_v37 = vshll.u32 %v965_v30, 16  ;;  %v9641_v42 = vld [vmem:[#allocation2 + $0xac] sm:$0xf]  ;;  %392 = vst [vmem:[#allocation2 + $0xb0] sm:$0x1] %v391_v45 }
  0x94   : > { %v1359_v29 = vsel %vm9239_vm10, %v1354_v15, %v9634_v24  ;;  %v1332_v53 = vshll.u32 %v9641_v42, 16  ;;  %v843_v2 = vld [vmem:[#allocation2 + $0x9c] sm:$0xf]  ;;  %v9685_v41 = vld [vmem:[#allocation2 + $0x28] sm:$0xf]  ;;  %v1364_v28 = vrot.slane %v1363_v18, 4 }
  0x95   : > { %1430 = vrot.lane.b32.xlu0 %v1359_v29, %s9117_s30  ;;  %v1229_v26 = vrot.slane %v1227_v36, 4  ;;  %v1232_v14 = vrot.slane %v1230_v37, 5  ;;  %v977_v8 = vld [vmem:[#allocation2 + $0xa8] sm:$0xf]  ;;  %v844_v11 = vsel %vm9247_vm11, %v646_v32, %v843_v2  ;;  %v1373_v60 = vpop.permute.xlu0 %1372  ;;  %v872_v24 = vld [vmem:[#allocation2 + $0x4] sm:$0xf]  ;;  %v1615_v32 = vsel %vm9656_vm14, %v8688_v61, %v1614_v23 }
  0x96   : > { %v1323_v49 = vshrl.u32 %v977_v8, 16  ;;  %v1326_v51 = vshll.u32 %v977_v8, 16  ;;  %v9665_v10 = vrot.slane %v1332_v53, 5  ;;  %845 = vst [vmem:[#allocation2 + $0x9c] sm:$0xf] %v844_v11  ;;  %v1336_v31 = vshrl.u32 %v9641_v42, 16 }
  0x97   : > { %v1233_v20 = vor.u32 %v1232_v14, %v1229_v26  ;;  %904 = vst.msk [vmem:[#allocation4 + $0x4] sm:$0xf] %vm280_vm0, %v872_v24  ;;  %v1510_v37 = vld [vmem:[#allocation2 + $0x2c] sm:$0x1]  ;;  %v1621_v13 = vrot.slane %v9685_v41, 5  ;;  %vm1806_vm1 = vcmask 93248  }
  0x98   : > { %v1325_v62 = vrot.slane %v1323_v49, 4  ;;  %v1328_v63 = vrot.slane %v1326_v51, 5  ;;  %v970_v22 = vld [vmem:[#allocation2 + $0x8c] sm:$0x1]  ;;  %1468 = vst.msk [vmem:[#allocation4 + $0x4] sm:$0xf] %vm1466_vm15, %v1373_v60 }
  0x99   : > { %v1234_v46 = vrot.slane %v1233_v20, 4  ;;  %v1270_v27 = vshll.u32 %v970_v22, 16  ;;  %v982_v7 = vld [vmem:[#allocation2 + $0xbc] sm:$0x1]  ;;  %v1502_v3 = vld [vmem:[#allocation2 + $0xc] sm:$0xe] }
  0x9a   : > { %v1329_v9 = vor.u32 %v1328_v63, %v1325_v62  ;;  %v1366_v15 = vshll.u32 %v982_v7, 16  ;;  %v854_v30 = vld [vmem:[#allocation2 + $0xb0] sm:$0x1]  ;;  %v1338_v48 = vrot.slane %v1336_v31, 4  ;;  %v1623_v49 = vrot.slane %v1621_v13, 4  ;;  %v8999_v4 = vld [vmem:[%s9202_s29] sm:$0xff]  }
  0x9b   : > { %v1239_v12 = vsel %vm9239_vm10, %v1234_v46, %v9476_v55  ;;  %v673_v55 = vrot.slane %v9603_v52, 4  ;;  %v1272_v19 = vrot.slane %v1270_v27, 5  ;;  %v9700_v26 = vld [vmem:[#allocation2 + $0x10] sm:$0xf]  ;;  %v1624_v51 = vrot.slane %v1510_v37, 5 }
  0x9c   : > { %1410 = vrot.lane.b32.xlu2 %v1239_v12, %s9117_s30  ;;  %v1330_v17 = vrot.slane %v1329_v9, 4  ;;  %v1368_v42 = vrot.slane %v1366_v15, 5  ;;  %v871_v20 = vld [vmem:[#allocation2] sm:$0xf]  ;;  %v875_v44 = vld [vmem:[#allocation2 + $0x18] sm:$0xf]  ;;  %v1339_v40 = vor.u32 %v1338_v48, %v9665_v10 }
  0x9d   : > { %1712 = vrot.lane.b32.xlu0 %v1604_v43, %s9118_s8  ;;  %v1273_v52 = vsel %vm9239_vm10, %v1268_v21, %v1272_v19  ;;  %v974_v36 = vld [vmem:[#allocation2 + $0x9c] sm:$0xf]  ;;  %v855_v29 = vsel %vm9177_vm3, %v673_v55, %v854_v30  ;;  %v1371_v54 = vpop.permute.xlu0 %1370  ;;  %v8687_v58 = vrot.slane %v1502_v3, 9  ;;  %v1607_v59 = vrot.slane %v9700_v26, 5  ;;  %903 = vst.msk [vmem:[#allocation4] sm:$0xf] %vm280_vm0, %v871_v20 }
  0x9e   : > { %v1335_v25 = vsel %vm9239_vm10, %v1330_v17, %v9665_v10  ;;  %v1299_v34 = vshrl.u32 %v974_v36, 16  ;;  %v1302_v39 = vshll.u32 %v974_v36, 16  ;;  %856 = vst [vmem:[#allocation2 + $0xb0] sm:$0x1] %v855_v29  ;;  %v1369_v14 = vsel %vm9239_vm10, %v1364_v28, %v1368_v42  ;;  %v873_v0 = vld [vmem:[#allocation2 + $0xc] sm:$0xf] }
  0x9f   : > { %1426 = vrot.lane.b32.xlu1 %v1335_v25, %s9117_s30  ;;  %1467 = vst.msk [vmem:[#allocation4] sm:$0xf] %vm1466_vm15, %v1371_v54  ;;  %v1625_v46 = vsel %vm9656_vm14, %v1623_v49, %v1624_v51  ;;  %v1514_v45 = vld [vmem:[#allocation2 + $0x3c] sm:$0xe]  ;;  %v9718_v11 = vld [vmem:[#allocation2 + $0x40] sm:$0xf]  ;;  %v1608_v10 = vsel %vm9656_vm14, %v8687_v58, %v1607_v59 }
  0xa0   : > { %v1301_v8 = vrot.slane %v1299_v34, 4  ;;  %v1304_v47 = vrot.slane %v1302_v39, 5  ;;  %907 = vst.msk [vmem:[#allocation4 + $0x10] sm:$0xf] %vm280_vm0, %v875_v44  ;;  %v1340_v12 = vrot.slane %v1339_v40, 4  ;;  %v1635_v18 = vrot.slane %v9718_v11, 5 }
  0xa1   : > { %905 = vst.msk [vmem:[#allocation4 + $0x8] sm:$0xf] %vm280_vm0, %v873_v0  ;;  %v1507_v21 = vld [vmem:[#allocation2 + $0x20] sm:$0x1]  ;;  %v9731_v22 = vld [vmem:[#allocation2 + $0x4c] sm:$0xf] }
  0xa2   : > { %v1305_v53 = vor.u32 %v1304_v47, %v1301_v8  ;;  %v877_v25 = vld [vmem:[#allocation2 + $0x24] sm:$0xf]  ;;  %v876_v27 = vld [vmem:[#allocation2 + $0x1c] sm:$0xf]  ;;  %v1616_v55 = vrot.slane %v1614_v23, 4  ;;  %v1617_v60 = vrot.slane %v1507_v21, 5 }
  0xa3   : > { %909 = vst.msk [vmem:[#allocation4 + $0x18] sm:$0xf] %vm280_vm0, %v877_v25  ;;  %v1499_v7 = vld [vmem:[#allocation2] sm:$0xe]  ;;  %v874_v28 = vld [vmem:[#allocation2 + $0x10] sm:$0xf] }
  0xa4   : > { %1416 = vrot.lane.b32.xlu2 %v1273_v52, %s9117_s30  ;;  %v1306_v16 = vrot.slane %v1305_v53, 4  ;;  %v1642_v15 = vrot.slane %v9731_v22, 5  ;;  %908 = vst.msk [vmem:[#allocation4 + $0x14] sm:$0xf] %vm280_vm0, %v876_v27  ;;  %v1519_v23 = vld [vmem:[#allocation2 + $0x50] sm:$0x1]  ;;  %v1618_v30 = vsel %vm9656_vm14, %v1616_v55, %v1617_v60 }
  0xa5   : > { %1718 = vrot.lane.b32.xlu0 %v1615_v32, %s9118_s8  ;;  %v979_v2 = vld [vmem:[#allocation2 + $0xb0] sm:$0x1]  ;;  %v8686_v52 = vrot.slane %v1499_v7, 9  ;;  %906 = vst.msk [vmem:[#allocation4 + $0xc] sm:$0xf] %vm280_vm0, %v874_v28  ;;  %v1645_v29 = vrot.slane %v1519_v23, 5 }
  0xa6   : > { %v1379_v62 = vpop.permute.xlu2 %1378  ;;  %v1375_v63 = vpop.permute.xlu1 %1374  ;;  %v1311_v9 = vsel %vm9239_vm10, %v1306_v16, %v9586_v5  ;;  %v1342_v43 = vshll.u32 %v979_v2, 16  ;;  %v8691_v5 = vrot.slane %v1514_v45, 9  ;;  %v1511_v32 = vld [vmem:[#allocation2 + $0x30] sm:$0xe]  ;;  %v9749_v36 = vld [vmem:[#allocation2 + $0x34] sm:$0xf] }
  0xa7   : > { %1432 = vrot.lane.b32.xlu1 %v1369_v14, %s9117_s30  ;;  %1471 = vst.msk [vmem:[#allocation4 + $0x10] sm:$0xf] %vm1466_vm15, %v1379_v62  ;;  %v1383_v61 = vpop.permute.xlu0 %1382  ;;  %v1644_v37 = vrot.slane %v1642_v15, 4  ;;  %v880_v42 = vld [vmem:[#allocation2 + $0x34] sm:$0xf]  ;;  %v8690_v3 = vrot.slane %v1511_v32, 9  ;;  %v1601_v48 = vsel %vm9656_vm14, %v8686_v52, %v1600_v33 }
  0xa8   : > { %v1344_v17 = vrot.slane %v1342_v43, 5  ;;  %1469 = vst.msk [vmem:[#allocation4 + $0x8] sm:$0xf] %vm1466_vm15, %v1375_v63  ;;  %v1636_v31 = vsel %vm9656_vm14, %v8691_v5, %v1635_v18  ;;  %v879_v39 = vld [vmem:[#allocation2 + $0x30] sm:$0xf]  ;;  %v1628_v14 = vrot.slane %v9749_v36, 5 }
  0xa9   : > { %1473 = vst.msk [vmem:[#allocation4 + $0x18] sm:$0xf] %vm1466_vm15, %v1383_v61  ;;  %v878_v8 = vld [vmem:[#allocation2 + $0x28] sm:$0xf]  ;;  %v1646_v49 = vsel %vm9656_vm14, %v1644_v37, %v1645_v29  ;;  %v1504_v51 = vld [vmem:[#allocation2 + $0x14] sm:$0x1] }
  0xaa   : > { %v1345_v19 = vsel %vm9239_vm10, %v1340_v12, %v1344_v17  ;;  %912 = vst.msk [vmem:[#allocation4 + $0x24] sm:$0xf] %vm280_vm0, %v880_v42  ;;  %v1523_v53 = vld [vmem:[#allocation2 + $0x60] sm:$0xe]  ;;  %v9765_v54 = vld [vmem:[#allocation2 + $0x64] sm:$0xf]  ;;  %v1629_v57 = vsel %vm9656_vm14, %v8690_v3, %v1628_v14 }
  0xab   : > { %911 = vst.msk [vmem:[#allocation4 + $0x20] sm:$0xf] %vm280_vm0, %v879_v39  ;;  %v1609_v33 = vrot.slane %v1607_v59, 4  ;;  %v1610_v20 = vrot.slane %v1504_v51, 5  ;;  %v1516_v44 = vld [vmem:[#allocation2 + $0x44] sm:$0x1] }
  0xac   : > { %1422 = vrot.lane.b32.xlu2 %v1311_v9, %s9117_s30  ;;  %910 = vst.msk [vmem:[#allocation4 + $0x1c] sm:$0xf] %vm280_vm0, %v878_v8  ;;  %v8694_v58 = vrot.slane %v1523_v53, 9  ;;  %v1656_v62 = vrot.slane %v9765_v54, 5  ;;  %v9779_v63 = vld [vmem:[#allocation2 + $0x70] sm:$0xf] }
  0xad   : > { %1724 = vrot.lane.b32.xlu0 %v1625_v46, %s9118_s8  ;;  %v883_v16 = vld [vmem:[#allocation2 + $0x48] sm:$0xf]  ;;  %v882_v0 = vld [vmem:[#allocation2 + $0x40] sm:$0xf]  ;;  %v1637_v46 = vrot.slane %v1635_v18, 4  ;;  %v1638_v2 = vrot.slane %v1516_v44, 5  ;;  %v1611_v26 = vsel %vm9656_vm14, %v1609_v33, %v1610_v20 }
  0xae   : > { %v1377_v24 = vpop.permute.xlu1 %1376  ;;  %915 = vst.msk [vmem:[#allocation4 + $0x30] sm:$0xf] %vm280_vm0, %v883_v16  ;;  %v881_v45 = vld [vmem:[#allocation2 + $0x3c] sm:$0xf]  ;;  %v1508_v59 = vld [vmem:[#allocation2 + $0x24] sm:$0xe]  ;;  %v1657_v43 = vsel %vm9656_vm14, %v8694_v58, %v1656_v62 }
  0xaf   : > { %1714 = vrot.lane.b32.xlu1 %v1608_v10, %s9118_s8  ;;  %1470 = vst.msk [vmem:[#allocation4 + $0xc] sm:$0xf] %vm1466_vm15, %v1377_v24  ;;  %v1389_v34 = vpop.permute.xlu0 %1388  ;;  %v1663_v11 = vrot.slane %v9779_v63, 5  ;;  %v1528_v10 = vld [vmem:[#allocation2 + $0x74] sm:$0x1]  ;;  %v1639_v17 = vsel %vm9656_vm14, %v1637_v46, %v1638_v2  ;;  %v8689_v21 = vrot.slane %v1508_v59, 9 }
  0xb0   : > { %v1381_v35 = vpop.permute.xlu2 %1380  ;;  %1476 = vst.msk [vmem:[#allocation4 + $0x24] sm:$0xf] %vm1466_vm15, %v1389_v34  ;;  %v1520_v5 = vld [vmem:[#allocation2 + $0x54] sm:$0xe]  ;;  %v9795_v18 = vld [vmem:[#allocation2 + $0x58] sm:$0xf] }
  0xb1   : > { %1472 = vst.msk [vmem:[#allocation4 + $0x14] sm:$0xf] %vm1466_vm15, %v1381_v35  ;;  %v1665_v61 = vrot.slane %v1663_v11, 4  ;;  %v1666_v25 = vrot.slane %v1528_v10, 5  ;;  %v886_v27 = vld [vmem:[#allocation2 + $0x58] sm:$0xf]  ;;  %v1622_v28 = vsel %vm9656_vm14, %v8689_v21, %v1621_v13 }
  0xb2   : > { %914 = vst.msk [vmem:[#allocation4 + $0x2c] sm:$0xf] %vm280_vm0, %v882_v0  ;;  %v885_v60 = vld [vmem:[#allocation2 + $0x54] sm:$0xf]  ;;  %v8693_v24 = vrot.slane %v1520_v5, 9  ;;  %v1630_v13 = vrot.slane %v1628_v14, 4 }
  0xb3   : > { %913 = vst.msk [vmem:[#allocation4 + $0x28] sm:$0xf] %vm280_vm0, %v881_v45  ;;  %v884_v7 = vld [vmem:[#allocation2 + $0x4c] sm:$0xf]  ;;  %v1513_v35 = vld [vmem:[#allocation2 + $0x38] sm:$0x1] }
  0xb4   : > { %1428 = vrot.lane.b32.xlu2 %v1345_v19, %s9117_s30  ;;  %v1649_v19 = vrot.slane %v9795_v18, 5  ;;  %918 = vst.msk [vmem:[#allocation4 + $0x3c] sm:$0xf] %vm280_vm0, %v886_v27  ;;  %v9811_v52 = vld [vmem:[#allocation2 + $0x88] sm:$0xf]  ;;  %v1631_v37 = vrot.slane %v1513_v35, 5 }
  0xb5   : > { %1730 = vrot.lane.b32.xlu0 %v1636_v31, %s9118_s8  ;;  %v1667_v31 = vsel %vm9656_vm14, %v1665_v61, %v1666_v25  ;;  %917 = vst.msk [vmem:[#allocation4 + $0x38] sm:$0xf] %vm280_vm0, %v885_v60  ;;  %v1525_v29 = vld [vmem:[#allocation2 + $0x68] sm:$0x1]  ;;  %v1677_v34 = vrot.slane %v9811_v52, 5  ;;  %vm1999_vm2 = vcmask 126048  }
  0xb6   : > { %v1385_v47 = vpop.permute.xlu1 %1384  ;;  %916 = vst.msk [vmem:[#allocation4 + $0x34] sm:$0xf] %vm280_vm0, %v884_v7  ;;  %v1650_v41 = vsel %vm9656_vm14, %v8693_v24, %v1649_v19  ;;  %v9826_v39 = vld [vmem:[#allocation2 + $0x94] sm:$0xf]  ;;  %v889_v3 = vld [vmem:[#allocation2 + $0x6c] sm:$0xf]  ;;  %v1632_v36 = vsel %vm9656_vm14, %v1630_v13, %v1631_v37 }
  0xb7   : > { %1720 = vrot.lane.b32.xlu1 %v1618_v30, %s9118_s8  ;;  %1474 = vst.msk [vmem:[#allocation4 + $0x1c] sm:$0xf] %vm1466_vm15, %v1385_v47  ;;  %v1395_v40 = vpop.permute.xlu0 %1394  ;;  %v1532_v30 = vld [vmem:[#allocation2 + $0x84] sm:$0xe]  ;;  %v1658_v47 = vrot.slane %v1656_v62, 4  ;;  %v1684_v54 = vrot.slane %v9826_v39, 5 }
  0xb8   : > { %1479 = vst.msk [vmem:[#allocation4 + $0x30] sm:$0xf] %vm1466_vm15, %v1395_v40  ;;  %v8697_v42 = vrot.slane %v1532_v30, 9  ;;  %v888_v8 = vld [vmem:[#allocation2 + $0x64] sm:$0xf]  ;;  %v1679_v7 = vrot.slane %v1677_v34, 4 }
  0xb9   : > { %921 = vst.msk [vmem:[#allocation4 + $0x48] sm:$0xf] %vm280_vm0, %v889_v3  ;;  %v1517_v53 = vld [vmem:[#allocation2 + $0x48] sm:$0xe]  ;;  %v1529_v44 = vld [vmem:[#allocation2 + $0x78] sm:$0xe] }
  0xba   : > { %920 = vst.msk [vmem:[#allocation4 + $0x44] sm:$0xf] %vm280_vm0, %v888_v8  ;;  %v1678_v51 = vsel %vm9656_vm14, %v8697_v42, %v1677_v34  ;;  %v8692_v20 = vrot.slane %v1517_v53, 9  ;;  %v9841_v58 = vld [vmem:[#allocation2 + $0x7c] sm:$0xf]  ;;  %v1686_v62 = vrot.slane %v1684_v54, 4 }
  0xbb   : > { %v892_v40 = vld [vmem:[#allocation2 + $0x7c] sm:$0xf]  ;;  %v891_v0 = vld [vmem:[#allocation2 + $0x78] sm:$0xf]  ;;  %v890_v46 = vld [vmem:[#allocation2 + $0x70] sm:$0xf] }
  0xbc   : > { %1710 = vrot.lane.b32.xlu2 %v1601_v48, %s9118_s8  ;;  %v1659_v48 = vrot.slane %v1525_v29, 5  ;;  %v8696_v2 = vrot.slane %v1529_v44, 9  ;;  %v1670_v45 = vrot.slane %v9841_v58, 5  ;;  %924 = vst.msk [vmem:[#allocation4 + $0x54] sm:$0xf] %vm280_vm0, %v892_v40  ;;  %vm2560_vm4 = vcmask 158848  }
  0xbd   : > { %1736 = vrot.lane.b32.xlu0 %v1646_v49, %s9118_s8  ;;  %v887_v49 = vld [vmem:[#allocation2 + $0x60] sm:$0xf]  ;;  %923 = vst.msk [vmem:[#allocation4 + $0x50] sm:$0xf] %vm280_vm0, %v891_v0  ;;  %v9856_v10 = vld [vmem:[#allocation2 + $0xac] sm:$0xf] }
  0xbe   : > { %919 = vst.msk [vmem:[#allocation4 + $0x40] sm:$0xf] %vm280_vm0, %v887_v49  ;;  %v1660_v33 = vsel %vm9656_vm14, %v1658_v47, %v1659_v48  ;;  %v1671_v22 = vsel %vm9656_vm14, %v8696_v2, %v1670_v45  ;;  %v1534_v21 = vld [vmem:[#allocation2 + $0x8c] sm:$0x1]  ;;  %v1698_v25 = vrot.slane %v9856_v10, 5  ;;  %v1672_v63 = vrot.slane %v1670_v45, 4 }
  0xbf   : > { %1726 = vrot.lane.b32.xlu1 %v1629_v57, %s9118_s8  ;;  %v1537_v57 = vld [vmem:[#allocation2 + $0x98] sm:$0x1]  ;;  %922 = vst.msk [vmem:[#allocation4 + $0x4c] sm:$0xf] %vm280_vm0, %v890_v46  ;;  %v895_v60 = vld [vmem:[#allocation2 + $0x90] sm:$0xf] }
  0xc0   : > { %v1687_v16 = vrot.slane %v1537_v57, 5  ;;  %v9870_v27 = vld [vmem:[#allocation2 + $0xb8] sm:$0xf]  ;;  %v894_v24 = vld [vmem:[#allocation2 + $0x88] sm:$0xf]  ;;  %v1680_v18 = vrot.slane %v1534_v21, 5 }
  0xc1   : > { %v1391_v9 = vpop.permute.xlu1 %1390  ;;  %927 = vst.msk [vmem:[#allocation4 + $0x60] sm:$0xf] %vm280_vm0, %v895_v60  ;;  %v1526_v35 = vld [vmem:[#allocation2 + $0x6c] sm:$0xe]  ;;  %v1546_v30 = vld [vmem:[#allocation2 + $0xbc] sm:$0x1] }
  0xc2   : > { %1477 = vst.msk [vmem:[#allocation4 + $0x28] sm:$0xf] %vm1466_vm15, %v1391_v9  ;;  %v1688_v59 = vsel %vm9656_vm14, %v1686_v62, %v1687_v16  ;;  %v1522_v9 = vld [vmem:[#allocation2 + $0x5c] sm:$0x1]  ;;  %v1681_v52 = vsel %vm9656_vm14, %v1679_v7, %v1680_v18  ;;  %v1539_v13 = vld [vmem:[#allocation2 + $0xa0] sm:$0xf] }
  0xc3   : > { %v1387_v12 = vpop.permute.xlu2 %1386  ;;  %926 = vst.msk [vmem:[#allocation4 + $0x5c] sm:$0xf] %vm280_vm0, %v894_v24  ;;  %v1708_v42 = vrot.slane %v1546_v30, 5  ;;  %v898_v3 = vld [vmem:[#allocation2 + $0xa0] sm:$0xf]  ;;  %v1691_v48 = vrot.slane %v1539_v13, 5 }
  0xc4   : > { %1716 = vrot.lane.b32.xlu2 %v1611_v26, %s9118_s8  ;;  %1475 = vst.msk [vmem:[#allocation4 + $0x20] sm:$0xf] %vm1466_vm15, %v1387_v12  ;;  %v1643_v26 = vsel %vm9656_vm14, %v8692_v20, %v1642_v15  ;;  %v1651_v15 = vrot.slane %v1649_v19, 4  ;;  %v893_v19 = vld [vmem:[#allocation2 + $0x84] sm:$0xf]  ;;  %v1700_v16 = vrot.slane %v1698_v25, 4 }
  0xc5   : > { %1742 = vrot.lane.b32.xlu0 %v1657_v43, %s9118_s8  ;;  %v1401_v55 = vpop.permute.xlu0 %1400  ;;  %v1541_v43 = vld [vmem:[#allocation2 + $0xa8] sm:$0xe]  ;;  %925 = vst.msk [vmem:[#allocation4 + $0x58] sm:$0xf] %vm280_vm0, %v893_v19  ;;  %v897_v8 = vld [vmem:[#allocation2 + $0x9c] sm:$0xf] }
  0xc6   : > { %1482 = vst.msk [vmem:[#allocation4 + $0x3c] sm:$0xf] %vm1466_vm15, %v1401_v55  ;;  %v8700_v61 = vrot.slane %v1541_v43, 9  ;;  %v896_v49 = vld [vmem:[#allocation2 + $0x94] sm:$0xf]  ;;  %vm2897_vm5 = vcmask 191648  }
  0xc7   : > { %1732 = vrot.lane.b32.xlu1 %v1639_v17, %s9118_s8  ;;  %v1652_v17 = vrot.slane %v1522_v9, 5  ;;  %930 = vst.msk [vmem:[#allocation4 + $0x6c] sm:$0xf] %vm280_vm0, %v898_v3  ;;  %v901_v20 = vld [vmem:[#allocation2 + $0xb4] sm:$0xf]  ;;  %vm3091_vm7 = vcmask 224448  }
  0xc8   : > { %929 = vst.msk [vmem:[#allocation4 + $0x68] sm:$0xf] %vm280_vm0, %v897_v8  ;;  %v900_v44 = vld [vmem:[#allocation2 + $0xac] sm:$0xf]  ;;  %v899_v62 = vld [vmem:[#allocation2 + $0xa8] sm:$0xf] }
  0xc9   : > { %v1397_v23 = vpop.permute.xlu1 %1396  ;;  %928 = vst.msk [vmem:[#allocation4 + $0x64] sm:$0xf] %vm280_vm0, %v896_v49  ;;  %v1841_v46 = vld [vmem:[#allocation2 + $0x18] sm:$0xf]  ;;  %v1535_v2 = vld [vmem:[#allocation2 + $0x90] sm:$0xe] }
  0xca   : > { %1480 = vst.msk [vmem:[#allocation4 + $0x34] sm:$0xf] %vm1466_vm15, %v1397_v23  ;;  %v1705_v23 = vrot.slane %v9870_v27, 5  ;;  %v8698_v45 = vrot.slane %v1535_v2, 9  ;;  %v1844_v10 = vld [vmem:[#allocation2 + $0x28] sm:$0xf] }
  0xcb   : > { %v1393_v32 = vpop.permute.xlu2 %1392  ;;  %933 = vst.msk [vmem:[#allocation4 + $0x78] sm:$0xf] %vm280_vm0, %v901_v20  ;;  %v1850_v19 = vld [vmem:[#allocation2 + $0x4c] sm:$0xf]  ;;  %v1840_v27 = vld [vmem:[#allocation2 + $0x10] sm:$0xf] }
  0xcc   : > { %1722 = vrot.lane.b32.xlu2 %v1622_v28, %s9118_s8  ;;  %1478 = vst.msk [vmem:[#allocation4 + $0x2c] sm:$0xf] %vm1466_vm15, %v1393_v32  ;;  %v1653_v28 = vsel %vm9656_vm14, %v1651_v15, %v1652_v17  ;;  %v8695_v32 = vrot.slane %v1526_v35, 9  ;;  %v1707_v29 = vrot.slane %v1705_v23, 4  ;;  %v1685_v43 = vsel %vm9656_vm14, %v8698_v45, %v1684_v54  ;;  %v1839_v15 = vld [vmem:[#allocation2 + $0xc] sm:$0xf] }
  0xcd   : > { %1748 = vrot.lane.b32.xlu0 %v1667_v31, %s9118_s8  ;;  %v1699_v31 = vsel %vm9656_vm14, %v8700_v61, %v1698_v25  ;;  %932 = vst.msk [vmem:[#allocation4 + $0x74] sm:$0xf] %vm280_vm0, %v900_v44  ;;  %v1693_v17 = vrot.slane %v1691_v48, 4  ;;  %v1847_v61 = vld [vmem:[#allocation2 + $0x3c] sm:$0xf]  ;;  %vm3652_vm8 = vcmask 257248  }
  0xce   : > { %931 = vst.msk [vmem:[#allocation4 + $0x70] sm:$0xf] %vm280_vm0, %v899_v62  ;;  %v1544_v25 = vld [vmem:[#allocation2 + $0xb4] sm:$0xe]  ;;  %vm12467_vm12 = vcmask 1041408   ;;  %vm3989_vm13 = vcmask 290048  }
  0xcf   : > { %1738 = vrot.lane.b32.xlu1 %v1650_v41, %s9118_s8  ;;  %v1538_v41 = vld [vmem:[#allocation2 + $0x9c] sm:$0xe]  ;;  %v8701_v60 = vrot.slane %v1544_v25, 9 }
  0xd0   : > { %v8699_v47 = vrot.slane %v1538_v41, 9 }
  0xd1   : > { %v1407_v14 = vpop.permute.xlu0 %1406  ;;  %v1706_v18 = vsel %vm9656_vm14, %v8701_v60, %v1705_v23  ;;  %v1853_v23 = vld [vmem:[#allocation2 + $0x60] sm:$0xf] }
  0xd2   : > { %1485 = vst.msk [vmem:[#allocation4 + $0x48] sm:$0xf] %vm1466_vm15, %v1407_v14  ;;  %v1709_v14 = vsel %vm9656_vm14, %v1707_v29, %v1708_v42  ;;  %v1692_v57 = vsel %vm9656_vm14, %v8699_v47, %v1691_v48  ;;  %v1856_v29 = vld [vmem:[#allocation2 + $0x70] sm:$0xf]  ;;  %v1851_v42 = vld [vmem:[#allocation2 + $0x54] sm:$0xf] }
  0xd3   : > { %v432_v48 = vld [vmem:[%s9202_s29 + $0x78] sm:$0xf] }
  0xd4   : > { %1728 = vrot.lane.b32.xlu2 %v1632_v36, %s9118_s8  ;;  %v1664_v36 = vsel %vm9656_vm14, %v8695_v32, %v1663_v11  ;;  %v692_v49 = vshrl.u32 %v432_v48, 16 }
  0xd5   : > { %1754 = vrot.lane.b32.xlu0 %v1678_v51, %s9118_s8  ;;  %v1531_v51 = vld [vmem:[#allocation2 + $0x80] sm:$0x1] }
  0xd6   : > { %v1673_v11 = vrot.slane %v1531_v51, 5  ;;  %v1859_v51 = vld [vmem:[#allocation2 + $0x84] sm:$0xf] }
  0xd7   : > { %1744 = vrot.lane.b32.xlu1 %v1660_v33, %s9118_s8  ;;  %v1543_v33 = vld [vmem:[#allocation2 + $0xb0] sm:$0x1] }
  0xd8   : > { %v1701_v40 = vrot.slane %v1543_v33, 5  ;;  %v1674_v0 = vsel %vm9656_vm14, %v1672_v63, %v1673_v11  ;;  %v1854_v63 = vld [vmem:[#allocation2 + $0x64] sm:$0xf] }
  0xda   : > { %v1702_v58 = vsel %vm9656_vm14, %v1700_v16, %v1701_v40  ;;  %v1849_v40 = vld [vmem:[#allocation2 + $0x48] sm:$0xf] }
  0xdc   : > { %1734 = vrot.lane.b32.xlu2 %v1643_v26, %s9118_s8  ;;  %v1403_v12 = vpop.permute.xlu1 %1402 }
  0xdd   : > { %1760 = vrot.lane.b32.xlu0 %v1688_v59, %s9118_s8  ;;  %v1399_v5 = vpop.permute.xlu2 %1398  ;;  %1483 = vst.msk [vmem:[#allocation4 + $0x40] sm:$0xf] %vm1466_vm15, %v1403_v12  ;;  %v902_v59 = vld [vmem:[#allocation2 + $0xb8] sm:$0xf] }
  0xde   : > { %1481 = vst.msk [vmem:[#allocation4 + $0x38] sm:$0xf] %vm1466_vm15, %v1399_v5 }
  0xdf   : > { %1750 = vrot.lane.b32.xlu1 %v1671_v22, %s9118_s8  ;;  %v1413_v55 = vpop.permute.xlu0 %1412  ;;  %934 = vst.msk [vmem:[#allocation4 + $0x7c] sm:$0xf] %vm280_vm0, %v902_v59  ;;  %v1540_v22 = vld [vmem:[#allocation2 + $0xa4] sm:$0x1]  ;;  %v1852_v59 = vld [vmem:[#allocation2 + $0x58] sm:$0xf] }
  0xe0   : > { %1488 = vst.msk [vmem:[#allocation4 + $0x54] sm:$0xf] %vm1466_vm15, %v1413_v55  ;;  %v1694_v21 = vrot.slane %v1540_v22, 5  ;;  %v1842_v55 = vld [vmem:[#allocation2 + $0x1c] sm:$0xf] }
  0xe1   : > { %v1860_v22 = vld [vmem:[#allocation2 + $0x88] sm:$0xf] }
  0xe2   : > { %v1695_v54 = vsel %vm9656_vm14, %v1693_v17, %v1694_v21  ;;  %v2033_v21 = vld [vmem:[#allocation2 + $0x10] sm:$0xf] }
  0xe4   : > { %1740 = vrot.lane.b32.xlu2 %v1653_v28, %s9118_s8  ;;  %v1845_v28 = vld [vmem:[#allocation2 + $0x30] sm:$0xf] }
  0xe5   : > { %1766 = vrot.lane.b32.xlu0 %v1699_v31, %s9118_s8  ;;  %v1405_v37 = vpop.permute.xlu2 %1404 }
  0xe6   : > { %1484 = vst.msk [vmem:[#allocation4 + $0x44] sm:$0xf] %vm1466_vm15, %v1405_v37  ;;  %v1409_v34 = vpop.permute.xlu1 %1408  ;;  %v1843_v37 = vld [vmem:[#allocation2 + $0x24] sm:$0xf] }
  0xe7   : > { %1756 = vrot.lane.b32.xlu1 %v1681_v52, %s9118_s8  ;;  %1486 = vst.msk [vmem:[#allocation4 + $0x4c] sm:$0xf] %vm1466_vm15, %v1409_v34  ;;  %v1848_v52 = vld [vmem:[#allocation2 + $0x40] sm:$0xf] }
  0xe8   : > { %v340_v34 = vld [vmem:[#allocation2 + $0xc0] sm:$0x1] }
  0xe9   : > { %v341_v3 = vsel %vm9177_vm3, 0, %v340_v34 }
  0xea   : > { %342 = vst [vmem:[#allocation2 + $0xc0] sm:$0x1] %v341_v3 }
  0xeb   : > { %v1419_v53 = vpop.permute.xlu0 %1418 }
  0xec   : > { %1746 = vrot.lane.b32.xlu2 %v1664_v36, %s9118_s8  ;;  %1491 = vst.msk [vmem:[#allocation4 + $0x60] sm:$0xf] %vm1466_vm15, %v1419_v53  ;;  %v9962_v53 = vrot.slane %v692_v49, 7 }
  0xed   : > { %1772 = vrot.lane.b32.xlu0 %v1709_v14, %s9118_s8  ;;  %v1846_v14 = vld [vmem:[#allocation2 + $0x34] sm:$0xf] }
  0xef   : > { %1762 = vrot.lane.b32.xlu1 %v1692_v57, %s9118_s8  ;;  %v695_v57 = vshll.u32 %v432_v48, 16 }
  0xf1   : > { %v697_v11 = vor.u32 %v695_v57, %v9962_v53  ;;  %v864_v33 = vld [vmem:[#allocation2 + $0xc0] sm:$0xf] }
  0xf3   : > { %v865_v62 = vsel %vm9247_vm11, %v697_v11, %v864_v33 }
  0xf4   : > { %1752 = vrot.lane.b32.xlu2 %v1674_v0, %s9118_s8  ;;  %866 = vst [vmem:[#allocation2 + $0xc0] sm:$0xf] %v865_v62  ;;  %v1862_v0 = vld [vmem:[#allocation2 + $0x94] sm:$0xf] }
  0xf5   : > { %1907 = vrot.lane.b32.xlu0 %v1841_v46, %s9119_s9  ;;  %v1857_v46 = vld [vmem:[#allocation2 + $0x78] sm:$0xf] }
  0xf6   : > { %v1411_v26 = vpop.permute.xlu2 %1410 }
  0xf7   : > { %1768 = vrot.lane.b32.xlu1 %v1702_v58, %s9118_s8  ;;  %1487 = vst.msk [vmem:[#allocation4 + $0x50] sm:$0xf] %vm1466_vm15, %v1411_v26  ;;  %v2032_v58 = vld [vmem:[#allocation2 + $0xc] sm:$0xf] }
  0xf8   : > { %v1415_v9 = vpop.permute.xlu1 %1414 }
  0xf9   : > { %1489 = vst.msk [vmem:[#allocation4 + $0x58] sm:$0xf] %vm1466_vm15, %v1415_v9  ;;  %v2081_v9 = vshrl.u32 %v2032_v58, 16 }
  0xfc   : > { %v1425_v12 = vpop.permute.xlu0 %1424  ;;  %1758 = vrot.lane.b32.xlu2 %v1685_v43, %s9118_s8  ;;  %v2084_v43 = vshll.u32 %v2032_v58, 16  ;;  %v2034_v58 = vld [vmem:[#allocation2 + $0x14] sm:$0x1] }
  0xfd   : > { %1494 = vst.msk [vmem:[#allocation4 + $0x6c] sm:$0xf] %vm1466_vm15, %v1425_v12  ;;  %1913 = vrot.lane.b32.xlu0 %v1844_v10, %s9119_s9  ;;  %v1865_v10 = vld [vmem:[#allocation2 + $0xa8] sm:$0xf]  ;;  %v2083_v12 = vrot.slane %v2081_v9, 4 }
  0xfe   : > { %v1417_v5 = vpop.permute.xlu2 %1416 }
  0xff   : > { %1903 = vrot.lane.b32.xlu1 %v1839_v15, %s9119_s9  ;;  %1490 = vst.msk [vmem:[#allocation4 + $0x5c] sm:$0xf] %vm1466_vm15, %v1417_v5  ;;  %v2086_v15 = vrot.slane %v2084_v43, 5 }
 0x100   : > { %v1421_v39 = vpop.permute.xlu1 %1420 }
 0x101   : > { %1492 = vst.msk [vmem:[#allocation4 + $0x64] sm:$0xf] %vm1466_vm15, %v1421_v39  ;;  %v2036_v39 = vld [vmem:[#allocation2 + $0x1c] sm:$0xf]  ;;  %v2087_v60 = vor.u32 %v2086_v15, %v2083_v12  ;;  %v1869_v12 = vld [vmem:[#allocation2 + $0xc0] sm:$0xf] }
 0x104   : > { %1764 = vrot.lane.b32.xlu2 %v1695_v54, %s9118_s8  ;;  %v433_v54 = vld [vmem:[%s9202_s29 + $0x7c] sm:$0xf] }
 0x105   : > { %1919 = vrot.lane.b32.xlu0 %v1847_v61, %s9119_s9  ;;  %v700_v61 = vshrl.u32 %v433_v54, 16 }
 0x106   : > { %v1423_v24 = vpop.permute.xlu2 %1422 }
 0x107   : > { %1909 = vrot.lane.b32.xlu1 %v1842_v55, %s9119_s9  ;;  %1493 = vst.msk [vmem:[#allocation4 + $0x68] sm:$0xf] %vm1466_vm15, %v1423_v24  ;;  %v1431_v7 = vpop.permute.xlu0 %1430  ;;  %v1855_v55 = vld [vmem:[#allocation2 + $0x6c] sm:$0xf]  ;;  %v2090_v24 = vshll.u32 %v2033_v21, 16 }
 0x108   : > { %1497 = vst.msk [vmem:[#allocation4 + $0x78] sm:$0xf] %vm1466_vm15, %v1431_v7  ;;  %v1868_v7 = vld [vmem:[#allocation2 + $0xb8] sm:$0xf] }
 0x10c   : > { %1770 = vrot.lane.b32.xlu2 %v1706_v18, %s9118_s8  ;;  %v2114_v18 = vshll.u32 %v2036_v39, 16 }
 0x10d   : > { %1925 = vrot.lane.b32.xlu0 %v1850_v19, %s9119_s9  ;;  %v2118_v19 = vshrl.u32 %v2036_v39, 16 }
 0x10e   : > { %v1429_v31 = vpop.permute.xlu2 %1428 }
 0x10f   : > { %1915 = vrot.lane.b32.xlu1 %v1845_v28, %s9119_s9  ;;  %1496 = vst.msk [vmem:[#allocation4 + $0x74] sm:$0xf] %vm1466_vm15, %v1429_v31  ;;  %v1713_v35 = vpop.permute.xlu0 %1712  ;;  %v9986_v28 = vrot.slane %v700_v61, 7  ;;  %v703_v31 = vshll.u32 %v433_v54, 16 }
 0x110   : > { %1808 = vst.msk [vmem:[#allocation4 + $0x4] sm:$0xf] %vm1806_vm1, %v1713_v35  ;;  %v1863_v35 = vld [vmem:[#allocation2 + $0x9c] sm:$0xf] }
 0x111   : > { %v1427_v30 = vpop.permute.xlu1 %1426 }
 0x112   : > { %1495 = vst.msk [vmem:[#allocation4 + $0x70] sm:$0xf] %vm1466_vm15, %v1427_v30  ;;  %v2088_v30 = vrot.slane %v2087_v60, 4 }
 0x114   : > { %1905 = vrot.lane.b32.xlu2 %v1840_v27, %s9119_s9  ;;  %v9990_v27 = vrot.slane %v2090_v24, 5 }
 0x115   : > { %1931 = vrot.lane.b32.xlu0 %v1853_v23, %s9119_s9  ;;  %v698_v23 = vrot.slane %v9962_v53, 4  ;;  %v2094_v53 = vshrl.u32 %v2033_v21, 16 }
 0x116   : > { %v1711_v32 = vpop.permute.xlu2 %1710 }
 0x117   : > { %1921 = vrot.lane.b32.xlu1 %v1848_v52, %s9119_s9  ;;  %1807 = vst.msk [vmem:[#allocation4] sm:$0xf] %vm1806_vm1, %v1711_v32  ;;  %v1719_v41 = vpop.permute.xlu0 %1718  ;;  %v705_v52 = vor.u32 %v703_v31, %v9986_v28 }
 0x118   : > { %1811 = vst.msk [vmem:[#allocation4 + $0x10] sm:$0xf] %vm1806_vm1, %v1719_v41  ;;  %v9994_v41 = vrot.slane %v2114_v18, 5  ;;  %v2050_v18 = vld [vmem:[#allocation2 + $0x54] sm:$0xf] }
 0x119   : > { %v1433_v13 = vpop.permute.xlu1 %1432  ;;  %v706_v34 = vsel %vm9228_vm9, %v698_v23, %v705_v52 }
 0x11a   : > { %1498 = vst.msk [vmem:[#allocation4 + $0x7c] sm:$0xf] %vm1466_vm15, %v1433_v13  ;;  %v2120_v13 = vrot.slane %v2118_v19, 4 }
 0x11b   : > { %867 = vst.msk [vmem:[#allocation2 + $0xc4] sm:$0xf] %vm280_vm0, %v706_v34 }
 0x11c   : > { %1911 = vrot.lane.b32.xlu2 %v1843_v37, %s9119_s9  ;;  %v2121_v48 = vor.u32 %v2120_v13, %v9994_v41  ;;  %v2225_v13 = vshrl.u32 %v2050_v18, 16 }
 0x11d   : > { %1937 = vrot.lane.b32.xlu0 %v1856_v29, %s9119_s9  ;;  %v2037_v29 = vld [vmem:[#allocation2 + $0x20] sm:$0x1] }
 0x11e   : > { %v1717_v8 = vpop.permute.xlu2 %1716  ;;  %v2124_v49 = vshll.u32 %v2037_v29, 16 }
 0x11f   : > { %1927 = vrot.lane.b32.xlu1 %v1851_v42, %s9119_s9  ;;  %1810 = vst.msk [vmem:[#allocation4 + $0xc] sm:$0xf] %vm1806_vm1, %v1717_v8  ;;  %v1725_v47 = vpop.permute.xlu0 %1724  ;;  %v2041_v42 = vld [vmem:[#allocation2 + $0x30] sm:$0xf]  ;;  %v1858_v8 = vld [vmem:[#allocation2 + $0x7c] sm:$0xf] }
 0x120   : > { %1814 = vst.msk [vmem:[#allocation4 + $0x1c] sm:$0xf] %vm1806_vm1, %v1725_v47  ;;  %v2093_v47 = vsel %vm9239_vm10, %v2088_v30, %v9990_v27  ;;  %v2126_v11 = vrot.slane %v2124_v49, 5  ;;  %v1864_v30 = vld [vmem:[#allocation2 + $0xa0] sm:$0xf] }
 0x121   : > { %v1715_v36 = vpop.permute.xlu1 %1714 }
 0x122   : > { %1809 = vst.msk [vmem:[#allocation4 + $0x8] sm:$0xf] %vm1806_vm1, %v1715_v36  ;;  %v2153_v36 = vshrl.u32 %v2041_v42, 16 }
 0x124   : > { %1917 = vrot.lane.b32.xlu2 %v1846_v14, %s9119_s9  ;;  %v2156_v14 = vshll.u32 %v2041_v42, 16  ;;  %v2155_v33 = vrot.slane %v2153_v36, 4  ;;  %v2227_v36 = vrot.slane %v2225_v13, 4 }
 0x125   : > { %1943 = vrot.lane.b32.xlu0 %v1859_v51, %s9119_s9  ;;  %v1866_v51 = vld [vmem:[#allocation2 + $0xac] sm:$0xf] }
 0x126   : > { %v1723_v20 = vpop.permute.xlu2 %1722 }
 0x127   : > { %1933 = vrot.lane.b32.xlu1 %v1854_v63, %s9119_s9  ;;  %1813 = vst.msk [vmem:[#allocation4 + $0x18] sm:$0xf] %vm1806_vm1, %v1723_v20  ;;  %v1731_v44 = vpop.permute.xlu0 %1730  ;;  %v2122_v63 = vrot.slane %v2121_v48, 4  ;;  %v2158_v20 = vrot.slane %v2156_v14, 5  ;;  %v2035_v48 = vld [vmem:[#allocation2 + $0x18] sm:$0xf] }
 0x128   : > { %1817 = vst.msk [vmem:[#allocation4 + $0x28] sm:$0xf] %vm1806_vm1, %v1731_v44  ;;  %v2045_v44 = vld [vmem:[#allocation2 + $0x40] sm:$0xf] }
 0x129   : > { %v1721_v16 = vpop.permute.xlu1 %1720  ;;  %v2159_v9 = vor.u32 %v2158_v20, %v2155_v33  ;;  %v10045_v33 = vld [vmem:[#allocation2 + $0x58] sm:$0xf] }
 0x12a   : > { %1812 = vst.msk [vmem:[#allocation4 + $0x14] sm:$0xf] %vm1806_vm1, %v1721_v16  ;;  %v10011_v16 = vld [vmem:[#allocation2 + $0x34] sm:$0xf]  ;;  %v2043_v20 = vld [vmem:[#allocation2 + $0x38] sm:$0x1] }
 0x12b   : > { %v2162_v43 = vshll.u32 %v10011_v16, 16  ;;  %v2160_v54 = vrot.slane %v2159_v9, 4  ;;  %v2166_v29 = vshrl.u32 %v10011_v16, 16 }
 0x12c   : > { %1923 = vrot.lane.b32.xlu2 %v1849_v40, %s9119_s9  ;;  %v2096_v40 = vrot.slane %v2094_v53, 4  ;;  %v2054_v53 = vld [vmem:[#allocation2 + $0x64] sm:$0xf] }
 0x12d   : > { %1949 = vrot.lane.b32.xlu0 %v1862_v0, %s9119_s9  ;;  %v2038_v0 = vld [vmem:[#allocation2 + $0x24] sm:$0xf]  ;;  %v10023_v61 = vrot.slane %v2162_v43, 5  ;;  %v2172_v43 = vshll.u32 %v2043_v20, 16 }
 0x12e   : > { %v1729_v2 = vpop.permute.xlu2 %1728  ;;  %v2097_v15 = vor.u32 %v2096_v40, %v9990_v27  ;;  %v1867_v40 = vld [vmem:[#allocation2 + $0xb4] sm:$0xf] }
 0x12f   : > { %1939 = vrot.lane.b32.xlu1 %v1857_v46, %s9119_s9  ;;  %1816 = vst.msk [vmem:[#allocation4 + $0x24] sm:$0xf] %vm1806_vm1, %v1729_v2  ;;  %v1737_v45 = vpop.permute.xlu0 %1736  ;;  %v1861_v2 = vld [vmem:[#allocation2 + $0x90] sm:$0xf] }
 0x130   : > { %1820 = vst.msk [vmem:[#allocation4 + $0x34] sm:$0xf] %vm1806_vm1, %v1737_v45  ;;  %v2186_v45 = vshll.u32 %v2045_v44, 16  ;;  %v2098_v19 = vrot.slane %v2097_v15, 4  ;;  %v10058_v15 = vld [vmem:[#allocation2 + $0x4c] sm:$0xf] }
 0x131   : > { %v1727_v26 = vpop.permute.xlu1 %1726 }
 0x132   : > { %1815 = vst.msk [vmem:[#allocation4 + $0x20] sm:$0xf] %vm1806_vm1, %v1727_v26  ;;  %v2190_v26 = vshrl.u32 %v2045_v44, 16  ;;  %v10021_v21 = vrot.slane %v2186_v45, 5  ;;  %v2105_v44 = vshrl.u32 %v2035_v48, 16 }
 0x134   : > { %1929 = vrot.lane.b32.xlu2 %v1852_v59, %s9119_s9  ;;  %v2127_v59 = vsel %vm9239_vm10, %v2122_v63, %v2126_v11  ;;  %v2168_v11 = vrot.slane %v2166_v29, 4 }
 0x135   : > { %1955 = vrot.lane.b32.xlu0 %v1865_v10, %s9119_s9  ;;  %v2129_v10 = vshrl.u32 %v2038_v0, 16 }
 0x136   : > { %v1735_v17 = vpop.permute.xlu2 %1734  ;;  %v2169_v9 = vor.u32 %v2168_v11, %v10023_v61 }
 0x137   : > { %1945 = vrot.lane.b32.xlu1 %v1860_v22, %s9119_s9  ;;  %1819 = vst.msk [vmem:[#allocation4 + $0x30] sm:$0xf] %vm1806_vm1, %v1735_v17  ;;  %v1743_v5 = vpop.permute.xlu0 %1742  ;;  %v2132_v22 = vshll.u32 %v2038_v0, 16  ;;  %v2100_v17 = vshll.u32 %v2034_v58, 16  ;;  %v2131_v24 = vrot.slane %v2129_v10, 4  ;;  %v2262_v58 = vshrl.u32 %v2054_v53, 16 }
 0x138   : > { %1823 = vst.msk [vmem:[#allocation4 + $0x40] sm:$0xf] %vm1806_vm1, %v1743_v5  ;;  %v2192_v5 = vrot.slane %v2190_v26, 4 }
 0x139   : > { %v1733_v25 = vpop.permute.xlu1 %1732  ;;  %v2102_v31 = vrot.slane %v2100_v17, 5 }
 0x13a   : > { %1818 = vst.msk [vmem:[#allocation4 + $0x2c] sm:$0xf] %vm1806_vm1, %v1733_v25  ;;  %v10025_v25 = vld [vmem:[#allocation2 + $0x28] sm:$0xf]  ;;  %v2193_v23 = vor.u32 %v2192_v5, %v10021_v21 }
 0x13b   : > { %v2138_v27 = vshll.u32 %v10025_v25, 16  ;;  %v2103_v34 = vsel %vm9239_vm10, %v2098_v19, %v2102_v31  ;;  %v2059_v31 = vld [vmem:[#allocation2 + $0x78] sm:$0xf] }
 0x13c   : > { %1935 = vrot.lane.b32.xlu2 %v1855_v55, %s9119_s9  ;;  %v2046_v55 = vld [vmem:[#allocation2 + $0x44] sm:$0x1] }
 0x13d   : > { %1961 = vrot.lane.b32.xlu0 %v1868_v7, %s9119_s9  ;;  %v2134_v7 = vrot.slane %v2132_v22, 5  ;;  %v2196_v52 = vshll.u32 %v2046_v55, 16  ;;  %v2107_v22 = vrot.slane %v2105_v44, 4  ;;  %v2056_v44 = vld [vmem:[#allocation2 + $0x6c] sm:$0xf] }
 0x13e   : > { %v1741_v32 = vpop.permute.xlu2 %1740 }
 0x13f   : > { %1951 = vrot.lane.b32.xlu1 %v1863_v35, %s9119_s9  ;;  %1822 = vst.msk [vmem:[#allocation4 + $0x3c] sm:$0xf] %vm1806_vm1, %v1741_v32  ;;  %v1749_v37 = vpop.permute.xlu0 %1748  ;;  %v2165_v32 = vsel %vm9239_vm10, %v2160_v54, %v10023_v61  ;;  %v2135_v42 = vor.u32 %v2134_v7, %v2131_v24  ;;  %v2264_v54 = vrot.slane %v2262_v58, 4  ;;  %v2055_v24 = vld [vmem:[#allocation2 + $0x68] sm:$0x1]  ;;  %v2170_v7 = vrot.slane %v2169_v9, 4 }
 0x140   : > { %1826 = vst.msk [vmem:[#allocation4 + $0x4c] sm:$0xf] %vm1806_vm1, %v1749_v37  ;;  %v2228_v37 = vshll.u32 %v2050_v18, 16  ;;  %v2174_v18 = vrot.slane %v2172_v43, 5  ;;  %v2273_v9 = vshrl.u32 %v2056_v44, 16  ;;  %v2276_v43 = vshll.u32 %v2056_v44, 16 }
 0x141   : > { %v1739_v3 = vpop.permute.xlu1 %1738 }
 0x142   : > { %1821 = vst.msk [vmem:[#allocation4 + $0x38] sm:$0xf] %vm1806_vm1, %v1739_v3  ;;  %v10041_v3 = vrot.slane %v2138_v27, 5  ;;  %v2230_v14 = vrot.slane %v2228_v37, 5  ;;  %v2210_v27 = vshll.u32 %v10058_v15, 16  ;;  %v2268_v37 = vshll.u32 %v2055_v24, 16 }
 0x144   : > { %1941 = vrot.lane.b32.xlu2 %v1858_v8, %s9119_s9  ;;  %v2194_v8 = vrot.slane %v2193_v23, 4  ;;  %v2231_v26 = vor.u32 %v2230_v14, %v2227_v36  ;;  %v2044_v36 = vld [vmem:[#allocation2 + $0x3c] sm:$0xf] }
 0x145   : > { %2464 = vrot.lane.b32.xlu0 %v2093_v47, %s9120_s10  ;;  %v2198_v47 = vrot.slane %v2196_v52, 5  ;;  %v1870_v52 = vld [vmem:[#allocation2 + $0xc4] sm:$0xf] }
 0x146   : > { %v1747_v57 = vpop.permute.xlu2 %1746  ;;  %v2232_v61 = vrot.slane %v2231_v26, 4 }
 0x147   : > { %1957 = vrot.lane.b32.xlu1 %v1866_v51, %s9119_s9  ;;  %1825 = vst.msk [vmem:[#allocation4 + $0x48] sm:$0xf] %vm1806_vm1, %v1747_v57  ;;  %v1755_v62 = vpop.permute.xlu0 %1754  ;;  %v2047_v51 = vld [vmem:[#allocation2 + $0x48] sm:$0xf]  ;;  %v2136_v57 = vrot.slane %v2135_v42, 4  ;;  %v2199_v45 = vsel %vm9239_vm10, %v2194_v8, %v2198_v47  ;;  %v2297_v42 = vshrl.u32 %v2059_v31, 16 }
 0x148   : > { %1829 = vst.msk [vmem:[#allocation4 + $0x58] sm:$0xf] %vm1806_vm1, %v1755_v62  ;;  %v2108_v62 = vshll.u32 %v2035_v48, 16  ;;  %v2201_v0 = vshrl.u32 %v2047_v51, 16  ;;  %v2238_v47 = vshrl.u32 %v10045_v33, 16  ;;  %v10078_v48 = vrot.slane %v2210_v27, 5 }
 0x149   : > { %v1745_v46 = vpop.permute.xlu1 %1744  ;;  %v2141_v10 = vsel %vm9239_vm10, %v2136_v57, %v10041_v3  ;;  %v2270_v57 = vrot.slane %v2268_v37, 5  ;;  %v2299_v11 = vrot.slane %v2297_v42, 4 }
 0x14a   : > { %1824 = vst.msk [vmem:[#allocation4 + $0x44] sm:$0xf] %vm1806_vm1, %v1745_v46  ;;  %v2204_v46 = vshll.u32 %v2047_v51, 16  ;;  %v2203_v17 = vrot.slane %v2201_v0, 4  ;;  %v2040_v51 = vld [vmem:[#allocation2 + $0x2c] sm:$0x1] }
 0x14b   : > { %v10083_v0 = vld [vmem:[#allocation2 + $0x7c] sm:$0xf]  ;;  %v2148_v58 = vshll.u32 %v2040_v51, 16 }
 0x14c   : > { %1947 = vrot.lane.b32.xlu2 %v1861_v2, %s9119_s9  ;;  %v2258_v2 = vshll.u32 %v2054_v53, 16  ;;  %v2206_v5 = vrot.slane %v2204_v46, 5 }
 0x14d   : > { %2470 = vrot.lane.b32.xlu0 %v2127_v59, %s9120_s10  ;;  %v2234_v59 = vshll.u32 %v10045_v33, 16 }
 0x14e   : > { %v1753_v39 = vpop.permute.xlu2 %1752 }
 0x14f   : > { %1963 = vrot.lane.b32.xlu1 %v1869_v12, %s9119_s9  ;;  %1828 = vst.msk [vmem:[#allocation4 + $0x54] sm:$0xf] %vm1806_vm1, %v1753_v39  ;;  %v1761_v60 = vpop.permute.xlu0 %1760  ;;  %v2110_v12 = vrot.slane %v2108_v62, 5  ;;  %v10060_v39 = vrot.slane %v2258_v2, 5  ;;  %v2063_v62 = vld [vmem:[#allocation2 + $0x88] sm:$0xf] }
 0x150   : > { %1832 = vst.msk [vmem:[#allocation4 + $0x64] sm:$0xf] %vm1806_vm1, %v1761_v60  ;;  %v10062_v60 = vrot.slane %v2234_v59, 5  ;;  %v2052_v59 = vld [vmem:[#allocation2 + $0x5c] sm:$0x1] }
 0x151   : > { %v1751_v35 = vpop.permute.xlu1 %1750  ;;  %v2265_v13 = vor.u32 %v2264_v54, %v10060_v39 }
 0x152   : > { %1827 = vst.msk [vmem:[#allocation4 + $0x50] sm:$0xf] %vm1806_vm1, %v1751_v35  ;;  %v2142_v35 = vshrl.u32 %v10025_v25, 16  ;;  %v2237_v29 = vsel %vm9239_vm10, %v2232_v61, %v10062_v60  ;;  %v2175_v25 = vsel %vm9239_vm10, %v2170_v7, %v2174_v18  ;;  %v2150_v61 = vrot.slane %v2148_v58, 5 }
 0x153   : > { %v2266_v53 = vrot.slane %v2265_v13, 4  ;;  %v2244_v7 = vshll.u32 %v2052_v59, 16  ;;  %v2275_v18 = vrot.slane %v2273_v9, 4  ;;  %v2214_v13 = vshrl.u32 %v10058_v15, 16  ;;  %v2061_v9 = vld [vmem:[#allocation2 + $0x80] sm:$0x1] }
 0x154   : > { %1953 = vrot.lane.b32.xlu2 %v1864_v30, %s9119_s9  ;;  %v2111_v30 = vor.u32 %v2110_v12, %v2107_v22  ;;  %v2334_v22 = vshrl.u32 %v2063_v62, 16 }
 0x155   : > { %2476 = vrot.lane.b32.xlu0 %v2165_v32, %s9120_s10  ;;  %v2207_v32 = vor.u32 %v2206_v5, %v2203_v17  ;;  %v2271_v12 = vsel %vm9239_vm10, %v2266_v53, %v2270_v57 }
 0x156   : > { %v1759_v49 = vpop.permute.xlu2 %1758  ;;  %v2112_v8 = vrot.slane %v2111_v30, 4 }
 0x157   : > { %2466 = vrot.lane.b32.xlu1 %v2103_v34, %s9120_s10  ;;  %1831 = vst.msk [vmem:[#allocation4 + $0x60] sm:$0xf] %vm1806_vm1, %v1759_v49  ;;  %v1767_v63 = vpop.permute.xlu0 %1766  ;;  %v2300_v34 = vshll.u32 %v2059_v31, 16  ;;  %v2144_v49 = vrot.slane %v2142_v35, 4  ;;  %v2208_v14 = vrot.slane %v2207_v32, 4  ;;  %v2336_v35 = vrot.slane %v2334_v22, 4 }
 0x158   : > { %1835 = vst.msk [vmem:[#allocation4 + $0x70] sm:$0xf] %vm1806_vm1, %v1767_v63  ;;  %v2117_v46 = vsel %vm9239_vm10, %v2112_v8, %v9994_v41  ;;  %v2306_v41 = vshll.u32 %v10083_v0, 16  ;;  %v2068_v32 = vld [vmem:[#allocation2 + $0x9c] sm:$0xf] }
 0x159   : > { %v1757_v16 = vpop.permute.xlu1 %1756  ;;  %v2302_v20 = vrot.slane %v2300_v34, 5  ;;  %v2145_v2 = vor.u32 %v2144_v49, %v10041_v3  ;;  %v2213_v3 = vsel %vm9239_vm10, %v2208_v14, %v10078_v48  ;;  %v396_v8 = vld [vmem:[#allocation2 + $0xc8] sm:$0x1]  ;;  %v2372_v14 = vshll.u32 %v2068_v32, 16  ;;  %v2065_v22 = vld [vmem:[#allocation2 + $0x90] sm:$0xf] }
 0x15a   : > { %1830 = vst.msk [vmem:[#allocation4 + $0x5c] sm:$0xf] %vm1806_vm1, %v1757_v16  ;;  %v2177_v16 = vshrl.u32 %v2044_v36, 16 }
 0x15b   : > { %v2303_v17 = vor.u32 %v2302_v20, %v2299_v11  ;;  %v397_v20 = vsel %vm9190_vm6, 0, %v396_v8  ;;  %v2374_v58 = vrot.slane %v2372_v14, 5 }
 0x15c   : > { %1959 = vrot.lane.b32.xlu2 %v1867_v40, %s9119_s9  ;;  %v2180_v40 = vshll.u32 %v2044_v36, 16  ;;  %v2179_v5 = vrot.slane %v2177_v16, 4  ;;  %v2369_v36 = vshrl.u32 %v2068_v32, 16  ;;  %v2216_v16 = vrot.slane %v2214_v13, 4  ;;  %398 = vst [vmem:[#allocation2 + $0xc8] sm:$0x1] %v397_v20 }
 0x15d   : > { %2482 = vrot.lane.b32.xlu0 %v2199_v45, %s9120_s10  ;;  %v2240_v45 = vrot.slane %v2238_v47, 4  ;;  %v2304_v27 = vrot.slane %v2303_v17, 4 }
 0x15e   : > { %v1765_v55 = vpop.permute.xlu2 %1764  ;;  %v2182_v54 = vrot.slane %v2180_v40, 5  ;;  %v2217_v17 = vor.u32 %v2216_v16, %v10078_v48 }
 0x15f   : > { %2472 = vrot.lane.b32.xlu1 %v2141_v10, %s9120_s10  ;;  %1834 = vst.msk [vmem:[#allocation4 + $0x6c] sm:$0xf] %vm1806_vm1, %v1765_v55  ;;  %v1773_v19 = vpop.permute.xlu0 %1772  ;;  %v2330_v10 = vshll.u32 %v2063_v62, 16  ;;  %v2146_v55 = vrot.slane %v2145_v2, 4  ;;  %v2241_v24 = vor.u32 %v2240_v45, %v10062_v60  ;;  %v2310_v62 = vshrl.u32 %v10083_v0, 16 }
 0x160   : > { %1838 = vst.msk [vmem:[#allocation4 + $0x7c] sm:$0xf] %vm1806_vm1, %v1773_v19  ;;  %v2278_v19 = vrot.slane %v2276_v43, 5  ;;  %v2183_v37 = vor.u32 %v2182_v54, %v2179_v5  ;;  %v2053_v2 = vld [vmem:[#allocation2 + $0x60] sm:$0xf] }
 0x161   : > { %v1763_v23 = vpop.permute.xlu1 %1762  ;;  %v10100_v31 = vrot.slane %v2330_v10, 5  ;;  %v2151_v42 = vsel %vm9239_vm10, %v2146_v55, %v2150_v61  ;;  %v2242_v34 = vrot.slane %v2241_v24, 4  ;;  %v10128_v43 = vld [vmem:[#allocation2 + $0xa0] sm:$0xf]  ;;  %v2249_v5 = vshrl.u32 %v2053_v2, 16 }
 0x162   : > { %1833 = vst.msk [vmem:[#allocation4 + $0x68] sm:$0xf] %vm1806_vm1, %v1763_v23  ;;  %v10102_v23 = vrot.slane %v2306_v41, 5  ;;  %v2279_v53 = vor.u32 %v2278_v19, %v2275_v18  ;;  %v2184_v11 = vrot.slane %v2183_v37, 4  ;;  %v2252_v61 = vshll.u32 %v2053_v2, 16 }
 0x163   : > { %v2337_v49 = vor.u32 %v2336_v35, %v10100_v31  ;;  %v2348_v18 = vshll.u32 %v2065_v22, 16 }
 0x164   : > { %1965 = vrot.lane.b32.xlu2 %v1870_v52, %s9119_s9  ;;  %v2064_v52 = vld [vmem:[#allocation2 + $0x8c] sm:$0x1]  ;;  %v2309_v51 = vsel %vm9239_vm10, %v2304_v27, %v10102_v23  ;;  %v2189_v0 = vsel %vm9239_vm10, %v2184_v11, %v10021_v21  ;;  %v2345_v21 = vshrl.u32 %v2065_v22, 16  ;;  %v868_v27 = vld [vmem:[#allocation2 + $0xc8] sm:$0x1]  ;;  %v2254_v37 = vrot.slane %v2252_v61, 5 }
 0x165   : > { %2488 = vrot.lane.b32.xlu0 %v2237_v29, %s9120_s10  ;;  %v10107_v29 = vld [vmem:[#allocation2 + $0x70] sm:$0xf]  ;;  %v2340_v15 = vshll.u32 %v2064_v52, 16  ;;  %v2338_v40 = vrot.slane %v2337_v49, 4  ;;  %v2218_v52 = vrot.slane %v2217_v17, 4 }
 0x166   : > { %v1771_v63 = vpop.permute.xlu2 %1770  ;;  %v2282_v57 = vshll.u32 %v10107_v29, 16  ;;  %v2347_v49 = vrot.slane %v2345_v21, 4  ;;  %v10176_v61 = vld [vmem:[#allocation2 + $0xc4] sm:$0xf] }
 0x167   : > { %2478 = vrot.lane.b32.xlu1 %v2175_v25, %s9120_s10  ;;  %1837 = vst.msk [vmem:[#allocation4 + $0x78] sm:$0xf] %vm1806_vm1, %v1771_v63  ;;  %v1908_v33 = vpop.permute.xlu0 %1907  ;;  %v2246_v25 = vrot.slane %v2244_v7, 5  ;;  %v707_v63 = vrot.slane %v9986_v28, 4  ;;  %v2371_v28 = vrot.slane %v2369_v36, 4  ;;  %v2378_v7 = vshll.u32 %v10128_v43, 16 }
 0x168   : > { %2002 = vst.msk [vmem:[#allocation4 + $0x8] sm:$0xf] %vm1999_vm2, %v1908_v33  ;;  %v2049_v33 = vld [vmem:[#allocation2 + $0x50] sm:$0x1]  ;;  %v10126_v59 = vrot.slane %v2282_v57, 5  ;;  %v2286_v57 = vshrl.u32 %v10107_v29, 16 }
 0x169   : > { %v1769_v26 = vpop.permute.xlu1 %1768  ;;  %v2247_v44 = vsel %vm9239_vm10, %v2242_v34, %v2246_v25  ;;  %v2220_v41 = vshll.u32 %v2049_v33, 16  ;;  %v2375_v24 = vor.u32 %v2374_v58, %v2371_v28  ;;  %v10147_v34 = vrot.slane %v2378_v7, 5  ;;  %v10149_v25 = vld [vmem:[#allocation2 + $0x94] sm:$0xf] }
 0x16a   : > { %1836 = vst.msk [vmem:[#allocation4 + $0x74] sm:$0xf] %vm1806_vm1, %v1769_v26  ;;  %v2280_v26 = vrot.slane %v2279_v53, 4  ;;  %v869_v8 = vsel %vm9177_vm3, %v707_v63, %v868_v27  ;;  %v2077_v53 = vld [vmem:[#allocation2 + $0xc0] sm:$0xf]  ;;  %v2354_v16 = vshll.u32 %v10149_v25, 16 }
 0x16b   : > { %v2222_v32 = vrot.slane %v2220_v41, 5  ;;  %870 = vst [vmem:[#allocation2 + $0xc8] sm:$0x1] %v869_v8  ;;  %v2444_v2 = vshll.u32 %v2077_v53, 16  ;;  %v2382_v28 = vshrl.u32 %v10128_v43, 16 }
 0x16c   : > { %2468 = vrot.lane.b32.xlu2 %v2117_v46, %s9120_s10  ;;  %v2342_v46 = vrot.slane %v2340_v15, 5  ;;  %v2285_v48 = vsel %vm9239_vm10, %v2280_v26, %v10126_v59  ;;  %v2350_v15 = vrot.slane %v2348_v18, 5 }
 0x16d   : > { %2494 = vrot.lane.b32.xlu0 %v2271_v12, %s9120_s10  ;;  %v2072_v12 = vld [vmem:[#allocation2 + $0xac] sm:$0xf] }
 0x16e   : > { %v1906_v30 = vpop.permute.xlu2 %1905  ;;  %v2343_v55 = vsel %vm9239_vm10, %v2338_v40, %v2342_v46  ;;  %v2402_v19 = vshll.u32 %v2072_v12, 16  ;;  %v2406_v35 = vshrl.u32 %v2072_v12, 16  ;;  %v2441_v46 = vshrl.u32 %v2077_v53, 16  ;;  %v2058_v12 = vld [vmem:[#allocation2 + $0x74] sm:$0x1] }
 0x16f   : > { %2484 = vrot.lane.b32.xlu1 %v2213_v3, %s9120_s10  ;;  %2001 = vst.msk [vmem:[#allocation4 + $0x4] sm:$0xf] %vm1999_vm2, %v1906_v30  ;;  %v1914_v60 = vpop.permute.xlu0 %1913  ;;  %v2312_v3 = vrot.slane %v2310_v62, 4  ;;  %v2316_v30 = vshll.u32 %v2061_v9, 16  ;;  %v2351_v58 = vor.u32 %v2350_v15, %v2347_v49  ;;  %v10172_v9 = vrot.slane %v2354_v16, 5 }
 0x170   : > { %2005 = vst.msk [vmem:[#allocation4 + $0x14] sm:$0xf] %vm1999_vm2, %v1914_v60  ;;  %v2251_v60 = vrot.slane %v2249_v5, 4  ;;  %v10153_v36 = vrot.slane %v2402_v19, 5  ;;  %v2408_v14 = vrot.slane %v2406_v35, 4  ;;  %v2446_v5 = vrot.slane %v2444_v2, 5 }
 0x171   : > { %v1904_v47 = vpop.permute.xlu1 %1903  ;;  %v2313_v13 = vor.u32 %v2312_v3, %v10102_v23  ;;  %v2318_v20 = vrot.slane %v2316_v30, 5  ;;  %v2443_v3 = vrot.slane %v2441_v46, 4  ;;  %v2352_v43 = vrot.slane %v2351_v58, 4  ;;  %v2074_v30 = vld [vmem:[#allocation2 + $0xb4] sm:$0xf] }
 0x172   : > { %2000 = vst.msk [vmem:[#allocation4] sm:$0xf] %vm1999_vm2, %v1904_v47  ;;  %v2255_v62 = vor.u32 %v2254_v37, %v2251_v60  ;;  %v2409_v40 = vor.u32 %v2408_v14, %v10153_v36  ;;  %v2420_v8 = vshll.u32 %v2074_v30, 16  ;;  %v10203_v16 = vld [vmem:[#allocation2 + $0xb8] sm:$0xf] }
 0x173   : > { %v2314_v11 = vrot.slane %v2313_v13, 4  ;;  %v2357_v13 = vsel %vm9239_vm10, %v2352_v43, %v10172_v9  ;;  %v2595_v2 = vld [vmem:[#allocation2 + $0x14] sm:$0x1] }
 0x174   : > { %2474 = vrot.lane.b32.xlu2 %v2151_v42, %s9120_s10  ;;  %v2376_v42 = vrot.slane %v2375_v24, 4  ;;  %v2256_v26 = vrot.slane %v2255_v62, 4  ;;  %v2410_v17 = vrot.slane %v2409_v40, 4  ;;  %v2070_v24 = vld [vmem:[#allocation2 + $0xa4] sm:$0x1] }
 0x175   : > { %2500 = vrot.lane.b32.xlu0 %v2309_v51, %s9120_s10  ;;  %v2073_v51 = vld [vmem:[#allocation2 + $0xb0] sm:$0x1]  ;;  %v2388_v37 = vshll.u32 %v2070_v24, 16 }
 0x176   : > { %v1912_v45 = vpop.permute.xlu2 %1911  ;;  %v2381_v33 = vsel %vm9239_vm10, %v2376_v42, %v10147_v34  ;;  %v2412_v29 = vshll.u32 %v2073_v51, 16  ;;  %v2261_v19 = vsel %vm9239_vm10, %v2256_v26, %v10060_v39  ;;  %v2417_v42 = vshrl.u32 %v2074_v30, 16 }
 0x177   : > { %2490 = vrot.lane.b32.xlu1 %v2247_v44, %s9120_s10  ;;  %2004 = vst.msk [vmem:[#allocation4 + $0x10] sm:$0xf] %vm1999_vm2, %v1912_v45  ;;  %v1920_v10 = vpop.permute.xlu0 %1919  ;;  %v2223_v44 = vsel %vm9239_vm10, %v2218_v52, %v2222_v32  ;;  %v2319_v45 = vsel %vm9239_vm10, %v2314_v11, %v2318_v20  ;;  %v2447_v52 = vor.u32 %v2446_v5, %v2443_v3  ;;  %v2450_v32 = vshll.u32 %v10176_v61, 16 }
 0x178   : > { %2008 = vst.msk [vmem:[#allocation4 + $0x20] sm:$0xf] %vm1999_vm2, %v1920_v10  ;;  %v2062_v10 = vld [vmem:[#allocation2 + $0x84] sm:$0xf]  ;;  %v2414_v41 = vrot.slane %v2412_v29, 5  ;;  %v2390_v51 = vrot.slane %v2388_v37, 5 }
 0x179   : > { %v1910_v54 = vpop.permute.xlu1 %1909  ;;  %v2321_v7 = vshrl.u32 %v2062_v10, 16  ;;  %v2324_v21 = vshll.u32 %v2062_v10, 16  ;;  %v2448_v14 = vrot.slane %v2447_v52, 4  ;;  %v2419_v20 = vrot.slane %v2417_v42, 4  ;;  %v2067_v10 = vld [vmem:[#allocation2 + $0x98] sm:$0x1] }
 0x17a   : > { %2003 = vst.msk [vmem:[#allocation4 + $0xc] sm:$0xf] %vm1999_vm2, %v1910_v54  ;;  %v2415_v27 = vsel %vm9239_vm10, %v2410_v17, %v2414_v41  ;;  %v2071_v17 = vld [vmem:[#allocation2 + $0xa8] sm:$0xf]  ;;  %v2364_v24 = vshll.u32 %v2067_v10, 16 }
 0x17b   : > { %v2323_v39 = vrot.slane %v2321_v7, 4  ;;  %v2079_v7 = vld [vmem:[#allocation2 + $0xc8] sm:$0x1]  ;;  %v10241_v42 = vld [vmem:[#allocation2 + $0x34] sm:$0xf] }
 0x17c   : > { %2480 = vrot.lane.b32.xlu2 %v2189_v0, %s9120_s10  ;;  %v2288_v0 = vrot.slane %v2286_v57, 4  ;;  %v10197_v57 = vld [vmem:[#allocation2 + $0x10] sm:$0xf]  ;;  %v2460_v30 = vshll.u32 %v2079_v7, 16  ;;  %v2366_v52 = vrot.slane %v2364_v24, 5 }
 0x17d   : > { %2506 = vrot.lane.b32.xlu0 %v2343_v55, %s9120_s10  ;;  %v2384_v55 = vrot.slane %v2382_v28, 4  ;;  %v2691_v29 = vrot.slane %v10197_v57, 5  ;;  %v2454_v28 = vshrl.u32 %v10176_v61, 16  ;;  %v2610_v57 = vld [vmem:[#allocation2 + $0x50] sm:$0x1] }
 0x17e   : > { %v1918_v47 = vpop.permute.xlu2 %1917  ;;  %v2289_v35 = vor.u32 %v2288_v0, %v10126_v59  ;;  %v2326_v59 = vrot.slane %v2324_v21, 5  ;;  %v2393_v21 = vshrl.u32 %v2071_v17, 16 }
 0x17f   : > { %2496 = vrot.lane.b32.xlu1 %v2285_v48, %s9120_s10  ;;  %2007 = vst.msk [vmem:[#allocation4 + $0x1c] sm:$0xf] %vm1999_vm2, %v1918_v47  ;;  %v1926_v23 = vpop.permute.xlu0 %1925  ;;  %v2292_v48 = vshll.u32 %v2058_v12, 16  ;;  %v2385_v60 = vor.u32 %v2384_v55, %v10147_v34  ;;  %v2694_v12 = vrot.slane %v2595_v2, 5 }
 0x180   : > { %2011 = vst.msk [vmem:[#allocation4 + $0x2c] sm:$0xf] %vm1999_vm2, %v1926_v23  ;;  %v2290_v47 = vrot.slane %v2289_v35, 4  ;;  %v10193_v23 = vrot.slane %v2450_v32, 5  ;;  %v2327_v11 = vor.u32 %v2326_v59, %v2323_v39  ;;  %v2599_v35 = vld [vmem:[#allocation2 + $0x24] sm:$0xe] }
 0x181   : > { %v1916_v63 = vpop.permute.xlu1 %1915  ;;  %v2294_v49 = vrot.slane %v2292_v48, 5  ;;  %v2386_v34 = vrot.slane %v2385_v60, 4  ;;  %v2395_v32 = vrot.slane %v2393_v21, 4  ;;  %v8704_v37 = vrot.slane %v2599_v35, 9 }
 0x182   : > { %2006 = vst.msk [vmem:[#allocation4 + $0x18] sm:$0xf] %vm1999_vm2, %v1916_v63  ;;  %v2422_v63 = vrot.slane %v2420_v8, 5  ;;  %v2453_v40 = vsel %vm9239_vm10, %v2448_v14, %v10193_v23 }
 0x183   : > { %v2391_v46 = vsel %vm9239_vm10, %v2386_v34, %v2390_v51  ;;  %v2712_v51 = vrot.slane %v10241_v42, 5  ;;  %v2619_v42 = vld [vmem:[#allocation2 + $0x74] sm:$0x1] }
 0x184   : > { %2486 = vrot.lane.b32.xlu2 %v2223_v44, %s9120_s10  ;;  %v2358_v44 = vshrl.u32 %v10149_v25, 16  ;;  %v2328_v25 = vrot.slane %v2327_v11, 4  ;;  %v2423_v58 = vor.u32 %v2422_v63, %v2419_v20  ;;  %v2596_v63 = vld [vmem:[#allocation2 + $0x18] sm:$0xe] }
 0x185   : > { %2512 = vrot.lane.b32.xlu0 %v2381_v33, %s9120_s10  ;;  %v2295_v33 = vsel %vm9239_vm10, %v2290_v47, %v2294_v49  ;;  %v2462_v47 = vrot.slane %v2460_v30, 5  ;;  %v2430_v49 = vshrl.u32 %v10203_v16, 16 }
 0x186   : > { %v1924_v22 = vpop.permute.xlu2 %1923  ;;  %v2360_v26 = vrot.slane %v2358_v44, 4  ;;  %v2333_v3 = vsel %vm9239_vm10, %v2328_v25, %v10100_v31  ;;  %v2424_v5 = vrot.slane %v2423_v58, 4  ;;  %v10230_v31 = vld [vmem:[#allocation2 + $0x28] sm:$0xf]  ;;  %v10255_v44 = vld [vmem:[#allocation2 + $0x1c] sm:$0xf] }
 0x187   : > { %2502 = vrot.lane.b32.xlu1 %v2319_v45, %s9120_s10  ;;  %2010 = vst.msk [vmem:[#allocation4 + $0x28] sm:$0xf] %vm1999_vm2, %v1924_v22  ;;  %v1932_v54 = vpop.permute.xlu0 %1931  ;;  %v2426_v45 = vshll.u32 %v10203_v16, 16  ;;  %v2693_v22 = vrot.slane %v2691_v29, 4  ;;  %v2705_v39 = vrot.slane %v10230_v31, 5  ;;  %v8703_v25 = vrot.slane %v2596_v63, 9 }
 0x188   : > { %2014 = vst.msk [vmem:[#allocation4 + $0x38] sm:$0xf] %vm1999_vm2, %v1932_v54  ;;  %v2456_v54 = vrot.slane %v2454_v28, 4  ;;  %v2361_v61 = vor.u32 %v2360_v26, %v10172_v9  ;;  %v2076_v16 = vld [vmem:[#allocation2 + $0xbc] sm:$0x1]  ;;  %v2698_v28 = vrot.slane %v10255_v44, 5 }
 0x189   : > { %v1922_v18 = vpop.permute.xlu1 %1921  ;;  %v10223_v43 = vrot.slane %v2426_v45, 5  ;;  %v2706_v34 = vsel %vm9656_vm14, %v8704_v37, %v2705_v39  ;;  %v2707_v24 = vrot.slane %v2705_v39, 4 }
 0x18a   : > { %2009 = vst.msk [vmem:[#allocation4 + $0x24] sm:$0xf] %vm1999_vm2, %v1922_v18  ;;  %v2396_v18 = vshll.u32 %v2071_v17, 16  ;;  %v2457_v9 = vor.u32 %v2456_v54, %v10193_v23  ;;  %v2699_v17 = vsel %vm9656_vm14, %v8703_v25, %v2698_v28 }
 0x18b   : > { %v2429_v48 = vsel %vm9239_vm10, %v2424_v5, %v10223_v43 }
 0x18c   : > { %2492 = vrot.lane.b32.xlu2 %v2261_v19, %s9120_s10  ;;  %v2695_v19 = vsel %vm9656_vm14, %v2693_v22, %v2694_v12  ;;  %v2458_v8 = vrot.slane %v2457_v9, 4  ;;  %v2608_v22 = vld [vmem:[#allocation2 + $0x48] sm:$0xe]  ;;  %v2609_v12 = vld [vmem:[#allocation2 + $0x4c] sm:$0xf] }
 0x18d   : > { %2518 = vrot.lane.b32.xlu0 %v2415_v27, %s9120_s10  ;;  %v2362_v27 = vrot.slane %v2361_v61, 4  ;;  %v2726_v54 = vrot.slane %v2609_v12, 5  ;;  %v10276_v61 = vld [vmem:[#allocation2 + $0x58] sm:$0xf] }
 0x18e   : > { %v1930_v15 = vpop.permute.xlu2 %1929  ;;  %v2463_v11 = vsel %vm9239_vm10, %v2458_v8, %v2462_v47  ;;  %v2733_v31 = vrot.slane %v10276_v61, 5  ;;  %v2628_v61 = vld [vmem:[#allocation2 + $0x98] sm:$0x1] }
 0x18f   : > { %2508 = vrot.lane.b32.xlu1 %v2357_v13, %s9120_s10  ;;  %2013 = vst.msk [vmem:[#allocation4 + $0x34] sm:$0xf] %vm1999_vm2, %v1930_v15  ;;  %v1938_v53 = vpop.permute.xlu0 %1937  ;;  %v2398_v13 = vrot.slane %v2396_v18, 5  ;;  %v2367_v14 = vsel %vm9239_vm10, %v2362_v27, %v2366_v52  ;;  %v2605_v27 = vld [vmem:[#allocation2 + $0x3c] sm:$0xe] }
 0x190   : > { %2017 = vst.msk [vmem:[#allocation4 + $0x44] sm:$0xf] %vm1999_vm2, %v1938_v53  ;;  %v2604_v53 = vld [vmem:[#allocation2 + $0x38] sm:$0x1]  ;;  %v10289_v52 = vld [vmem:[#allocation2 + $0x40] sm:$0xf] }
 0x191   : > { %v1928_v62 = vpop.permute.xlu1 %1927  ;;  %v2399_v23 = vor.u32 %v2398_v13, %v2395_v32  ;;  %v2735_v13 = vrot.slane %v2733_v31, 4  ;;  %v8706_v39 = vrot.slane %v2605_v27, 9 }
 0x192   : > { %2012 = vst.msk [vmem:[#allocation4 + $0x30] sm:$0xf] %vm1999_vm2, %v1928_v62  ;;  %v2432_v62 = vrot.slane %v2430_v49, 4  ;;  %v2598_v49 = vld [vmem:[#allocation2 + $0x20] sm:$0x1] }
 0x193   : > { %v2400_v20 = vrot.slane %v2399_v23, 4  ;;  %v2618_v23 = vld [vmem:[#allocation2 + $0x70] sm:$0xf] }
 0x194   : > { %2498 = vrot.lane.b32.xlu2 %v2295_v33, %s9120_s10  ;;  %v2433_v26 = vor.u32 %v2432_v62, %v10223_v43  ;;  %v8707_v43 = vrot.slane %v2608_v22, 9  ;;  %v2747_v63 = vrot.slane %v2618_v23, 5  ;;  %v10310_v62 = vld [vmem:[#allocation2 + $0x7c] sm:$0xf] }
 0x195   : > { %2524 = vrot.lane.b32.xlu0 %v2453_v40, %s9120_s10  ;;  %v2714_v40 = vrot.slane %v2712_v51, 4  ;;  %v2405_v45 = vsel %vm9239_vm10, %v2400_v20, %v10153_v36  ;;  %v2601_v36 = vld [vmem:[#allocation2 + $0x2c] sm:$0x1] }
 0x196   : > { %v1936_v0 = vpop.permute.xlu2 %1935  ;;  %v2708_v7 = vrot.slane %v2601_v36, 5  ;;  %v2727_v35 = vsel %vm9656_vm14, %v8707_v43, %v2726_v54  ;;  %v2749_v27 = vrot.slane %v2747_v63, 4 }
 0x197   : > { %2514 = vrot.lane.b32.xlu1 %v2391_v46, %s9120_s10  ;;  %2016 = vst.msk [vmem:[#allocation4 + $0x40] sm:$0xf] %vm1999_vm2, %v1936_v0  ;;  %v1944_v41 = vpop.permute.xlu0 %1943  ;;  %v2715_v46 = vrot.slane %v2604_v53, 5  ;;  %v2436_v0 = vshll.u32 %v2076_v16, 16  ;;  %v2700_v53 = vrot.slane %v2698_v28, 4  ;;  %v2729_v16 = vrot.slane %v2610_v57, 5 }
 0x198   : > { %2020 = vst.msk [vmem:[#allocation4 + $0x50] sm:$0xf] %vm1999_vm2, %v1944_v41  ;;  %v2434_v41 = vrot.slane %v2433_v26, 4  ;;  %v2709_v9 = vsel %vm9656_vm14, %v2707_v24, %v2708_v7  ;;  %v2754_v28 = vrot.slane %v10310_v62, 5  ;;  %v2626_v24 = vld [vmem:[#allocation2 + $0x90] sm:$0xe] }
 0x199   : > { %v1934_v55 = vpop.permute.xlu1 %1933  ;;  %v2716_v10 = vsel %vm9656_vm14, %v2714_v40, %v2715_v46  ;;  %v2627_v7 = vld [vmem:[#allocation2 + $0x94] sm:$0xf] }
 0x19a   : > { %2015 = vst.msk [vmem:[#allocation4 + $0x3c] sm:$0xf] %vm1999_vm2, %v1934_v55  ;;  %v2756_v12 = vrot.slane %v2754_v28, 4 }
 0x19c   : > { %2504 = vrot.lane.b32.xlu2 %v2333_v3, %s9120_s10  ;;  %v2438_v3 = vrot.slane %v2436_v0, 5  ;;  %v2614_v0 = vld [vmem:[#allocation2 + $0x60] sm:$0xe] }
 0x19d   : > { %2803 = vrot.lane.b32.xlu0 %v2695_v19, %s9121_s11  ;;  %v2593_v19 = vld [vmem:[#allocation2 + $0xc] sm:$0xe] }
 0x19e   : > { %v1942_v60 = vpop.permute.xlu2 %1941  ;;  %v2439_v18 = vsel %vm9239_vm10, %v2434_v41, %v2438_v3  ;;  %v8702_v30 = vrot.slane %v2593_v19, 9  ;;  %v8709_v3 = vrot.slane %v2614_v0, 9 }
 0x19f   : > { %2520 = vrot.lane.b32.xlu1 %v2429_v48, %s9120_s10  ;;  %2019 = vst.msk [vmem:[#allocation4 + $0x4c] sm:$0xf] %vm1999_vm2, %v1942_v60  ;;  %v1950_v59 = vpop.permute.xlu0 %1949  ;;  %v2613_v48 = vld [vmem:[#allocation2 + $0x5c] sm:$0x1] }
 0x1a0   : > { %2023 = vst.msk [vmem:[#allocation4 + $0x5c] sm:$0xf] %vm1999_vm2, %v1950_v59  ;;  %v2736_v60 = vrot.slane %v2613_v48, 5  ;;  %v2719_v59 = vrot.slane %v10289_v52, 5  ;;  %v2692_v47 = vsel %vm9656_vm14, %v8702_v30, %v2691_v29  ;;  %v2768_v48 = vrot.slane %v2627_v7, 5 }
 0x1a1   : > { %v1940_v15 = vpop.permute.xlu1 %1939  ;;  %v10344_v30 = vld [vmem:[#allocation2 + $0xa0] sm:$0xf]  ;;  %v2750_v52 = vrot.slane %v2619_v42, 5 }
 0x1a2   : > { %2018 = vst.msk [vmem:[#allocation4 + $0x48] sm:$0xf] %vm1999_vm2, %v1940_v15  ;;  %v2737_v15 = vsel %vm9656_vm14, %v2735_v13, %v2736_v60  ;;  %v2611_v60 = vld [vmem:[#allocation2 + $0x54] sm:$0xe]  ;;  %v2770_v0 = vrot.slane %v2768_v48, 4 }
 0x1a4   : > { %2510 = vrot.lane.b32.xlu2 %v2367_v14, %s9120_s10  ;;  %v2617_v14 = vld [vmem:[#allocation2 + $0x6c] sm:$0xe] }
 0x1a5   : > { %2809 = vrot.lane.b32.xlu0 %v2706_v34, %s9121_s11  ;;  %v2720_v34 = vsel %vm9656_vm14, %v8706_v39, %v2719_v59  ;;  %v8710_v29 = vrot.slane %v2617_v14, 9  ;;  %v2775_v39 = vrot.slane %v10344_v30, 5 }
 0x1a6   : > { %v1948_v33 = vpop.permute.xlu2 %1947 }
 0x1a7   : > { %2526 = vrot.lane.b32.xlu1 %v2463_v11, %s9120_s10  ;;  %2022 = vst.msk [vmem:[#allocation4 + $0x58] sm:$0xf] %vm1999_vm2, %v1948_v33  ;;  %v1956_v2 = vpop.permute.xlu0 %1955  ;;  %v2701_v11 = vrot.slane %v2598_v49, 5  ;;  %v2728_v33 = vrot.slane %v2726_v54, 4  ;;  %v2748_v25 = vsel %vm9656_vm14, %v8710_v29, %v2747_v63  ;;  %v2607_v54 = vld [vmem:[#allocation2 + $0x44] sm:$0x1] }
 0x1a8   : > { %2026 = vst.msk [vmem:[#allocation4 + $0x68] sm:$0xf] %vm1999_vm2, %v1956_v2  ;;  %v2602_v2 = vld [vmem:[#allocation2 + $0x30] sm:$0xe]  ;;  %v2722_v19 = vrot.slane %v2607_v54, 5  ;;  %v2777_v23 = vrot.slane %v2775_v39, 4 }
 0x1a9   : > { %v1946_v58 = vpop.permute.xlu1 %1945  ;;  %v2702_v46 = vsel %vm9656_vm14, %v2700_v53, %v2701_v11  ;;  %v8705_v26 = vrot.slane %v2602_v2, 9  ;;  %v2623_v49 = vld [vmem:[#allocation2 + $0x84] sm:$0xe]  ;;  %v2616_v63 = vld [vmem:[#allocation2 + $0x68] sm:$0x1] }
 0x1aa   : > { %2021 = vst.msk [vmem:[#allocation4 + $0x54] sm:$0xf] %vm1999_vm2, %v1946_v58  ;;  %v2622_v58 = vld [vmem:[#allocation2 + $0x80] sm:$0x1]  ;;  %v8712_v11 = vrot.slane %v2623_v49, 9  ;;  %v2743_v2 = vrot.slane %v2616_v63, 5 }
 0x1ab   : > { %v2713_v43 = vsel %vm9656_vm14, %v8705_v26, %v2712_v51  ;;  %v8713_v51 = vrot.slane %v2626_v24, 9  ;;  %v10378_v26 = vld [vmem:[#allocation2 + $0xc4] sm:$0xf]  ;;  %v2632_v54 = vld [vmem:[#allocation2 + $0xa8] sm:$0xe] }
 0x1ac   : > { %2516 = vrot.lane.b32.xlu2 %v2405_v45, %s9120_s10  ;;  %v2730_v45 = vsel %vm9656_vm14, %v2728_v33, %v2729_v16  ;;  %v2635_v33 = vld [vmem:[#allocation2 + $0xb4] sm:$0xe]  ;;  %v2636_v16 = vld [vmem:[#allocation2 + $0xb8] sm:$0xf]  ;;  %v2933_v49 = vld [vmem:[#allocation2 + $0x24] sm:$0xf] }
 0x1ad   : > { %2815 = vrot.lane.b32.xlu0 %v2716_v10, %s9121_s11  ;;  %v10323_v10 = vld [vmem:[#allocation2 + $0x64] sm:$0xf] }
 0x1ae   : > { %v1954_v5 = vpop.permute.xlu2 %1953  ;;  %v2740_v36 = vrot.slane %v10323_v10, 5  ;;  %v2771_v10 = vrot.slane %v2628_v61, 5 }
 0x1af   : > { %2805 = vrot.lane.b32.xlu1 %v2699_v17, %s9121_s11  ;;  %2025 = vst.msk [vmem:[#allocation4 + $0x64] sm:$0xf] %vm1999_vm2, %v1954_v5  ;;  %v1962_v55 = vpop.permute.xlu0 %1961  ;;  %v2757_v17 = vrot.slane %v2622_v58, 5  ;;  %v2789_v58 = vrot.slane %v2636_v16, 5 }
 0x1b0   : > { %2029 = vst.msk [vmem:[#allocation4 + $0x74] sm:$0xf] %vm1999_vm2, %v1962_v55 }
 0x1b1   : > { %v1952_v21 = vpop.permute.xlu1 %1951  ;;  %v2758_v55 = vsel %vm9656_vm14, %v2756_v12, %v2757_v17  ;;  %v2620_v17 = vld [vmem:[#allocation2 + $0x78] sm:$0xe] }
 0x1b2   : > { %2024 = vst.msk [vmem:[#allocation4 + $0x60] sm:$0xf] %vm1999_vm2, %v1952_v21  ;;  %v2741_v21 = vsel %vm9656_vm14, %v8709_v3, %v2740_v36  ;;  %v2796_v3 = vrot.slane %v10378_v26, 5 }
 0x1b4   : > { %2522 = vrot.lane.b32.xlu2 %v2439_v18, %s9120_s10  ;;  %v2721_v18 = vrot.slane %v2719_v59, 4  ;;  %v2631_v59 = vld [vmem:[#allocation2 + $0xa4] sm:$0x1]  ;;  %v2798_v7 = vrot.slane %v2796_v3, 4 }
 0x1b5   : > { %2821 = vrot.lane.b32.xlu0 %v2727_v35, %s9121_s11 }
 0x1b6   : > { %v1960_v32 = vpop.permute.xlu2 %1959  ;;  %v2723_v13 = vsel %vm9656_vm14, %v2721_v18, %v2722_v19  ;;  %v8715_v19 = vrot.slane %v2632_v54, 9  ;;  %v2935_v54 = vld [vmem:[#allocation2 + $0x30] sm:$0xf] }
 0x1b7   : > { %2811 = vrot.lane.b32.xlu1 %v2709_v9, %s9121_s11  ;;  %2028 = vst.msk [vmem:[#allocation4 + $0x70] sm:$0xf] %vm1999_vm2, %v1960_v32  ;;  %v2465_v37 = vpop.permute.xlu0 %2464 }
 0x1b8   : > { %2561 = vst.msk [vmem:[#allocation4] sm:$0xf] %vm2560_vm4, %v2465_v37  ;;  %v2769_v37 = vsel %vm9656_vm14, %v8713_v51, %v2768_v48  ;;  %v2625_v48 = vld [vmem:[#allocation2 + $0x8c] sm:$0x1] }
 0x1b9   : > { %v1958_v8 = vpop.permute.xlu1 %1957 }
 0x1ba   : > { %2027 = vst.msk [vmem:[#allocation4 + $0x6c] sm:$0xf] %vm1999_vm2, %v1958_v8  ;;  %v2751_v8 = vsel %vm9656_vm14, %v2749_v27, %v2750_v52 }
 0x1bc   : > { %2801 = vrot.lane.b32.xlu2 %v2692_v47, %s9121_s11  ;;  %v8708_v47 = vrot.slane %v2611_v60, 9  ;;  %v2791_v60 = vrot.slane %v2789_v58, 4 }
 0x1bd   : > { %2827 = vrot.lane.b32.xlu0 %v2737_v15, %s9121_s11  ;;  %v10357_v15 = vld [vmem:[#allocation2 + $0x88] sm:$0xf] }
 0x1be   : > { %v1966_v20 = vpop.permute.xlu2 %1965  ;;  %v2761_v57 = vrot.slane %v10357_v15, 5  ;;  %v2734_v29 = vsel %vm9656_vm14, %v8708_v47, %v2733_v31  ;;  %v8716_v31 = vrot.slane %v2635_v33, 9  ;;  %v2629_v47 = vld [vmem:[#allocation2 + $0x9c] sm:$0xe] }
 0x1bf   : > { %2817 = vrot.lane.b32.xlu1 %v2720_v34, %s9121_s11  ;;  %2031 = vst.msk [vmem:[#allocation4 + $0x7c] sm:$0xf] %vm1999_vm2, %v1966_v20  ;;  %v2471_v44 = vpop.permute.xlu0 %2470  ;;  %v2778_v34 = vrot.slane %v2631_v59, 5 }
 0x1c0   : > { %2564 = vst.msk [vmem:[#allocation4 + $0xc] sm:$0xf] %vm2560_vm4, %v2471_v44  ;;  %v2763_v52 = vrot.slane %v2761_v57, 4 }
 0x1c1   : > { %v1964_v40 = vpop.permute.xlu1 %1963  ;;  %v2779_v44 = vsel %vm9656_vm14, %v2777_v23, %v2778_v34 }
 0x1c2   : > { %2030 = vst.msk [vmem:[#allocation4 + $0x78] sm:$0xf] %vm1999_vm2, %v1964_v40  ;;  %v2762_v40 = vsel %vm9656_vm14, %v8712_v11, %v2761_v57  ;;  %v2634_v57 = vld [vmem:[#allocation2 + $0xb0] sm:$0x1] }
 0x1c4   : > { %2807 = vrot.lane.b32.xlu2 %v2702_v46, %s9121_s11  ;;  %v2742_v46 = vrot.slane %v2740_v36, 4  ;;  %v2640_v36 = vld [vmem:[#allocation2 + $0xc8] sm:$0x1] }
 0x1c5   : > { %2833 = vrot.lane.b32.xlu0 %v2748_v25, %s9121_s11 }
 0x1c6   : > { %v2469_v22 = vpop.permute.xlu2 %2468  ;;  %v2744_v12 = vsel %vm9656_vm14, %v2742_v46, %v2743_v2  ;;  %v2939_v46 = vld [vmem:[#allocation2 + $0x48] sm:$0xf] }
 0x1c7   : > { %2823 = vrot.lane.b32.xlu1 %v2730_v45, %s9121_s11  ;;  %2563 = vst.msk [vmem:[#allocation4 + $0x8] sm:$0xf] %vm2560_vm4, %v2469_v22  ;;  %v2477_v41 = vpop.permute.xlu0 %2476  ;;  %v2934_v2 = vld [vmem:[#allocation2 + $0x28] sm:$0xf] }
 0x1c8   : > { %2567 = vst.msk [vmem:[#allocation4 + $0x18] sm:$0xf] %vm2560_vm4, %v2477_v41  ;;  %v2790_v41 = vsel %vm9656_vm14, %v8716_v31, %v2789_v58 }
 0x1c9   : > { %v2467_v5 = vpop.permute.xlu1 %2466 }
 0x1ca   : > { %2562 = vst.msk [vmem:[#allocation4 + $0x4] sm:$0xf] %vm2560_vm4, %v2467_v5  ;;  %v2772_v5 = vsel %vm9656_vm14, %v2770_v0, %v2771_v10  ;;  %v2942_v0 = vld [vmem:[#allocation2 + $0x58] sm:$0xf]  ;;  %v2937_v10 = vld [vmem:[#allocation2 + $0x3c] sm:$0xf] }
 0x1cc   : > { %2813 = vrot.lane.b32.xlu2 %v2713_v43, %s9121_s11  ;;  %v8711_v43 = vrot.slane %v2620_v17, 9  ;;  %v2932_v17 = vld [vmem:[#allocation2 + $0x1c] sm:$0xf] }
 0x1cd   : > { %2839 = vrot.lane.b32.xlu0 %v2758_v55, %s9121_s11  ;;  %v2633_v55 = vld [vmem:[#allocation2 + $0xac] sm:$0xf] }
 0x1ce   : > { %v2475_v35 = vpop.permute.xlu2 %2474  ;;  %v2782_v42 = vrot.slane %v2633_v55, 5  ;;  %v2755_v51 = vsel %vm9656_vm14, %v8711_v43, %v2754_v28  ;;  %v2948_v55 = vld [vmem:[#allocation2 + $0x7c] sm:$0xf] }
 0x1cf   : > { %2829 = vrot.lane.b32.xlu1 %v2741_v21, %s9121_s11  ;;  %2566 = vst.msk [vmem:[#allocation4 + $0x14] sm:$0xf] %vm2560_vm4, %v2475_v35  ;;  %v2483_v9 = vpop.permute.xlu0 %2482  ;;  %v2799_v21 = vrot.slane %v2640_v36, 5 }
 0x1d0   : > { %2570 = vst.msk [vmem:[#allocation4 + $0x24] sm:$0xf] %vm2560_vm4, %v2483_v9  ;;  %v2783_v27 = vsel %vm9656_vm14, %v8715_v19, %v2782_v42  ;;  %v2784_v63 = vrot.slane %v2782_v42, 4  ;;  %v2938_v19 = vld [vmem:[#allocation2 + $0x40] sm:$0xf] }
 0x1d1   : > { %v2473_v32 = vpop.permute.xlu1 %2472  ;;  %v2800_v9 = vsel %vm9656_vm14, %v2798_v7, %v2799_v21  ;;  %v2951_v42 = vld [vmem:[#allocation2 + $0x90] sm:$0xf] }
 0x1d2   : > { %2565 = vst.msk [vmem:[#allocation4 + $0x10] sm:$0xf] %vm2560_vm4, %v2473_v32  ;;  %v2764_v32 = vrot.slane %v2625_v48, 5 }
 0x1d4   : > { %2819 = vrot.lane.b32.xlu2 %v2723_v13, %s9121_s11  ;;  %v2637_v13 = vld [vmem:[#allocation2 + $0xbc] sm:$0x1] }
 0x1d5   : > { %2845 = vrot.lane.b32.xlu0 %v2769_v37, %s9121_s11  ;;  %v2792_v37 = vrot.slane %v2637_v13, 5  ;;  %v2954_v13 = vld [vmem:[#allocation2 + $0xa0] sm:$0xf] }
 0x1d6   : > { %v2481_v14 = vpop.permute.xlu2 %2480 }
 0x1d7   : > { %2835 = vrot.lane.b32.xlu1 %v2751_v8, %s9121_s11  ;;  %2569 = vst.msk [vmem:[#allocation4 + $0x20] sm:$0xf] %vm2560_vm4, %v2481_v14  ;;  %v2489_v53 = vpop.permute.xlu0 %2488  ;;  %v2765_v8 = vsel %vm9656_vm14, %v2763_v52, %v2764_v32  ;;  %v2793_v15 = vsel %vm9656_vm14, %v2791_v60, %v2792_v37  ;;  %v8714_v14 = vrot.slane %v2629_v47, 9  ;;  %v2941_v32 = vld [vmem:[#allocation2 + $0x54] sm:$0xf] }
 0x1d8   : > { %2573 = vst.msk [vmem:[#allocation4 + $0x30] sm:$0xf] %vm2560_vm4, %v2489_v53  ;;  %v3124_v60 = vld [vmem:[#allocation2 + $0x18] sm:$0xf] }
 0x1d9   : > { %v2479_v20 = vpop.permute.xlu1 %2478  ;;  %v2776_v11 = vsel %vm9656_vm14, %v8714_v14, %v2775_v39  ;;  %v3173_v47 = vshrl.u32 %v3124_v60, 16  ;;  %v2952_v14 = vld [vmem:[#allocation2 + $0x94] sm:$0xf] }
 0x1da   : > { %2568 = vst.msk [vmem:[#allocation4 + $0x1c] sm:$0xf] %vm2560_vm4, %v2479_v20  ;;  %v2936_v20 = vld [vmem:[#allocation2 + $0x34] sm:$0xf] }
 0x1dc   : > { %2825 = vrot.lane.b32.xlu2 %v2734_v29, %s9121_s11  ;;  %v2931_v29 = vld [vmem:[#allocation2 + $0x18] sm:$0xf] }
 0x1dd   : > { %2851 = vrot.lane.b32.xlu0 %v2779_v44, %s9121_s11  ;;  %v2785_v44 = vrot.slane %v2634_v57, 5 }
 0x1de   : > { %v2487_v25 = vpop.permute.xlu2 %2486 }
 0x1df   : > { %2841 = vrot.lane.b32.xlu1 %v2762_v40, %s9121_s11  ;;  %2572 = vst.msk [vmem:[#allocation4 + $0x2c] sm:$0xf] %vm2560_vm4, %v2487_v25  ;;  %v2495_v45 = vpop.permute.xlu0 %2494  ;;  %v2786_v16 = vsel %vm9656_vm14, %v2784_v63, %v2785_v44  ;;  %v2638_v40 = vld [vmem:[#allocation2 + $0xc0] sm:$0xe]  ;;  %v2947_v63 = vld [vmem:[#allocation2 + $0x78] sm:$0xf] }
 0x1e0   : > { %2576 = vst.msk [vmem:[#allocation4 + $0x3c] sm:$0xf] %vm2560_vm4, %v2495_v45  ;;  %v8717_v61 = vrot.slane %v2638_v40, 9  ;;  %v2955_v40 = vld [vmem:[#allocation2 + $0xa8] sm:$0xf] }
 0x1e1   : > { %v2485_v22 = vpop.permute.xlu1 %2484 }
 0x1e2   : > { %2571 = vst.msk [vmem:[#allocation4 + $0x28] sm:$0xf] %vm2560_vm4, %v2485_v22  ;;  %v2797_v45 = vsel %vm9656_vm14, %v8717_v61, %v2796_v3  ;;  %v2940_v3 = vld [vmem:[#allocation2 + $0x4c] sm:$0xf] }
 0x1e4   : > { %2831 = vrot.lane.b32.xlu2 %v2744_v12, %s9121_s11 }
 0x1e5   : > { %2857 = vrot.lane.b32.xlu0 %v2790_v41, %s9121_s11  ;;  %v2945_v41 = vld [vmem:[#allocation2 + $0x6c] sm:$0xf] }
 0x1e6   : > { %v2493_v24 = vpop.permute.xlu2 %2492 }
 0x1e7   : > { %2847 = vrot.lane.b32.xlu1 %v2772_v5, %s9121_s11  ;;  %2575 = vst.msk [vmem:[#allocation4 + $0x38] sm:$0xf] %vm2560_vm4, %v2493_v24  ;;  %v2501_v18 = vpop.permute.xlu0 %2500  ;;  %v2943_v24 = vld [vmem:[#allocation2 + $0x60] sm:$0xf] }
 0x1e8   : > { %2579 = vst.msk [vmem:[#allocation4 + $0x48] sm:$0xf] %vm2560_vm4, %v2501_v18 }
 0x1e9   : > { %v2491_v35 = vpop.permute.xlu1 %2490 }
 0x1ea   : > { %2574 = vst.msk [vmem:[#allocation4 + $0x34] sm:$0xf] %vm2560_vm4, %v2491_v35  ;;  %v2946_v35 = vld [vmem:[#allocation2 + $0x70] sm:$0xf] }
 0x1ec   : > { %2837 = vrot.lane.b32.xlu2 %v2755_v51, %s9121_s11  ;;  %v343_v51 = vld [vmem:[#allocation2 + $0xcc] sm:$0x1] }
 0x1ed   : > { %2863 = vrot.lane.b32.xlu0 %v2800_v9, %s9121_s11  ;;  %v344_v9 = vsel %vm9177_vm3, 0, %v343_v51 }
 0x1ee   : > { %v2499_v62 = vpop.permute.xlu2 %2498  ;;  %345 = vst [vmem:[#allocation2 + $0xcc] sm:$0x1] %v344_v9  ;;  %v3126_v9 = vld [vmem:[#allocation2 + $0x20] sm:$0x1] }
 0x1ef   : > { %2853 = vrot.lane.b32.xlu1 %v2783_v27, %s9121_s11  ;;  %2578 = vst.msk [vmem:[#allocation4 + $0x44] sm:$0xf] %vm2560_vm4, %v2499_v62  ;;  %v2507_v28 = vpop.permute.xlu0 %2506  ;;  %v2949_v62 = vld [vmem:[#allocation2 + $0x84] sm:$0xf] }
 0x1f0   : > { %2582 = vst.msk [vmem:[#allocation4 + $0x54] sm:$0xf] %vm2560_vm4, %v2507_v28 }
 0x1f1   : > { %v2497_v59 = vpop.permute.xlu1 %2496 }
 0x1f2   : > { %2577 = vst.msk [vmem:[#allocation4 + $0x40] sm:$0xf] %vm2560_vm4, %v2497_v59 }
 0x1f4   : > { %2843 = vrot.lane.b32.xlu2 %v2765_v8, %s9121_s11  ;;  %v2944_v8 = vld [vmem:[#allocation2 + $0x64] sm:$0xf] }
 0x1f5   : > { %2999 = vrot.lane.b32.xlu0 %v2933_v49, %s9122_s12  ;;  %v3176_v49 = vshll.u32 %v3124_v60, 16 }
 0x1f6   : > { %v2505_v23 = vpop.permute.xlu2 %2504 }
 0x1f7   : > { %2859 = vrot.lane.b32.xlu1 %v2793_v15, %s9121_s11  ;;  %2581 = vst.msk [vmem:[#allocation4 + $0x50] sm:$0xf] %vm2560_vm4, %v2505_v23  ;;  %v2513_v34 = vpop.permute.xlu0 %2512  ;;  %v2957_v15 = vld [vmem:[#allocation2 + $0xb4] sm:$0xf]  ;;  %v3175_v23 = vrot.slane %v3173_v47, 4 }
 0x1f8   : > { %2585 = vst.msk [vmem:[#allocation4 + $0x60] sm:$0xf] %vm2560_vm4, %v2513_v34  ;;  %v3178_v34 = vrot.slane %v3176_v49, 5 }
 0x1f9   : > { %v2503_v53 = vpop.permute.xlu1 %2502 }
 0x1fa   : > { %2580 = vst.msk [vmem:[#allocation4 + $0x4c] sm:$0xf] %vm2560_vm4, %v2503_v53  ;;  %v3179_v44 = vor.u32 %v3178_v34, %v3175_v23  ;;  %v10513_v34 = vld [vmem:[#allocation2 + $0x34] sm:$0xf] }
 0x1fc   : > { %2849 = vrot.lane.b32.xlu2 %v2776_v11, %s9121_s11  ;;  %v3125_v11 = vld [vmem:[#allocation2 + $0x1c] sm:$0xf] }
 0x1fd   : > { %3005 = vrot.lane.b32.xlu0 %v2936_v20, %s9122_s12  ;;  %v3128_v20 = vld [vmem:[#allocation2 + $0x28] sm:$0xf] }
 0x1fe   : > { %v2511_v33 = vpop.permute.xlu2 %2510 }
 0x1ff   : > { %2995 = vrot.lane.b32.xlu1 %v2931_v29, %s9122_s12  ;;  %2584 = vst.msk [vmem:[#allocation4 + $0x5c] sm:$0xf] %vm2560_vm4, %v2511_v33  ;;  %v2519_v30 = vpop.permute.xlu0 %2518  ;;  %v3182_v33 = vshll.u32 %v3125_v11, 16 }
 0x200   : > { %2588 = vst.msk [vmem:[#allocation4 + $0x6c] sm:$0xf] %vm2560_vm4, %v2519_v30  ;;  %v2960_v30 = vld [vmem:[#allocation2 + $0xc4] sm:$0xf] }
 0x201   : > { %v2509_v39 = vpop.permute.xlu1 %2508 }
 0x202   : > { %2583 = vst.msk [vmem:[#allocation4 + $0x58] sm:$0xf] %vm2560_vm4, %v2509_v39  ;;  %v3206_v39 = vshll.u32 %v3128_v20, 16 }
 0x204   : > { %2855 = vrot.lane.b32.xlu2 %v2786_v16, %s9121_s11  ;;  %v3210_v16 = vshrl.u32 %v3128_v20, 16 }
 0x205   : > { %3011 = vrot.lane.b32.xlu0 %v2939_v46, %s9122_s12  ;;  %v3180_v46 = vrot.slane %v3179_v44, 4 }
 0x206   : > { %v2517_v25 = vpop.permute.xlu2 %2516 }
 0x207   : > { %3001 = vrot.lane.b32.xlu1 %v2934_v2, %s9122_s12  ;;  %2587 = vst.msk [vmem:[#allocation4 + $0x68] sm:$0xf] %vm2560_vm4, %v2517_v25  ;;  %v2525_v31 = vpop.permute.xlu0 %2524  ;;  %v10483_v2 = vrot.slane %v3182_v33, 5  ;;  %v10485_v25 = vrot.slane %v3206_v39, 5  ;;  %v3230_v39 = vshll.u32 %v10513_v34, 16 }
 0x208   : > { %2591 = vst.msk [vmem:[#allocation4 + $0x78] sm:$0xf] %vm2560_vm4, %v2525_v31  ;;  %v3212_v31 = vrot.slane %v3210_v16, 4 }
 0x209   : > { %v2515_v58 = vpop.permute.xlu1 %2514 }
 0x20a   : > { %2586 = vst.msk [vmem:[#allocation4 + $0x64] sm:$0xf] %vm2560_vm4, %v2515_v58 }
 0x20c   : > { %2861 = vrot.lane.b32.xlu2 %v2797_v45, %s9121_s11  ;;  %v3129_v45 = vld [vmem:[#allocation2 + $0x2c] sm:$0x1] }
 0x20d   : > { %3017 = vrot.lane.b32.xlu0 %v2942_v0, %s9122_s12  ;;  %v3133_v0 = vld [vmem:[#allocation2 + $0x3c] sm:$0xf] }
 0x20e   : > { %v2523_v22 = vpop.permute.xlu2 %2522 }
 0x20f   : > { %3007 = vrot.lane.b32.xlu1 %v2937_v10, %s9122_s12  ;;  %2590 = vst.msk [vmem:[#allocation4 + $0x74] sm:$0xf] %vm2560_vm4, %v2523_v22  ;;  %v2804_v12 = vpop.permute.xlu0 %2803  ;;  %v2950_v22 = vld [vmem:[#allocation2 + $0x88] sm:$0xf] }
 0x210   : > { %2899 = vst.msk [vmem:[#allocation4 + $0x4] sm:$0xf] %vm2897_vm5, %v2804_v12  ;;  %v3185_v12 = vsel %vm9239_vm10, %v3180_v46, %v10483_v2 }
 0x211   : > { %v2521_v26 = vpop.permute.xlu1 %2520 }
 0x212   : > { %2589 = vst.msk [vmem:[#allocation4 + $0x70] sm:$0xf] %vm2560_vm4, %v2521_v26  ;;  %v3213_v26 = vor.u32 %v3212_v31, %v10485_v25 }
 0x214   : > { %2997 = vrot.lane.b32.xlu2 %v2932_v17, %s9122_s12  ;;  %v3216_v17 = vshll.u32 %v3129_v45, 16 }
 0x215   : > { %3023 = vrot.lane.b32.xlu0 %v2945_v41, %s9122_s12  ;;  %v3245_v41 = vshrl.u32 %v3133_v0, 16 }
 0x216   : > { %v2802_v36 = vpop.permute.xlu2 %2801 }
 0x217   : > { %3013 = vrot.lane.b32.xlu1 %v2940_v3, %s9122_s12  ;;  %2898 = vst.msk [vmem:[#allocation4] sm:$0xf] %vm2897_vm5, %v2802_v36  ;;  %v2810_v5 = vpop.permute.xlu0 %2809  ;;  %v3248_v3 = vshll.u32 %v3133_v0, 16  ;;  %v2958_v36 = vld [vmem:[#allocation2 + $0xb8] sm:$0xf]  ;;  %v10529_v0 = vrot.slane %v3230_v39, 5 }
 0x218   : > { %2902 = vst.msk [vmem:[#allocation4 + $0x10] sm:$0xf] %vm2897_vm5, %v2810_v5  ;;  %v3186_v5 = vshrl.u32 %v3125_v11, 16 }
 0x219   : > { %v2527_v43 = vpop.permute.xlu1 %2526 }
 0x21a   : > { %2592 = vst.msk [vmem:[#allocation4 + $0x7c] sm:$0xf] %vm2560_vm4, %v2527_v43 }
 0x21c   : > { %3003 = vrot.lane.b32.xlu2 %v2935_v54, %s9122_s12  ;;  %v3214_v54 = vrot.slane %v3213_v26, 4 }
 0x21d   : > { %3029 = vrot.lane.b32.xlu0 %v2948_v55, %s9122_s12  ;;  %v3218_v55 = vrot.slane %v3216_v17, 5 }
 0x21e   : > { %v2808_v7 = vpop.permute.xlu2 %2807 }
 0x21f   : > { %3019 = vrot.lane.b32.xlu1 %v2943_v24, %s9122_s12  ;;  %2901 = vst.msk [vmem:[#allocation4 + $0xc] sm:$0xf] %vm2897_vm5, %v2808_v7  ;;  %v2816_v21 = vpop.permute.xlu0 %2815  ;;  %v3247_v24 = vrot.slane %v3245_v41, 4  ;;  %v3250_v7 = vrot.slane %v3248_v3, 5  ;;  %v3139_v3 = vld [vmem:[#allocation2 + $0x54] sm:$0xf] }
 0x220   : > { %2905 = vst.msk [vmem:[#allocation4 + $0x1c] sm:$0xf] %vm2897_vm5, %v2816_v21  ;;  %v3137_v21 = vld [vmem:[#allocation2 + $0x4c] sm:$0xf] }
 0x221   : > { %v2806_v18 = vpop.permute.xlu1 %2805 }
 0x222   : > { %2900 = vst.msk [vmem:[#allocation4 + $0x8] sm:$0xf] %vm2897_vm5, %v2806_v18 }
 0x224   : > { %3009 = vrot.lane.b32.xlu2 %v2938_v19, %s9122_s12  ;;  %v10499_v19 = vld [vmem:[#allocation2 + $0x40] sm:$0xf] }
 0x225   : > { %3035 = vrot.lane.b32.xlu0 %v2951_v42, %s9122_s12  ;;  %v3188_v42 = vrot.slane %v3186_v5, 4  ;;  %v3258_v31 = vshrl.u32 %v10499_v19, 16 }
 0x226   : > { %v2814_v48 = vpop.permute.xlu2 %2813 }
 0x227   : > { %3025 = vrot.lane.b32.xlu1 %v2946_v35, %s9122_s12  ;;  %2904 = vst.msk [vmem:[#allocation4 + $0x18] sm:$0xf] %vm2897_vm5, %v2814_v48  ;;  %v2822_v27 = vpop.permute.xlu0 %2821  ;;  %v3130_v35 = vld [vmem:[#allocation2 + $0x30] sm:$0xf]  ;;  %v2953_v48 = vld [vmem:[#allocation2 + $0x9c] sm:$0xf] }
 0x228   : > { %2908 = vst.msk [vmem:[#allocation4 + $0x28] sm:$0xf] %vm2897_vm5, %v2822_v27  ;;  %v3278_v27 = vshll.u32 %v3137_v21, 16  ;;  %v3224_v60 = vshll.u32 %v3130_v35, 16 }
 0x229   : > { %v2812_v52 = vpop.permute.xlu1 %2811 }
 0x22a   : > { %2903 = vst.msk [vmem:[#allocation4 + $0x14] sm:$0xf] %vm2897_vm5, %v2812_v52  ;;  %v3282_v52 = vshrl.u32 %v3137_v21, 16  ;;  %v10509_v47 = vrot.slane %v3278_v27, 5  ;;  %v3226_v20 = vrot.slane %v3224_v60, 5 }
 0x22c   : > { %3015 = vrot.lane.b32.xlu2 %v2941_v32, %s9122_s12  ;;  %v3219_v32 = vsel %vm9239_vm10, %v3214_v54, %v3218_v55  ;;  %v3284_v49 = vrot.slane %v3282_v52, 4  ;;  %v3260_v54 = vrot.slane %v3258_v31, 4  ;;  %v10533_v55 = vld [vmem:[#allocation2 + $0x64] sm:$0xf] }
 0x22d   : > { %3041 = vrot.lane.b32.xlu0 %v2954_v13, %s9122_s12  ;;  %v3251_v13 = vor.u32 %v3250_v7, %v3247_v24  ;;  %v3135_v24 = vld [vmem:[#allocation2 + $0x44] sm:$0x1]  ;;  %v3326_v52 = vshll.u32 %v10533_v55, 16 }
 0x22e   : > { %v2820_v28 = vpop.permute.xlu2 %2819  ;;  %v3285_v16 = vor.u32 %v3284_v49, %v10509_v47 }
 0x22f   : > { %3031 = vrot.lane.b32.xlu1 %v2949_v62, %s9122_s12  ;;  %2907 = vst.msk [vmem:[#allocation4 + $0x24] sm:$0xf] %vm2897_vm5, %v2820_v28  ;;  %v2828_v37 = vpop.permute.xlu0 %2827  ;;  %v3254_v62 = vshll.u32 %v10499_v19, 16  ;;  %v3221_v28 = vshrl.u32 %v3130_v35, 16  ;;  %v2959_v19 = vld [vmem:[#allocation2 + $0xc0] sm:$0xf] }
 0x230   : > { %2911 = vst.msk [vmem:[#allocation4 + $0x34] sm:$0xf] %vm2897_vm5, %v2828_v37  ;;  %v2961_v37 = vld [vmem:[#allocation2 + $0xcc] sm:$0xf]  ;;  %v3296_v35 = vshll.u32 %v3139_v3, 16 }
 0x231   : > { %v2818_v59 = vpop.permute.xlu1 %2817  ;;  %v10511_v23 = vrot.slane %v3254_v62, 5 }
 0x232   : > { %2906 = vst.msk [vmem:[#allocation4 + $0x20] sm:$0xf] %vm2897_vm5, %v2818_v59  ;;  %v3189_v59 = vor.u32 %v3188_v42, %v10483_v2  ;;  %v3293_v42 = vshrl.u32 %v3139_v3, 16 }
 0x234   : > { %3021 = vrot.lane.b32.xlu2 %v2944_v8, %s9122_s12  ;;  %v3192_v8 = vshll.u32 %v3126_v9, 16 }
 0x235   : > { %3047 = vrot.lane.b32.xlu0 %v2957_v15, %s9122_s12 }
 0x236   : > { %v2826_v53 = vpop.permute.xlu2 %2825  ;;  %v3194_v44 = vrot.slane %v3192_v8, 5  ;;  %v3298_v8 = vrot.slane %v3296_v35, 5 }
 0x237   : > { %3037 = vrot.lane.b32.xlu1 %v2952_v14, %s9122_s12  ;;  %2910 = vst.msk [vmem:[#allocation4 + $0x30] sm:$0xf] %vm2897_vm5, %v2826_v53  ;;  %v2834_v57 = vpop.permute.xlu0 %2833  ;;  %v3252_v14 = vrot.slane %v3251_v13, 4  ;;  %v3138_v53 = vld [vmem:[#allocation2 + $0x50] sm:$0x1]  ;;  %v3264_v13 = vshll.u32 %v3135_v24, 16 }
 0x238   : > { %2914 = vst.msk [vmem:[#allocation4 + $0x40] sm:$0xf] %vm2897_vm5, %v2834_v57  ;;  %v3223_v57 = vrot.slane %v3221_v28, 4  ;;  %v3148_v24 = vld [vmem:[#allocation2 + $0x78] sm:$0xf] }
 0x239   : > { %v2824_v29 = vpop.permute.xlu1 %2823  ;;  %v3257_v46 = vsel %vm9239_vm10, %v3252_v14, %v10511_v23 }
 0x23a   : > { %2909 = vst.msk [vmem:[#allocation4 + $0x2c] sm:$0xf] %vm2897_vm5, %v2824_v29  ;;  %v3142_v29 = vld [vmem:[#allocation2 + $0x60] sm:$0xf] }
 0x23b   : > { %v3317_v2 = vshrl.u32 %v3142_v29, 16 }
 0x23c   : > { %3027 = vrot.lane.b32.xlu2 %v2947_v63, %s9122_s12  ;;  %v3190_v63 = vrot.slane %v3189_v59, 4  ;;  %v3295_v59 = vrot.slane %v3293_v42, 4 }
 0x23d   : > { %3053 = vrot.lane.b32.xlu0 %v2960_v30, %s9122_s12  ;;  %v2956_v30 = vld [vmem:[#allocation2 + $0xac] sm:$0xf]  ;;  %v3319_v17 = vrot.slane %v3317_v2, 4 }
 0x23e   : > { %v2832_v61 = vpop.permute.xlu2 %2831  ;;  %v3195_v45 = vsel %vm9239_vm10, %v3190_v63, %v3194_v44  ;;  %v3151_v63 = vld [vmem:[#allocation2 + $0x84] sm:$0xf]  ;;  %v3234_v44 = vshrl.u32 %v10513_v34, 16 }
 0x23f   : > { %3043 = vrot.lane.b32.xlu1 %v2955_v40, %s9122_s12  ;;  %2913 = vst.msk [vmem:[#allocation4 + $0x3c] sm:$0xf] %vm2897_vm5, %v2832_v61  ;;  %v2840_v58 = vpop.permute.xlu0 %2839  ;;  %v3288_v40 = vshll.u32 %v3138_v53, 16  ;;  %v3320_v61 = vshll.u32 %v3142_v29, 16  ;;  %v10550_v53 = vrot.slane %v3326_v52, 5  ;;  %v3389_v31 = vshrl.u32 %v3151_v63, 16 }
 0x240   : > { %2917 = vst.msk [vmem:[#allocation4 + $0x4c] sm:$0xf] %vm2897_vm5, %v2840_v58  ;;  %v3227_v58 = vor.u32 %v3226_v20, %v3223_v57  ;;  %v3266_v20 = vrot.slane %v3264_v13, 5  ;;  %v3365_v52 = vshrl.u32 %v3148_v24, 16 }
 0x241   : > { %v2830_v10 = vpop.permute.xlu1 %2829  ;;  %v3322_v41 = vrot.slane %v3320_v61, 5 }
 0x242   : > { %2912 = vst.msk [vmem:[#allocation4 + $0x38] sm:$0xf] %vm2897_vm5, %v2830_v10  ;;  %v3286_v10 = vrot.slane %v3285_v16, 4  ;;  %v3228_v5 = vrot.slane %v3227_v58, 4  ;;  %v2962_v16 = vld [vmem:[#allocation2 + $0xd0] sm:$0xf] }
 0x243   : > { %v3323_v27 = vor.u32 %v3322_v41, %v3319_v17  ;;  %v3392_v58 = vshll.u32 %v3151_v63, 16  ;;  %v3132_v41 = vld [vmem:[#allocation2 + $0x38] sm:$0x1] }
 0x244   : > { %3033 = vrot.lane.b32.xlu2 %v2950_v22, %s9122_s12  ;;  %v3290_v22 = vrot.slane %v3288_v40, 5  ;;  %v3233_v62 = vsel %vm9239_vm10, %v3228_v5, %v10529_v0  ;;  %v3299_v40 = vor.u32 %v3298_v8, %v3295_v59 }
 0x245   : > { %3556 = vrot.lane.b32.xlu0 %v3185_v12, %s9123_s13  ;;  %v3127_v12 = vld [vmem:[#allocation2 + $0x24] sm:$0xf] }
 0x246   : > { %v2838_v43 = vpop.permute.xlu2 %2837  ;;  %v3197_v7 = vshrl.u32 %v3127_v12, 16  ;;  %v3200_v21 = vshll.u32 %v3127_v12, 16  ;;  %v3291_v9 = vsel %vm9239_vm10, %v3286_v10, %v3290_v22  ;;  %v3330_v10 = vshrl.u32 %v10533_v55, 16 }
 0x247   : > { %3049 = vrot.lane.b32.xlu1 %v2958_v36, %s9122_s12  ;;  %2916 = vst.msk [vmem:[#allocation4 + $0x48] sm:$0xf] %vm2897_vm5, %v2838_v43  ;;  %v2846_v18 = vpop.permute.xlu0 %2845  ;;  %v3146_v36 = vld [vmem:[#allocation2 + $0x70] sm:$0xf]  ;;  %v3236_v12 = vrot.slane %v3234_v44, 4  ;;  %v3300_v17 = vrot.slane %v3299_v40, 4 }
 0x248   : > { %2920 = vst.msk [vmem:[#allocation4 + $0x58] sm:$0xf] %vm2897_vm5, %v2846_v18  ;;  %v3199_v28 = vrot.slane %v3197_v7, 4  ;;  %v3202_v60 = vrot.slane %v3200_v21, 5  ;;  %v3155_v7 = vld [vmem:[#allocation2 + $0x94] sm:$0xf] }
 0x249   : > { %v2836_v51 = vpop.permute.xlu1 %2835  ;;  %v3237_v35 = vor.u32 %v3236_v12, %v10529_v0  ;;  %v3422_v13 = vshll.u32 %v3155_v7, 16 }
 0x24a   : > { %2915 = vst.msk [vmem:[#allocation4 + $0x44] sm:$0xf] %vm2897_vm5, %v2836_v51  ;;  %v3350_v51 = vshll.u32 %v3146_v36, 16 }
 0x24c   : > { %3039 = vrot.lane.b32.xlu2 %v2953_v48, %s9122_s12  ;;  %v3354_v48 = vshrl.u32 %v3146_v36, 16  ;;  %v10548_v49 = vrot.slane %v3350_v51, 5  ;;  %v3240_v51 = vshll.u32 %v3132_v41, 16 }
 0x24d   : > { %3562 = vrot.lane.b32.xlu0 %v3219_v32, %s9123_s13  ;;  %v3261_v32 = vor.u32 %v3260_v54, %v10511_v23  ;;  %v3324_v23 = vrot.slane %v3323_v27, 4  ;;  %v3394_v54 = vrot.slane %v3392_v58, 5  ;;  %v3144_v27 = vld [vmem:[#allocation2 + $0x68] sm:$0x1] }
 0x24e   : > { %v2844_v15 = vpop.permute.xlu2 %2843 }
 0x24f   : > { %3055 = vrot.lane.b32.xlu1 %v2961_v37, %s9122_s12  ;;  %2919 = vst.msk [vmem:[#allocation4 + $0x54] sm:$0xf] %vm2897_vm5, %v2844_v15  ;;  %v2852_v11 = vpop.permute.xlu0 %2851  ;;  %v10546_v37 = vld [vmem:[#allocation2 + $0x58] sm:$0xf]  ;;  %v3356_v15 = vrot.slane %v3354_v48, 4  ;;  %v3262_v57 = vrot.slane %v3261_v32, 4  ;;  %v3329_v61 = vsel %vm9239_vm10, %v3324_v23, %v10550_v53 }
 0x250   : > { %2923 = vst.msk [vmem:[#allocation4 + $0x64] sm:$0xf] %vm2897_vm5, %v2852_v11  ;;  %v3147_v11 = vld [vmem:[#allocation2 + $0x74] sm:$0x1]  ;;  %v3332_v48 = vrot.slane %v3330_v10, 4  ;;  %v3368_v32 = vshll.u32 %v3148_v24, 16 }
 0x251   : > { %v2842_v33 = vpop.permute.xlu1 %2841  ;;  %v3360_v2 = vshll.u32 %v3147_v11, 16  ;;  %v3267_v34 = vsel %vm9239_vm10, %v3262_v57, %v3266_v20  ;;  %v3336_v11 = vshll.u32 %v3144_v27, 16  ;;  %v3367_v57 = vrot.slane %v3365_v52, 4  ;;  %v3157_v52 = vld [vmem:[#allocation2 + $0x9c] sm:$0xf] }
 0x252   : > { %2918 = vst.msk [vmem:[#allocation4 + $0x50] sm:$0xf] %vm2897_vm5, %v2842_v33  ;;  %v3203_v33 = vor.u32 %v3202_v60, %v3199_v28  ;;  %v3333_v23 = vor.u32 %v3332_v48, %v10550_v53  ;;  %v3370_v20 = vrot.slane %v3368_v32, 5  ;;  %v3153_v48 = vld [vmem:[#allocation2 + $0x8c] sm:$0x1] }
 0x253   : > { %v3362_v36 = vrot.slane %v3360_v2, 5  ;;  %v3306_v2 = vshrl.u32 %v10546_v37, 16  ;;  %v3338_v58 = vrot.slane %v3336_v11, 5  ;;  %v3164_v32 = vld [vmem:[#allocation2 + $0xb8] sm:$0xf] }
 0x254   : > { %3045 = vrot.lane.b32.xlu2 %v2956_v30, %s9122_s12  ;;  %v3302_v30 = vshll.u32 %v10546_v37, 16  ;;  %v3371_v37 = vor.u32 %v3370_v20, %v3367_v57  ;;  %v3498_v11 = vshrl.u32 %v3164_v32, 16  ;;  %v3408_v57 = vshll.u32 %v3153_v48, 16  ;;  %v399_v20 = vld [vmem:[#allocation2 + $0xd4] sm:$0x1] }
 0x255   : > { %3568 = vrot.lane.b32.xlu0 %v3257_v46, %s9123_s13  ;;  %v3357_v46 = vor.u32 %v3356_v15, %v10548_v49  ;;  %v3238_v15 = vrot.slane %v3237_v35, 4 }
 0x256   : > { %v2850_v26 = vpop.permute.xlu2 %2849  ;;  %v10566_v22 = vrot.slane %v3302_v30, 5  ;;  %v3372_v35 = vrot.slane %v3371_v37, 4 }
 0x257   : > { %3558 = vrot.lane.b32.xlu1 %v3195_v45, %s9123_s13  ;;  %2922 = vst.msk [vmem:[#allocation4 + $0x60] sm:$0xf] %vm2897_vm5, %v2850_v26  ;;  %v2858_v43 = vpop.permute.xlu0 %2857  ;;  %v3204_v45 = vrot.slane %v3203_v33, 4  ;;  %v3136_v26 = vld [vmem:[#allocation2 + $0x48] sm:$0xf]  ;;  %v3358_v3 = vrot.slane %v3357_v46, 4 }
 0x258   : > { %2926 = vst.msk [vmem:[#allocation4 + $0x70] sm:$0xf] %vm2897_vm5, %v2858_v43  ;;  %v3391_v43 = vrot.slane %v3389_v31, 4  ;;  %v3269_v21 = vshrl.u32 %v3136_v26, 16  ;;  %v3305_v0 = vsel %vm9239_vm10, %v3300_v17, %v10566_v22  ;;  %v10594_v46 = vld [vmem:[#allocation2 + $0x7c] sm:$0xf] }
 0x259   : > { %v2848_v18 = vpop.permute.xlu1 %2847  ;;  %v3209_v42 = vsel %vm9239_vm10, %v3204_v45, %v10485_v25  ;;  %v3363_v28 = vsel %vm9239_vm10, %v3358_v3, %v3362_v36  ;;  %v3334_v31 = vrot.slane %v3333_v23, 4  ;;  %v3374_v41 = vshll.u32 %v10594_v46, 16 }
 0x25a   : > { %2921 = vst.msk [vmem:[#allocation4 + $0x5c] sm:$0xf] %vm2897_vm5, %v2848_v18  ;;  %v3272_v18 = vshll.u32 %v3136_v26, 16  ;;  %v3395_v60 = vor.u32 %v3394_v54, %v3391_v43  ;;  %v3271_v59 = vrot.slane %v3269_v21, 4  ;;  %v3141_v43 = vld [vmem:[#allocation2 + $0x5c] sm:$0x1] }
 0x25b   : > { %v3339_v36 = vsel %vm9239_vm10, %v3334_v31, %v3338_v58  ;;  %v3308_v54 = vrot.slane %v3306_v2, 4  ;;  %v3494_v23 = vshll.u32 %v3164_v32, 16  ;;  %v10634_v2 = vld [vmem:[#allocation2 + $0xa0] sm:$0xf] }
 0x25c   : > { %3051 = vrot.lane.b32.xlu2 %v2959_v19, %s9122_s12  ;;  %v10571_v19 = vld [vmem:[#allocation2 + $0x88] sm:$0xf]  ;;  %v3274_v8 = vrot.slane %v3272_v18, 5  ;;  %v3396_v33 = vrot.slane %v3395_v60, 4  ;;  %v3150_v32 = vld [vmem:[#allocation2 + $0x80] sm:$0x1] }
 0x25d   : > { %3574 = vrot.lane.b32.xlu0 %v3291_v9, %s9123_s13  ;;  %v3398_v25 = vshll.u32 %v10571_v19, 16 }
 0x25e   : > { %v2856_v14 = vpop.permute.xlu2 %2855  ;;  %v3275_v53 = vor.u32 %v3274_v8, %v3271_v59 }
 0x25f   : > { %3564 = vrot.lane.b32.xlu1 %v3233_v62, %s9123_s13  ;;  %2925 = vst.msk [vmem:[#allocation4 + $0x6c] sm:$0xf] %vm2897_vm5, %v2856_v14  ;;  %v2864_v29 = vpop.permute.xlu0 %2863  ;;  %v3426_v62 = vshrl.u32 %v3155_v7, 16  ;;  %v3242_v14 = vrot.slane %v3240_v51, 5  ;;  %v10590_v30 = vrot.slane %v3398_v25, 5  ;;  %v10611_v51 = vrot.slane %v3374_v41, 5 }
 0x260   : > { %2929 = vst.msk [vmem:[#allocation4 + $0x7c] sm:$0xf] %vm2897_vm5, %v2864_v29  ;;  %v10588_v29 = vrot.slane %v3422_v13, 5  ;;  %v3276_v3 = vrot.slane %v3275_v53, 4  ;;  %v3309_v13 = vor.u32 %v3308_v54, %v10566_v22  ;;  %v3410_v41 = vrot.slane %v3408_v57, 5 }
 0x261   : > { %v2854_v39 = vpop.permute.xlu1 %2853  ;;  %v3428_v63 = vrot.slane %v3426_v62, 4  ;;  %v3401_v17 = vsel %vm9239_vm10, %v3396_v33, %v10590_v30  ;;  %v3312_v62 = vshll.u32 %v3141_v43, 16  ;;  %v3377_v22 = vsel %vm9239_vm10, %v3372_v35, %v10611_v51  ;;  %v3166_v57 = vld [vmem:[#allocation2 + $0xc0] sm:$0xf] }
 0x262   : > { %2924 = vst.msk [vmem:[#allocation4 + $0x68] sm:$0xf] %vm2897_vm5, %v2854_v39  ;;  %v3156_v39 = vld [vmem:[#allocation2 + $0x98] sm:$0x1]  ;;  %v3446_v54 = vshll.u32 %v10634_v2, 16 }
 0x263   : > { %v3429_v45 = vor.u32 %v3428_v63, %v10588_v29  ;;  %v3432_v10 = vshll.u32 %v3156_v39, 16  ;;  %v3310_v63 = vrot.slane %v3309_v13, 4 }
 0x264   : > { %3057 = vrot.lane.b32.xlu2 %v2962_v16, %s9122_s12  ;;  %v3160_v16 = vld [vmem:[#allocation2 + $0xa8] sm:$0xf]  ;;  %v10657_v48 = vrot.slane %v3446_v54, 5  ;;  %v10688_v54 = vld [vmem:[#allocation2 + $0xc4] sm:$0xf] }
 0x265   : > { %3580 = vrot.lane.b32.xlu0 %v3329_v61, %s9123_s13  ;;  %v3243_v61 = vsel %vm9239_vm10, %v3238_v15, %v3242_v14  ;;  %v3461_v12 = vshrl.u32 %v3160_v16, 16  ;;  %v3464_v26 = vshll.u32 %v3160_v16, 16  ;;  %v3430_v24 = vrot.slane %v3429_v45, 4 }
 0x266   : > { %v2862_v5 = vpop.permute.xlu2 %2861  ;;  %v3434_v7 = vrot.slane %v3432_v10, 5  ;;  %v3440_v14 = vshll.u32 %v3157_v52, 16  ;;  %v10638_v45 = vrot.slane %v3494_v23, 5  ;;  %v3500_v10 = vrot.slane %v3498_v11, 4 }
 0x267   : > { %3570 = vrot.lane.b32.xlu1 %v3267_v34, %s9123_s13  ;;  %2928 = vst.msk [vmem:[#allocation4 + $0x78] sm:$0xf] %vm2897_vm5, %v2862_v5  ;;  %v3000_v55 = vpop.permute.xlu0 %2999  ;;  %v3402_v5 = vshrl.u32 %v10571_v19, 16  ;;  %v3463_v21 = vrot.slane %v3461_v12, 4  ;;  %v3466_v18 = vrot.slane %v3464_v26, 5  ;;  %v3281_v19 = vsel %vm9239_vm10, %v3276_v3, %v10509_v47 }
 0x268   : > { %3094 = vst.msk [vmem:[#allocation4 + $0x8] sm:$0xf] %vm3091_vm7, %v3000_v55  ;;  %v3145_v55 = vld [vmem:[#allocation2 + $0x6c] sm:$0xf]  ;;  %v3437_v47 = vshrl.u32 %v3157_v52, 16 }
 0x269   : > { %v2860_v9 = vpop.permute.xlu1 %2859  ;;  %v3341_v60 = vshrl.u32 %v3145_v55, 16  ;;  %v3344_v59 = vshll.u32 %v3145_v55, 16  ;;  %v3467_v8 = vor.u32 %v3466_v18, %v3463_v21  ;;  %v3165_v12 = vld [vmem:[#allocation2 + $0xbc] sm:$0x1]  ;;  %v3169_v26 = vld [vmem:[#allocation2 + $0xcc] sm:$0xf] }
 0x26a   : > { %2927 = vst.msk [vmem:[#allocation4 + $0x74] sm:$0xf] %vm2897_vm5, %v2860_v9  ;;  %v10613_v9 = vld [vmem:[#allocation2 + $0xac] sm:$0xf]  ;;  %v3439_v58 = vrot.slane %v3437_v47, 4  ;;  %v3536_v55 = vshll.u32 %v3169_v26, 16 }
 0x26b   : > { %v3470_v15 = vshll.u32 %v10613_v9, 16  ;;  %v3343_v39 = vrot.slane %v3341_v60, 4  ;;  %v3346_v16 = vrot.slane %v3344_v59, 5  ;;  %v3474_v21 = vshrl.u32 %v10613_v9, 16  ;;  %v10661_v59 = vld [vmem:[#allocation2 + $0xd0] sm:$0xf] }
 0x26c   : > { %3560 = vrot.lane.b32.xlu2 %v3209_v42, %s9123_s13  ;;  %v3538_v60 = vrot.slane %v3536_v55, 5  ;;  %v3687_v55 = vld [vmem:[#allocation2 + $0x20] sm:$0x1] }
 0x26d   : > { %3586 = vrot.lane.b32.xlu0 %v3363_v28, %s9123_s13  ;;  %v3404_v28 = vrot.slane %v3402_v5, 4  ;;  %v10632_v53 = vrot.slane %v3470_v15, 5  ;;  %v3347_v5 = vor.u32 %v3346_v16, %v3343_v39 }
 0x26e   : > { %v2998_v44 = vpop.permute.xlu2 %2997 }
 0x26f   : > { %3576 = vrot.lane.b32.xlu1 %v3305_v0, %s9123_s13  ;;  %3093 = vst.msk [vmem:[#allocation4 + $0x4] sm:$0xf] %vm3091_vm7, %v2998_v44  ;;  %v3006_v40 = vpop.permute.xlu0 %3005  ;;  %v3435_v0 = vsel %vm9239_vm10, %v3430_v24, %v3434_v7  ;;  %v3314_v44 = vrot.slane %v3312_v62, 5  ;;  %v3405_v33 = vor.u32 %v3404_v28, %v10590_v30  ;;  %v3501_v24 = vor.u32 %v3500_v10, %v10638_v45 }
 0x270   : > { %3097 = vst.msk [vmem:[#allocation4 + $0x14] sm:$0xf] %vm3091_vm7, %v3006_v40  ;;  %v3468_v40 = vrot.slane %v3467_v8, 4  ;;  %v3533_v7 = vshrl.u32 %v3169_v26, 16  ;;  %v3348_v35 = vrot.slane %v3347_v5, 4 }
 0x271   : > { %v2996_v34 = vpop.permute.xlu1 %2995  ;;  %v3406_v37 = vrot.slane %v3405_v33, 4  ;;  %v3502_v13 = vrot.slane %v3501_v24, 4  ;;  %v3162_v8 = vld [vmem:[#allocation2 + $0xb0] sm:$0x1] }
 0x272   : > { %3092 = vst.msk [vmem:[#allocation4] sm:$0xf] %vm3091_vm7, %v2996_v34  ;;  %v3442_v34 = vrot.slane %v3440_v14, 5  ;;  %v3473_v43 = vsel %vm9239_vm10, %v3468_v40, %v10632_v53  ;;  %v3535_v28 = vrot.slane %v3533_v7, 4  ;;  %v3353_v23 = vsel %vm9239_vm10, %v3348_v35, %v10548_v49 }
 0x273   : > { %v3480_v16 = vshll.u32 %v3162_v8, 16  ;;  %v3509_v40 = vshrl.u32 %v3166_v57, 16 }
 0x274   : > { %3566 = vrot.lane.b32.xlu2 %v3243_v61, %s9123_s13  ;;  %v400_v61 = vsel %vm9190_vm6, 0, %v399_v20  ;;  %v3443_v18 = vor.u32 %v3442_v34, %v3439_v58 }
 0x275   : > { %3592 = vrot.lane.b32.xlu0 %v3401_v17, %s9123_s13  ;;  %401 = vst [vmem:[#allocation2 + $0xd4] sm:$0x1] %v400_v61  ;;  %v3378_v17 = vshrl.u32 %v10594_v46, 16  ;;  %v3504_v46 = vshll.u32 %v3165_v12, 16  ;;  %v3512_v61 = vshll.u32 %v3166_v57, 16  ;;  %v3482_v12 = vrot.slane %v3480_v16, 5 }
 0x276   : > { %v3004_v42 = vpop.permute.xlu2 %3003  ;;  %v3444_v9 = vrot.slane %v3443_v18, 4 }
 0x277   : > { %3582 = vrot.lane.b32.xlu1 %v3339_v36, %s9123_s13  ;;  %3096 = vst.msk [vmem:[#allocation4 + $0x10] sm:$0xf] %vm3091_vm7, %v3004_v42  ;;  %v3012_v27 = vpop.permute.xlu0 %3011  ;;  %v3315_v36 = vsel %vm9239_vm10, %v3310_v63, %v3314_v44  ;;  %v3411_v42 = vsel %vm9239_vm10, %v3406_v37, %v3410_v41  ;;  %v3506_v62 = vrot.slane %v3504_v46, 5  ;;  %v3539_v63 = vor.u32 %v3538_v60, %v3535_v28 }
 0x278   : > { %3100 = vst.msk [vmem:[#allocation4 + $0x20] sm:$0xf] %vm3091_vm7, %v3012_v27  ;;  %v3154_v27 = vld [vmem:[#allocation2 + $0x90] sm:$0xf]  ;;  %v3542_v44 = vshll.u32 %v10661_v59, 16  ;;  %v3449_v33 = vsel %vm9239_vm10, %v3444_v9, %v10657_v48  ;;  %v3511_v41 = vrot.slane %v3509_v40, 4 }
 0x279   : > { %v3002_v25 = vpop.permute.xlu1 %3001  ;;  %v3413_v15 = vshrl.u32 %v3154_v27, 16  ;;  %v3416_v47 = vshll.u32 %v3154_v27, 16  ;;  %v3507_v20 = vsel %vm9239_vm10, %v3502_v13, %v3506_v62  ;;  %v3540_v10 = vrot.slane %v3539_v63, 4  ;;  %v3159_v27 = vld [vmem:[#allocation2 + $0xa4] sm:$0x1] }
 0x27a   : > { %3095 = vst.msk [vmem:[#allocation4 + $0xc] sm:$0xf] %vm3091_vm7, %v3002_v25  ;;  %v3163_v13 = vld [vmem:[#allocation2 + $0xb4] sm:$0xf]  ;;  %v3456_v8 = vshll.u32 %v3159_v27, 16 }
 0x27b   : > { %v3415_v49 = vrot.slane %v3413_v15, 4 }
 0x27c   : > { %3572 = vrot.lane.b32.xlu2 %v3281_v19, %s9123_s13  ;;  %v3380_v19 = vrot.slane %v3378_v17, 4  ;;  %v10682_v17 = vld [vmem:[#allocation2 + $0x1c] sm:$0xf]  ;;  %v3171_v15 = vld [vmem:[#allocation2 + $0xd4] sm:$0x1] }
 0x27d   : > { %3598 = vrot.lane.b32.xlu0 %v3435_v0, %s9123_s13  ;;  %v3476_v0 = vrot.slane %v3474_v21, 4  ;;  %v3783_v46 = vrot.slane %v10682_v17, 5  ;;  %v3546_v21 = vshrl.u32 %v10661_v59, 16  ;;  %v3552_v57 = vshll.u32 %v3171_v15, 16  ;;  %v3710_v17 = vld [vmem:[#allocation2 + $0x7c] sm:$0xf] }
 0x27e   : > { %v3010_v31 = vpop.permute.xlu2 %3009  ;;  %v3381_v11 = vor.u32 %v3380_v19, %v10611_v51  ;;  %v3418_v51 = vrot.slane %v3416_v47, 5  ;;  %v3485_v47 = vshrl.u32 %v3163_v13, 16 }
 0x27f   : > { %3588 = vrot.lane.b32.xlu1 %v3377_v22, %s9123_s13  ;;  %3099 = vst.msk [vmem:[#allocation4 + $0x1c] sm:$0xf] %vm3091_vm7, %v3010_v31  ;;  %v3018_v30 = vpop.permute.xlu0 %3017  ;;  %v3384_v22 = vshll.u32 %v3150_v32, 16  ;;  %v3477_v39 = vor.u32 %v3476_v0, %v10632_v53  ;;  %v3786_v32 = vrot.slane %v3687_v55, 5 }
 0x280   : > { %3103 = vst.msk [vmem:[#allocation4 + $0x2c] sm:$0xf] %vm3091_vm7, %v3018_v30  ;;  %v3382_v31 = vrot.slane %v3381_v11, 4  ;;  %v10678_v30 = vrot.slane %v3542_v44, 5  ;;  %v3419_v37 = vor.u32 %v3418_v51, %v3415_v49  ;;  %v3691_v11 = vld [vmem:[#allocation2 + $0x30] sm:$0xe] }
 0x281   : > { %v3008_v3 = vpop.permute.xlu1 %3007  ;;  %v3386_v58 = vrot.slane %v3384_v22, 5  ;;  %v3478_v53 = vrot.slane %v3477_v39, 4  ;;  %v3487_v63 = vrot.slane %v3485_v47, 4  ;;  %v8720_v16 = vrot.slane %v3691_v11, 9  ;;  %v10723_v51 = vld [vmem:[#allocation2 + $0x40] sm:$0xf] }
 0x282   : > { %3098 = vst.msk [vmem:[#allocation4 + $0x18] sm:$0xf] %vm3091_vm7, %v3008_v3  ;;  %v3514_v3 = vrot.slane %v3512_v61, 5  ;;  %v3545_v24 = vsel %vm9239_vm10, %v3540_v10, %v10678_v30  ;;  %v3554_v61 = vrot.slane %v3552_v57, 5 }
 0x283   : > { %v3483_v7 = vsel %vm9239_vm10, %v3478_v53, %v3482_v12  ;;  %v3804_v12 = vrot.slane %v10723_v51, 5 }
 0x284   : > { %3578 = vrot.lane.b32.xlu2 %v3315_v36, %s9123_s13  ;;  %v3450_v36 = vshrl.u32 %v10634_v2, 16  ;;  %v3420_v2 = vrot.slane %v3419_v37, 4  ;;  %v3515_v18 = vor.u32 %v3514_v3, %v3511_v41  ;;  %v3688_v3 = vld [vmem:[#allocation2 + $0x24] sm:$0xe] }
 0x285   : > { %3604 = vrot.lane.b32.xlu0 %v3473_v43, %s9123_s13  ;;  %v3387_v43 = vsel %vm9239_vm10, %v3382_v31, %v3386_v58  ;;  %v3522_v58 = vshrl.u32 %v10688_v54, 16 }
 0x286   : > { %v3016_v52 = vpop.permute.xlu2 %3015  ;;  %v3452_v35 = vrot.slane %v3450_v36, 4  ;;  %v3425_v28 = vsel %vm9239_vm10, %v3420_v2, %v10588_v29  ;;  %v3516_v60 = vrot.slane %v3515_v18, 4  ;;  %v10736_v36 = vld [vmem:[#allocation2 + $0x28] sm:$0xf]  ;;  %v8719_v2 = vrot.slane %v3688_v3, 9 }
 0x287   : > { %3594 = vrot.lane.b32.xlu1 %v3411_v42, %s9123_s13  ;;  %3102 = vst.msk [vmem:[#allocation4 + $0x28] sm:$0xf] %vm3091_vm7, %v3016_v52  ;;  %v3024_v25 = vpop.permute.xlu0 %3023  ;;  %v3518_v42 = vshll.u32 %v10688_v54, 16  ;;  %v3785_v52 = vrot.slane %v3783_v46, 4  ;;  %v3168_v54 = vld [vmem:[#allocation2 + $0xc8] sm:$0x1] }
 0x288   : > { %3106 = vst.msk [vmem:[#allocation4 + $0x38] sm:$0xf] %vm3091_vm7, %v3024_v25  ;;  %v3548_v25 = vrot.slane %v3546_v21, 4  ;;  %v3453_v59 = vor.u32 %v3452_v35, %v10657_v48  ;;  %v3790_v21 = vrot.slane %v10736_v36, 5 }
 0x289   : > { %v3014_v14 = vpop.permute.xlu1 %3013  ;;  %v10708_v9 = vrot.slane %v3518_v42, 5 }
 0x28a   : > { %3101 = vst.msk [vmem:[#allocation4 + $0x24] sm:$0xf] %vm3091_vm7, %v3014_v14  ;;  %v3488_v14 = vshll.u32 %v3163_v13, 16  ;;  %v3549_v22 = vor.u32 %v3548_v25, %v10678_v30  ;;  %v3454_v48 = vrot.slane %v3453_v59, 4 }
 0x28b   : > { %v3521_v29 = vsel %vm9239_vm10, %v3516_v60, %v10708_v9 }
 0x28c   : > { %3584 = vrot.lane.b32.xlu2 %v3353_v23, %s9123_s13  ;;  %v3787_v23 = vsel %vm9656_vm14, %v3785_v52, %v3786_v32  ;;  %v3490_v44 = vrot.slane %v3488_v14, 5  ;;  %v3550_v40 = vrot.slane %v3549_v22, 4  ;;  %v3700_v52 = vld [vmem:[#allocation2 + $0x54] sm:$0xe]  ;;  %v3791_v32 = vsel %vm9656_vm14, %v8719_v2, %v3790_v21  ;;  %v3705_v22 = vld [vmem:[#allocation2 + $0x68] sm:$0x1] }
 0x28d   : > { %3610 = vrot.lane.b32.xlu0 %v3507_v20, %s9123_s13  ;;  %v3458_v20 = vrot.slane %v3456_v8, 5 }
 0x28e   : > { %v3022_v34 = vpop.permute.xlu2 %3021  ;;  %v3491_v30 = vor.u32 %v3490_v44, %v3487_v63  ;;  %v3555_v37 = vsel %vm9239_vm10, %v3550_v40, %v3554_v61  ;;  %v10770_v63 = vld [vmem:[#allocation2 + $0x4c] sm:$0xf] }
 0x28f   : > { %3600 = vrot.lane.b32.xlu1 %v3449_v33, %s9123_s13  ;;  %3105 = vst.msk [vmem:[#allocation4 + $0x34] sm:$0xf] %vm3091_vm7, %v3022_v34  ;;  %v3030_v26 = vpop.permute.xlu0 %3029  ;;  %v3692_v33 = vld [vmem:[#allocation2 + $0x34] sm:$0xf]  ;;  %v3459_v10 = vsel %vm9239_vm10, %v3454_v48, %v3458_v20  ;;  %v3697_v20 = vld [vmem:[#allocation2 + $0x48] sm:$0xe] }
 0x290   : > { %3109 = vst.msk [vmem:[#allocation4 + $0x44] sm:$0xf] %vm3091_vm7, %v3030_v26  ;;  %v3797_v31 = vrot.slane %v3692_v33, 5  ;;  %v3696_v26 = vld [vmem:[#allocation2 + $0x44] sm:$0x1]  ;;  %v3492_v41 = vrot.slane %v3491_v30, 4 }
 0x291   : > { %v3020_v5 = vpop.permute.xlu1 %3019  ;;  %v3811_v40 = vrot.slane %v10770_v63, 5 }
 0x292   : > { %3104 = vst.msk [vmem:[#allocation4 + $0x30] sm:$0xf] %vm3091_vm7, %v3020_v5  ;;  %v3798_v53 = vsel %vm9656_vm14, %v8720_v16, %v3797_v31  ;;  %v3524_v5 = vrot.slane %v3522_v58, 4  ;;  %v3497_v42 = vsel %vm9239_vm10, %v3492_v41, %v10638_v45  ;;  %v3701_v45 = vld [vmem:[#allocation2 + $0x58] sm:$0xf]  ;;  %v3799_v59 = vrot.slane %v3797_v31, 4 }
 0x293   : > { %v3818_v15 = vrot.slane %v3701_v45, 5  ;;  %v3690_v58 = vld [vmem:[#allocation2 + $0x2c] sm:$0x1] }
 0x294   : > { %3590 = vrot.lane.b32.xlu2 %v3387_v43, %s9123_s13  ;;  %v3525_v35 = vor.u32 %v3524_v5, %v10708_v9  ;;  %v8723_v9 = vrot.slane %v3700_v52, 9 }
 0x295   : > { %3616 = vrot.lane.b32.xlu0 %v3545_v24, %s9123_s13  ;;  %v3806_v24 = vrot.slane %v3804_v12, 4  ;;  %v3820_v36 = vrot.slane %v3818_v15, 4 }
 0x296   : > { %v3028_v19 = vpop.permute.xlu2 %3027  ;;  %v3526_v13 = vrot.slane %v3525_v35, 4  ;;  %v3819_v11 = vsel %vm9656_vm14, %v8723_v9, %v3818_v15  ;;  %v3813_v15 = vrot.slane %v3811_v40, 4 }
 0x297   : > { %3606 = vrot.lane.b32.xlu1 %v3483_v7, %s9123_s13  ;;  %3108 = vst.msk [vmem:[#allocation4 + $0x40] sm:$0xf] %vm3091_vm7, %v3028_v19  ;;  %v3036_v62 = vpop.permute.xlu0 %3035  ;;  %v3807_v7 = vrot.slane %v3696_v26, 5  ;;  %v3528_v19 = vshll.u32 %v3168_v54, 16  ;;  %v3793_v26 = vrot.slane %v3690_v58, 5 }
 0x298   : > { %3112 = vst.msk [vmem:[#allocation4 + $0x50] sm:$0xf] %vm3091_vm7, %v3036_v62  ;;  %v3708_v58 = vld [vmem:[#allocation2 + $0x74] sm:$0x1] }
 0x299   : > { %v3026_v0 = vpop.permute.xlu1 %3025  ;;  %v3808_v27 = vsel %vm9656_vm14, %v3806_v24, %v3807_v7  ;;  %v3530_v62 = vrot.slane %v3528_v19, 5  ;;  %v10795_v7 = vld [vmem:[#allocation2 + $0x88] sm:$0xf]  ;;  %v3706_v19 = vld [vmem:[#allocation2 + $0x6c] sm:$0xe] }
 0x29a   : > { %3107 = vst.msk [vmem:[#allocation4 + $0x3c] sm:$0xf] %vm3091_vm7, %v3026_v0  ;;  %v10758_v0 = vld [vmem:[#allocation2 + $0x64] sm:$0xf] }
 0x29b   : > { %v3531_v14 = vsel %vm9239_vm10, %v3526_v13, %v3530_v62 }
 0x29c   : > { %3596 = vrot.lane.b32.xlu2 %v3425_v28, %s9123_s13  ;;  %v3693_v28 = vld [vmem:[#allocation2 + $0x38] sm:$0x1] }
 0x29d   : > { %3895 = vrot.lane.b32.xlu0 %v3787_v23, %s9124_s14  ;;  %v3800_v8 = vrot.slane %v3693_v28, 5  ;;  %v3685_v23 = vld [vmem:[#allocation2 + $0x18] sm:$0xe]  ;;  %v8725_v28 = vrot.slane %v3706_v19, 9  ;;  %v3717_v19 = vld [vmem:[#allocation2 + $0x98] sm:$0x1] }
 0x29e   : > { %v3034_v39 = vpop.permute.xlu2 %3033  ;;  %v8718_v48 = vrot.slane %v3685_v23, 9 }
 0x29f   : > { %3612 = vrot.lane.b32.xlu1 %v3521_v29, %s9123_s13  ;;  %3111 = vst.msk [vmem:[#allocation4 + $0x4c] sm:$0xf] %vm3091_vm7, %v3034_v39  ;;  %v3042_v49 = vpop.permute.xlu0 %3041  ;;  %v3825_v29 = vrot.slane %v10758_v0, 5  ;;  %v3801_v57 = vsel %vm9656_vm14, %v3799_v59, %v3800_v8  ;;  %v3828_v39 = vrot.slane %v3705_v22, 5 }
 0x2a0   : > { %3115 = vst.msk [vmem:[#allocation4 + $0x5c] sm:$0xf] %vm3091_vm7, %v3042_v49  ;;  %v8722_v49 = vrot.slane %v3697_v20, 9  ;;  %v3784_v31 = vsel %vm9656_vm14, %v8718_v48, %v3783_v46  ;;  %v3703_v48 = vld [vmem:[#allocation2 + $0x60] sm:$0xe] }
 0x2a1   : > { %v3032_v34 = vpop.permute.xlu1 %3031  ;;  %v3827_v33 = vrot.slane %v3825_v29, 4  ;;  %v8724_v63 = vrot.slane %v3703_v48, 9 }
 0x2a2   : > { %3110 = vst.msk [vmem:[#allocation4 + $0x48] sm:$0xf] %vm3091_vm7, %v3032_v34  ;;  %v3812_v30 = vsel %vm9656_vm14, %v8722_v49, %v3811_v40 }
 0x2a3   : > { %v3829_v34 = vsel %vm9656_vm14, %v3827_v33, %v3828_v39  ;;  %v3716_v33 = vld [vmem:[#allocation2 + $0x94] sm:$0xf] }
 0x2a4   : > { %3602 = vrot.lane.b32.xlu2 %v3459_v10, %s9123_s13  ;;  %v3709_v10 = vld [vmem:[#allocation2 + $0x78] sm:$0xe]  ;;  %v3853_v40 = vrot.slane %v3716_v33, 5 }
 0x2a5   : > { %3901 = vrot.lane.b32.xlu0 %v3798_v53, %s9124_s14  ;;  %v3792_v53 = vrot.slane %v3790_v21, 4  ;;  %v8726_v46 = vrot.slane %v3709_v10, 9  ;;  %v3846_v21 = vrot.slane %v10795_v7, 5 }
 0x2a6   : > { %v3040_v43 = vpop.permute.xlu2 %3039 }
 0x2a7   : > { %3618 = vrot.lane.b32.xlu1 %v3555_v37, %s9123_s13  ;;  %3114 = vst.msk [vmem:[#allocation4 + $0x58] sm:$0xf] %vm3091_vm7, %v3040_v43  ;;  %v3048_v55 = vpop.permute.xlu0 %3047  ;;  %v3702_v37 = vld [vmem:[#allocation2 + $0x5c] sm:$0x1]  ;;  %v3839_v43 = vrot.slane %v3710_v17, 5  ;;  %v3794_v24 = vsel %vm9656_vm14, %v3792_v53, %v3793_v26 }
 0x2a8   : > { %3118 = vst.msk [vmem:[#allocation4 + $0x68] sm:$0xf] %vm3091_vm7, %v3048_v55  ;;  %v3821_v5 = vrot.slane %v3702_v37, 5  ;;  %v3694_v55 = vld [vmem:[#allocation2 + $0x3c] sm:$0xe] }
 0x2a9   : > { %v3038_v18 = vpop.permute.xlu1 %3037  ;;  %v3840_v2 = vsel %vm9656_vm14, %v8726_v46, %v3839_v43  ;;  %v8721_v35 = vrot.slane %v3694_v55, 9  ;;  %v3841_v23 = vrot.slane %v3839_v43, 4  ;;  %v3712_v37 = vld [vmem:[#allocation2 + $0x84] sm:$0xe]  ;;  %v3719_v17 = vld [vmem:[#allocation2 + $0xa0] sm:$0xf] }
 0x2aa   : > { %3113 = vst.msk [vmem:[#allocation4 + $0x54] sm:$0xf] %vm3091_vm7, %v3038_v18  ;;  %v3714_v18 = vld [vmem:[#allocation2 + $0x8c] sm:$0x1]  ;;  %v3860_v46 = vrot.slane %v3719_v17, 5 }
 0x2ab   : > { %v3849_v13 = vrot.slane %v3714_v18, 5  ;;  %v3805_v9 = vsel %vm9656_vm14, %v8721_v35, %v3804_v12 }
 0x2ac   : > { %3608 = vrot.lane.b32.xlu2 %v3497_v42, %s9123_s13  ;;  %v3822_v42 = vsel %vm9656_vm14, %v3820_v36, %v3821_v5  ;;  %v3720_v36 = vld [vmem:[#allocation2 + $0xa4] sm:$0x1]  ;;  %v3862_v5 = vrot.slane %v3860_v46, 4 }
 0x2ad   : > { %3907 = vrot.lane.b32.xlu0 %v3808_v27, %s9124_s14  ;;  %v3707_v27 = vld [vmem:[#allocation2 + $0x70] sm:$0xf]  ;;  %v3863_v43 = vrot.slane %v3720_v36, 5 }
 0x2ae   : > { %v3046_v60 = vpop.permute.xlu2 %3045  ;;  %v3832_v45 = vrot.slane %v3707_v27, 5  ;;  %v3855_v27 = vrot.slane %v3853_v40, 4 }
 0x2af   : > { %3897 = vrot.lane.b32.xlu1 %v3791_v32, %s9124_s14  ;;  %3117 = vst.msk [vmem:[#allocation4 + $0x64] sm:$0xf] %vm3091_vm7, %v3046_v60  ;;  %v3054_v25 = vpop.permute.xlu0 %3053  ;;  %v3848_v32 = vrot.slane %v3846_v21, 4 }
 0x2b0   : > { %3121 = vst.msk [vmem:[#allocation4 + $0x74] sm:$0xf] %vm3091_vm7, %v3054_v25  ;;  %v3699_v25 = vld [vmem:[#allocation2 + $0x50] sm:$0x1]  ;;  %v3833_v8 = vsel %vm9656_vm14, %v8725_v28, %v3832_v45  ;;  %v3834_v10 = vrot.slane %v3832_v45, 4 }
 0x2b1   : > { %v3044_v47 = vpop.permute.xlu1 %3043  ;;  %v3850_v59 = vsel %vm9656_vm14, %v3848_v32, %v3849_v13  ;;  %v3722_v28 = vld [vmem:[#allocation2 + $0xac] sm:$0xf] }
 0x2b2   : > { %3116 = vst.msk [vmem:[#allocation4 + $0x60] sm:$0xf] %vm3091_vm7, %v3044_v47  ;;  %v3814_v47 = vrot.slane %v3699_v25, 5  ;;  %v3867_v45 = vrot.slane %v3722_v28, 5 }
 0x2b4   : > { %3614 = vrot.lane.b32.xlu2 %v3531_v14, %s9123_s13  ;;  %v3711_v14 = vld [vmem:[#allocation2 + $0x80] sm:$0x1]  ;;  %v3869_v25 = vrot.slane %v3867_v45, 4 }
 0x2b5   : > { %3913 = vrot.lane.b32.xlu0 %v3819_v11, %s9124_s14  ;;  %v3842_v11 = vrot.slane %v3711_v14, 5 }
 0x2b6   : > { %v3052_v44 = vpop.permute.xlu2 %3051 }
 0x2b7   : > { %3903 = vrot.lane.b32.xlu1 %v3801_v57, %s9124_s14  ;;  %3120 = vst.msk [vmem:[#allocation4 + $0x70] sm:$0xf] %vm3091_vm7, %v3052_v44  ;;  %v3557_v16 = vpop.permute.xlu0 %3556  ;;  %v3815_v57 = vsel %vm9656_vm14, %v3813_v15, %v3814_v47  ;;  %v3843_v20 = vsel %vm9656_vm14, %v3841_v23, %v3842_v11  ;;  %v3715_v44 = vld [vmem:[#allocation2 + $0x90] sm:$0xe]  ;;  %v8979_v23 = vld [vmem:[%s12460_s1 + $0x8] sm:$0xff]  ;;  %v8978_v11 = vld [vmem:[%s12460_s1] sm:$0xff] }
 0x2b8   : > { %3653 = vst.msk [vmem:[#allocation4] sm:$0xf] %vm3652_vm8, %v3557_v16  ;;  %v8728_v49 = vrot.slane %v3715_v44, 9 }
 0x2b9   : > { %v3050_v61 = vpop.permute.xlu1 %3049 }
 0x2ba   : > { %3119 = vst.msk [vmem:[#allocation4 + $0x6c] sm:$0xf] %vm3091_vm7, %v3050_v61 }
 0x2bc   : > { %3893 = vrot.lane.b32.xlu2 %v3784_v31, %s9124_s14  ;;  %v3826_v31 = vsel %vm9656_vm14, %v8724_v63, %v3825_v29  ;;  %v3725_v63 = vld [vmem:[#allocation2 + $0xb8] sm:$0xf] }
 0x2bd   : > { %3919 = vrot.lane.b32.xlu0 %v3829_v34, %s9124_s14  ;;  %v3854_v34 = vsel %vm9656_vm14, %v8728_v49, %v3853_v40  ;;  %v3874_v33 = vrot.slane %v3725_v63, 5 }
 0x2be   : > { %v3058_v41 = vpop.permute.xlu2 %3057 }
 0x2bf   : > { %3909 = vrot.lane.b32.xlu1 %v3812_v30, %s9124_s14  ;;  %3123 = vst.msk [vmem:[#allocation4 + $0x7c] sm:$0xf] %vm3091_vm7, %v3058_v41  ;;  %v3563_v3 = vpop.permute.xlu0 %3562  ;;  %v3835_v30 = vrot.slane %v3708_v58, 5  ;;  %v3718_v41 = vld [vmem:[#allocation2 + $0x9c] sm:$0xe] }
 0x2c0   : > { %3656 = vst.msk [vmem:[#allocation4 + $0xc] sm:$0xf] %vm3652_vm8, %v3563_v3  ;;  %v8729_v3 = vrot.slane %v3718_v41, 9 }
 0x2c1   : > { %v3056_v54 = vpop.permute.xlu1 %3055  ;;  %v3836_v29 = vsel %vm9656_vm14, %v3834_v10, %v3835_v30 }
 0x2c2   : > { %3122 = vst.msk [vmem:[#allocation4 + $0x78] sm:$0xf] %vm3091_vm7, %v3056_v54  ;;  %v8727_v54 = vrot.slane %v3712_v37, 9  ;;  %v3729_v37 = vld [vmem:[#allocation2 + $0xc8] sm:$0x1] }
 0x2c3   : > { %v3884_v41 = vrot.slane %v3729_v37, 5  ;;  %v4413_v37 = vld [vmem:[#allocation3 + $0x18] sm:$0x1] }
 0x2c4   : > { %3899 = vrot.lane.b32.xlu2 %v3794_v24, %s9124_s14  ;;  %v3861_v24 = vsel %vm9656_vm14, %v8729_v3, %v3860_v46  ;;  %v3847_v35 = vsel %vm9656_vm14, %v8727_v54, %v3846_v21  ;;  %v3723_v21 = vld [vmem:[#allocation2 + $0xb0] sm:$0x1]  ;;  %v3726_v54 = vld [vmem:[#allocation2 + $0xbc] sm:$0x1] }
 0x2c5   : > { %3925 = vrot.lane.b32.xlu0 %v3840_v2, %s9124_s14  ;;  %v3864_v2 = vsel %vm9656_vm14, %v3862_v5, %v3863_v43 }
 0x2c6   : > { %v3561_v52 = vpop.permute.xlu2 %3560 }
 0x2c7   : > { %3915 = vrot.lane.b32.xlu1 %v3822_v42, %s9124_s14  ;;  %3655 = vst.msk [vmem:[#allocation4 + $0x8] sm:$0xf] %vm3652_vm8, %v3561_v52  ;;  %v3569_v62 = vpop.permute.xlu0 %3568  ;;  %v3856_v52 = vrot.slane %v3717_v19, 5 }
 0x2c8   : > { %3659 = vst.msk [vmem:[#allocation4 + $0x18] sm:$0xf] %vm3652_vm8, %v3569_v62 }
 0x2c9   : > { %v3559_v60 = vpop.permute.xlu1 %3558  ;;  %v3857_v7 = vsel %vm9656_vm14, %v3855_v27, %v3856_v52 }
 0x2ca   : > { %3654 = vst.msk [vmem:[#allocation4 + $0x4] sm:$0xf] %vm3652_vm8, %v3559_v60  ;;  %v3870_v60 = vrot.slane %v3723_v21, 5 }
 0x2cc   : > { %3905 = vrot.lane.b32.xlu2 %v3805_v9, %s9124_s14  ;;  %v4058_v9 = vld [vmem:[%s12460_s1 + $0x10] sm:$0x3]  ;;  %v3871_v15 = vsel %vm9656_vm14, %v3869_v25, %v3870_v60 }
 0x2cd   : > { %3931 = vrot.lane.b32.xlu0 %v3850_v59, %s9124_s14  ;;  %v4148_v59 = vunpack.c.l.b16 %v4058_v9 }
 0x2ce   : > { %v3567_v51 = vpop.permute.xlu2 %3566 }
 0x2cf   : > { %3921 = vrot.lane.b32.xlu1 %v3833_v8, %s9124_s14  ;;  %3658 = vst.msk [vmem:[#allocation4 + $0x14] sm:$0xf] %vm3652_vm8, %v3567_v51  ;;  %v3575_v12 = vpop.permute.xlu0 %3574  ;;  %v4151_v47 = vpack.c.b16 %v4148_v59, %v4148_v59 }
 0x2d0   : > { %3662 = vst.msk [vmem:[#allocation4 + $0x24] sm:$0xf] %vm3652_vm8, %v3575_v12 }
 0x2d1   : > { %v3565_v22 = vpop.permute.xlu1 %3564  ;;  %v4205_v51 = vsel %vm12467_vm12, %v4151_v47, 0  ;;  %vm4154_vm12 = vcmask 293888  }
 0x2d2   : > { %3657 = vst.msk [vmem:[#allocation4 + $0x10] sm:$0xf] %vm3652_vm8, %v3565_v22  ;;  %4212 = vmatpush.bf16.msra.mxu0 %v4205_v51  ;;  %9077 = vmatpush.bf16.msra.mxu2 %v4205_v51 }
 0x2d4   : > { %3911 = vrot.lane.b32.xlu2 %v3815_v57, %s9124_s14 }
 0x2d5   : > { %3937 = vrot.lane.b32.xlu0 %v3861_v24, %s9124_s14  ;;  %v3876_v24 = vrot.slane %v3874_v33, 4 }
 0x2d6   : > { %v3573_v39 = vpop.permute.xlu2 %3572  ;;  %4213 = vmatpush.bf16.msra.mxu0 %v8979_v23  ;;  %9078 = vmatpush.bf16.msra.mxu2 %v8979_v23 }
 0x2d7   : > { %3927 = vrot.lane.b32.xlu1 %v3843_v20, %s9124_s14  ;;  %3661 = vst.msk [vmem:[#allocation4 + $0x20] sm:$0xf] %vm3652_vm8, %v3573_v39  ;;  %v3581_v16 = vpop.permute.xlu0 %3580  ;;  %v3724_v20 = vld [vmem:[#allocation2 + $0xb4] sm:$0xe] }
 0x2d8   : > { %3665 = vst.msk [vmem:[#allocation4 + $0x30] sm:$0xf] %vm3652_vm8, %v3581_v16  ;;  %v8731_v44 = vrot.slane %v3724_v20, 9 }
 0x2d9   : > { %v3571_v61 = vpop.permute.xlu1 %3570 }
 0x2da   : > { %3660 = vst.msk [vmem:[#allocation4 + $0x1c] sm:$0xf] %vm3652_vm8, %v3571_v61  ;;  %4214 = vmatpush.bf16.msra.mxu0 %v8978_v11  ;;  %9079 = vmatpush.bf16.msra.mxu2 %v8978_v11  ;;  %v3875_v16 = vsel %vm9656_vm14, %v8731_v44, %v3874_v33  ;;  %v3721_v61 = vld [vmem:[#allocation2 + $0xa8] sm:$0xe] }
 0x2dc   : > { %3917 = vrot.lane.b32.xlu2 %v3826_v31, %s9124_s14  ;;  %v8730_v31 = vrot.slane %v3721_v61, 9  ;;  %v4410_v61 = vld [vmem:[#allocation3 + $0xc] sm:$0x1] }
 0x2dd   : > { %3943 = vrot.lane.b32.xlu0 %v3871_v15, %s9124_s14 }
 0x2de   : > { %v3579_v53 = vpop.permute.xlu2 %3578  ;;  %v3868_v58 = vsel %vm9656_vm14, %v8730_v31, %v3867_v45  ;;  %v4411_v31 = vsel %vm9177_vm3, 0, %v4410_v61 }
 0x2df   : > { %3664 = vst.msk [vmem:[#allocation4 + $0x2c] sm:$0xf] %vm3652_vm8, %v3579_v53  ;;  %v3587_v26 = vpop.permute.xlu0 %3586  ;;  %3933 = vrot.lane.b32.xlu1 %v3854_v34, %s9124_s14  ;;  %v3728_v53 = vld [vmem:[#allocation2 + $0xc4] sm:$0xf] }
 0x2e0   : > { %3668 = vst.msk [vmem:[#allocation4 + $0x3c] sm:$0xf] %vm3652_vm8, %v3587_v26  ;;  %v3727_v26 = vld [vmem:[#allocation2 + $0xc0] sm:$0xe] }
 0x2e1   : > { %v3577_v0 = vpop.permute.xlu1 %3576  ;;  %4412 = vst [vmem:[#allocation3 + $0xc] sm:$0x1] %v4411_v31 }
 0x2e2   : > { %3663 = vst.msk [vmem:[#allocation4 + $0x28] sm:$0xf] %vm3652_vm8, %v3577_v0  ;;  %v3881_v0 = vrot.slane %v3728_v53, 5 }
 0x2e4   : > { %3923 = vrot.lane.b32.xlu2 %v3836_v29, %s9124_s14  ;;  %v8732_v29 = vrot.slane %v3727_v26, 9  ;;  %v3883_v17 = vrot.slane %v3881_v0, 4  ;;  %v4407_v26 = vld [vmem:[#allocation3] sm:$0x1] }
 0x2e6   : > { %v3585_v55 = vpop.permute.xlu2 %3584  ;;  %v3882_v46 = vsel %vm9656_vm14, %v8732_v29, %v3881_v0  ;;  %v3885_v36 = vsel %vm9656_vm14, %v3883_v17, %v3884_v41  ;;  %v4408_v29 = vsel %vm9177_vm3, 0, %v4407_v26  ;;  %v4414_v17 = vsel %vm9177_vm3, 0, %v4413_v37  ;;  %v3731_v41 = vld [vmem:[#allocation2 + $0xd0] sm:$0xf]  ;;  %v4470_v26 = vld [vmem:[#allocation3 + $0x2c] sm:$0x1] }
 0x2e7   : > { %3667 = vst.msk [vmem:[#allocation4 + $0x38] sm:$0xf] %vm3652_vm8, %v3585_v55  ;;  %v3593_v18 = vpop.permute.xlu0 %3592  ;;  %3939 = vrot.lane.b32.xlu1 %v3864_v2, %s9124_s14  ;;  %3949 = vrot.lane.b32.xlu0 %v3882_v46, %s9124_s14  ;;  %v3877_v55 = vrot.slane %v3726_v54, 5  ;;  %v10962_v54 = vld [vmem:[%s12461_s2] ss:$0 sm:$0xff] }
 0x2e8   : > { %3671 = vst.msk [vmem:[#allocation4 + $0x48] sm:$0xf] %vm3652_vm8, %v3593_v18 }
 0x2e9   : > { %v3583_v42 = vpop.permute.xlu1 %3582  ;;  %v3878_v2 = vsel %vm9656_vm14, %v3876_v24, %v3877_v55  ;;  %4409 = vst [vmem:[#allocation3] sm:$0x1] %v4408_v29 }
 0x2ea   : > { %3666 = vst.msk [vmem:[#allocation4 + $0x34] sm:$0xf] %vm3652_vm8, %v3583_v42 }
 0x2eb   : > { %4415 = vst [vmem:[#allocation3 + $0x18] sm:$0x1] %v4414_v17  ;;  %v4471_v17 = vsel %vm9190_vm6, 0, %v4470_v26 }
 0x2ec   : > { %3929 = vrot.lane.b32.xlu2 %v3847_v35, %s9124_s14  ;;  %4472 = vst [vmem:[#allocation3 + $0x2c] sm:$0x1] %v4471_v17 }
 0x2ee   : > { %v3591_v32 = vpop.permute.xlu2 %3590 }
 0x2ef   : > { %3670 = vst.msk [vmem:[#allocation4 + $0x44] sm:$0xf] %vm3652_vm8, %v3591_v32  ;;  %v3599_v13 = vpop.permute.xlu0 %3598  ;;  %3945 = vrot.lane.b32.xlu1 %v3875_v16, %s9124_s14 }
 0x2f0   : > { %3674 = vst.msk [vmem:[#allocation4 + $0x54] sm:$0xf] %vm3652_vm8, %v3599_v13  ;;  %v5044_v46 = vld [vmem:[#allocation3] sm:$0xf] }
 0x2f1   : > { %v3589_v62 = vpop.permute.xlu1 %3588 }
 0x2f2   : > { %3669 = vst.msk [vmem:[#allocation4 + $0x40] sm:$0xf] %vm3652_vm8, %v3589_v62 }
 0x2f4   : > { %3935 = vrot.lane.b32.xlu2 %v3857_v7, %s9124_s14 }
 0x2f6   : > { %v3597_v8 = vpop.permute.xlu2 %3596 }
 0x2f7   : > { %3673 = vst.msk [vmem:[#allocation4 + $0x50] sm:$0xf] %vm3652_vm8, %v3597_v8  ;;  %v3605_v14 = vpop.permute.xlu0 %3604  ;;  %3951 = vrot.lane.b32.xlu1 %v3885_v36, %s9124_s14  ;;  %v5093_v36 = vshrl.u32 %v5044_v46, 16 }
 0x2f8   : > { %3677 = vst.msk [vmem:[#allocation4 + $0x60] sm:$0xf] %vm3652_vm8, %v3605_v14 }
 0x2f9   : > { %v3595_v12 = vpop.permute.xlu1 %3594 }
 0x2fa   : > { %3672 = vst.msk [vmem:[#allocation4 + $0x4c] sm:$0xf] %vm3652_vm8, %v3595_v12 }
 0x2fc   : > { %3941 = vrot.lane.b32.xlu2 %v3868_v58, %s9124_s14 }
 0x2fe   : > { %v3603_v22 = vpop.permute.xlu2 %3602 }
 0x2ff   : > { %3676 = vst.msk [vmem:[#allocation4 + $0x5c] sm:$0xf] %vm3652_vm8, %v3603_v22  ;;  %v3611_v57 = vpop.permute.xlu0 %3610 }
 0x300   : > { %3680 = vst.msk [vmem:[#allocation4 + $0x6c] sm:$0xf] %vm3652_vm8, %v3611_v57 }
 0x301   : > { %v3601_v48 = vpop.permute.xlu1 %3600 }
 0x302   : > { %3675 = vst.msk [vmem:[#allocation4 + $0x58] sm:$0xf] %vm3652_vm8, %v3601_v48 }
 0x304   : > { %3947 = vrot.lane.b32.xlu2 %v3878_v2, %s9124_s14  ;;  %v5095_v2 = vrot.slane %v5093_v36, 4 }
 0x306   : > { %v3609_v39 = vpop.permute.xlu2 %3608 }
 0x307   : > { %3679 = vst.msk [vmem:[#allocation4 + $0x68] sm:$0xf] %vm3652_vm8, %v3609_v39  ;;  %v3617_v49 = vpop.permute.xlu0 %3616 }
 0x308   : > { %3683 = vst.msk [vmem:[#allocation4 + $0x78] sm:$0xf] %vm3652_vm8, %v3617_v49 }
 0x309   : > { %v3607_v40 = vpop.permute.xlu1 %3606 }
 0x30a   : > { %3678 = vst.msk [vmem:[#allocation4 + $0x64] sm:$0xf] %vm3652_vm8, %v3607_v40 }
 0x30e   : > { %v3615_v34 = vpop.permute.xlu2 %3614 }
 0x30f   : > { %3682 = vst.msk [vmem:[#allocation4 + $0x74] sm:$0xf] %vm3652_vm8, %v3615_v34  ;;  %v3896_v10 = vpop.permute.xlu0 %3895 }
 0x310   : > { %3991 = vst.msk [vmem:[#allocation4 + $0x4] sm:$0xf] %vm3989_vm13, %v3896_v10  ;;  %v4464_v10 = vld [vmem:[#allocation3 + $0x14] sm:$0x1] }
 0x311   : > { %v3613_v30 = vpop.permute.xlu1 %3612  ;;  %v4465_v53 = vsel %vm9190_vm6, 0, %v4464_v10 }
 0x312   : > { %3681 = vst.msk [vmem:[#allocation4 + $0x70] sm:$0xf] %vm3652_vm8, %v3613_v30 }
 0x313   : > { %4466 = vst [vmem:[#allocation3 + $0x14] sm:$0x1] %v4465_v53 }
 0x316   : > { %v3894_v3 = vpop.permute.xlu2 %3893 }
 0x317   : > { %3990 = vst.msk [vmem:[#allocation4] sm:$0xf] %vm3989_vm13, %v3894_v3  ;;  %v3902_v5 = vpop.permute.xlu0 %3901  ;;  %v3888_v3 = vrot.slane %v3731_v41, 5 }
 0x318   : > { %3994 = vst.msk [vmem:[#allocation4 + $0x10] sm:$0xf] %vm3989_vm13, %v3902_v5  ;;  %v5096_v5 = vshll.u32 %v5044_v46, 16 }
 0x319   : > { %v3619_v43 = vpop.permute.xlu1 %3618  ;;  %v3890_v24 = vrot.slane %v3888_v3, 4 }
 0x31a   : > { %3684 = vst.msk [vmem:[#allocation4 + $0x7c] sm:$0xf] %vm3652_vm8, %v3619_v43  ;;  %v3732_v43 = vld [vmem:[#allocation2 + $0xd4] sm:$0x1] }
 0x31b   : > { %v3891_v55 = vrot.slane %v3732_v43, 5 }
 0x31e   : > { %v3900_v18 = vpop.permute.xlu2 %3899  ;;  %v8962_v42 = vld [vmem:[#allocation4] sm:$0xff] }
 0x31f   : > { %3993 = vst.msk [vmem:[#allocation4 + $0xc] sm:$0xf] %vm3989_vm13, %v3900_v18  ;;  %v3908_v35 = vpop.permute.xlu0 %3907  ;;  %8806 = vmatmul.msk.bf16.vlgmr.msra.gmra.mxu0 %vm4154_vm12, %v8962_v42  ;;  %v5098_v18 = vrot.slane %v5096_v5, 5  ;;  %v5045_v42 = vld [vmem:[#allocation3 + $0x4] sm:$0xf] }
 0x320   : > { %3997 = vst.msk [vmem:[#allocation4 + $0x1c] sm:$0xf] %vm3989_vm13, %v3908_v35  ;;  %v10967_v35 = vld [vmem:[%s12462_s3] ss:$0 sm:$0xff]  ;;  %v4872_v5 = vld [vmem:[#allocation3 + $0x14] sm:$0x1] }
 0x321   : > { %v3898_v19 = vpop.permute.xlu1 %3897 }
 0x322   : > { %3992 = vst.msk [vmem:[#allocation4 + $0x8] sm:$0xf] %vm3989_vm13, %v3898_v19  ;;  %v3892_v19 = vsel %vm9656_vm14, %v3890_v24, %v3891_v55 }
 0x323   : > { %3955 = vrot.lane.b32.xlu0 %v3892_v19, %s9124_s14 }
 0x326   : > { %v3906_v27 = vpop.permute.xlu2 %3905 }
 0x327   : > { %3996 = vst.msk [vmem:[#allocation4 + $0x18] sm:$0xf] %vm3989_vm13, %v3906_v27  ;;  %v3914_v52 = vpop.permute.xlu0 %3913  ;;  %v5099_v27 = vor.u32 %v5098_v18, %v5095_v2 }
 0x328   : > { %4000 = vst.msk [vmem:[#allocation4 + $0x28] sm:$0xf] %vm3989_vm13, %v3914_v52  ;;  %v5102_v52 = vshll.u32 %v5045_v42, 16 }
 0x329   : > { %v3904_v32 = vpop.permute.xlu1 %3903  ;;  %v8963_v62 = vld [vmem:[#allocation4 + $0x8] sm:$0xff] }
 0x32a   : > { %3995 = vst.msk [vmem:[#allocation4 + $0x14] sm:$0xf] %vm3989_vm13, %v3904_v32 }
 0x32e   : > { %v3912_v13 = vpop.permute.xlu2 %3911  ;;  %v8965_v14 = vld [vmem:[#allocation4 + $0x18] sm:$0xff] }
 0x32f   : > { %3999 = vst.msk [vmem:[#allocation4 + $0x24] sm:$0xf] %vm3989_vm13, %v3912_v13  ;;  %v3920_v7 = vpop.permute.xlu0 %3919  ;;  %8807 = vmatmul.msk.bf16.gmra.mxu0 %vm4154_vm12, %v8963_v62  ;;  %v4467_v13 = vld [vmem:[#allocation3 + $0x20] sm:$0x1] }
 0x330   : > { %4003 = vst.msk [vmem:[#allocation4 + $0x34] sm:$0xf] %vm3989_vm13, %v3920_v7  ;;  %v4468_v7 = vsel %vm9190_vm6, 0, %v4467_v13 }
 0x331   : > { %v3910_v28 = vpop.permute.xlu1 %3909  ;;  %v8964_v25 = vld [vmem:[#allocation4 + $0x10] sm:$0xff]  ;;  %4469 = vst [vmem:[#allocation3 + $0x20] sm:$0x1] %v4468_v7 }
 0x332   : > { %3998 = vst.msk [vmem:[#allocation4 + $0x20] sm:$0xf] %vm3989_vm13, %v3910_v28  ;;  %v5100_v28 = vrot.slane %v5099_v27, 4 }
 0x336   : > { %v3918_v21 = vpop.permute.xlu2 %3917 }
 0x337   : > { %4002 = vst.msk [vmem:[#allocation4 + $0x30] sm:$0xf] %vm3989_vm13, %v3918_v21  ;;  %v3926_v45 = vpop.permute.xlu0 %3925  ;;  %v5104_v21 = vrot.slane %v5102_v52, 5 }
 0x338   : > { %4006 = vst.msk [vmem:[#allocation4 + $0x40] sm:$0xf] %vm3989_vm13, %v3926_v45 }
 0x339   : > { %v3916_v60 = vpop.permute.xlu1 %3915  ;;  %v8966_v57 = vld [vmem:[#allocation4 + $0x20] sm:$0xff] }
 0x33a   : > { %4001 = vst.msk [vmem:[#allocation4 + $0x2c] sm:$0xf] %vm3989_vm13, %v3916_v60  ;;  %v4461_v60 = vld [vmem:[#allocation3 + $0x8] sm:$0x1] }
 0x33e   : > { %v3924_v9 = vpop.permute.xlu2 %3923  ;;  %v8968_v49 = vld [vmem:[#allocation4 + $0x30] sm:$0xff] }
 0x33f   : > { %4005 = vst.msk [vmem:[#allocation4 + $0x3c] sm:$0xf] %vm3989_vm13, %v3924_v9  ;;  %v3932_v59 = vpop.permute.xlu0 %3931  ;;  %8808 = vmatmul.msk.bf16.gmra.mxu0 %vm4154_vm12, %v8964_v25  ;;  %v5105_v25 = vsel %vm9239_vm10, %v5100_v28, %v5104_v21 }
 0x340   : > { %4009 = vst.msk [vmem:[#allocation4 + $0x4c] sm:$0xf] %vm3989_vm13, %v3932_v59  ;;  %v4462_v59 = vsel %vm9190_vm6, 0, %v4461_v60  ;;  %5476 = vrot.lane.b32.xlu1 %v5105_v25, %s9117_s30 }
 0x341   : > { %v3922_v8 = vpop.permute.xlu1 %3921  ;;  %v8967_v44 = vld [vmem:[#allocation4 + $0x28] sm:$0xff]  ;;  %4463 = vst [vmem:[#allocation3 + $0x8] sm:$0x1] %v4462_v59 }
 0x342   : > { %4004 = vst.msk [vmem:[#allocation4 + $0x38] sm:$0xf] %vm3989_vm13, %v3922_v8  ;;  %v3730_v8 = vld [vmem:[#allocation2 + $0xcc] sm:$0xe] }
 0x346   : > { %v3930_v15 = vpop.permute.xlu2 %3929 }
 0x347   : > { %4008 = vst.msk [vmem:[#allocation4 + $0x48] sm:$0xf] %vm3989_vm13, %v3930_v15  ;;  %v3938_v11 = vpop.permute.xlu0 %3937 }
 0x348   : > { %4012 = vst.msk [vmem:[#allocation4 + $0x58] sm:$0xf] %vm3989_vm13, %v3938_v11  ;;  %v4416_v11 = vld [vmem:[#allocation3 + $0x24] sm:$0x1] }
 0x349   : > { %v3928_v47 = vpop.permute.xlu1 %3927  ;;  %v8969_v30 = vld [vmem:[#allocation4 + $0x38] sm:$0xff] }
 0x34a   : > { %4007 = vst.msk [vmem:[#allocation4 + $0x44] sm:$0xf] %vm3989_vm13, %v3928_v47  ;;  %v8733_v47 = vrot.slane %v3730_v8, 9  ;;  %v4875_v8 = vld [vmem:[#allocation3 + $0x18] sm:$0xf] }
 0x34e   : > { %v3936_v51 = vpop.permute.xlu2 %3935  ;;  %v8971_v48 = vld [vmem:[#allocation4 + $0x48] sm:$0xff] }
 0x34f   : > { %4011 = vst.msk [vmem:[#allocation4 + $0x54] sm:$0xf] %vm3989_vm13, %v3936_v51  ;;  %8809 = vmatmul.msk.bf16.gmra.mxu0 %vm4154_vm12, %v8965_v14  ;;  %v3944_v63 = vpop.permute.xlu0 %3943  ;;  %v5106_v51 = vshrl.u32 %v5045_v42, 16 }
 0x350   : > { %4015 = vst.msk [vmem:[#allocation4 + $0x64] sm:$0xf] %vm3989_vm13, %v3944_v63 }
 0x351   : > { %v8970_v12 = vld [vmem:[#allocation4 + $0x40] sm:$0xff]  ;;  %v3934_v23 = vpop.permute.xlu1 %3933  ;;  %v5108_v63 = vrot.slane %v5106_v51, 4  ;;  %v4434_v51 = vld [vmem:[#allocation3 + $0x6c] sm:$0x1] }
 0x352   : > { %4010 = vst.msk [vmem:[#allocation4 + $0x50] sm:$0xf] %vm3989_vm13, %v3934_v23  ;;  %8814 = vmatmul.msk.bf16.vlgmr.msra.gmra.mxu2 %vm4154_vm12, %v8970_v12  ;;  %v3889_v12 = vsel %vm9656_vm14, %v8733_v47, %v3888_v3 }
 0x353   : > { %3953 = vrot.lane.b32.xlu2 %v3889_v12, %s9124_s14 }
 0x356   : > { %v3942_v20 = vpop.permute.xlu2 %3941 }
 0x357   : > { %4014 = vst.msk [vmem:[#allocation4 + $0x60] sm:$0xf] %vm3989_vm13, %v3942_v20  ;;  %v4417_v20 = vsel %vm9177_vm3, 0, %v4416_v11 }
 0x358   : > { %4418 = vst [vmem:[#allocation3 + $0x24] sm:$0x1] %v4417_v20 }
 0x359   : > { %v3940_v22 = vpop.permute.xlu1 %3939  ;;  %v8972_v33 = vld [vmem:[#allocation4 + $0x50] sm:$0xff]  ;;  %v3950_v58 = vpop.permute.xlu0 %3949 }
 0x35a   : > { %4013 = vst.msk [vmem:[#allocation4 + $0x5c] sm:$0xf] %vm3989_vm13, %v3940_v22 }
 0x35b   : > { %4018 = vst.msk [vmem:[#allocation4 + $0x70] sm:$0xf] %vm3989_vm13, %v3950_v58 }
 0x35e   : > { %v3948_v39 = vpop.permute.xlu2 %3947  ;;  %v8974_v0 = vld [vmem:[#allocation4 + $0x60] sm:$0xff] }
 0x35f   : > { %8810 = vmatmul.msk.bf16.gmra.mxu0 %vm4154_vm12, %v8966_v57  ;;  %4017 = vst.msk [vmem:[#allocation4 + $0x6c] sm:$0xf] %vm3989_vm13, %v3948_v39  ;;  %v5046_v39 = vld [vmem:[#allocation3 + $0x8] sm:$0x1] }
 0x361   : > { %v3946_v16 = vpop.permute.xlu1 %3945  ;;  %v8973_v40 = vld [vmem:[#allocation4 + $0x58] sm:$0xff] }
 0x362   : > { %8815 = vmatmul.msk.bf16.gmra.mxu2 %vm4154_vm12, %v8971_v48  ;;  %4016 = vst.msk [vmem:[#allocation4 + $0x68] sm:$0xf] %vm3989_vm13, %v3946_v16  ;;  %v4868_v16 = vld [vmem:[#allocation3 + $0xc] sm:$0xf] }
 0x369   : > { %v3952_v34 = vpop.permute.xlu1 %3951  ;;  %v8975_v45 = vld [vmem:[#allocation4 + $0x68] sm:$0xff] }
 0x36a   : > { %4019 = vst.msk [vmem:[#allocation4 + $0x74] sm:$0xf] %vm3989_vm13, %v3952_v34 }
 0x36f   : > { %8811 = vmatmul.msk.bf16.gmra.mxu0 %vm4154_vm12, %v8967_v44 }
 0x371   : > { %v8976_v41 = vld [vmem:[#allocation4 + $0x70] sm:$0xff] }
 0x372   : > { %8816 = vmatmul.msk.bf16.gmra.mxu2 %vm4154_vm12, %v8972_v33 }
 0x37f   : > { %8812 = vmatmul.msk.bf16.gmra.mxu0 %vm4154_vm12, %v8968_v49  ;;  %v5109_v49 = vor.u32 %v5108_v63, %v5104_v21 }
 0x381   : > { %v5110_v58 = vrot.slane %v5109_v49, 4 }
 0x382   : > { %8817 = vmatmul.msk.bf16.gmra.mxu2 %vm4154_vm12, %v8973_v40  ;;  %v5112_v40 = vshll.u32 %v5046_v39, 16 }
 0x384   : > { %v5114_v34 = vrot.slane %v5112_v40, 5 }
 0x38f   : > { %8813 = vmatmul.msk.bf16.gmra.mxu0 %vm4154_vm12, %v8969_v30 }
 0x392   : > { %8818 = vmatmul.msk.bf16.gmra.mxu2 %vm4154_vm12, %v8974_v0  ;;  %v5115_v0 = vsel %vm9239_vm10, %v5110_v58, %v5114_v34 }
 0x393   : > { %5478 = vrot.lane.b32.xlu2 %v5115_v0, %s9117_s30 }
 0x39c   : > { %v4216_v32 = vpop.f32.mrf.mxu0 }
 0x39d   : > { %v4300_v62 = vmul.f32 %v10962_v54, %v4216_v32 }
 0x39f   : > { %v4336_v9 = vadd.f32 %v10967_v35, %v4300_v62  ;;  %v4419_v62 = vld [vmem:[#allocation3 + $0x30] sm:$0x1] }
 0x3a0   : > { %v4420_v60 = vsel %vm9177_vm3, 0, %v4419_v62 }
 0x3a1   : > { %v4368_v15 = vmax.f32 %v4336_v9, 0.0  ;;  %4421 = vst [vmem:[#allocation3 + $0x30] sm:$0x1] %v4420_v60 }
 0x3a2   : > { %8819 = vmatmul.msk.bf16.gmra.mxu2 %vm4154_vm12, %v8975_v45 }
 0x3a3   : > { %v4515_v14 = vpack.c.bf16 %v4368_v15, %v4368_v15 }
 0x3a4   : > { %v4218_v23 = vpop.f32.mrf.mxu0 }
 0x3a5   : > { %v4548_v22 = vshrl.u32 %v4515_v14, 16  ;;  %v4551_v57 = vshll.u32 %v4515_v14, 16  ;;  %v4301_v48 = vmul.f32 %v10962_v54, %v4218_v23 }
 0x3a7   : > { %v4550_v44 = vrot.slane %v4548_v22, 7  ;;  %v4337_v33 = vadd.f32 %v10967_v35, %v4301_v48  ;;  %v4435_v22 = vsel %vm9177_vm3, 0, %v4434_v51 }
 0x3a8   : > { %4436 = vst [vmem:[#allocation3 + $0x6c] sm:$0x1] %v4435_v22 }
 0x3a9   : > { %v4553_v61 = vor.u32 %v4551_v57, %v4550_v44  ;;  %v4369_v31 = vmax.f32 %v4337_v33, 0.0  ;;  %v4554_v43 = vrot.slane %v4550_v44, 4 }
 0x3ab   : > { %v4869_v10 = vsel %vm9247_vm11, %v4553_v61, %v4868_v16  ;;  %v4516_v30 = vpack.c.bf16 %v4369_v31, %v4369_v31  ;;  %v4473_v61 = vld [vmem:[#allocation3 + $0x38] sm:$0x1] }
 0x3ac   : > { %4870 = vst [vmem:[#allocation3 + $0xc] sm:$0xf] %v4869_v10  ;;  %v4221_v53 = vpop.f32.mrf.mxu0  ;;  %v4474_v10 = vsel %vm9190_vm6, 0, %v4473_v61 }
 0x3ad   : > { %v4556_v29 = vshrl.u32 %v4516_v30, 16  ;;  %v4302_v37 = vmul.f32 %v10962_v54, %v4221_v53  ;;  %v4559_v3 = vshll.u32 %v4516_v30, 16  ;;  %v4879_v30 = vld [vmem:[#allocation3 + $0x20] sm:$0x1]  ;;  %4475 = vst [vmem:[#allocation3 + $0x38] sm:$0x1] %v4474_v10 }
 0x3af   : > { %v4558_v46 = vrot.slane %v4556_v29, 7  ;;  %v4338_v36 = vadd.f32 %v10967_v35, %v4302_v37 }
 0x3b1   : > { %v4561_v24 = vor.u32 %v4559_v3, %v4558_v46  ;;  %v4563_v55 = vrot.slane %v4558_v46, 4  ;;  %v4370_v2 = vmax.f32 %v4338_v36, 0.0  ;;  %v4488_v3 = vld [vmem:[#allocation3 + $0x74] sm:$0x1] }
 0x3b2   : > { %8820 = vmatmul.msk.bf16.gmra.mxu2 %vm4154_vm12, %v8976_v41 }
 0x3b3   : > { %v4562_v18 = vsel %vm9228_vm9, %v4554_v43, %v4561_v24  ;;  %v4873_v42 = vsel %vm9177_vm3, %v4563_v55, %v4872_v5  ;;  %v4517_v19 = vpack.c.bf16 %v4370_v2, %v4370_v2  ;;  %v5047_v27 = vld [vmem:[#allocation3 + $0xc] sm:$0xf]  ;;  %v4489_v55 = vsel %vm9190_vm6, 0, %v4488_v3 }
 0x3b4   : > { %4871 = vst.msk [vmem:[#allocation3 + $0x10] sm:$0xf] %vm280_vm0, %v4562_v18  ;;  %v4223_v52 = vpop.f32.mrf.mxu0  ;;  %v5117_v32 = vshrl.u32 %v5047_v27, 16  ;;  %v5120_v13 = vshll.u32 %v5047_v27, 16 }
 0x3b5   : > { %4874 = vst [vmem:[#allocation3 + $0x14] sm:$0x1] %v4873_v42  ;;  %v4565_v7 = vshrl.u32 %v4517_v19, 16  ;;  %v4303_v28 = vmul.f32 %v10962_v54, %v4223_v52  ;;  %v4568_v25 = vshll.u32 %v4517_v19, 16 }
 0x3b6   : > { %v5119_v21 = vrot.slane %v5117_v32, 4  ;;  %v5122_v45 = vrot.slane %v5120_v13, 5  ;;  %v4422_v13 = vld [vmem:[#allocation3 + $0x3c] sm:$0x1]  ;;  %4490 = vst [vmem:[#allocation3 + $0x74] sm:$0x1] %v4489_v55 }
 0x3b7   : > { %v4567_v9 = vrot.slane %v4565_v7, 7  ;;  %v4339_v59 = vadd.f32 %v10967_v35, %v4303_v28  ;;  %v4423_v28 = vsel %vm9177_vm3, 0, %v4422_v13 }
 0x3b8   : > { %v5123_v14 = vor.u32 %v5122_v45, %v5119_v21  ;;  %4424 = vst [vmem:[#allocation3 + $0x3c] sm:$0x1] %v4423_v28 }
 0x3b9   : > { %v4570_v15 = vor.u32 %v4568_v25, %v4567_v9  ;;  %v4371_v47 = vmax.f32 %v4339_v59, 0.0  ;;  %v4571_v0 = vrot.slane %v4567_v9, 4  ;;  %v4882_v9 = vld [vmem:[#allocation3 + $0x24] sm:$0xf]  ;;  %v4982_v25 = vld [vmem:[#allocation3 + $0xc] sm:$0xf] }
 0x3ba   : > { %v5124_v39 = vrot.slane %v5123_v14, 4  ;;  %5014 = vst.msk [vmem:[#allocation5 + $0x8] sm:$0xf] %vm280_vm0, %v4982_v25 }
 0x3bb   : > { %v4876_v12 = vsel %vm9247_vm11, %v4570_v15, %v4875_v8  ;;  %v4518_v23 = vpack.c.bf16 %v4371_v47, %v4371_v47  ;;  %v5048_v11 = vld [vmem:[#allocation3 + $0x10] sm:$0xf] }
 0x3bc   : > { %4877 = vst [vmem:[#allocation3 + $0x18] sm:$0xf] %v4876_v12  ;;  %v4226_v57 = vpop.f32.mrf.mxu0  ;;  %v5126_v48 = vshll.u32 %v5048_v11, 16  ;;  %v5130_v20 = vshrl.u32 %v5048_v11, 16  ;;  %v5049_v63 = vld [vmem:[#allocation3 + $0x14] sm:$0x1] }
 0x3bd   : > { %v4573_v44 = vshrl.u32 %v4518_v23, 16  ;;  %v4304_v33 = vmul.f32 %v10962_v54, %v4226_v57  ;;  %v5136_v40 = vshll.u32 %v5049_v63, 16  ;;  %v4576_v58 = vshll.u32 %v4518_v23, 16  ;;  %v4437_v12 = vld [vmem:[#allocation3 + $0x78] sm:$0x1] }
 0x3be   : > { %v5128_v16 = vrot.slane %v5126_v48, 5  ;;  %v5132_v49 = vrot.slane %v5130_v20, 4 }
 0x3bf   : > { %v4575_v31 = vrot.slane %v4573_v44, 7  ;;  %v4340_v34 = vadd.f32 %v10967_v35, %v4304_v33  ;;  %v5138_v46 = vrot.slane %v5136_v40, 5 }
 0x3c0   : > { %v5129_v53 = vsel %vm9239_vm10, %v5124_v39, %v5128_v16  ;;  %v5133_v26 = vor.u32 %v5132_v49, %v5128_v16  ;;  %v4438_v16 = vsel %vm9177_vm3, 0, %v4437_v12 }
 0x3c1   : > { %v4578_v29 = vor.u32 %v4576_v58, %v4575_v31  ;;  %v4580_v37 = vrot.slane %v4575_v31, 4  ;;  %v4372_v17 = vmax.f32 %v4340_v34, 0.0  ;;  %5480 = vrot.lane.b32.xlu0 %v5129_v53, %s9117_s30  ;;  %4439 = vst [vmem:[#allocation3 + $0x78] sm:$0x1] %v4438_v16  ;;  %v4476_v31 = vld [vmem:[#allocation3 + $0x44] sm:$0x1] }
 0x3c2   : > { %v5134_v41 = vrot.slane %v5133_v26, 4  ;;  %v4886_v58 = vld [vmem:[#allocation3 + $0x2c] sm:$0x1]  ;;  %v4983_v53 = vld [vmem:[#allocation3 + $0x10] sm:$0xf] }
 0x3c3   : > { %v4579_v36 = vsel %vm9228_vm9, %v4571_v0, %v4578_v29  ;;  %v4880_v5 = vsel %vm9177_vm3, %v4580_v37, %v4879_v30  ;;  %v4519_v43 = vpack.c.bf16 %v4372_v17, %v4372_v17  ;;  %v5050_v24 = vld [vmem:[#allocation3 + $0x18] sm:$0xf]  ;;  %v4477_v30 = vsel %vm9190_vm6, 0, %v4476_v31  ;;  %5015 = vst.msk [vmem:[#allocation5 + $0xc] sm:$0xf] %vm280_vm0, %v4983_v53 }
 0x3c4   : > { %4878 = vst.msk [vmem:[#allocation3 + $0x1c] sm:$0xf] %vm280_vm0, %v4579_v36  ;;  %v4228_v2 = vpop.f32.mrf.mxu0  ;;  %v5139_v18 = vsel %vm9239_vm10, %v5134_v41, %v5138_v46  ;;  %v5141_v42 = vshrl.u32 %v5050_v24, 16  ;;  %v5144_v19 = vshll.u32 %v5050_v24, 16  ;;  %v4984_v27 = vld [vmem:[#allocation3 + $0x18] sm:$0xf] }
 0x3c5   : > { %4881 = vst [vmem:[#allocation3 + $0x20] sm:$0x1] %v4880_v5  ;;  %v4582_v52 = vshrl.u32 %v4519_v43, 16  ;;  %v4305_v32 = vmul.f32 %v10962_v54, %v4228_v2  ;;  %5482 = vrot.lane.b32.xlu1 %v5139_v18, %s9117_s30  ;;  %v4585_v45 = vshll.u32 %v4519_v43, 16  ;;  %v4491_v43 = vld [vmem:[#allocation3 + $0x80] sm:$0x1] }
 0x3c6   : > { %v5143_v62 = vrot.slane %v5141_v42, 4  ;;  %v5146_v7 = vrot.slane %v5144_v19, 5  ;;  %5016 = vst.msk [vmem:[#allocation5 + $0x10] sm:$0xf] %vm280_vm0, %v4984_v27  ;;  %v4492_v42 = vsel %vm9190_vm6, 0, %v4491_v43 }
 0x3c7   : > { %v4584_v21 = vrot.slane %v4582_v52, 7  ;;  %v4341_v60 = vadd.f32 %v10967_v35, %v4305_v32  ;;  %4478 = vst [vmem:[#allocation3 + $0x44] sm:$0x1] %v4477_v30  ;;  %v4425_v32 = vld [vmem:[#allocation3 + $0x48] sm:$0x1] }
 0x3c8   : > { %v5147_v15 = vor.u32 %v5146_v7, %v5143_v62  ;;  %4493 = vst [vmem:[#allocation3 + $0x80] sm:$0x1] %v4492_v42 }
 0x3c9   : > { %v4587_v59 = vor.u32 %v4585_v45, %v4584_v21  ;;  %v4373_v8 = vmax.f32 %v4341_v60, 0.0  ;;  %v4588_v26 = vrot.slane %v4584_v21, 4  ;;  %v4426_v60 = vsel %vm9177_vm3, 0, %v4425_v32 }
 0x3ca   : > { %v5148_v63 = vrot.slane %v5147_v15, 4  ;;  %4427 = vst [vmem:[#allocation3 + $0x48] sm:$0x1] %v4426_v60 }
 0x3cb   : > { %v4883_v47 = vsel %vm9247_vm11, %v4587_v59, %v4882_v9  ;;  %v4520_v14 = vpack.c.bf16 %v4373_v8, %v4373_v8  ;;  %v5051_v51 = vld [vmem:[#allocation3 + $0x1c] sm:$0xf]  ;;  %v4889_v9 = vld [vmem:[#allocation3 + $0x30] sm:$0xf] }
 0x3cc   : > { %4884 = vst [vmem:[#allocation3 + $0x24] sm:$0xf] %v4883_v47  ;;  %v4231_v23 = vpop.f32.mrf.mxu0  ;;  %v5150_v11 = vshll.u32 %v5051_v51, 16  ;;  %v5154_v22 = vshrl.u32 %v5051_v51, 16  ;;  %v5052_v57 = vld [vmem:[#allocation3 + $0x20] sm:$0x1] }
 0x3cd   : > { %v4590_v48 = vshrl.u32 %v4520_v14, 16  ;;  %v4306_v20 = vmul.f32 %v10962_v54, %v4231_v23  ;;  %v5160_v39 = vshll.u32 %v5052_v57, 16  ;;  %v4593_v40 = vshll.u32 %v4520_v14, 16 }
 0x3ce   : > { %v5152_v44 = vrot.slane %v5150_v11, 5  ;;  %v5156_v33 = vrot.slane %v5154_v22, 4 }
 0x3cf   : > { %v4592_v49 = vrot.slane %v4590_v48, 7  ;;  %v4342_v61 = vadd.f32 %v10967_v35, %v4306_v20  ;;  %v5162_v41 = vrot.slane %v5160_v39, 5 }
 0x3d0   : > { %v5153_v34 = vsel %vm9239_vm10, %v5148_v63, %v5152_v44  ;;  %v5157_v10 = vor.u32 %v5156_v33, %v5152_v44 }
 0x3d1   : > { %v4595_v0 = vor.u32 %v4593_v40, %v4592_v49  ;;  %v4597_v29 = vrot.slane %v4592_v49, 4  ;;  %v4374_v37 = vmax.f32 %v4342_v61, 0.0  ;;  %5484 = vrot.lane.b32.xlu2 %v5153_v34, %s9117_s30  ;;  %v4440_v49 = vld [vmem:[#allocation3 + $0x84] sm:$0x1] }
 0x3d2   : > { %v5158_v17 = vrot.slane %v5157_v10, 4 }
 0x3d3   : > { %v4596_v46 = vsel %vm9228_vm9, %v4588_v26, %v4595_v0  ;;  %v4887_v3 = vsel %vm9177_vm3, %v4597_v29, %v4886_v58  ;;  %v4521_v36 = vpack.c.bf16 %v4374_v37, %v4374_v37  ;;  %v5053_v5 = vld [vmem:[#allocation3 + $0x24] sm:$0xf]  ;;  %v4479_v26 = vld [vmem:[#allocation3 + $0x50] sm:$0x1]  ;;  %v4893_v29 = vld [vmem:[#allocation3 + $0x38] sm:$0x1] }
 0x3d4   : > { %4885 = vst.msk [vmem:[#allocation3 + $0x28] sm:$0xf] %vm280_vm0, %v4596_v46  ;;  %v4233_v24 = vpop.f32.mrf.mxu0  ;;  %v5163_v55 = vsel %vm9239_vm10, %v5158_v17, %v5162_v41  ;;  %v5165_v2 = vshrl.u32 %v5053_v5, 16  ;;  %v5168_v18 = vshll.u32 %v5053_v5, 16  ;;  %v4441_v41 = vsel %vm9177_vm3, 0, %v4440_v49 }
 0x3d5   : > { %4888 = vst [vmem:[#allocation3 + $0x2c] sm:$0x1] %v4887_v3  ;;  %v4599_v19 = vshrl.u32 %v4521_v36, 16  ;;  %v4256_v27 = vpop.f32.mrf.mxu2  ;;  %v4307_v52 = vmul.f32 %v10962_v54, %v4233_v24  ;;  %5486 = vrot.lane.b32.xlu0 %v5163_v55, %s9117_s30  ;;  %v4602_v21 = vshll.u32 %v4521_v36, 16  ;;  %v4924_v46 = vld [vmem:[#allocation3 + $0x6c] sm:$0xf] }
 0x3d6   : > { %v4316_v13 = vmul.f32 %v10962_v54, %v4256_v27  ;;  %v5167_v62 = vrot.slane %v5165_v2, 4  ;;  %v5170_v7 = vrot.slane %v5168_v18, 5  ;;  %4442 = vst [vmem:[#allocation3 + $0x84] sm:$0x1] %v4441_v41  ;;  %v4480_v18 = vsel %vm9190_vm6, 0, %v4479_v26 }
 0x3d7   : > { %v4601_v28 = vrot.slane %v4599_v19, 7  ;;  %v4343_v45 = vadd.f32 %v10967_v35, %v4307_v52  ;;  %4481 = vst [vmem:[#allocation3 + $0x50] sm:$0x1] %v4480_v18 }
 0x3d8   : > { %v4352_v25 = vadd.f32 %v10967_v35, %v4316_v13  ;;  %v5171_v15 = vor.u32 %v5170_v7, %v5167_v62 }
 0x3d9   : > { %v4604_v59 = vor.u32 %v4602_v21, %v4601_v28  ;;  %v4375_v8 = vmax.f32 %v4343_v45, 0.0  ;;  %v4605_v14 = vrot.slane %v4601_v28, 4  ;;  %v4494_v45 = vld [vmem:[#allocation3 + $0x8c] sm:$0x1] }
 0x3da   : > { %v4384_v47 = vmax.f32 %v4352_v25, 0.0  ;;  %v5172_v16 = vrot.slane %v5171_v15, 4 }
 0x3db   : > { %v4890_v51 = vsel %vm9247_vm11, %v4604_v59, %v4889_v9  ;;  %v4522_v12 = vpack.c.bf16 %v4375_v8, %v4375_v8  ;;  %v5054_v23 = vld [vmem:[#allocation3 + $0x28] sm:$0xf]  ;;  %v4428_v8 = vld [vmem:[#allocation3 + $0x54] sm:$0x1] }
 0x3dc   : > { %4891 = vst [vmem:[#allocation3 + $0x30] sm:$0xf] %v4890_v51  ;;  %v4531_v11 = vpack.c.bf16 %v4384_v47, %v4384_v47  ;;  %v4236_v22 = vpop.f32.mrf.mxu0  ;;  %v5174_v57 = vshll.u32 %v5054_v23, 16  ;;  %v5178_v48 = vshrl.u32 %v5054_v23, 16  ;;  %v5055_v20 = vld [vmem:[#allocation3 + $0x2c] sm:$0x1] }
 0x3dd   : > { %v4607_v63 = vshrl.u32 %v4522_v12, 16  ;;  %v4610_v44 = vshll.u32 %v4522_v12, 16  ;;  %v4258_v33 = vpop.f32.mrf.mxu2  ;;  %v4308_v39 = vmul.f32 %v10962_v54, %v4236_v22  ;;  %v5184_v58 = vshll.u32 %v5055_v20, 16 }
 0x3de   : > { %v4684_v40 = vshrl.u32 %v4531_v11, 16  ;;  %v4317_v61 = vmul.f32 %v10962_v54, %v4258_v33  ;;  %v5176_v31 = vrot.slane %v5174_v57, 5  ;;  %v4687_v34 = vshll.u32 %v4531_v11, 16 }
 0x3df   : > { %v4609_v10 = vrot.slane %v4607_v63, 7  ;;  %v4344_v30 = vadd.f32 %v10967_v35, %v4308_v39  ;;  %v5180_v53 = vrot.slane %v5178_v48, 4  ;;  %v5186_v2 = vrot.slane %v5184_v58, 5  ;;  %v4985_v48 = vld [vmem:[#allocation3 + $0x1c] sm:$0xf] }
 0x3e0   : > { %v11068_v0 = vrot.slane %v4684_v40, 7  ;;  %v4353_v37 = vadd.f32 %v10967_v35, %v4317_v61  ;;  %v5177_v17 = vsel %vm9239_vm10, %v5172_v16, %v5176_v31  ;;  %v4495_v57 = vsel %vm9190_vm6, 0, %v4494_v45  ;;  %v4928_v39 = vld [vmem:[#allocation3 + $0x74] sm:$0x1]  ;;  %5017 = vst.msk [vmem:[#allocation5 + $0x14] sm:$0xf] %vm280_vm0, %v4985_v48 }
 0x3e1   : > { %v4612_v3 = vor.u32 %v4610_v44, %v4609_v10  ;;  %v4614_v36 = vrot.slane %v4609_v10, 4  ;;  %v4376_v5 = vmax.f32 %v4344_v30, 0.0  ;;  %5488 = vrot.lane.b32.xlu1 %v5177_v17, %s9117_s30  ;;  %v5181_v43 = vor.u32 %v5180_v53, %v5176_v31  ;;  %4496 = vst [vmem:[#allocation3 + $0x8c] sm:$0x1] %v4495_v57  ;;  %v4931_v45 = vld [vmem:[#allocation3 + $0x78] sm:$0xf] }
 0x3e2   : > { %v4689_v24 = vor.u32 %v4687_v34, %v11068_v0  ;;  %v4385_v55 = vmax.f32 %v4353_v37, 0.0  ;;  %v4429_v33 = vsel %vm9177_vm3, 0, %v4428_v8  ;;  %v4690_v61 = vrot.slane %v11068_v0, 4  ;;  %v4986_v8 = vld [vmem:[#allocation3 + $0x24] sm:$0xf] }
 0x3e3   : > { %v4613_v42 = vsel %vm9228_vm9, %v4605_v14, %v4612_v3  ;;  %v4894_v19 = vsel %vm9177_vm3, %v4614_v36, %v4893_v29  ;;  %v4523_v27 = vpack.c.bf16 %v4376_v5, %v4376_v5  ;;  %v5182_v52 = vrot.slane %v5181_v43, 4  ;;  %v5056_v32 = vld [vmem:[#allocation3 + $0x30] sm:$0xf]  ;;  %v4896_v14 = vld [vmem:[#allocation3 + $0x3c] sm:$0xf] }
 0x3e4   : > { %v4925_v13 = vsel %vm9247_vm11, %v4689_v24, %v4924_v46  ;;  %4892 = vst.msk [vmem:[#allocation3 + $0x34] sm:$0xf] %vm280_vm0, %v4613_v42  ;;  %v4532_v62 = vpack.c.bf16 %v4385_v55, %v4385_v55  ;;  %v4238_v7 = vpop.f32.mrf.mxu0  ;;  %v5189_v28 = vshrl.u32 %v5056_v32, 16  ;;  %v5192_v21 = vshll.u32 %v5056_v32, 16  ;;  %v4443_v57 = vld [vmem:[#allocation3 + $0x90] sm:$0x1] }
 0x3e5   : > { %4926 = vst [vmem:[#allocation3 + $0x6c] sm:$0xf] %v4925_v13  ;;  %v4616_v60 = vshrl.u32 %v4523_v27, 16  ;;  %v4261_v9 = vpop.f32.mrf.mxu2  ;;  %v4309_v25 = vmul.f32 %v10962_v54, %v4238_v7  ;;  %v5187_v59 = vsel %vm9239_vm10, %v5182_v52, %v5186_v2  ;;  %v4619_v47 = vshll.u32 %v4523_v27, 16 }
 0x3e6   : > { %4895 = vst [vmem:[#allocation3 + $0x38] sm:$0x1] %v4894_v19  ;;  %v4692_v15 = vshrl.u32 %v4532_v62, 16  ;;  %v4318_v51 = vmul.f32 %v10962_v54, %v4261_v9  ;;  %5490 = vrot.lane.b32.xlu2 %v5187_v59, %s9117_s30  ;;  %v5191_v12 = vrot.slane %v5189_v28, 4  ;;  %v5194_v22 = vrot.slane %v5192_v21, 5 }
 0x3e7   : > { %v11091_v23 = vrot.slane %v4616_v60, 7  ;;  %v4345_v11 = vadd.f32 %v10967_v35, %v4309_v25  ;;  %v4695_v63 = vshll.u32 %v4532_v62, 16  ;;  %4430 = vst [vmem:[#allocation3 + $0x54] sm:$0x1] %v4429_v33  ;;  %v4900_v62 = vld [vmem:[#allocation3 + $0x44] sm:$0x1] }
 0x3e8   : > { %v4694_v20 = vrot.slane %v4692_v15, 7  ;;  %v4354_v44 = vadd.f32 %v10967_v35, %v4318_v51  ;;  %v5195_v40 = vor.u32 %v5194_v22, %v5191_v12  ;;  %5018 = vst.msk [vmem:[#allocation5 + $0x18] sm:$0xf] %vm280_vm0, %v4986_v8 }
 0x3e9   : > { %v4621_v16 = vor.u32 %v4619_v47, %v11091_v23  ;;  %v4377_v49 = vmax.f32 %v4345_v11, 0.0  ;;  %v4622_v10 = vrot.slane %v11091_v23, 4 }
 0x3ea   : > { %v4697_v31 = vor.u32 %v4695_v63, %v4694_v20  ;;  %v4699_v58 = vrot.slane %v4694_v20, 4  ;;  %v4386_v34 = vmax.f32 %v4354_v44, 0.0  ;;  %v5196_v5 = vrot.slane %v5195_v40, 4 }
 0x3eb   : > { %v4897_v30 = vsel %vm9247_vm11, %v4621_v16, %v4896_v14  ;;  %v4524_v53 = vpack.c.bf16 %v4377_v49, %v4377_v49  ;;  %v5057_v26 = vld [vmem:[#allocation3 + $0x34] sm:$0xf] }
 0x3ec   : > { %v4698_v29 = vsel %vm9228_vm9, %v4690_v61, %v4697_v31  ;;  %v4929_v37 = vsel %vm9177_vm3, %v4699_v58, %v4928_v39  ;;  %4898 = vst [vmem:[#allocation3 + $0x3c] sm:$0xf] %v4897_v30  ;;  %v4533_v0 = vpack.c.bf16 %v4386_v34, %v4386_v34  ;;  %v4241_v17 = vpop.f32.mrf.mxu0  ;;  %v5198_v41 = vshll.u32 %v5057_v26, 16  ;;  %v4482_v39 = vld [vmem:[#allocation3 + $0x5c] sm:$0x1] }
 0x3ed   : > { %4927 = vst.msk [vmem:[#allocation3 + $0x70] sm:$0xf] %vm280_vm0, %v4698_v29  ;;  %v4624_v46 = vshrl.u32 %v4524_v53, 16  ;;  %v4263_v3 = vpop.f32.mrf.mxu2  ;;  %v4310_v36 = vmul.f32 %v10962_v54, %v4241_v17  ;;  %v5202_v43 = vshrl.u32 %v5057_v26, 16  ;;  %v4627_v55 = vshll.u32 %v4524_v53, 16 }
 0x3ee   : > { %4930 = vst [vmem:[#allocation3 + $0x74] sm:$0x1] %v4929_v37  ;;  %v4701_v24 = vshrl.u32 %v4533_v0, 16  ;;  %v4319_v2 = vmul.f32 %v10962_v54, %v4263_v3  ;;  %v5200_v18 = vrot.slane %v5198_v41, 5  ;;  %v4704_v42 = vshll.u32 %v4533_v0, 16 }
 0x3ef   : > { %v4626_v19 = vrot.slane %v4624_v46, 7  ;;  %v4346_v27 = vadd.f32 %v10967_v35, %v4310_v36  ;;  %v5058_v52 = vld [vmem:[#allocation3 + $0x38] sm:$0x1]  ;;  %v5204_v32 = vrot.slane %v5202_v43, 4  ;;  %v4903_v30 = vld [vmem:[#allocation3 + $0x48] sm:$0xf] }
 0x3f0   : > { %v11113_v13 = vrot.slane %v4701_v24, 7  ;;  %v4355_v7 = vadd.f32 %v10967_v35, %v4319_v2  ;;  %v5201_v28 = vsel %vm9239_vm10, %v5196_v5, %v5200_v18  ;;  %v5208_v21 = vshll.u32 %v5058_v52, 16  ;;  %v4497_v58 = vld [vmem:[#allocation3 + $0x98] sm:$0x1]  ;;  %v4431_v41 = vld [vmem:[#allocation3 + $0x60] sm:$0x1] }
 0x3f1   : > { %v4629_v60 = vor.u32 %v4627_v55, %v4626_v19  ;;  %v4631_v9 = vrot.slane %v4626_v19, 4  ;;  %v4378_v25 = vmax.f32 %v4346_v27, 0.0  ;;  %5492 = vrot.lane.b32.xlu0 %v5201_v28, %s9117_s30  ;;  %v5205_v59 = vor.u32 %v5204_v32, %v5200_v18  ;;  %v4935_v24 = vld [vmem:[#allocation3 + $0x80] sm:$0x1] }
 0x3f2   : > { %v4706_v15 = vor.u32 %v4704_v42, %v11113_v13  ;;  %v4387_v47 = vmax.f32 %v4355_v7, 0.0  ;;  %v5210_v14 = vrot.slane %v5208_v21, 5  ;;  %v4444_v17 = vsel %vm9177_vm3, 0, %v4443_v57 }
 0x3f3   : > { %v4630_v51 = vsel %vm9228_vm9, %v4622_v10, %v4629_v60  ;;  %v4901_v12 = vsel %vm9177_vm3, %v4631_v9, %v4900_v62  ;;  %v4525_v23 = vpack.c.bf16 %v4378_v25, %v4378_v25  ;;  %v5206_v11 = vrot.slane %v5205_v59, 4  ;;  %v5059_v22 = vld [vmem:[#allocation3 + $0x3c] sm:$0xf]  ;;  %4445 = vst [vmem:[#allocation3 + $0x90] sm:$0x1] %v4444_v17 }
 0x3f4   : > { %v4932_v48 = vsel %vm9247_vm11, %v4706_v15, %v4931_v45  ;;  %4899 = vst.msk [vmem:[#allocation3 + $0x40] sm:$0xf] %vm280_vm0, %v4630_v51  ;;  %v4534_v20 = vpack.c.bf16 %v4387_v47, %v4387_v47  ;;  %v4243_v63 = vpop.f32.mrf.mxu0  ;;  %v5213_v44 = vshrl.u32 %v5059_v22, 16  ;;  %v5216_v33 = vshll.u32 %v5059_v22, 16 }
 0x3f5   : > { %4933 = vst [vmem:[#allocation3 + $0x78] sm:$0xf] %v4932_v48  ;;  %v4633_v16 = vshrl.u32 %v4525_v23, 16  ;;  %v4636_v49 = vshll.u32 %v4525_v23, 16  ;;  %v4266_v40 = vpop.f32.mrf.mxu2  ;;  %v4311_v61 = vmul.f32 %v10962_v54, %v4243_v63  ;;  %v5211_v31 = vsel %vm9239_vm10, %v5206_v11, %v5210_v14 }
 0x3f6   : > { %4902 = vst [vmem:[#allocation3 + $0x44] sm:$0x1] %v4901_v12  ;;  %v4709_v34 = vshrl.u32 %v4534_v20, 16  ;;  %v4712_v10 = vshll.u32 %v4534_v20, 16  ;;  %v4320_v53 = vmul.f32 %v10962_v54, %v4266_v40  ;;  %5494 = vrot.lane.b32.xlu1 %v5211_v31, %s9117_s30  ;;  %v5215_v26 = vrot.slane %v5213_v44, 4 }
 0x3f7   : > { %v11133_v29 = vrot.slane %v4633_v16, 7  ;;  %v4347_v37 = vadd.f32 %v10967_v35, %v4311_v61  ;;  %v5218_v0 = vrot.slane %v5216_v33, 5  ;;  %v4483_v36 = vsel %vm9190_vm6, 0, %v4482_v39  ;;  %v4907_v44 = vld [vmem:[#allocation3 + $0x50] sm:$0x1] }
 0x3f8   : > { %v4711_v46 = vrot.slane %v4709_v34, 7  ;;  %v4356_v3 = vadd.f32 %v10967_v35, %v4320_v53  ;;  %v4498_v5 = vsel %vm9190_vm6, 0, %v4497_v58  ;;  %v4707_v43 = vrot.slane %v11113_v13, 4  ;;  %4484 = vst [vmem:[#allocation3 + $0x5c] sm:$0x1] %v4483_v36 }
 0x3f9   : > { %v4638_v55 = vor.u32 %v4636_v49, %v11133_v29  ;;  %v4379_v2 = vmax.f32 %v4347_v37, 0.0  ;;  %v5219_v18 = vor.u32 %v5218_v0, %v5215_v26  ;;  %4499 = vst [vmem:[#allocation3 + $0x98] sm:$0x1] %v4498_v5  ;;  %v4432_v52 = vsel %vm9177_vm3, 0, %v4431_v41  ;;  %v3954_v49 = vpop.permute.xlu2 %3953  ;;  %v4938_v40 = vld [vmem:[#allocation3 + $0x84] sm:$0xf] }
 0x3fa   : > { %v4714_v42 = vor.u32 %v4712_v10, %v4711_v46  ;;  %v4716_v19 = vrot.slane %v4711_v46, 4  ;;  %v4388_v27 = vmax.f32 %v4356_v3, 0.0  ;;  %v4639_v32 = vrot.slane %v11133_v29, 4  ;;  %4433 = vst [vmem:[#allocation3 + $0x60] sm:$0x1] %v4432_v52 }
 0x3fb   : > { %v4904_v62 = vsel %vm9247_vm11, %v4638_v55, %v4903_v30  ;;  %v4526_v7 = vpack.c.bf16 %v4379_v2, %v4379_v2  ;;  %v5060_v13 = vld [vmem:[#allocation3 + $0x40] sm:$0xf]  ;;  %v5220_v15 = vrot.slane %v5219_v18, 4  ;;  %4020 = vst.msk [vmem:[#allocation4 + $0x78] sm:$0xf] %vm3989_vm13, %v3954_v49 }
 0x3fc   : > { %v4715_v28 = vsel %vm9228_vm9, %v4707_v43, %v4714_v42  ;;  %v4936_v21 = vsel %vm9177_vm3, %v4716_v19, %v4935_v24  ;;  %4905 = vst [vmem:[#allocation3 + $0x48] sm:$0xf] %v4904_v62  ;;  %v4535_v45 = vpack.c.bf16 %v4388_v27, %v4388_v27  ;;  %v4246_v60 = vpop.f32.mrf.mxu0  ;;  %v5222_v9 = vshll.u32 %v5060_v13, 16  ;;  %v4987_v26 = vld [vmem:[#allocation3 + $0x28] sm:$0xf] }
 0x3fd   : > { %4934 = vst.msk [vmem:[#allocation3 + $0x7c] sm:$0xf] %vm280_vm0, %v4715_v28  ;;  %v4641_v25 = vshrl.u32 %v4526_v7, 16  ;;  %v4268_v59 = vpop.f32.mrf.mxu2  ;;  %v4312_v8 = vmul.f32 %v10962_v54, %v4246_v60  ;;  %v5226_v47 = vshrl.u32 %v5060_v13, 16  ;;  %v4644_v51 = vshll.u32 %v4526_v7, 16 }
 0x3fe   : > { %4937 = vst [vmem:[#allocation3 + $0x80] sm:$0x1] %v4936_v21  ;;  %v4718_v14 = vshrl.u32 %v4535_v45, 16  ;;  %v4321_v12 = vmul.f32 %v10962_v54, %v4268_v59  ;;  %v5224_v23 = vrot.slane %v5222_v9, 5  ;;  %v4721_v11 = vshll.u32 %v4535_v45, 16 }
 0x3ff   : > { %v4643_v22 = vrot.slane %v4641_v25, 7  ;;  %v4348_v57 = vadd.f32 %v10967_v35, %v4312_v8  ;;  %v5061_v48 = vld [vmem:[#allocation3 + $0x44] sm:$0x1]  ;;  %v5228_v20 = vrot.slane %v5226_v47, 4  ;;  %v4446_v46 = vld [vmem:[#allocation3 + $0x9c] sm:$0x1] }
 0x400   : > { %v11158_v63 = vrot.slane %v4718_v14, 7  ;;  %v4357_v33 = vadd.f32 %v10967_v35, %v4321_v12  ;;  %v5225_v39 = vsel %vm9239_vm10, %v5220_v15, %v5224_v23  ;;  %v5232_v16 = vshll.u32 %v5061_v48, 16  ;;  %v4485_v55 = vld [vmem:[#allocation3 + $0x68] sm:$0x1]  ;;  %v4500_v52 = vld [vmem:[#allocation3 + $0xa4] sm:$0x1] }
 0x401   : > { %v4646_v61 = vor.u32 %v4644_v51, %v4643_v22  ;;  %v4648_v31 = vrot.slane %v4643_v22, 4  ;;  %v4380_v58 = vmax.f32 %v4348_v57, 0.0  ;;  %5496 = vrot.lane.b32.xlu2 %v5225_v39, %s9117_s30  ;;  %v5229_v34 = vor.u32 %v5228_v20, %v5224_v23  ;;  %v4910_v7 = vld [vmem:[#allocation3 + $0x54] sm:$0xf]  ;;  %v11178_v21 = vld [vmem:[#allocation3 + $0x6c] sm:$0xf] }
 0x402   : > { %v4723_v10 = vor.u32 %v4721_v11, %v11158_v63  ;;  %v4389_v30 = vmax.f32 %v4357_v33, 0.0  ;;  %v5234_v53 = vrot.slane %v5232_v16, 5  ;;  %v4447_v25 = vsel %vm9177_vm3, 0, %v4446_v46  ;;  %5019 = vst.msk [vmem:[#allocation5 + $0x1c] sm:$0xf] %vm280_vm0, %v4987_v26 }
 0x403   : > { %v4647_v29 = vsel %vm9228_vm9, %v4639_v32, %v4646_v61  ;;  %v4908_v37 = vsel %vm9177_vm3, %v4648_v31, %v4907_v44  ;;  %v4527_v0 = vpack.c.bf16 %v4380_v58, %v4380_v58  ;;  %v5230_v17 = vrot.slane %v5229_v34, 4  ;;  %v5062_v41 = vld [vmem:[#allocation3 + $0x48] sm:$0xf]  ;;  %4448 = vst [vmem:[#allocation3 + $0x9c] sm:$0x1] %v4447_v25 }
 0x404   : > { %v4939_v3 = vsel %vm9247_vm11, %v4723_v10, %v4938_v40  ;;  %4906 = vst.msk [vmem:[#allocation3 + $0x4c] sm:$0xf] %vm280_vm0, %v4647_v29  ;;  %v4536_v36 = vpack.c.bf16 %v4389_v30, %v4389_v30  ;;  %v4248_v5 = vpop.f32.mrf.mxu0  ;;  %v5237_v43 = vshrl.u32 %v5062_v41, 16  ;;  %v5240_v24 = vshll.u32 %v5062_v41, 16  ;;  %v4942_v14 = vld [vmem:[#allocation3 + $0x8c] sm:$0x1] }
 0x405   : > { %4940 = vst [vmem:[#allocation3 + $0x84] sm:$0xf] %v4939_v3  ;;  %v4650_v2 = vshrl.u32 %v4527_v0, 16  ;;  %v4653_v18 = vshll.u32 %v4527_v0, 16  ;;  %v4271_v42 = vpop.f32.mrf.mxu2  ;;  %v4313_v19 = vmul.f32 %v10962_v54, %v4248_v5  ;;  %v5235_v27 = vsel %vm9239_vm10, %v5230_v17, %v5234_v53  ;;  %v11206_v29 = vld [vmem:[%s12461_s2] ss:$0 sm:$0xff]  ;;  %v3956_v5 = vpop.permute.xlu0 %3955 }
 0x406   : > { %4909 = vst [vmem:[#allocation3 + $0x50] sm:$0x1] %v4908_v37  ;;  %v4726_v32 = vshrl.u32 %v4536_v36, 16  ;;  %v4729_v62 = vshll.u32 %v4536_v36, 16  ;;  %v4322_v13 = vmul.f32 %v10962_v54, %v4271_v42  ;;  %5498 = vrot.lane.b32.xlu0 %v5235_v27, %s9117_s30  ;;  %v5239_v28 = vrot.slane %v5237_v43, 4 }
 0x407   : > { %v11180_v45 = vrot.slane %v4650_v2, 7  ;;  %v4349_v60 = vadd.f32 %v10967_v35, %v4313_v19  ;;  %v5242_v9 = vrot.slane %v5240_v24, 5  ;;  %v4486_v15 = vsel %vm9190_vm6, 0, %v4485_v55  ;;  %v11212_v46 = vld [vmem:[%s12462_s3] ss:$0 sm:$0xff] }
 0x408   : > { %v4728_v59 = vrot.slane %v4726_v32, 7  ;;  %v4358_v8 = vadd.f32 %v10967_v35, %v4322_v13  ;;  %v4501_v47 = vsel %vm9190_vm6, 0, %v4500_v52  ;;  %4487 = vst [vmem:[#allocation3 + $0x68] sm:$0x1] %v4486_v15  ;;  %v4724_v11 = vrot.slane %v11158_v63, 4 }
 0x409   : > { %v4655_v51 = vor.u32 %v4653_v18, %v11180_v45  ;;  %v4381_v12 = vmax.f32 %v4349_v60, 0.0  ;;  %v5243_v23 = vor.u32 %v5242_v9, %v5239_v28  ;;  %4502 = vst [vmem:[#allocation3 + $0xa4] sm:$0x1] %v4501_v47  ;;  %v4656_v35 = vrot.slane %v11180_v45, 4  ;;  %v4914_v24 = vld [vmem:[#allocation3 + $0x5c] sm:$0x1] }
 0x40a   : > { %v4731_v22 = vor.u32 %v4729_v62, %v4728_v59  ;;  %v4733_v57 = vrot.slane %v4728_v59, 4  ;;  %v4390_v48 = vmax.f32 %v4358_v8, 0.0  ;;  %v5309_v39 = vshrl.u32 %v11178_v21, 16  ;;  %4021 = vst.msk [vmem:[#allocation4 + $0x7c] sm:$0xf] %vm3989_vm13, %v3956_v5 }
 0x40b   : > { %v4911_v20 = vsel %vm9247_vm11, %v4655_v51, %v4910_v7  ;;  %v4528_v44 = vpack.c.bf16 %v4381_v12, %v4381_v12  ;;  %v5063_v33 = vld [vmem:[#allocation3 + $0x4c] sm:$0xf]  ;;  %v5244_v10 = vrot.slane %v5243_v23, 4  ;;  %v4945_v42 = vld [vmem:[#allocation3 + $0x90] sm:$0xf] }
 0x40c   : > { %v4732_v16 = vsel %vm9228_vm9, %v4724_v11, %v4731_v22  ;;  %v4943_v49 = vsel %vm9177_vm3, %v4733_v57, %v4942_v14  ;;  %4912 = vst [vmem:[#allocation3 + $0x54] sm:$0xf] %v4911_v20  ;;  %v4537_v63 = vpack.c.bf16 %v4390_v48, %v4390_v48  ;;  %v4251_v40 = vpop.f32.mrf.mxu0  ;;  %v5246_v61 = vshll.u32 %v5063_v33, 16  ;;  %v4449_v8 = vld [vmem:[#allocation3 + $0xa8] sm:$0x1] }
 0x40d   : > { %4941 = vst.msk [vmem:[#allocation3 + $0x88] sm:$0xf] %vm280_vm0, %v4732_v16  ;;  %v4658_v31 = vshrl.u32 %v4528_v44, 16  ;;  %v4273_v58 = vpop.f32.mrf.mxu2  ;;  %v4314_v34 = vmul.f32 %v10962_v54, %v4251_v40  ;;  %v5250_v30 = vshrl.u32 %v5063_v33, 16  ;;  %v4661_v26 = vshll.u32 %v4528_v44, 16 }
 0x40e   : > { %4944 = vst [vmem:[#allocation3 + $0x8c] sm:$0x1] %v4943_v49  ;;  %v4735_v53 = vshrl.u32 %v4537_v63, 16  ;;  %v4323_v37 = vmul.f32 %v11206_v29, %v4273_v58  ;;  %v5248_v0 = vrot.slane %v5246_v61, 5  ;;  %v4738_v17 = vshll.u32 %v4537_v63, 16 }
 0x40f   : > { %v4660_v41 = vrot.slane %v4658_v31, 7  ;;  %v4350_v54 = vadd.f32 %v11212_v46, %v4314_v34  ;;  %v5064_v3 = vld [vmem:[#allocation3 + $0x50] sm:$0x1]  ;;  %v5252_v36 = vrot.slane %v5250_v30, 4  ;;  %v11223_v28 = vrot.slane %v5309_v39, 4  ;;  %v5479_v30 = vpop.permute.xlu2 %5478 }
 0x410   : > { %v11215_v43 = vrot.slane %v4735_v53, 7  ;;  %v4359_v55 = vadd.f32 %v11212_v46, %v4323_v37  ;;  %v5249_v2 = vsel %vm9239_vm10, %v5244_v10, %v5248_v0  ;;  %v5256_v18 = vshll.u32 %v5064_v3, 16  ;;  %v4503_v23 = vld [vmem:[#allocation3 + $0xb0] sm:$0x1]  ;;  %v4917_v39 = vld [vmem:[#allocation3 + $0x60] sm:$0xf] }
 0x411   : > { %v4663_v19 = vor.u32 %v4661_v26, %v4660_v41  ;;  %v4665_v27 = vrot.slane %v4660_v41, 4  ;;  %v4382_v52 = vmax.f32 %v4350_v54, 0.0  ;;  %5500 = vrot.lane.b32.xlu1 %v5249_v2, %s9117_s30  ;;  %v5253_v32 = vor.u32 %v5252_v36, %v5248_v0  ;;  %v4990_v63 = vld [vmem:[#allocation3 + $0x3c] sm:$0xf]  ;;  %v4949_v26 = vld [vmem:[#allocation3 + $0x98] sm:$0x1] }
 0x412   : > { %v4740_v62 = vor.u32 %v4738_v17, %v11215_v43  ;;  %v4391_v7 = vmax.f32 %v4359_v55, 0.0  ;;  %v5258_v13 = vrot.slane %v5256_v18, 5  ;;  %v5312_v20 = vshll.u32 %v11178_v21, 16  ;;  %v11249_v41 = vld [vmem:[#allocation3 + $0x70] sm:$0xf] }
 0x413   : > { %v4664_v45 = vsel %vm9228_vm9, %v4656_v35, %v4663_v19  ;;  %v4915_v60 = vsel %vm9177_vm3, %v4665_v27, %v4914_v24  ;;  %v4529_v9 = vpack.c.bf16 %v4382_v52, %v4382_v52  ;;  %v5254_v25 = vrot.slane %v5253_v32, 4  ;;  %v5065_v59 = vld [vmem:[#allocation3 + $0x54] sm:$0xf]  ;;  %v4981_v35 = vld [vmem:[#allocation3 + $0x4] sm:$0xf] }
 0x414   : > { %v4946_v15 = vsel %vm9247_vm11, %v4740_v62, %v4945_v42  ;;  %4913 = vst.msk [vmem:[#allocation3 + $0x58] sm:$0xf] %vm280_vm0, %v4664_v45  ;;  %v4538_v47 = vpack.c.bf16 %v4391_v7, %v4391_v7  ;;  %v4253_v14 = vpop.f32.mrf.mxu0  ;;  %v5261_v51 = vshrl.u32 %v5065_v59, 16  ;;  %v5264_v12 = vshll.u32 %v5065_v59, 16 }
 0x415   : > { %4947 = vst [vmem:[#allocation3 + $0x90] sm:$0xf] %v4946_v15  ;;  %v4667_v11 = vshrl.u32 %v4529_v9, 16  ;;  %v4276_v22 = vpop.f32.mrf.mxu2  ;;  %v4315_v57 = vmul.f32 %v11206_v29, %v4253_v14  ;;  %v5259_v48 = vsel %vm9239_vm10, %v5254_v25, %v5258_v13  ;;  %v4670_v33 = vshll.u32 %v4529_v9, 16 }
 0x416   : > { %4916 = vst [vmem:[#allocation3 + $0x5c] sm:$0x1] %v4915_v60  ;;  %v4743_v44 = vshrl.u32 %v4538_v47, 16  ;;  %v4324_v16 = vmul.f32 %v11206_v29, %v4276_v22  ;;  %5502 = vrot.lane.b32.xlu2 %v5259_v48, %s9117_s30  ;;  %v5263_v49 = vrot.slane %v5261_v51, 4  ;;  %v5266_v31 = vrot.slane %v5264_v12, 5 }
 0x417   : > { %v11238_v40 = vrot.slane %v4667_v11, 7  ;;  %v4351_v61 = vadd.f32 %v11212_v46, %v4315_v57  ;;  %v4450_v58 = vsel %vm9177_vm3, 0, %v4449_v8  ;;  %5013 = vst.msk [vmem:[#allocation5 + $0x4] sm:$0xf] %vm280_vm0, %v4981_v35  ;;  %v4746_v34 = vshll.u32 %v4538_v47, 16 }
 0x418   : > { %v4745_v21 = vrot.slane %v4743_v44, 7  ;;  %v4360_v10 = vadd.f32 %v11212_v46, %v4324_v16  ;;  %4451 = vst [vmem:[#allocation3 + $0xa8] sm:$0x1] %v4450_v58  ;;  %v4504_v53 = vsel %vm9190_vm6, 0, %v4503_v23  ;;  %v5267_v17 = vor.u32 %v5266_v31, %v5263_v49  ;;  %v4988_v8 = vld [vmem:[#allocation3 + $0x30] sm:$0xf]  ;;  %v5477_v16 = vpop.permute.xlu1 %5476 }
 0x419   : > { %v4672_v37 = vor.u32 %v4670_v33, %v11238_v40  ;;  %v4383_v0 = vmax.f32 %v4351_v61, 0.0  ;;  %5573 = vst.msk [vmem:[#allocation5 + $0x4] sm:$0xf] %vm1466_vm15, %v5479_v30  ;;  %v5314_v54 = vrot.slane %v5312_v20, 5  ;;  %v4741_v3 = vrot.slane %v11215_v43, 4 }
 0x41a   : > { %v4748_v36 = vor.u32 %v4746_v34, %v4745_v21  ;;  %v4750_v5 = vrot.slane %v4745_v21, 4  ;;  %v4392_v24 = vmax.f32 %v4360_v10, 0.0  ;;  %4505 = vst [vmem:[#allocation3 + $0xb0] sm:$0x1] %v4504_v53  ;;  %v4673_v55 = vrot.slane %v11238_v40, 4 }
 0x41b   : > { %v4918_v2 = vsel %vm9247_vm11, %v4672_v37, %v4917_v39  ;;  %v4530_v18 = vpack.c.bf16 %v4383_v0, %v4383_v0  ;;  %v5066_v42 = vld [vmem:[#allocation3 + $0x58] sm:$0xf]  ;;  %5022 = vst.msk [vmem:[#allocation5 + $0x28] sm:$0xf] %vm280_vm0, %v4990_v63  ;;  %v5268_v7 = vrot.slane %v5267_v17, 4  ;;  %v5315_v45 = vor.u32 %v5314_v54, %v11223_v28 }
 0x41c   : > { %v4749_v19 = vsel %vm9228_vm9, %v4741_v3, %v4748_v36  ;;  %v4950_v27 = vsel %vm9177_vm3, %v4750_v5, %v4949_v26  ;;  %4919 = vst [vmem:[#allocation3 + $0x60] sm:$0xf] %v4918_v2  ;;  %v4539_v43 = vpack.c.bf16 %v4392_v24, %v4392_v24  ;;  %v5270_v52 = vshll.u32 %v5066_v42, 16  ;;  %v4952_v47 = vld [vmem:[#allocation3 + $0x9c] sm:$0xf] }
 0x41d   : > { %4948 = vst.msk [vmem:[#allocation3 + $0x94] sm:$0xf] %vm280_vm0, %v4749_v19  ;;  %v4675_v32 = vshrl.u32 %v4530_v18, 16  ;;  %v4278_v62 = vpop.f32.mrf.mxu2  ;;  %v5274_v13 = vshrl.u32 %v5066_v42, 16  ;;  %v5318_v59 = vshll.u32 %v11249_v41, 16  ;;  %v4678_v51 = vshll.u32 %v4530_v18, 16 }
 0x41e   : > { %4951 = vst [vmem:[#allocation3 + $0x98] sm:$0x1] %v4950_v27  ;;  %v4752_v60 = vshrl.u32 %v4539_v43, 16  ;;  %v4325_v9 = vmul.f32 %v11206_v29, %v4278_v62  ;;  %v5272_v25 = vrot.slane %v5270_v52, 5  ;;  %v4755_v15 = vshll.u32 %v4539_v43, 16 }
 0x41f   : > { %v4677_v14 = vrot.slane %v4675_v32, 7  ;;  %v5067_v12 = vld [vmem:[#allocation3 + $0x5c] sm:$0x1]  ;;  %v5276_v23 = vrot.slane %v5274_v13, 4  ;;  %v4921_v22 = vld [vmem:[#allocation3 + $0x68] sm:$0x1] }
 0x420   : > { %v11264_v11 = vrot.slane %v4752_v60, 7  ;;  %v4361_v57 = vadd.f32 %v11212_v46, %v4325_v9  ;;  %v5273_v28 = vsel %vm9239_vm10, %v5268_v7, %v5272_v25  ;;  %v5280_v48 = vshll.u32 %v5067_v12, 16  ;;  %v4980_v35 = vld [vmem:[#allocation3] sm:$0xf]  ;;  %v5075_v49 = vld [vmem:[#allocation3 + $0x7c] sm:$0xf] }
 0x421   : > { %v4680_v20 = vor.u32 %v4678_v51, %v4677_v14  ;;  %v4682_v44 = vrot.slane %v4677_v14, 4  ;;  %5504 = vrot.lane.b32.xlu0 %v5273_v28, %s9117_s30  ;;  %v5277_v33 = vor.u32 %v5276_v23, %v5272_v25  ;;  %v11270_v39 = vrot.slane %v5315_v45, 4  ;;  %5012 = vst.msk [vmem:[#allocation5] sm:$0xf] %vm280_vm0, %v4980_v35  ;;  %v4452_v31 = vld [vmem:[#allocation3 + $0xb4] sm:$0x1] }
 0x422   : > { %v4757_v63 = vor.u32 %v4755_v15, %v11264_v11  ;;  %v4393_v40 = vmax.f32 %v4361_v57, 0.0  ;;  %v11274_v61 = vrot.slane %v5318_v59, 5  ;;  %5572 = vst.msk [vmem:[#allocation5] sm:$0xf] %vm1466_vm15, %v5477_v16  ;;  %v5282_v10 = vrot.slane %v5280_v48, 5 }
 0x423   : > { %v4681_v58 = vsel %vm9228_vm9, %v4673_v55, %v4680_v20  ;;  %v4922_v21 = vsel %vm9177_vm3, %v4682_v44, %v4921_v22  ;;  %v5278_v34 = vrot.slane %v5277_v33, 4  ;;  %v5068_v30 = vld [vmem:[#allocation3 + $0x60] sm:$0xf]  ;;  %5020 = vst.msk [vmem:[#allocation5 + $0x20] sm:$0xf] %vm280_vm0, %v4988_v8  ;;  %v5322_v37 = vshrl.u32 %v11249_v41, 16 }
 0x424   : > { %v4953_v53 = vsel %vm9247_vm11, %v4757_v63, %v4952_v47  ;;  %4920 = vst.msk [vmem:[#allocation3 + $0x64] sm:$0xf] %vm280_vm0, %v4681_v58  ;;  %v4540_v26 = vpack.c.bf16 %v4393_v40, %v4393_v40  ;;  %v5285_v0 = vshrl.u32 %v5068_v30, 16  ;;  %v5076_v17 = vld [vmem:[#allocation3 + $0x80] sm:$0x1]  ;;  %v5288_v24 = vshll.u32 %v5068_v30, 16 }
 0x425   : > { %v5073_v54 = vld [vmem:[#allocation3 + $0x74] sm:$0x1]  ;;  %4954 = vst [vmem:[#allocation3 + $0x9c] sm:$0xf] %v4953_v53  ;;  %v4281_v36 = vpop.f32.mrf.mxu2  ;;  %v5283_v5 = vsel %vm9239_vm10, %v5278_v34, %v5282_v10  ;;  %v4453_v55 = vsel %vm9177_vm3, 0, %v4452_v31  ;;  %v5342_v2 = vshll.u32 %v5075_v49, 16  ;;  %v5321_v63 = vsel %vm9239_vm10, %v11270_v39, %v11274_v61 }
 0x426   : > { %v4989_v3 = vld [vmem:[#allocation3 + $0x34] sm:$0xf]  ;;  %v4758_v18 = vrot.slane %v11264_v11, 4  ;;  %4923 = vst [vmem:[#allocation3 + $0x68] sm:$0x1] %v4922_v21  ;;  %v4760_v42 = vshrl.u32 %v4540_v26, 16  ;;  %v4326_v41 = vmul.f32 %v11206_v29, %v4281_v36  ;;  %5506 = vrot.lane.b32.xlu1 %v5283_v5, %s9117_s30 }
 0x427   : > { %v5287_v19 = vrot.slane %v5285_v0, 4  ;;  %v11293_v27 = vld [vmem:[#allocation3 + $0x78] sm:$0xf]  ;;  %v4956_v43 = vld [vmem:[#allocation3 + $0xa4] sm:$0x1]  ;;  %v5290_v52 = vrot.slane %v5288_v24, 5 }
 0x428   : > { %4454 = vst [vmem:[#allocation3 + $0xb4] sm:$0x1] %v4453_v55  ;;  %v11295_v32 = vrot.slane %v5342_v2, 5  ;;  %v5346_v62 = vshrl.u32 %v5075_v49, 16  ;;  %v5352_v7 = vshll.u32 %v5076_v17, 16  ;;  %v4762_v13 = vrot.slane %v4760_v42, 7 }
 0x429   : > { %v4763_v45 = vshll.u32 %v4540_v26, 16  ;;  %v4362_v60 = vadd.f32 %v11212_v46, %v4326_v41  ;;  %v5324_v9 = vrot.slane %v5322_v37, 4  ;;  %v4506_v25 = vld [vmem:[#allocation3 + $0xbc] sm:$0x1]  ;;  %v5291_v59 = vor.u32 %v5290_v52, %v5287_v19  ;;  %5021 = vst.msk [vmem:[#allocation5 + $0x24] sm:$0xf] %vm280_vm0, %v4989_v3 }
 0x42a   : > { %v5348_v8 = vrot.slane %v5346_v62, 4  ;;  %v5328_v15 = vshll.u32 %v5073_v54, 16  ;;  %v4507_v47 = vsel %vm9190_vm6, 0, %v4506_v25  ;;  %v4767_v51 = vrot.slane %v4762_v13, 4  ;;  %v5080_v3 = vld [vmem:[#allocation3 + $0x90] sm:$0xf] }
 0x42b   : > { %v4765_v14 = vor.u32 %v4763_v45, %v4762_v13  ;;  %v4394_v12 = vmax.f32 %v4362_v60, 0.0  ;;  %v11301_v23 = vrot.slane %v5352_v7, 5  ;;  %4508 = vst [vmem:[#allocation3 + $0xbc] sm:$0x1] %v4507_v47  ;;  %v5485_v11 = vpop.permute.xlu2 %5484  ;;  %v5069_v22 = vld [vmem:[#allocation3 + $0x64] sm:$0xf]  ;;  %v5325_v48 = vor.u32 %v5324_v9, %v11274_v61 }
 0x42c   : > { %v5292_v57 = vrot.slane %v5291_v59, 4  ;;  %v5349_v28 = vor.u32 %v5348_v8, %v11295_v32  ;;  %v5333_v35 = vshrl.u32 %v11293_v27, 16  ;;  %v4957_v44 = vsel %vm9177_vm3, %v4767_v51, %v4956_v43  ;;  %5576 = vst.msk [vmem:[#allocation5 + $0x10] sm:$0xf] %vm1466_vm15, %v5485_v11  ;;  %v11326_v36 = vld [vmem:[#allocation3 + $0x94] sm:$0xf] }
 0x42d   : > { %v4766_v20 = vsel %vm9228_vm9, %v4758_v18, %v4765_v14  ;;  %v4541_v33 = vpack.c.bf16 %v4394_v12, %v4394_v12  ;;  %v5294_v16 = vshll.u32 %v5069_v22, 16  ;;  %v4283_v49 = vpop.f32.mrf.mxu2  ;;  %v5298_v40 = vshrl.u32 %v5069_v22, 16  ;;  %v5070_v58 = vld [vmem:[#allocation3 + $0x68] sm:$0x1]  ;;  %4958 = vst [vmem:[#allocation3 + $0xa4] sm:$0x1] %v4957_v44 }
 0x42e   : > { %4955 = vst.msk [vmem:[#allocation3 + $0xa0] sm:$0xf] %vm280_vm0, %v4766_v20  ;;  %v5350_v31 = vrot.slane %v5349_v28, 4  ;;  %v4327_v34 = vmul.f32 %v11206_v29, %v4283_v49  ;;  %5512 = vrot.lane.b32.xlu1 %v5321_v63, %s9117_s30  ;;  %v5330_v30 = vrot.slane %v5328_v15, 5  ;;  %v5304_v37 = vshll.u32 %v5070_v58, 16 }
 0x42f   : > { %v4769_v21 = vshrl.u32 %v4541_v33, 16  ;;  %v5296_v10 = vrot.slane %v5294_v16, 5  ;;  %v4772_v53 = vshll.u32 %v4541_v33, 16  ;;  %v5300_v26 = vrot.slane %v5298_v40, 4  ;;  %v4959_v5 = vld [vmem:[#allocation3 + $0xa8] sm:$0xf] }
 0x430   : > { %v5326_v0 = vrot.slane %v5325_v48, 4  ;;  %v4363_v54 = vadd.f32 %v11212_v46, %v4327_v34  ;;  %v5355_v61 = vsel %vm9239_vm10, %v5350_v31, %v11301_v23  ;;  %v5306_v55 = vrot.slane %v5304_v37, 5  ;;  %v5077_v52 = vld [vmem:[#allocation3 + $0x84] sm:$0xf]  ;;  %v5078_v15 = vld [vmem:[#allocation3 + $0x88] sm:$0xf] }
 0x431   : > { %v11318_v17 = vrot.slane %v4769_v21, 7  ;;  %v5297_v39 = vsel %vm9239_vm10, %v5292_v57, %v5296_v10  ;;  %v5301_v24 = vor.u32 %v5300_v26, %v5296_v10  ;;  %v5381_v2 = vshrl.u32 %v5080_v3, 16  ;;  %v4963_v31 = vld [vmem:[#allocation3 + $0xb0] sm:$0x1]  ;;  %v5955_v38 = vld [vmem:[#allocation3 + $0x64] sm:$0xf] }
 0x432   : > { %5508 = vrot.lane.b32.xlu2 %v5297_v39, %s9117_s30  ;;  %v5335_v18 = vrot.slane %v5333_v35, 4  ;;  %v4395_v41 = vmax.f32 %v4363_v54, 0.0  ;;  %v5331_v19 = vsel %vm9239_vm10, %v5326_v0, %v5330_v30  ;;  %v5384_v43 = vshll.u32 %v5080_v3, 16 }
 0x433   : > { %v4774_v42 = vor.u32 %v4772_v53, %v11318_v17  ;;  %v4775_v62 = vrot.slane %v11318_v17, 4  ;;  %v5481_v7 = vpop.permute.xlu0 %5480  ;;  %v5302_v13 = vrot.slane %v5301_v24, 4  ;;  %v5383_v45 = vrot.slane %v5381_v2, 4  ;;  %v8977_v17 = vld [vmem:[#allocation4 + $0x78] sm:$0xff]  ;;  %v5079_v2 = vld [vmem:[#allocation3 + $0x8c] sm:$0x1] }
 0x434   : > { %v5390_v60 = vshll.u32 %v11326_v36, 16  ;;  %v4542_v25 = vpack.c.bf16 %v4395_v41, %v4395_v41  ;;  %5574 = vst.msk [vmem:[#allocation5 + $0x8] sm:$0xf] %vm1466_vm15, %v5481_v7  ;;  %v5386_v59 = vrot.slane %v5384_v43, 5  ;;  %v5336_v8 = vshll.u32 %v11293_v27, 16  ;;  %8821 = vmatmul.msk.bf16.gmra.mxu2 %vm4154_vm12, %v8977_v17 }
 0x435   : > { %v4960_v9 = vsel %vm9247_vm11, %v4774_v42, %v4959_v5  ;;  %v4286_v47 = vpop.f32.mrf.mxu2  ;;  %v5307_v14 = vsel %vm9239_vm10, %v5302_v13, %v5306_v55  ;;  %v5394_v51 = vshrl.u32 %v11326_v36, 16  ;;  %v5357_v12 = vshrl.u32 %v5077_v52, 16  ;;  %v5084_v27 = vld [vmem:[#allocation3 + $0xa0] sm:$0xf]  ;;  %v5085_v0 = vld [vmem:[#allocation3 + $0xa4] sm:$0x1] }
 0x436   : > { %4961 = vst [vmem:[#allocation3 + $0xa8] sm:$0xf] %v4960_v9  ;;  %v5360_v23 = vshll.u32 %v5077_v52, 16  ;;  %v4777_v11 = vshrl.u32 %v4542_v25, 16  ;;  %v4328_v22 = vmul.f32 %v11206_v29, %v4286_v47  ;;  %5518 = vrot.lane.b32.xlu1 %v5355_v61, %s9117_s30  ;;  %5510 = vrot.lane.b32.xlu0 %v5307_v14, %s9117_s30  ;;  %v5387_v57 = vor.u32 %v5386_v59, %v5383_v45  ;;  %v4966_v45 = vld [vmem:[#allocation3 + $0xb4] sm:$0xf] }
 0x437   : > { %v11344_v28 = vrot.slane %v5390_v60, 5  ;;  %v5483_v48 = vpop.permute.xlu1 %5482  ;;  %v5338_v35 = vrot.slane %v5336_v8, 5  ;;  %v5359_v20 = vrot.slane %v5357_v12, 4  ;;  %v5366_v33 = vshll.u32 %v5078_v15, 16 }
 0x438   : > { %v5362_v44 = vrot.slane %v5360_v23, 5  ;;  %v4779_v16 = vrot.slane %v4777_v11, 7  ;;  %v4780_v49 = vshll.u32 %v4542_v25, 16  ;;  %v4364_v63 = vadd.f32 %v11212_v46, %v4328_v22  ;;  %5575 = vst.msk [vmem:[#allocation5 + $0xc] sm:$0xf] %vm1466_vm15, %v5483_v48 }
 0x439   : > { %v5388_v40 = vrot.slane %v5387_v57, 4  ;;  %v5339_v58 = vor.u32 %v5338_v35, %v5335_v18  ;;  %v5370_v34 = vshrl.u32 %v5078_v15, 16  ;;  %v5414_v10 = vshll.u32 %v5084_v27, 16  ;;  %v5083_v18 = vld [vmem:[#allocation3 + $0x9c] sm:$0xf] }
 0x43a   : > { %5514 = vrot.lane.b32.xlu2 %v5331_v19, %s9117_s30  ;;  %v5363_v21 = vor.u32 %v5362_v44, %v5359_v20  ;;  %v4782_v30 = vor.u32 %v4780_v49, %v4779_v16  ;;  %v4784_v53 = vrot.slane %v4779_v16, 4  ;;  %v4396_v26 = vmax.f32 %v4364_v63, 0.0 }
 0x43b   : > { %v5368_v37 = vrot.slane %v5366_v33, 5  ;;  %v5393_v54 = vsel %vm9239_vm10, %v5388_v40, %v11344_v28  ;;  %v5340_v39 = vrot.slane %v5339_v58, 4  ;;  %v11352_v61 = vrot.slane %v5414_v10, 5 }
 0x43c   : > { %v5418_v3 = vshrl.u32 %v5084_v27, 16  ;;  %v4783_v36 = vsel %vm9228_vm9, %v4775_v62, %v4782_v30  ;;  %v4964_v5 = vsel %vm9177_vm3, %v4784_v53, %v4963_v31  ;;  %v4543_v24 = vpack.c.bf16 %v4396_v26, %v4396_v26 }
 0x43d   : > { %v5364_v55 = vrot.slane %v5363_v21, 4  ;;  %4962 = vst.msk [vmem:[#allocation3 + $0xac] sm:$0xf] %vm280_vm0, %v4783_v36  ;;  %v4288_v42 = vpop.f32.mrf.mxu2  ;;  %v5345_v41 = vsel %vm9239_vm10, %v5340_v39, %v11295_v32  ;;  %v5424_v43 = vshll.u32 %v5085_v0, 16  ;;  %v5372_v52 = vrot.slane %v5370_v34, 4 }
 0x43e   : > { %v5420_v19 = vrot.slane %v5418_v3, 4  ;;  %4965 = vst [vmem:[#allocation3 + $0xb0] sm:$0x1] %v4964_v5  ;;  %v4786_v62 = vshrl.u32 %v4543_v24, 16  ;;  %v4329_v7 = vmul.f32 %v11206_v29, %v4288_v42  ;;  %5524 = vrot.lane.b32.xlu1 %v5393_v54, %s9117_s30  ;;  %5516 = vrot.lane.b32.xlu0 %v5345_v41, %s9117_s30  ;;  %v5376_v25 = vshll.u32 %v5079_v2, 16 }
 0x43f   : > { %v5369_v13 = vsel %vm9239_vm10, %v5364_v55, %v5368_v37  ;;  %v5373_v9 = vor.u32 %v5372_v52, %v5368_v37  ;;  %v5082_v32 = vld [vmem:[#allocation3 + $0x98] sm:$0x1]  ;;  %v5396_v59 = vrot.slane %v5394_v51, 4  ;;  %v4789_v15 = vshll.u32 %v4543_v24, 16  ;;  %v5086_v12 = vld [vmem:[#allocation3 + $0xa8] sm:$0xf] }
 0x440   : > { %v5421_v60 = vor.u32 %v5420_v19, %v11352_v61  ;;  %v4788_v8 = vrot.slane %v4786_v62, 7  ;;  %v4365_v47 = vadd.f32 %v11212_v46, %v4329_v7  ;;  %v5491_v14 = vpop.permute.xlu2 %5490  ;;  %v5405_v29 = vshrl.u32 %v5083_v18, 16  ;;  %v4970_v3 = vld [vmem:[#allocation3 + $0xbc] sm:$0x1] }
 0x441   : > { %5579 = vst.msk [vmem:[#allocation5 + $0x1c] sm:$0xf] %vm1466_vm15, %v5491_v14  ;;  %v5426_v11 = vrot.slane %v5424_v43, 5  ;;  %v5374_v22 = vrot.slane %v5373_v9, 4  ;;  %v5397_v57 = vor.u32 %v5396_v59, %v11344_v28  ;;  %v5400_v35 = vshll.u32 %v5082_v32, 16 }
 0x442   : > { %5520 = vrot.lane.b32.xlu2 %v5369_v13, %s9117_s30  ;;  %v5422_v23 = vrot.slane %v5421_v60, 4  ;;  %v4791_v27 = vor.u32 %v4789_v15, %v4788_v8  ;;  %v4397_v48 = vmax.f32 %v4365_v47, 0.0  ;;  %v5378_v20 = vrot.slane %v5376_v25, 5 }
 0x443   : > { %v5398_v46 = vrot.slane %v5397_v57, 4  ;;  %v5407_v44 = vrot.slane %v5405_v29, 4  ;;  %v5408_v49 = vshll.u32 %v5083_v18, 16  ;;  %v5429_v40 = vshrl.u32 %v5086_v12, 16 }
 0x444   : > { %v5427_v51 = vsel %vm9239_vm10, %v5422_v23, %v5426_v11  ;;  %v4967_v33 = vsel %vm9247_vm11, %v4791_v27, %v4966_v45  ;;  %v4544_v16 = vpack.c.bf16 %v4397_v48, %v4397_v48  ;;  %v5087_v63 = vld [vmem:[#allocation3 + $0xac] sm:$0xf]  ;;  %v5379_v28 = vsel %vm9239_vm10, %v5374_v22, %v5378_v20  ;;  %v5605_v23 = vld [vmem:[#allocation3 + $0x4] sm:$0xf] }
 0x445   : > { %4968 = vst [vmem:[#allocation3 + $0xb4] sm:$0xf] %v4967_v33  ;;  %v5432_v31 = vshll.u32 %v5086_v12, 16  ;;  %v5438_v58 = vshll.u32 %v5087_v63, 16  ;;  %v5442_v21 = vshrl.u32 %v5087_v63, 16  ;;  %v5402_v10 = vrot.slane %v5400_v35, 5 }
 0x446   : > { %v4794_v34 = vshrl.u32 %v4544_v16, 16  ;;  %5530 = vrot.lane.b32.xlu1 %v5427_v51, %s9117_s30  ;;  %5522 = vrot.lane.b32.xlu0 %v5379_v28, %s9117_s30  ;;  %v5410_v30 = vrot.slane %v5408_v49, 5  ;;  %v5431_v53 = vrot.slane %v5429_v40, 4  ;;  %v4797_v17 = vshll.u32 %v4544_v16, 16  ;;  %v5088_v43 = vld [vmem:[#allocation3 + $0xb0] sm:$0x1] }
 0x447   : > { %v5487_v26 = vpop.permute.xlu0 %5486  ;;  %v5434_v37 = vrot.slane %v5432_v31, 5  ;;  %v5403_v54 = vsel %vm9239_vm10, %v5398_v46, %v5402_v10  ;;  %v5440_v36 = vrot.slane %v5438_v58, 5  ;;  %v5444_v5 = vrot.slane %v5442_v21, 4  ;;  %v5604_v12 = vld [vmem:[#allocation3] sm:$0xe] }
 0x448   : > { %v4796_v0 = vrot.slane %v4794_v34, 7  ;;  %5577 = vst.msk [vmem:[#allocation5 + $0x14] sm:$0xf] %vm1466_vm15, %v5487_v26  ;;  %v5411_v39 = vor.u32 %v5410_v30, %v5407_v44  ;;  %v4792_v24 = vrot.slane %v4788_v8, 4  ;;  %v5448_v9 = vshll.u32 %v5088_v43, 16 }
 0x449   : > { %v5435_v18 = vor.u32 %v5434_v37, %v5431_v53  ;;  %v5445_v7 = vor.u32 %v5444_v5, %v5440_v36  ;;  %v4993_v8 = vld [vmem:[#allocation3 + $0x4c] sm:$0xf]  ;;  %v8822_v35 = vrot.slane %v5604_v12, 9  ;;  %v5702_v51 = vrot.slane %v5605_v23, 5  ;;  %v5606_v16 = vld [vmem:[#allocation3 + $0x8] sm:$0x1] }
 0x44a   : > { %5526 = vrot.lane.b32.xlu2 %v5403_v54, %s9117_s30  ;;  %v4799_v55 = vor.u32 %v4797_v17, %v4796_v0  ;;  %v4801_v2 = vrot.slane %v4796_v0, 4  ;;  %v5412_v42 = vrot.slane %v5411_v39, 4  ;;  %5025 = vst.msk [vmem:[#allocation5 + $0x34] sm:$0xf] %vm280_vm0, %v4993_v8  ;;  %v5450_v14 = vrot.slane %v5448_v9, 5 }
 0x44b   : > { %v5436_v60 = vrot.slane %v5435_v18, 4  ;;  %v5446_v15 = vrot.slane %v5445_v7, 4  ;;  %v4991_v49 = vld [vmem:[#allocation3 + $0x40] sm:$0xf]  ;;  %v5705_v28 = vrot.slane %v5606_v16, 5  ;;  %v5703_v10 = vsel %vm9656_vm14, %v8822_v35, %v5702_v51 }
 0x44c   : > { %v4800_v41 = vsel %vm9228_vm9, %v4792_v24, %v4799_v55  ;;  %v4971_v19 = vsel %vm9177_vm3, %v4801_v2, %v4970_v3  ;;  %v5089_v52 = vld [vmem:[#allocation3 + $0xb4] sm:$0xf]  ;;  %v5417_v62 = vsel %vm9239_vm10, %v5412_v42, %v11352_v61  ;;  %v4998_v61 = vld [vmem:[#allocation3 + $0x6c] sm:$0xf]  ;;  %5023 = vst.msk [vmem:[#allocation5 + $0x2c] sm:$0xf] %vm280_vm0, %v4991_v49 }
 0x44d   : > { %4969 = vst.msk [vmem:[#allocation3 + $0xb8] sm:$0xf] %vm280_vm0, %v4800_v41  ;;  %v5453_v13 = vshrl.u32 %v5089_v52, 16  ;;  %v5456_v45 = vshll.u32 %v5089_v52, 16  ;;  %v5441_v59 = vsel %vm9239_vm10, %v5436_v60, %v5440_v36  ;;  %v5451_v22 = vsel %vm9239_vm10, %v5446_v15, %v5450_v14  ;;  %v5608_v31 = vld [vmem:[#allocation3 + $0x10] sm:$0xf] }
 0x44e   : > { %4972 = vst [vmem:[#allocation3 + $0xbc] sm:$0x1] %v4971_v19  ;;  %5528 = vrot.lane.b32.xlu0 %v5417_v62, %s9117_s30  ;;  %v5704_v30 = vrot.slane %v5702_v51, 4  ;;  %v4999_v53 = vld [vmem:[#allocation3 + $0x70] sm:$0xf]  ;;  %v5709_v37 = vrot.slane %v5608_v31, 5 }
 0x44f   : > { %v5455_v25 = vrot.slane %v5453_v13, 4  ;;  %v5458_v32 = vrot.slane %v5456_v45, 5  ;;  %5030 = vst.msk [vmem:[#allocation5 + $0x48] sm:$0xf] %vm280_vm0, %v4998_v61  ;;  %v5607_v17 = vld [vmem:[#allocation3 + $0xc] sm:$0xe] }
 0x450   : > { %5031 = vst.msk [vmem:[#allocation5 + $0x4c] sm:$0xf] %vm280_vm0, %v4999_v53  ;;  %v5706_v0 = vsel %vm9656_vm14, %v5704_v30, %v5705_v28  ;;  %v5609_v54 = vld [vmem:[#allocation3 + $0x14] sm:$0x1]  ;;  %v5000_v39 = vld [vmem:[#allocation3 + $0x78] sm:$0xf] }
 0x451   : > { %v5459_v29 = vor.u32 %v5458_v32, %v5455_v25  ;;  %v5711_v3 = vrot.slane %v5709_v37, 4  ;;  %5032 = vst.msk [vmem:[#allocation5 + $0x50] sm:$0xf] %vm280_vm0, %v5000_v39  ;;  %v5611_v36 = vld [vmem:[#allocation3 + $0x1c] sm:$0xf]  ;;  %v8823_v55 = vrot.slane %v5607_v17, 9 }
 0x452   : > { %5532 = vrot.lane.b32.xlu2 %v5441_v59, %s9117_s30  ;;  %v4992_v5 = vld [vmem:[#allocation3 + $0x48] sm:$0xf]  ;;  %v5712_v2 = vrot.slane %v5609_v54, 5  ;;  %v5610_v18 = vld [vmem:[#allocation3 + $0x18] sm:$0xe]  ;;  %v5716_v19 = vrot.slane %v5611_v36, 5 }
 0x453   : > { %v5489_v47 = vpop.permute.xlu1 %5488  ;;  %v5460_v20 = vrot.slane %v5459_v29, 4  ;;  %5024 = vst.msk [vmem:[#allocation5 + $0x30] sm:$0xf] %vm280_vm0, %v4992_v5  ;;  %v5710_v42 = vsel %vm9656_vm14, %v8823_v55, %v5709_v37  ;;  %v5614_v43 = vld [vmem:[#allocation3 + $0x28] sm:$0xf]  ;;  %v8824_v52 = vrot.slane %v5610_v18, 9 }
 0x454   : > { %5578 = vst.msk [vmem:[#allocation5 + $0x18] sm:$0xf] %vm1466_vm15, %v5489_v47  ;;  %v5090_v11 = vld [vmem:[#allocation3 + $0xb8] sm:$0xf]  ;;  %v5713_v41 = vsel %vm9656_vm14, %v5711_v3, %v5712_v2  ;;  %v5612_v7 = vld [vmem:[#allocation3 + $0x20] sm:$0x1] }
 0x455   : > { %v5462_v57 = vshll.u32 %v5090_v11, 16  ;;  %v5466_v27 = vshrl.u32 %v5090_v11, 16  ;;  %v5091_v48 = vld [vmem:[#allocation3 + $0xbc] sm:$0x1]  ;;  %v5613_v13 = vld [vmem:[#allocation3 + $0x24] sm:$0xe]  ;;  %v5717_v45 = vsel %vm9656_vm14, %v8824_v52, %v5716_v19 }
 0x456   : > { %5534 = vrot.lane.b32.xlu0 %v5451_v22, %s9117_s30  ;;  %v5472_v33 = vshll.u32 %v5091_v48, 16  ;;  %v5718_v60 = vrot.slane %v5716_v19, 4  ;;  %v5723_v9 = vrot.slane %v5614_v43, 5  ;;  %v5001_v25 = vld [vmem:[#allocation3 + $0x7c] sm:$0xf]  ;;  %v5719_v59 = vrot.slane %v5612_v7, 5 }
 0x457   : > { %v5464_v46 = vrot.slane %v5462_v57, 5  ;;  %v5468_v44 = vrot.slane %v5466_v27, 4  ;;  %v5617_v32 = vld [vmem:[#allocation3 + $0x34] sm:$0xf]  ;;  %5033 = vst.msk [vmem:[#allocation5 + $0x54] sm:$0xf] %vm280_vm0, %v5001_v25 }
 0x458   : > { %v5474_v34 = vrot.slane %v5472_v33, 5  ;;  %v8825_v8 = vrot.slane %v5613_v13, 9  ;;  %v5615_v15 = vld [vmem:[#allocation3 + $0x2c] sm:$0x1]  ;;  %v5720_v61 = vsel %vm9656_vm14, %v5718_v60, %v5719_v59  ;;  %v5725_v14 = vrot.slane %v5723_v9, 4 }
 0x459   : > { %v5465_v63 = vsel %vm9239_vm10, %v5460_v20, %v5464_v46  ;;  %v5469_v40 = vor.u32 %v5468_v44, %v5464_v46  ;;  %v5730_v29 = vrot.slane %v5617_v32, 5  ;;  %v4996_v12 = vld [vmem:[#allocation3 + $0x60] sm:$0xf]  ;;  %v5726_v23 = vrot.slane %v5615_v15, 5  ;;  %v5616_v22 = vld [vmem:[#allocation3 + $0x30] sm:$0xe] }
 0x45a   : > { %5536 = vrot.lane.b32.xlu1 %v5465_v63, %s9117_s30  ;;  %v5724_v47 = vsel %vm9656_vm14, %v8825_v8, %v5723_v9  ;;  %5028 = vst.msk [vmem:[#allocation5 + $0x40] sm:$0xf] %vm280_vm0, %v4996_v12  ;;  %v5618_v57 = vld [vmem:[#allocation3 + $0x38] sm:$0x1]  ;;  %v5002_v27 = vld [vmem:[#allocation3 + $0x84] sm:$0xf] }
 0x45b   : > { %v5497_v58 = vpop.permute.xlu2 %5496  ;;  %v5470_v21 = vrot.slane %v5469_v40, 4  ;;  %v5727_v48 = vsel %vm9656_vm14, %v5725_v14, %v5726_v23  ;;  %v5732_v35 = vrot.slane %v5730_v29, 4  ;;  %v5620_v51 = vld [vmem:[#allocation3 + $0x40] sm:$0xf]  ;;  %v4994_v20 = vld [vmem:[#allocation3 + $0x54] sm:$0xf] }
 0x45c   : > { %5582 = vst.msk [vmem:[#allocation5 + $0x28] sm:$0xf] %vm1466_vm15, %v5497_v58  ;;  %v8826_v46 = vrot.slane %v5616_v22, 9  ;;  %v5733_v44 = vrot.slane %v5618_v57, 5  ;;  %v5619_v33 = vld [vmem:[#allocation3 + $0x3c] sm:$0xe] }
 0x45d   : > { %v5475_v26 = vsel %vm9239_vm10, %v5470_v21, %v5474_v34  ;;  %5034 = vst.msk [vmem:[#allocation5 + $0x58] sm:$0xf] %vm280_vm0, %v5002_v27  ;;  %v5737_v63 = vrot.slane %v5620_v51, 5  ;;  %v5623_v40 = vld [vmem:[#allocation3 + $0x4c] sm:$0xf]  ;;  %v8827_v28 = vrot.slane %v5619_v33, 9 }
 0x45e   : > { %5538 = vrot.lane.b32.xlu2 %v5475_v26, %s9117_s30  ;;  %5812 = vrot.lane.b32.xlu0 %v5703_v10, %s9118_s8  ;;  %5026 = vst.msk [vmem:[#allocation5 + $0x38] sm:$0xf] %vm280_vm0, %v4994_v20  ;;  %v5731_v16 = vsel %vm9656_vm14, %v8826_v46, %v5730_v29  ;;  %v5734_v49 = vsel %vm9656_vm14, %v5732_v35, %v5733_v44  ;;  %v5621_v58 = vld [vmem:[#allocation3 + $0x44] sm:$0x1]  ;;  %v5622_v21 = vld [vmem:[#allocation3 + $0x48] sm:$0xe] }
 0x45f   : > { %v4995_v34 = vld [vmem:[#allocation3 + $0x58] sm:$0xf]  ;;  %v5738_v10 = vsel %vm9656_vm14, %v8827_v28, %v5737_v63  ;;  %v5739_v30 = vrot.slane %v5737_v63, 4  ;;  %v5744_v53 = vrot.slane %v5623_v40, 5  ;;  %v5003_v26 = vld [vmem:[#allocation3 + $0x88] sm:$0xf] }
 0x460   : > { %v5626_v37 = vld [vmem:[#allocation3 + $0x58] sm:$0xf]  ;;  %5027 = vst.msk [vmem:[#allocation5 + $0x3c] sm:$0xf] %vm280_vm0, %v4995_v34  ;;  %v8828_v17 = vrot.slane %v5622_v21, 9 }
 0x461   : > { %5035 = vst.msk [vmem:[#allocation5 + $0x5c] sm:$0xf] %vm280_vm0, %v5003_v26  ;;  %v5624_v54 = vld [vmem:[#allocation3 + $0x50] sm:$0x1]  ;;  %v5746_v36 = vrot.slane %v5744_v53, 4  ;;  %v5751_v5 = vrot.slane %v5626_v37, 5 }
 0x462   : > { %5814 = vrot.lane.b32.xlu1 %v5706_v0, %s9118_s8  ;;  %v5740_v0 = vrot.slane %v5621_v58, 5  ;;  %v5745_v3 = vsel %vm9656_vm14, %v8828_v17, %v5744_v53  ;;  %v5625_v55 = vld [vmem:[#allocation3 + $0x54] sm:$0xe]  ;;  %v5627_v2 = vld [vmem:[#allocation3 + $0x5c] sm:$0x1] }
 0x463   : > { %v5493_v24 = vpop.permute.xlu0 %5492  ;;  %v5004_v18 = vld [vmem:[#allocation3 + $0x90] sm:$0xf]  ;;  %v5629_v19 = vld [vmem:[#allocation3 + $0x64] sm:$0xf]  ;;  %v8829_v52 = vrot.slane %v5625_v55, 9 }
 0x464   : > { %5580 = vst.msk [vmem:[#allocation5 + $0x20] sm:$0xf] %vm1466_vm15, %v5493_v24  ;;  %v5741_v39 = vsel %vm9656_vm14, %v5739_v30, %v5740_v0  ;;  %v5747_v24 = vrot.slane %v5624_v54, 5  ;;  %v5628_v7 = vld [vmem:[#allocation3 + $0x60] sm:$0xe]  ;;  %v5758_v60 = vrot.slane %v5629_v19, 5 }
 0x465   : > { %5036 = vst.msk [vmem:[#allocation5 + $0x60] sm:$0xf] %vm280_vm0, %v5004_v18  ;;  %v5752_v13 = vsel %vm9656_vm14, %v8829_v52, %v5751_v5  ;;  %v5632_v9 = vld [vmem:[#allocation3 + $0x70] sm:$0xf]  ;;  %v5005_v25 = vld [vmem:[#allocation3 + $0x94] sm:$0xf] }
 0x466   : > { %5816 = vrot.lane.b32.xlu2 %v5710_v42, %s9118_s8  ;;  %5818 = vrot.lane.b32.xlu0 %v5713_v41, %s9118_s8  ;;  %v5748_v42 = vsel %vm9656_vm14, %v5746_v36, %v5747_v24  ;;  %v5753_v41 = vrot.slane %v5751_v5, 4  ;;  %v8830_v32 = vrot.slane %v5628_v7, 9  ;;  %5037 = vst.msk [vmem:[#allocation5 + $0x64] sm:$0xf] %vm280_vm0, %v5005_v25  ;;  %v5630_v59 = vld [vmem:[#allocation3 + $0x68] sm:$0x1] }
 0x467   : > { %v5631_v8 = vld [vmem:[#allocation3 + $0x6c] sm:$0xe]  ;;  %v5635_v14 = vld [vmem:[#allocation3 + $0x7c] sm:$0xf]  ;;  %v4997_v29 = vld [vmem:[#allocation3 + $0x64] sm:$0xf] }
 0x468   : > { %v5495_v62 = vpop.permute.xlu1 %5494  ;;  %v5759_v15 = vsel %vm9656_vm14, %v8830_v32, %v5758_v60  ;;  %v5761_v12 = vrot.slane %v5630_v59, 5  ;;  %5029 = vst.msk [vmem:[#allocation5 + $0x44] sm:$0xf] %vm280_vm0, %v4997_v29  ;;  %v5633_v22 = vld [vmem:[#allocation3 + $0x74] sm:$0x1]  ;;  %v5772_v35 = vrot.slane %v5635_v14, 5 }
 0x469   : > { %5581 = vst.msk [vmem:[#allocation5 + $0x24] sm:$0xf] %vm1466_vm15, %v5495_v62  ;;  %v5754_v62 = vrot.slane %v5627_v2, 5  ;;  %v5008_v51 = vld [vmem:[#allocation3 + $0xa8] sm:$0xf]  ;;  %v5768_v20 = vrot.slane %v5633_v22, 5 }
 0x46a   : > { %5820 = vrot.lane.b32.xlu1 %v5717_v45, %s9118_s8  ;;  %5040 = vst.msk [vmem:[#allocation5 + $0x70] sm:$0xf] %vm280_vm0, %v5008_v51  ;;  %v5634_v46 = vld [vmem:[#allocation3 + $0x78] sm:$0xe]  ;;  %v5636_v44 = vld [vmem:[#allocation3 + $0x80] sm:$0x1] }
 0x46b   : > { %v5755_v45 = vsel %vm9656_vm14, %v5753_v41, %v5754_v62  ;;  %v5006_v33 = vld [vmem:[#allocation3 + $0x9c] sm:$0xf]  ;;  %v5638_v63 = vld [vmem:[#allocation3 + $0x88] sm:$0xf]  ;;  %v8832_v28 = vrot.slane %v5634_v46, 9  ;;  %v5775_v58 = vrot.slane %v5636_v44, 5 }
 0x46c   : > { %5038 = vst.msk [vmem:[#allocation5 + $0x68] sm:$0xf] %vm280_vm0, %v5006_v33  ;;  %v5637_v21 = vld [vmem:[#allocation3 + $0x84] sm:$0xe]  ;;  %v5779_v30 = vrot.slane %v5638_v63, 5 }
 0x46d   : > { %v5773_v34 = vsel %vm9656_vm14, %v8832_v28, %v5772_v35  ;;  %v5641_v53 = vld [vmem:[#allocation3 + $0x94] sm:$0xf]  ;;  %v5011_v26 = vld [vmem:[#allocation3 + $0xb8] sm:$0xf]  ;;  %v8833_v37 = vrot.slane %v5637_v21, 9 }
 0x46e   : > { %5822 = vrot.lane.b32.xlu2 %v5720_v61, %s9118_s8  ;;  %5824 = vrot.lane.b32.xlu0 %v5724_v47, %s9118_s8  ;;  %v5760_v61 = vrot.slane %v5758_v60, 4  ;;  %v5765_v47 = vrot.slane %v5632_v9, 5  ;;  %5043 = vst.msk [vmem:[#allocation5 + $0x7c] sm:$0xf] %vm280_vm0, %v5011_v26  ;;  %v5639_v17 = vld [vmem:[#allocation3 + $0x8c] sm:$0x1] }
 0x46f   : > { %v5640_v54 = vld [vmem:[#allocation3 + $0x90] sm:$0xe]  ;;  %v5781_v36 = vrot.slane %v5779_v30, 4  ;;  %v5786_v5 = vrot.slane %v5641_v53, 5  ;;  %v5644_v24 = vld [vmem:[#allocation3 + $0xa0] sm:$0xf] }
 0x470   : > { %v5503_v11 = vpop.permute.xlu2 %5502  ;;  %v5762_v57 = vsel %vm9656_vm14, %v5760_v61, %v5761_v12  ;;  %v5782_v55 = vrot.slane %v5639_v17, 5  ;;  %v8834_v18 = vrot.slane %v5640_v54, 9  ;;  %v5793_v52 = vrot.slane %v5644_v24, 5  ;;  %v5647_v25 = vld [vmem:[#allocation3 + $0xac] sm:$0xf] }
 0x471   : > { %5585 = vst.msk [vmem:[#allocation5 + $0x34] sm:$0xf] %vm1466_vm15, %v5503_v11  ;;  %v8831_v11 = vrot.slane %v5631_v8, 9  ;;  %v5800_v14 = vrot.slane %v5647_v25, 5  ;;  %v5650_v29 = vld [vmem:[#allocation3 + $0xb8] sm:$0xf] }
 0x472   : > { %5826 = vrot.lane.b32.xlu1 %v5727_v48, %s9118_s8  ;;  %v5767_v48 = vrot.slane %v5765_v47, 4  ;;  %v5783_v41 = vsel %vm9656_vm14, %v5781_v36, %v5782_v55  ;;  %v5787_v19 = vsel %vm9656_vm14, %v8834_v18, %v5786_v5  ;;  %v5795_v9 = vrot.slane %v5793_v52, 4  ;;  %v5648_v22 = vld [vmem:[#allocation3 + $0xb0] sm:$0x1]  ;;  %v5942_v26 = vld [vmem:[#allocation3 + $0x18] sm:$0xf] }
 0x473   : > { %v5766_v27 = vsel %vm9656_vm14, %v8831_v11, %v5765_v47  ;;  %v5807_v51 = vrot.slane %v5650_v29, 5  ;;  %v5803_v46 = vrot.slane %v5648_v22, 5  ;;  %v5944_v17 = vld [vmem:[#allocation3 + $0x24] sm:$0xf]  ;;  %v4455_v54 = vld [vmem:[#allocation3 + $0xc0] sm:$0x1] }
 0x474   : > { %v5945_v55 = vld [vmem:[#allocation3 + $0x28] sm:$0xf] }
 0x475   : > { %v9107_v18 = vld [vmem:[%s12462_s3] ss:$0 sm:$0xff] }
 0x476   : > { %5828 = vrot.lane.b32.xlu2 %v5731_v16, %s9118_s8  ;;  %5830 = vrot.lane.b32.xlu0 %v5734_v49, %s9118_s8  ;;  %v5769_v16 = vsel %vm9656_vm14, %v5767_v48, %v5768_v20  ;;  %v5774_v49 = vrot.slane %v5772_v35, 4  ;;  %v5802_v35 = vrot.slane %v5800_v14, 4  ;;  %v5010_v20 = vld [vmem:[#allocation3 + $0xb4] sm:$0xf] }
 0x477   : > { %5042 = vst.msk [vmem:[#allocation5 + $0x78] sm:$0xf] %vm280_vm0, %v5010_v20 }
 0x478   : > { %v5499_v31 = vpop.permute.xlu0 %5498 }
 0x479   : > { %5583 = vst.msk [vmem:[#allocation5 + $0x2c] sm:$0xf] %vm1466_vm15, %v5499_v31 }
 0x47a   : > { %5832 = vrot.lane.b32.xlu1 %v5738_v10, %s9118_s8  ;;  %v5776_v10 = vsel %vm9656_vm14, %v5774_v49, %v5775_v58  ;;  %v5804_v49 = vsel %vm9656_vm14, %v5802_v35, %v5803_v46  ;;  %v5951_v35 = vld [vmem:[#allocation3 + $0x4c] sm:$0xf] }
 0x47e   : > { %5834 = vrot.lane.b32.xlu2 %v5741_v39, %s9118_s8  ;;  %5836 = vrot.lane.b32.xlu0 %v5745_v3, %s9118_s8  ;;  %v5007_v39 = vld [vmem:[#allocation3 + $0xa0] sm:$0xf]  ;;  %v5780_v3 = vsel %vm9656_vm14, %v8833_v37, %v5779_v30 }
 0x47f   : > { %5039 = vst.msk [vmem:[#allocation5 + $0x6c] sm:$0xf] %vm280_vm0, %v5007_v39  ;;  %v4456_v39 = vsel %vm9177_vm3, 0, %v4455_v54 }
 0x480   : > { %4457 = vst [vmem:[#allocation3 + $0xc0] sm:$0x1] %v4456_v39  ;;  %v5960_v39 = vld [vmem:[#allocation3 + $0x84] sm:$0xf] }
 0x482   : > { %5838 = vrot.lane.b32.xlu1 %v5748_v42, %s9118_s8  ;;  %v5642_v42 = vld [vmem:[#allocation3 + $0x98] sm:$0x1] }
 0x483   : > { %v5501_v43 = vpop.permute.xlu1 %5500  ;;  %v5789_v62 = vrot.slane %v5642_v42, 5 }
 0x484   : > { %5584 = vst.msk [vmem:[#allocation5 + $0x30] sm:$0xf] %vm1466_vm15, %v5501_v43  ;;  %v5788_v43 = vrot.slane %v5786_v5, 4  ;;  %v9106_v5 = vld [vmem:[%s12461_s2] ss:$0 sm:$0xff] }
 0x486   : > { %5840 = vrot.lane.b32.xlu2 %v5752_v13, %s9118_s8  ;;  %5842 = vrot.lane.b32.xlu0 %v5755_v45, %s9118_s8  ;;  %v5643_v13 = vld [vmem:[#allocation3 + $0x9c] sm:$0xe]  ;;  %v5645_v45 = vld [vmem:[#allocation3 + $0xa4] sm:$0x1]  ;;  %v5790_v60 = vsel %vm9656_vm14, %v5788_v43, %v5789_v62  ;;  %v5947_v43 = vld [vmem:[#allocation3 + $0x34] sm:$0xf] }
 0x487   : > { %v8835_v32 = vrot.slane %v5643_v13, 9  ;;  %v5796_v8 = vrot.slane %v5645_v45, 5 }
 0x489   : > { %v5794_v61 = vsel %vm9656_vm14, %v8835_v32, %v5793_v52  ;;  %v5797_v47 = vsel %vm9656_vm14, %v5795_v9, %v5796_v8  ;;  %v4509_v52 = vld [vmem:[#allocation3 + $0xc8] sm:$0x1]  ;;  %v5948_v32 = vld [vmem:[#allocation3 + $0x3c] sm:$0xf] }
 0x48a   : > { %5844 = vrot.lane.b32.xlu1 %v5759_v15, %s9118_s8  ;;  %v5646_v15 = vld [vmem:[#allocation3 + $0xa8] sm:$0xe] }
 0x48b   : > { %v8836_v12 = vrot.slane %v5646_v15, 9 }
 0x48c   : > { %v5509_v23 = vpop.permute.xlu2 %5508 }
 0x48d   : > { %5588 = vst.msk [vmem:[#allocation5 + $0x40] sm:$0xf] %vm1466_vm15, %v5509_v23  ;;  %v5801_v48 = vsel %vm9656_vm14, %v8836_v12, %v5800_v14  ;;  %v5949_v12 = vld [vmem:[#allocation3 + $0x40] sm:$0xf] }
 0x48e   : > { %5846 = vrot.lane.b32.xlu2 %v5762_v57, %s9118_s8  ;;  %5848 = vrot.lane.b32.xlu0 %v5766_v27, %s9118_s8  ;;  %v5649_v57 = vld [vmem:[#allocation3 + $0xb4] sm:$0xe]  ;;  %v5009_v27 = vld [vmem:[#allocation3 + $0xac] sm:$0xf] }
 0x48f   : > { %v8837_v33 = vrot.slane %v5649_v57, 9  ;;  %5041 = vst.msk [vmem:[#allocation5 + $0x74] sm:$0xf] %vm280_vm0, %v5009_v27 }
 0x491   : > { %v5808_v63 = vsel %vm9656_vm14, %v8837_v33, %v5807_v51 }
 0x492   : > { %5850 = vrot.lane.b32.xlu1 %v5769_v16, %s9118_s8  ;;  %v5651_v16 = vld [vmem:[#allocation3 + $0xbc] sm:$0x1] }
 0x493   : > { %v5505_v40 = vpop.permute.xlu0 %5504  ;;  %v5810_v28 = vrot.slane %v5651_v16, 5 }
 0x494   : > { %v5515_v31 = vpop.permute.xlu2 %5514  ;;  %5586 = vst.msk [vmem:[#allocation5 + $0x38] sm:$0xf] %vm1466_vm15, %v5505_v40  ;;  %v5809_v40 = vrot.slane %v5807_v51, 4 }
 0x495   : > { %5591 = vst.msk [vmem:[#allocation5 + $0x4c] sm:$0xf] %vm1466_vm15, %v5515_v31 }
 0x496   : > { %5852 = vrot.lane.b32.xlu2 %v5773_v34, %s9118_s8  ;;  %5854 = vrot.lane.b32.xlu0 %v5776_v10, %s9118_s8  ;;  %v5811_v21 = vsel %vm9656_vm14, %v5809_v40, %v5810_v28  ;;  %v5940_v34 = vld [vmem:[#allocation3 + $0xc] sm:$0xf]  ;;  %v5941_v10 = vld [vmem:[#allocation3 + $0x10] sm:$0xf] }
 0x498   : > { %v5507_v0 = vpop.permute.xlu1 %5506 }
 0x499   : > { %5587 = vst.msk [vmem:[#allocation5 + $0x3c] sm:$0xf] %vm1466_vm15, %v5507_v0  ;;  %v5943_v0 = vld [vmem:[#allocation3 + $0x1c] sm:$0xf] }
 0x49a   : > { %5856 = vrot.lane.b32.xlu1 %v5780_v3, %s9118_s8 }
 0x49c   : > { %v5521_v2 = vpop.permute.xlu2 %5520 }
 0x49d   : > { %5594 = vst.msk [vmem:[#allocation5 + $0x58] sm:$0xf] %vm1466_vm15, %v5521_v2 }
 0x49e   : > { %5858 = vrot.lane.b32.xlu2 %v5783_v41, %s9118_s8  ;;  %5860 = vrot.lane.b32.xlu0 %v5787_v19, %s9118_s8  ;;  %v5946_v19 = vld [vmem:[#allocation3 + $0x30] sm:$0xf] }
 0x4a0   : > { %v5513_v7 = vpop.permute.xlu1 %5512 }
 0x4a1   : > { %5590 = vst.msk [vmem:[#allocation5 + $0x48] sm:$0xf] %vm1466_vm15, %v5513_v7  ;;  %v4510_v7 = vsel %vm9190_vm6, 0, %v4509_v52  ;;  %v6132_v52 = vld [vmem:[#allocation3 + $0xc] sm:$0xf] }
 0x4a2   : > { %5862 = vrot.lane.b32.xlu1 %v5790_v60, %s9118_s8  ;;  %4511 = vst [vmem:[#allocation3 + $0xc8] sm:$0x1] %v4510_v7 }
 0x4a4   : > { %v5527_v59 = vpop.permute.xlu2 %5526 }
 0x4a5   : > { %5597 = vst.msk [vmem:[#allocation5 + $0x64] sm:$0xf] %vm1466_vm15, %v5527_v59 }
 0x4a6   : > { %5864 = vrot.lane.b32.xlu2 %v5794_v61, %s9118_s8  ;;  %5866 = vrot.lane.b32.xlu0 %v5797_v47, %s9118_s8  ;;  %v4973_v61 = vld [vmem:[#allocation3 + $0xc0] sm:$0xf] }
 0x4a8   : > { %v5519_v23 = vpop.permute.xlu1 %5518  ;;  %v5511_v11 = vpop.permute.xlu0 %5510 }
 0x4a9   : > { %5593 = vst.msk [vmem:[#allocation5 + $0x54] sm:$0xf] %vm1466_vm15, %v5519_v23  ;;  %v5950_v23 = vld [vmem:[#allocation3 + $0x48] sm:$0xf] }
 0x4aa   : > { %5868 = vrot.lane.b32.xlu1 %v5801_v48, %s9118_s8  ;;  %5589 = vst.msk [vmem:[#allocation5 + $0x44] sm:$0xf] %vm1466_vm15, %v5511_v11 }
 0x4ac   : > { %v5533_v44 = vpop.permute.xlu2 %5532 }
 0x4ad   : > { %5600 = vst.msk [vmem:[#allocation5 + $0x70] sm:$0xf] %vm1466_vm15, %v5533_v44  ;;  %v4977_v44 = vld [vmem:[#allocation3 + $0xc8] sm:$0x1] }
 0x4ae   : > { %5870 = vrot.lane.b32.xlu2 %v5804_v49, %s9118_s8  ;;  %5872 = vrot.lane.b32.xlu0 %v5808_v63, %s9118_s8  ;;  %v5952_v49 = vld [vmem:[#allocation3 + $0x54] sm:$0xf]  ;;  %v5953_v63 = vld [vmem:[#allocation3 + $0x58] sm:$0xf] }
 0x4b0   : > { %v5525_v31 = vpop.permute.xlu1 %5524  ;;  %v5517_v58 = vpop.permute.xlu0 %5516 }
 0x4b1   : > { %5596 = vst.msk [vmem:[#allocation5 + $0x60] sm:$0xf] %vm1466_vm15, %v5525_v31 }
 0x4b2   : > { %5874 = vrot.lane.b32.xlu1 %v5811_v21, %s9118_s8  ;;  %5592 = vst.msk [vmem:[#allocation5 + $0x50] sm:$0xf] %vm1466_vm15, %v5517_v58  ;;  %v5954_v58 = vld [vmem:[#allocation3 + $0x60] sm:$0xf] }
 0x4b6   : > { %6004 = vrot.lane.b32.xlu2 %v5940_v34, %s9119_s9  ;;  %6006 = vrot.lane.b32.xlu0 %v5941_v10, %s9119_s9  ;;  %v5956_v10 = vld [vmem:[#allocation3 + $0x6c] sm:$0xf] }
 0x4b7   : > { %v4291_v3 = vpop.f32.mrf.mxu2 }
 0x4b8   : > { %v5539_v30 = vpop.permute.xlu2 %5538  ;;  %v5531_v53 = vpop.permute.xlu1 %5530  ;;  %v4330_v24 = vmul.f32 %v9106_v5, %v4291_v3 }
 0x4b9   : > { %5603 = vst.msk [vmem:[#allocation5 + $0x7c] sm:$0xf] %vm1466_vm15, %v5539_v30  ;;  %v5523_v37 = vpop.permute.xlu0 %5522 }
 0x4ba   : > { %5599 = vst.msk [vmem:[#allocation5 + $0x6c] sm:$0xf] %vm1466_vm15, %v5531_v53  ;;  %6008 = vrot.lane.b32.xlu1 %v5942_v26, %s9119_s9  ;;  %v4366_v42 = vadd.f32 %v9107_v18, %v4330_v24  ;;  %v5957_v53 = vld [vmem:[#allocation3 + $0x70] sm:$0xf] }
 0x4bb   : > { %5595 = vst.msk [vmem:[#allocation5 + $0x5c] sm:$0xf] %vm1466_vm15, %v5523_v37  ;;  %v5962_v24 = vld [vmem:[#allocation3 + $0x90] sm:$0xf] }
 0x4bc   : > { %v4398_v41 = vmax.f32 %v4366_v42, 0.0 }
 0x4be   : > { %6010 = vrot.lane.b32.xlu2 %v5943_v0, %s9119_s9  ;;  %6012 = vrot.lane.b32.xlu0 %v5944_v17, %s9119_s9  ;;  %v4545_v62 = vpack.c.bf16 %v4398_v41, %v4398_v41  ;;  %v5958_v0 = vld [vmem:[#allocation3 + $0x78] sm:$0xf]  ;;  %v5959_v17 = vld [vmem:[#allocation3 + $0x7c] sm:$0xf] }
 0x4bf   : > { %v4293_v13 = vpop.f32.mrf.mxu2  ;;  %v5964_v41 = vld [vmem:[#allocation3 + $0x9c] sm:$0xf] }
 0x4c0   : > { %v5817_v36 = vpop.permute.xlu2 %5816  ;;  %v4803_v60 = vshrl.u32 %v4545_v62, 16  ;;  %v4806_v9 = vshll.u32 %v4545_v62, 16  ;;  %v4331_v25 = vmul.f32 %v9106_v5, %v4293_v13  ;;  %v5961_v5 = vld [vmem:[#allocation3 + $0x88] sm:$0xf]  ;;  %v6133_v13 = vld [vmem:[#allocation3 + $0x10] sm:$0xf] }
 0x4c1   : > { %5910 = vst.msk [vmem:[#allocation5 + $0x8] sm:$0xf] %vm1806_vm1, %v5817_v36  ;;  %v5529_v2 = vpop.permute.xlu0 %5528  ;;  %v5966_v62 = vld [vmem:[#allocation3 + $0xa8] sm:$0xf] }
 0x4c2   : > { %6014 = vrot.lane.b32.xlu1 %v5945_v55, %s9119_s9  ;;  %5598 = vst.msk [vmem:[#allocation5 + $0x68] sm:$0xf] %vm1466_vm15, %v5529_v2  ;;  %v4805_v8 = vrot.slane %v4803_v60, 7  ;;  %v4367_v15 = vadd.f32 %v9107_v18, %v4331_v25  ;;  %v5963_v2 = vld [vmem:[#allocation3 + $0x94] sm:$0xf]  ;;  %v6184_v60 = vshll.u32 %v6132_v52, 16 }
 0x4c3   : > { %v6190_v25 = vshll.u32 %v6133_v13, 16 }
 0x4c4   : > { %v4808_v14 = vor.u32 %v4806_v9, %v4805_v8  ;;  %v4399_v29 = vmax.f32 %v4367_v15, 0.0  ;;  %v4809_v20 = vrot.slane %v4805_v8, 4  ;;  %v6136_v8 = vld [vmem:[#allocation3 + $0x1c] sm:$0xf]  ;;  %v5967_v15 = vld [vmem:[#allocation3 + $0xac] sm:$0xf] }
 0x4c6   : > { %6016 = vrot.lane.b32.xlu2 %v5946_v19, %s9119_s9  ;;  %6018 = vrot.lane.b32.xlu0 %v5947_v43, %s9119_s9  ;;  %v4974_v11 = vsel %vm9247_vm11, %v4808_v14, %v4973_v61  ;;  %v4546_v22 = vpack.c.bf16 %v4399_v29, %v4399_v29  ;;  %v5965_v19 = vld [vmem:[#allocation3 + $0xa0] sm:$0xf]  ;;  %v5968_v61 = vld [vmem:[#allocation3 + $0xb4] sm:$0xf]  ;;  %v6186_v14 = vrot.slane %v6184_v60, 5 }
 0x4c7   : > { %4975 = vst [vmem:[#allocation3 + $0xc0] sm:$0xf] %v4974_v11  ;;  %v6192_v11 = vrot.slane %v6190_v25, 5 }
 0x4c8   : > { %v5823_v45 = vpop.permute.xlu2 %5822  ;;  %v4811_v27 = vshrl.u32 %v4546_v22, 16  ;;  %v4814_v48 = vshll.u32 %v4546_v22, 16 }
 0x4c9   : > { %5913 = vst.msk [vmem:[#allocation5 + $0x14] sm:$0xf] %vm1806_vm1, %v5823_v45  ;;  %v5535_v59 = vpop.permute.xlu0 %5534  ;;  %v6181_v45 = vshrl.u32 %v6132_v52, 16 }
 0x4ca   : > { %6020 = vrot.lane.b32.xlu1 %v5948_v32, %s9119_s9  ;;  %5601 = vst.msk [vmem:[#allocation5 + $0x74] sm:$0xf] %vm1466_vm15, %v5535_v59  ;;  %v4813_v46 = vrot.slane %v4811_v27, 7  ;;  %v6194_v32 = vshrl.u32 %v6133_v13, 16  ;;  %v6135_v59 = vld [vmem:[#allocation3 + $0x18] sm:$0xf] }
 0x4cb   : > { %v6205_v29 = vshrl.u32 %v6135_v59, 16  ;;  %v6218_v27 = vshrl.u32 %v6136_v8, 16 }
 0x4cc   : > { %v5537_v47 = vpop.permute.xlu1 %5536  ;;  %v4816_v16 = vor.u32 %v4814_v48, %v4813_v46  ;;  %v4818_v56 = vrot.slane %v4813_v46, 4  ;;  %v6196_v22 = vrot.slane %v6194_v32, 4  ;;  %v5969_v48 = vld [vmem:[#allocation3 + $0xb8] sm:$0xf] }
 0x4cd   : > { %5602 = vst.msk [vmem:[#allocation5 + $0x78] sm:$0xf] %vm1466_vm15, %v5537_v47  ;;  %v6183_v47 = vrot.slane %v6181_v45, 4  ;;  %v6207_v46 = vrot.slane %v6205_v29, 4  ;;  %v6144_v45 = vld [vmem:[#allocation3 + $0x3c] sm:$0xf] }
 0x4ce   : > { %6022 = vrot.lane.b32.xlu2 %v5949_v12, %s9119_s9  ;;  %6024 = vrot.lane.b32.xlu0 %v5950_v23, %s9119_s9  ;;  %v4817_v40 = vsel %vm9228_vm9, %v4809_v20, %v4816_v16  ;;  %v4978_v28 = vsel %vm9177_vm3, %v4818_v56, %v4977_v44  ;;  %v6208_v12 = vshll.u32 %v6135_v59, 16  ;;  %v6134_v56 = vld [vmem:[#allocation3 + $0x14] sm:$0x1]  ;;  %v6145_v59 = vld [vmem:[#allocation3 + $0x40] sm:$0xf]  ;;  %v6277_v29 = vshrl.u32 %v6144_v45, 16 }
 0x4cf   : > { %4976 = vst.msk [vmem:[#allocation3 + $0xc4] sm:$0xf] %vm280_vm0, %v4817_v40  ;;  %v6187_v20 = vor.u32 %v6186_v14, %v6183_v47  ;;  %vm12480_vm0 = vcmask 1041408  }
 0x4d0   : > { %v5829_v57 = vpop.permute.xlu2 %5828  ;;  %4979 = vst [vmem:[#allocation3 + $0xc8] sm:$0x1] %v4978_v28  ;;  %v6210_v44 = vrot.slane %v6208_v12, 5  ;;  %v6280_v12 = vshll.u32 %v6144_v45, 16 }
 0x4d1   : > { %5916 = vst.msk [vmem:[#allocation5 + $0x20] sm:$0xf] %vm1806_vm1, %v5829_v57  ;;  %v5813_v51 = vpop.permute.xlu0 %5812  ;;  %v6214_v57 = vshll.u32 %v6136_v8, 16 }
 0x4d2   : > { %6026 = vrot.lane.b32.xlu1 %v5951_v35, %s9119_s9  ;;  %5908 = vst.msk [vmem:[#allocation5] sm:$0xf] %vm1806_vm1, %v5813_v51  ;;  %v6139_v51 = vld [vmem:[#allocation3 + $0x28] sm:$0xf] }
 0x4d3   : > { %v6238_v40 = vshll.u32 %v6139_v51, 16  ;;  %v6242_v28 = vshrl.u32 %v6139_v51, 16 }
 0x4d4   : > { %v5815_v33 = vpop.permute.xlu1 %5814 }
 0x4d5   : > { %5909 = vst.msk [vmem:[#allocation5 + $0x4] sm:$0xf] %vm1806_vm1, %v5815_v33  ;;  %v6138_v33 = vld [vmem:[#allocation3 + $0x24] sm:$0xf] }
 0x4d6   : > { %6028 = vrot.lane.b32.xlu2 %v5952_v49, %s9119_s9  ;;  %6030 = vrot.lane.b32.xlu0 %v5953_v63, %s9119_s9  ;;  %v6216_v49 = vrot.slane %v6214_v57, 5  ;;  %v6220_v63 = vrot.slane %v6218_v27, 4  ;;  %v6290_v57 = vshrl.u32 %v6145_v59, 16 }
 0x4d8   : > { %v5835_v31 = vpop.permute.xlu2 %5834 }
 0x4d9   : > { %5919 = vst.msk [vmem:[#allocation5 + $0x2c] sm:$0xf] %vm1806_vm1, %v5835_v31  ;;  %v5819_v21 = vpop.permute.xlu0 %5818  ;;  %v5970_v31 = vld [vmem:[#allocation3 + $0xc0] sm:$0xf] }
 0x4da   : > { %6032 = vrot.lane.b32.xlu1 %v5954_v58, %s9119_s9  ;;  %5911 = vst.msk [vmem:[#allocation5 + $0xc] sm:$0xf] %vm1806_vm1, %v5819_v21  ;;  %v5971_v58 = vld [vmem:[#allocation3 + $0xc4] sm:$0xf]  ;;  %v6197_v21 = vor.u32 %v6196_v22, %v6192_v11  ;;  %v6286_v22 = vshll.u32 %v6145_v59, 16 }
 0x4dc   : > { %v5821_v34 = vpop.permute.xlu1 %5820 }
 0x4dd   : > { %5912 = vst.msk [vmem:[#allocation5 + $0x10] sm:$0xf] %vm1806_vm1, %v5821_v34  ;;  %v6137_v34 = vld [vmem:[#allocation3 + $0x20] sm:$0x1] }
 0x4de   : > { %6034 = vrot.lane.b32.xlu2 %v5955_v38, %s9119_s9  ;;  %6036 = vrot.lane.b32.xlu0 %v5956_v10, %s9119_s9  ;;  %v6229_v38 = vshrl.u32 %v6138_v33, 16  ;;  %v6232_v10 = vshll.u32 %v6138_v33, 16 }
 0x4e0   : > { %v5841_v30 = vpop.permute.xlu2 %5840 }
 0x4e1   : > { %5922 = vst.msk [vmem:[#allocation5 + $0x38] sm:$0xf] %vm1806_vm1, %v5841_v30  ;;  %v5825_v26 = vpop.permute.xlu0 %5824  ;;  %v6188_v30 = vrot.slane %v6187_v20, 4  ;;  %v6148_v20 = vld [vmem:[#allocation3 + $0x4c] sm:$0xf] }
 0x4e2   : > { %6038 = vrot.lane.b32.xlu1 %v5957_v53, %s9119_s9  ;;  %5914 = vst.msk [vmem:[#allocation5 + $0x18] sm:$0xf] %vm1806_vm1, %v5825_v26  ;;  %v6200_v53 = vshll.u32 %v6134_v56, 16  ;;  %v6211_v26 = vor.u32 %v6210_v44, %v6207_v46  ;;  %v6282_v56 = vrot.slane %v6280_v12, 5 }
 0x4e4   : > { %v5827_v37 = vpop.permute.xlu1 %5826 }
 0x4e5   : > { %5915 = vst.msk [vmem:[#allocation5 + $0x1c] sm:$0xf] %vm1806_vm1, %v5827_v37 }
 0x4e6   : > { %6040 = vrot.lane.b32.xlu2 %v5958_v0, %s9119_s9  ;;  %6042 = vrot.lane.b32.xlu0 %v5959_v17, %s9119_s9  ;;  %v6221_v0 = vor.u32 %v6220_v63, %v6216_v49  ;;  %v11620_v17 = vrot.slane %v6238_v40, 5  ;;  %v6143_v40 = vld [vmem:[#allocation3 + $0x38] sm:$0x1] }
 0x4e8   : > { %v5847_v54 = vpop.permute.xlu2 %5846 }
 0x4e9   : > { %5925 = vst.msk [vmem:[#allocation5 + $0x44] sm:$0xf] %vm1806_vm1, %v5847_v54  ;;  %v5831_v3 = vpop.permute.xlu0 %5830  ;;  %v6244_v54 = vrot.slane %v6242_v28, 4  ;;  %v6288_v28 = vrot.slane %v6286_v22, 5 }
 0x4ea   : > { %6044 = vrot.lane.b32.xlu1 %v5960_v39, %s9119_s9  ;;  %5917 = vst.msk [vmem:[#allocation5 + $0x24] sm:$0xf] %vm1806_vm1, %v5831_v3  ;;  %v6141_v39 = vld [vmem:[#allocation3 + $0x30] sm:$0xf]  ;;  %v6193_v3 = vsel %vm9239_vm10, %v6188_v30, %v6192_v11  ;;  %v6146_v30 = vld [vmem:[#allocation3 + $0x44] sm:$0x1] }
 0x4eb   : > { %v6256_v52 = vshll.u32 %v6141_v39, 16  ;;  %v6245_v13 = vor.u32 %v6244_v54, %v11620_v17 }
 0x4ec   : > { %v5833_v36 = vpop.permute.xlu1 %5832 }
 0x4ed   : > { %5918 = vst.msk [vmem:[#allocation5 + $0x28] sm:$0xf] %vm1806_vm1, %v5833_v36  ;;  %v6258_v14 = vrot.slane %v6256_v52, 5  ;;  %v6246_v11 = vrot.slane %v6245_v13, 4 }
 0x4ee   : > { %6046 = vrot.lane.b32.xlu2 %v5961_v5, %s9119_s9  ;;  %6048 = vrot.lane.b32.xlu0 %v5962_v24, %s9119_s9  ;;  %v6198_v5 = vrot.slane %v6197_v21, 4  ;;  %v6224_v24 = vshll.u32 %v6137_v34, 16  ;;  %v6314_v21 = vshrl.u32 %v6148_v20, 16 }
 0x4f0   : > { %v5853_v55 = vpop.permute.xlu2 %5852  ;;  %v6226_v8 = vrot.slane %v6224_v24, 5 }
 0x4f1   : > { %5928 = vst.msk [vmem:[#allocation5 + $0x50] sm:$0xf] %vm1806_vm1, %v5853_v55  ;;  %v5837_v18 = vpop.permute.xlu0 %5836  ;;  %v6231_v55 = vrot.slane %v6229_v38, 4 }
 0x4f2   : > { %6050 = vrot.lane.b32.xlu1 %v5963_v2, %s9119_s9  ;;  %5920 = vst.msk [vmem:[#allocation5 + $0x30] sm:$0xf] %vm1806_vm1, %v5837_v18  ;;  %v6234_v2 = vrot.slane %v6232_v10, 5  ;;  %v6142_v18 = vld [vmem:[#allocation3 + $0x34] sm:$0xf] }
 0x4f3   : > { %v6262_v25 = vshll.u32 %v6142_v18, 16  ;;  %v6266_v32 = vshrl.u32 %v6142_v18, 16  ;;  %v6296_v18 = vshll.u32 %v6146_v30, 16 }
 0x4f4   : > { %v5839_v42 = vpop.permute.xlu1 %5838 }
 0x4f5   : > { %5921 = vst.msk [vmem:[#allocation5 + $0x34] sm:$0xf] %vm1806_vm1, %v5839_v42  ;;  %v6202_v42 = vrot.slane %v6200_v53, 5  ;;  %v6268_v51 = vrot.slane %v6266_v32, 4 }
 0x4f6   : > { %6052 = vrot.lane.b32.xlu2 %v5964_v41, %s9119_s9  ;;  %6054 = vrot.lane.b32.xlu0 %v5965_v19, %s9119_s9  ;;  %v6212_v41 = vrot.slane %v6211_v26, 4  ;;  %v6140_v19 = vld [vmem:[#allocation3 + $0x2c] sm:$0x1] }
 0x4f7   : > { %v6203_v60 = vsel %vm9239_vm10, %v6198_v5, %v6202_v42  ;;  %v6316_v5 = vrot.slane %v6314_v21, 4 }
 0x4f8   : > { %v5859_v43 = vpop.permute.xlu2 %5858 }
 0x4f9   : > { %5931 = vst.msk [vmem:[#allocation5 + $0x5c] sm:$0xf] %vm1806_vm1, %v5859_v43  ;;  %v5843_v7 = vpop.permute.xlu0 %5842  ;;  %v6253_v43 = vshrl.u32 %v6141_v39, 16 }
 0x4fa   : > { %6056 = vrot.lane.b32.xlu1 %v5966_v62, %s9119_s9  ;;  %5923 = vst.msk [vmem:[#allocation5 + $0x3c] sm:$0xf] %vm1806_vm1, %v5843_v7  ;;  %v6222_v7 = vrot.slane %v6221_v0, 4  ;;  %v6272_v0 = vshll.u32 %v6143_v40, 16 }
 0x4fb   : > { %v6255_v47 = vrot.slane %v6253_v43, 4 }
 0x4fc   : > { %v5845_v9 = vpop.permute.xlu1 %5844  ;;  %v6227_v27 = vsel %vm9239_vm10, %v6222_v7, %v6226_v8  ;;  %v6274_v43 = vrot.slane %v6272_v0, 5 }
 0x4fd   : > { %5924 = vst.msk [vmem:[#allocation5 + $0x40] sm:$0xf] %vm1806_vm1, %v5845_v9  ;;  %v6217_v9 = vsel %vm9239_vm10, %v6212_v41, %v6216_v49  ;;  %v6259_v33 = vor.u32 %v6258_v14, %v6255_v47  ;;  %v6147_v49 = vld [vmem:[#allocation3 + $0x48] sm:$0xf] }
 0x4fe   : > { %6058 = vrot.lane.b32.xlu2 %v5967_v15, %s9119_s9  ;;  %6060 = vrot.lane.b32.xlu0 %v5968_v61, %s9119_s9  ;;  %v6235_v15 = vor.u32 %v6234_v2, %v6231_v55  ;;  %v6248_v61 = vshll.u32 %v6140_v19, 16  ;;  %v6301_v53 = vshrl.u32 %v6147_v49, 16  ;;  %v6304_v26 = vshll.u32 %v6147_v49, 16  ;;  %v6151_v19 = vld [vmem:[#allocation3 + $0x58] sm:$0xf] }
 0x4ff   : > { %v6334_v8 = vshll.u32 %v6151_v19, 16 }
 0x500   : > { %v5865_v23 = vpop.permute.xlu2 %5864  ;;  %v6236_v46 = vrot.slane %v6235_v15, 4  ;;  %v6250_v44 = vrot.slane %v6248_v61, 5  ;;  %v6303_v42 = vrot.slane %v6301_v53, 4  ;;  %v6306_v41 = vrot.slane %v6304_v26, 5 }
 0x501   : > { %5934 = vst.msk [vmem:[#allocation5 + $0x68] sm:$0xf] %vm1806_vm1, %v5865_v23  ;;  %v5849_v35 = vpop.permute.xlu0 %5848  ;;  %v6338_v15 = vshrl.u32 %v6151_v19, 16  ;;  %v6298_v61 = vrot.slane %v6296_v18, 5 }
 0x502   : > { %6062 = vrot.lane.b32.xlu1 %v5969_v48, %s9119_s9  ;;  %5926 = vst.msk [vmem:[#allocation5 + $0x48] sm:$0xf] %vm1806_vm1, %v5849_v35  ;;  %v6264_v35 = vrot.slane %v6262_v25, 5  ;;  %v6241_v34 = vsel %vm9239_vm10, %v6236_v46, %v11620_v17  ;;  %v6251_v38 = vsel %vm9239_vm10, %v6246_v11, %v6250_v44  ;;  %v6150_v17 = vld [vmem:[#allocation3 + $0x54] sm:$0xf]  ;;  %v6307_v47 = vor.u32 %v6306_v41, %v6303_v42 }
 0x503   : > { %v6325_v7 = vshrl.u32 %v6150_v17, 16  ;;  %v6328_v13 = vshll.u32 %v6150_v17, 16  ;;  %v6153_v25 = vld [vmem:[#allocation3 + $0x60] sm:$0xf]  ;;  %v6336_v46 = vrot.slane %v6334_v8, 5  ;;  %v6340_v44 = vrot.slane %v6338_v15, 4 }
 0x504   : > { %v5851_v16 = vpop.permute.xlu1 %5850  ;;  %v6269_v10 = vor.u32 %v6268_v51, %v6264_v35  ;;  %v6349_v11 = vshrl.u32 %v6153_v25, 16  ;;  %v6352_v22 = vshll.u32 %v6153_v25, 16  ;;  %v6157_v51 = vld [vmem:[#allocation3 + $0x70] sm:$0xf]  ;;  %v6155_v17 = vld [vmem:[#allocation3 + $0x68] sm:$0x1] }
 0x505   : > { %5927 = vst.msk [vmem:[#allocation5 + $0x4c] sm:$0xf] %vm1806_vm1, %v5851_v16  ;;  %v6279_v16 = vrot.slane %v6277_v29, 4  ;;  %v6154_v29 = vld [vmem:[#allocation3 + $0x64] sm:$0xf]  ;;  %v6327_v12 = vrot.slane %v6325_v7, 4  ;;  %v6341_v26 = vor.u32 %v6340_v44, %v6336_v46 }
 0x506   : > { %6064 = vrot.lane.b32.xlu2 %v5970_v31, %s9119_s9  ;;  %6066 = vrot.lane.b32.xlu0 %v5971_v58, %s9119_s9  ;;  %v6292_v31 = vrot.slane %v6290_v57, 4  ;;  %v6310_v58 = vshll.u32 %v6148_v20, 16  ;;  %v6270_v2 = vrot.slane %v6269_v10, 4  ;;  %v6156_v57 = vld [vmem:[#allocation3 + $0x6c] sm:$0xf]  ;;  %v6382_v10 = vshll.u32 %v6157_v51, 16 }
 0x507   : > { %v6283_v54 = vor.u32 %v6282_v56, %v6279_v16  ;;  %v6362_v16 = vshrl.u32 %v6154_v29, 16  ;;  %v6308_v56 = vrot.slane %v6307_v47, 4  ;;  %v6373_v49 = vshrl.u32 %v6156_v57, 16  ;;  %v6162_v25 = vld [vmem:[#allocation3 + $0x84] sm:$0xf] }
 0x508   : > { %v5871_v37 = vpop.permute.xlu2 %5870  ;;  %v6275_v32 = vsel %vm9239_vm10, %v6270_v2, %v6274_v43  ;;  %v6386_v30 = vshrl.u32 %v6157_v51, 16  ;;  %v11676_v2 = vrot.slane %v6382_v10, 5  ;;  %v6342_v19 = vrot.slane %v6341_v26, 4 }
 0x509   : > { %5937 = vst.msk [vmem:[#allocation5 + $0x74] sm:$0xf] %vm1806_vm1, %v5871_v37  ;;  %v5855_v36 = vpop.permute.xlu0 %5854  ;;  %v6260_v37 = vrot.slane %v6259_v33, 4  ;;  %v6284_v52 = vrot.slane %v6283_v54, 4  ;;  %v6358_v33 = vshll.u32 %v6154_v29, 16  ;;  %v6364_v0 = vrot.slane %v6362_v16, 4 }
 0x50a   : > { %6564 = vrot.lane.b32.xlu1 %v6193_v3, %s9120_s10  ;;  %5929 = vst.msk [vmem:[#allocation5 + $0x54] sm:$0xf] %vm1806_vm1, %v5855_v36  ;;  %v6293_v3 = vor.u32 %v6292_v31, %v6288_v28  ;;  %v11648_v36 = vrot.slane %v6310_v58, 5  ;;  %v6354_v31 = vrot.slane %v6352_v22, 5  ;;  %v6388_v18 = vrot.slane %v6386_v30, 4 }
 0x50b   : > { %v6265_v24 = vsel %vm9239_vm10, %v6260_v37, %v6264_v35  ;;  %v6289_v59 = vsel %vm9239_vm10, %v6284_v52, %v6288_v28  ;;  %v6351_v28 = vrot.slane %v6349_v11, 4  ;;  %v6360_v37 = vrot.slane %v6358_v33, 5  ;;  %v6160_v52 = vld [vmem:[#allocation3 + $0x7c] sm:$0xf]  ;;  %v6165_v30 = vld [vmem:[#allocation3 + $0x90] sm:$0xf] }
 0x50c   : > { %v5857_v62 = vpop.permute.xlu1 %5856  ;;  %v6313_v21 = vsel %vm9239_vm10, %v6308_v56, %v11648_v36  ;;  %v6389_v8 = vor.u32 %v6388_v18, %v11676_v2  ;;  %v6406_v15 = vshll.u32 %v6160_v52, 16  ;;  %v6421_v22 = vshrl.u32 %v6162_v25, 16 }
 0x50d   : > { %5930 = vst.msk [vmem:[#allocation5 + $0x58] sm:$0xf] %vm1806_vm1, %v5857_v62  ;;  %v6149_v62 = vld [vmem:[#allocation3 + $0x50] sm:$0x1]  ;;  %v6365_v43 = vor.u32 %v6364_v0, %v6360_v37  ;;  %v6448_v18 = vshll.u32 %v6165_v30, 16 }
 0x50e   : > { %6566 = vrot.lane.b32.xlu2 %v6203_v60, %s9120_s10  ;;  %6568 = vrot.lane.b32.xlu0 %v6217_v9, %s9120_s10  ;;  %v6294_v60 = vrot.slane %v6293_v3, 4  ;;  %v6317_v9 = vor.u32 %v6316_v5, %v11648_v36  ;;  %v6320_v14 = vshll.u32 %v6149_v62, 16  ;;  %v6355_v3 = vor.u32 %v6354_v31, %v6351_v28  ;;  %v6159_v36 = vld [vmem:[#allocation3 + $0x78] sm:$0xf]  ;;  %v6158_v62 = vld [vmem:[#allocation3 + $0x74] sm:$0x1] }
 0x50f   : > { %v6397_v7 = vshrl.u32 %v6159_v36, 16  ;;  %v6366_v29 = vrot.slane %v6365_v43, 4  ;;  %v6390_v44 = vrot.slane %v6389_v8, 4  ;;  %v6408_v56 = vrot.slane %v6406_v15, 5 }
 0x510   : > { %v6005_v23 = vpop.permute.xlu2 %6004  ;;  %v6318_v35 = vrot.slane %v6317_v9, 4  ;;  %v6400_v9 = vshll.u32 %v6159_v36, 16  ;;  %v6423_v28 = vrot.slane %v6421_v22, 4 }
 0x511   : > { %6100 = vst.msk [vmem:[#allocation5] sm:$0xf] %vm1999_vm2, %v6005_v23  ;;  %v5861_v48 = vpop.permute.xlu0 %5860  ;;  %v6330_v23 = vrot.slane %v6328_v13, 5  ;;  %v6399_v11 = vrot.slane %v6397_v7, 4 }
 0x512   : > { %6570 = vrot.lane.b32.xlu1 %v6227_v27, %s9120_s10  ;;  %5932 = vst.msk [vmem:[#allocation5 + $0x60] sm:$0xf] %vm1806_vm1, %v5861_v48  ;;  %v6299_v48 = vsel %vm9239_vm10, %v6294_v60, %v6298_v61  ;;  %v6368_v60 = vshll.u32 %v6155_v17, 16  ;;  %v6163_v61 = vld [vmem:[#allocation3 + $0x88] sm:$0xf] }
 0x513   : > { %v6331_v40 = vor.u32 %v6330_v23, %v6327_v12  ;;  %v6410_v12 = vshrl.u32 %v6160_v52, 16  ;;  %v6392_v23 = vshll.u32 %v6158_v62, 16  ;;  %v6434_v51 = vshrl.u32 %v6163_v61, 16  ;;  %v6164_v17 = vld [vmem:[#allocation3 + $0x8c] sm:$0x1] }
 0x514   : > { %v5863_v63 = vpop.permute.xlu1 %5862 }
 0x515   : > { %5933 = vst.msk [vmem:[#allocation5 + $0x64] sm:$0xf] %vm1806_vm1, %v5863_v63  ;;  %v6322_v63 = vrot.slane %v6320_v14, 5  ;;  %v6332_v54 = vrot.slane %v6331_v40, 4  ;;  %v6161_v40 = vld [vmem:[#allocation3 + $0x80] sm:$0x1] }
 0x516   : > { %6572 = vrot.lane.b32.xlu2 %v6241_v34, %s9120_s10  ;;  %6574 = vrot.lane.b32.xlu0 %v6251_v38, %s9120_s10  ;;  %v6152_v34 = vld [vmem:[#allocation3 + $0x5c] sm:$0x1]  ;;  %v6376_v38 = vshll.u32 %v6156_v57, 16  ;;  %v6424_v57 = vshll.u32 %v6162_v25, 16  ;;  %v6171_v25 = vld [vmem:[#allocation3 + $0xa8] sm:$0xf] }
 0x517   : > { %v6323_v53 = vsel %vm9239_vm10, %v6318_v35, %v6322_v63  ;;  %v6337_v42 = vsel %vm9239_vm10, %v6332_v54, %v6336_v46  ;;  %v6430_v35 = vshll.u32 %v6163_v61, 16  ;;  %v6166_v63 = vld [vmem:[#allocation3 + $0x94] sm:$0xf] }
 0x518   : > { %v6011_v39 = vpop.permute.xlu2 %6010  ;;  %v6426_v31 = vrot.slane %v6424_v57, 5  ;;  %v6458_v26 = vshrl.u32 %v6166_v63, 16  ;;  %v6172_v57 = vld [vmem:[#allocation3 + $0xac] sm:$0xf] }
 0x519   : > { %6103 = vst.msk [vmem:[#allocation5 + $0xc] sm:$0xf] %vm1999_vm2, %v6011_v39  ;;  %v5867_v55 = vpop.permute.xlu0 %5866  ;;  %v6344_v39 = vshll.u32 %v6152_v34, 16  ;;  %v6432_v34 = vrot.slane %v6430_v35, 5 }
 0x51a   : > { %6576 = vrot.lane.b32.xlu1 %v6265_v24, %s9120_s10  ;;  %5935 = vst.msk [vmem:[#allocation5 + $0x6c] sm:$0xf] %vm1806_vm1, %v5867_v55  ;;  %v6375_v24 = vrot.slane %v6373_v49, 4  ;;  %v6378_v55 = vrot.slane %v6376_v38, 5  ;;  %v6412_v49 = vrot.slane %v6410_v12, 4  ;;  %v6436_v38 = vrot.slane %v6434_v51, 4 }
 0x51b   : > { %v6346_v13 = vrot.slane %v6344_v39, 5  ;;  %v6416_v39 = vshll.u32 %v6161_v40, 16  ;;  %v6427_v36 = vor.u32 %v6426_v31, %v6423_v28 }
 0x51c   : > { %v5869_v45 = vpop.permute.xlu1 %5868  ;;  %v6413_v54 = vor.u32 %v6412_v49, %v6408_v56  ;;  %v6502_v49 = vshll.u32 %v6172_v57, 16 }
 0x51d   : > { %5936 = vst.msk [vmem:[#allocation5 + $0x70] sm:$0xf] %vm1806_vm1, %v5869_v45  ;;  %v6356_v45 = vrot.slane %v6355_v3, 4  ;;  %v6347_v47 = vsel %vm9239_vm10, %v6342_v19, %v6346_v13  ;;  %v6168_v3 = vld [vmem:[#allocation3 + $0x9c] sm:$0xf] }
 0x51e   : > { %6578 = vrot.lane.b32.xlu2 %v6275_v32, %s9120_s10  ;;  %6580 = vrot.lane.b32.xlu0 %v6289_v59, %s9120_s10  ;;  %v6379_v59 = vor.u32 %v6378_v55, %v6375_v24  ;;  %v6437_v24 = vor.u32 %v6436_v38, %v6432_v34  ;;  %v6445_v55 = vshrl.u32 %v6165_v30, 16  ;;  %v6169_v19 = vld [vmem:[#allocation3 + $0xa0] sm:$0xf]  ;;  %v6469_v43 = vshrl.u32 %v6168_v3, 16 }
 0x51f   : > { %v6361_v14 = vsel %vm9239_vm10, %v6356_v45, %v6360_v37  ;;  %v6472_v52 = vshll.u32 %v6168_v3, 16  ;;  %v6414_v13 = vrot.slane %v6413_v54, 4  ;;  %v6418_v45 = vrot.slane %v6416_v39, 5 }
 0x520   : > { %v6017_v27 = vpop.permute.xlu2 %6016  ;;  %v6380_v46 = vrot.slane %v6379_v59, 4  ;;  %v6450_v59 = vrot.slane %v6448_v18, 5  ;;  %v6478_v8 = vshll.u32 %v6169_v19, 16  ;;  %v6482_v15 = vshrl.u32 %v6169_v19, 16 }
 0x521   : > { %6106 = vst.msk [vmem:[#allocation5 + $0x18] sm:$0xf] %vm1999_vm2, %v6017_v27  ;;  %v5873_v20 = vpop.permute.xlu0 %5872  ;;  %v6370_v27 = vrot.slane %v6368_v60, 5  ;;  %v6428_v60 = vrot.slane %v6427_v36, 4  ;;  %v6471_v12 = vrot.slane %v6469_v43, 4 }
 0x522   : > { %6582 = vrot.lane.b32.xlu1 %v6299_v48, %s9120_s10  ;;  %5938 = vst.msk [vmem:[#allocation5 + $0x78] sm:$0xf] %vm1806_vm1, %v5873_v20  ;;  %v6402_v48 = vrot.slane %v6400_v9, 5  ;;  %v6385_v37 = vsel %vm9239_vm10, %v6380_v46, %v11676_v2  ;;  %v6460_v2 = vrot.slane %v6458_v26, 4  ;;  %v6440_v9 = vshll.u32 %v6164_v17, 16 }
 0x523   : > { %v6371_v33 = vsel %vm9239_vm10, %v6366_v29, %v6370_v27  ;;  %v6433_v22 = vsel %vm9239_vm10, %v6428_v60, %v6432_v34  ;;  %v6493_v27 = vshrl.u32 %v6171_v25, 16  ;;  %v6480_v46 = vrot.slane %v6478_v8, 5  ;;  %v6175_v34 = vld [vmem:[#allocation3 + $0xb8] sm:$0xf]  ;;  %v6174_v26 = vld [vmem:[#allocation3 + $0xb4] sm:$0xf] }
 0x524   : > { %v5875_v58 = vpop.permute.xlu1 %5874  ;;  %v6442_v35 = vrot.slane %v6440_v9, 5  ;;  %v6526_v39 = vshll.u32 %v6175_v34, 16  ;;  %v6530_v3 = vshrl.u32 %v6175_v34, 16  ;;  %v6517_v18 = vshrl.u32 %v6174_v26, 16 }
 0x525   : > { %5939 = vst.msk [vmem:[#allocation5 + $0x7c] sm:$0xf] %vm1806_vm1, %v5875_v58  ;;  %v6394_v58 = vrot.slane %v6392_v23, 5  ;;  %v6474_v23 = vrot.slane %v6472_v52, 5 }
 0x526   : > { %6584 = vrot.lane.b32.xlu2 %v6313_v21, %s9120_s10  ;;  %6586 = vrot.lane.b32.xlu0 %v6323_v53, %s9120_s10  ;;  %v6403_v21 = vor.u32 %v6402_v48, %v6399_v11  ;;  %v6454_v53 = vshll.u32 %v6166_v63, 16  ;;  %v6419_v11 = vsel %vm9239_vm10, %v6414_v13, %v6418_v45  ;;  %v6496_v48 = vshll.u32 %v6171_v25, 16 }
 0x527   : > { %v6395_v0 = vsel %vm9239_vm10, %v6390_v44, %v6394_v58  ;;  %v6484_v44 = vrot.slane %v6482_v15, 4  ;;  %v6506_v63 = vshrl.u32 %v6172_v57, 16  ;;  %v6475_v31 = vor.u32 %v6474_v23, %v6471_v12  ;;  %v6178_v15 = vld [vmem:[#allocation3 + $0xc4] sm:$0xf]  ;;  %v6176_v12 = vld [vmem:[#allocation3 + $0xbc] sm:$0x1] }
 0x528   : > { %v6023_v5 = vpop.permute.xlu2 %6022  ;;  %v6495_v58 = vrot.slane %v6493_v27, 4  ;;  %v6532_v13 = vrot.slane %v6530_v3, 4  ;;  %v6550_v57 = vshll.u32 %v6178_v15, 16  ;;  %v6554_v27 = vshrl.u32 %v6178_v15, 16 }
 0x529   : > { %6109 = vst.msk [vmem:[#allocation5 + $0x24] sm:$0xf] %vm1999_vm2, %v6023_v5  ;;  %v6007_v41 = vpop.permute.xlu0 %6006  ;;  %v6404_v5 = vrot.slane %v6403_v21, 4  ;;  %v6498_v21 = vrot.slane %v6496_v48, 5  ;;  %v6485_v30 = vor.u32 %v6484_v44, %v6480_v46  ;;  %v6508_v54 = vrot.slane %v6506_v63, 4 }
 0x52a   : > { %6588 = vrot.lane.b32.xlu1 %v6337_v42, %s9120_s10  ;;  %6101 = vst.msk [vmem:[#allocation5 + $0x4] sm:$0xf] %vm1999_vm2, %v6007_v41  ;;  %v11704_v41 = vrot.slane %v6454_v53, 5  ;;  %v6476_v17 = vrot.slane %v6475_v31, 4 }
 0x52b   : > { %v6409_v62 = vsel %vm9239_vm10, %v6404_v5, %v6408_v56  ;;  %v6170_v56 = vld [vmem:[#allocation3 + $0xa4] sm:$0x1] }
 0x52c   : > { %v6009_v32 = vpop.permute.xlu1 %6008  ;;  %v6461_v29 = vor.u32 %v6460_v2, %v11704_v41  ;;  %v6488_v53 = vshll.u32 %v6170_v56, 16  ;;  %v6177_v2 = vld [vmem:[#allocation3 + $0xc0] sm:$0xf]  ;;  %v6481_v19 = vsel %vm9239_vm10, %v6476_v17, %v6480_v46  ;;  %v6552_v56 = vrot.slane %v6550_v57, 5 }
 0x52d   : > { %6102 = vst.msk [vmem:[#allocation5 + $0x8] sm:$0xf] %vm1999_vm2, %v6009_v32  ;;  %v6447_v32 = vrot.slane %v6445_v55, 4  ;;  %v6173_v55 = vld [vmem:[#allocation3 + $0xb0] sm:$0x1]  ;;  %v6541_v25 = vshrl.u32 %v6177_v2, 16 }
 0x52e   : > { %6590 = vrot.lane.b32.xlu2 %v6347_v47, %s9120_s10  ;;  %6592 = vrot.lane.b32.xlu0 %v6361_v14, %s9120_s10  ;;  %v6438_v47 = vrot.slane %v6437_v24, 4  ;;  %v6167_v14 = vld [vmem:[#allocation3 + $0x98] sm:$0x1]  ;;  %v6499_v24 = vor.u32 %v6498_v21, %v6495_v58  ;;  %v6490_v43 = vrot.slane %v6488_v53, 5  ;;  %v6512_v9 = vshll.u32 %v6173_v55, 16 }
 0x52f   : > { %v6451_v51 = vor.u32 %v6450_v59, %v6447_v32  ;;  %v6544_v32 = vshll.u32 %v6177_v2, 16  ;;  %v6519_v59 = vrot.slane %v6517_v18, 4 }
 0x530   : > { %v6029_v20 = vpop.permute.xlu2 %6028  ;;  %v6443_v40 = vsel %vm9239_vm10, %v6438_v47, %v6442_v35  ;;  %v6500_v60 = vrot.slane %v6499_v24, 4  ;;  %v6514_v48 = vrot.slane %v6512_v9, 5  ;;  %v6694_v24 = vld [vmem:[#allocation3 + $0x14] sm:$0x1] }
 0x531   : > { %6112 = vst.msk [vmem:[#allocation5 + $0x30] sm:$0xf] %vm1999_vm2, %v6029_v20  ;;  %v6013_v16 = vpop.permute.xlu0 %6012  ;;  %v6464_v20 = vshll.u32 %v6167_v14, 16  ;;  %v6452_v38 = vrot.slane %v6451_v51, 4  ;;  %v6536_v51 = vshll.u32 %v6176_v12, 16 }
 0x532   : > { %6594 = vrot.lane.b32.xlu1 %v6371_v33, %s9120_s10  ;;  %6104 = vst.msk [vmem:[#allocation5 + $0x10] sm:$0xf] %vm1999_vm2, %v6013_v16  ;;  %v6462_v16 = vrot.slane %v6461_v29, 4  ;;  %v6701_v12 = vld [vmem:[#allocation3 + $0x30] sm:$0xe] }
 0x533   : > { %v6457_v36 = vsel %vm9239_vm10, %v6452_v38, %v11704_v41 }
 0x534   : > { %v6015_v10 = vpop.permute.xlu1 %6014 }
 0x535   : > { %6105 = vst.msk [vmem:[#allocation5 + $0x14] sm:$0xf] %vm1999_vm2, %v6015_v10  ;;  %v6466_v10 = vrot.slane %v6464_v20, 5 }
 0x536   : > { %6596 = vrot.lane.b32.xlu2 %v6385_v37, %s9120_s10  ;;  %6598 = vrot.lane.b32.xlu0 %v6395_v0, %s9120_s10  ;;  %v6504_v0 = vrot.slane %v6502_v49, 5  ;;  %v6556_v49 = vrot.slane %v6554_v27, 4  ;;  %v6705_v27 = vld [vmem:[#allocation3 + $0x40] sm:$0xf] }
 0x537   : > { %v6467_v5 = vsel %vm9239_vm10, %v6462_v16, %v6466_v10 }
 0x538   : > { %v6035_v42 = vpop.permute.xlu2 %6034  ;;  %v6509_v41 = vor.u32 %v6508_v54, %v6504_v0  ;;  %v6505_v14 = vsel %vm9239_vm10, %v6500_v60, %v6504_v0  ;;  %v6557_v38 = vor.u32 %v6556_v49, %v6552_v56 }
 0x539   : > { %6115 = vst.msk [vmem:[#allocation5 + $0x3c] sm:$0xf] %vm1999_vm2, %v6035_v42  ;;  %v6019_v7 = vpop.permute.xlu0 %6018  ;;  %v6520_v42 = vshll.u32 %v6174_v26, 16  ;;  %v6692_v26 = vld [vmem:[#allocation3 + $0xc] sm:$0xe] }
 0x53a   : > { %6600 = vrot.lane.b32.xlu1 %v6409_v62, %s9120_s10  ;;  %6107 = vst.msk [vmem:[#allocation5 + $0x1c] sm:$0xf] %vm1999_vm2, %v6019_v7  ;;  %v6486_v62 = vrot.slane %v6485_v30, 4  ;;  %v6528_v7 = vrot.slane %v6526_v39, 5  ;;  %v6510_v29 = vrot.slane %v6509_v41, 4  ;;  %v6558_v54 = vrot.slane %v6557_v38, 4 }
 0x53b   : > { %v6522_v8 = vrot.slane %v6520_v42, 5  ;;  %v6693_v30 = vld [vmem:[#allocation3 + $0x10] sm:$0xf] }
 0x53c   : > { %v6021_v61 = vpop.permute.xlu1 %6020  ;;  %v6491_v47 = vsel %vm9239_vm10, %v6486_v62, %v6490_v43  ;;  %v6533_v23 = vor.u32 %v6532_v13, %v6528_v7  ;;  %v6515_v46 = vsel %vm9239_vm10, %v6510_v29, %v6514_v48  ;;  %v6790_v3 = vrot.slane %v6693_v30, 5  ;;  %v6697_v62 = vld [vmem:[#allocation3 + $0x20] sm:$0x1]  ;;  %v6700_v29 = vld [vmem:[#allocation3 + $0x2c] sm:$0x1] }
 0x53d   : > { %6108 = vst.msk [vmem:[#allocation5 + $0x20] sm:$0xf] %vm1999_vm2, %v6021_v61  ;;  %v6523_v35 = vor.u32 %v6522_v8, %v6519_v59  ;;  %v6800_v9 = vrot.slane %v6697_v62, 5  ;;  %v6807_v48 = vrot.slane %v6700_v29, 5  ;;  %v6707_v30 = vld [vmem:[#allocation3 + $0x48] sm:$0xe] }
 0x53e   : > { %6602 = vrot.lane.b32.xlu2 %v6419_v11, %s9120_s10  ;;  %6604 = vrot.lane.b32.xlu0 %v6433_v22, %s9120_s10  ;;  %v6543_v11 = vrot.slane %v6541_v25, 4  ;;  %v6546_v22 = vrot.slane %v6544_v32, 5  ;;  %v6792_v42 = vrot.slane %v6790_v3, 4  ;;  %v6698_v32 = vld [vmem:[#allocation3 + $0x24] sm:$0xe] }
 0x53f   : > { %v6524_v63 = vrot.slane %v6523_v35, 4  ;;  %v8841_v35 = vrot.slane %v6701_v12, 9 }
 0x540   : > { %v6041_v33 = vpop.permute.xlu2 %6040  ;;  %v6547_v16 = vor.u32 %v6546_v22, %v6543_v11 }
 0x541   : > { %6118 = vst.msk [vmem:[#allocation5 + $0x48] sm:$0xf] %vm1999_vm2, %v6041_v33  ;;  %v6025_v28 = vpop.permute.xlu0 %6024  ;;  %v6534_v33 = vrot.slane %v6533_v23, 4  ;;  %v6529_v58 = vsel %vm9239_vm10, %v6524_v63, %v6528_v7  ;;  %v6704_v63 = vld [vmem:[#allocation3 + $0x3c] sm:$0xe] }
 0x542   : > { %6606 = vrot.lane.b32.xlu1 %v6443_v40, %s9120_s10  ;;  %6110 = vst.msk [vmem:[#allocation5 + $0x28] sm:$0xf] %vm1999_vm2, %v6025_v28  ;;  %v6179_v40 = vld [vmem:[#allocation3 + $0xc8] sm:$0x1]  ;;  %v6538_v28 = vrot.slane %v6536_v51, 5  ;;  %v6548_v34 = vrot.slane %v6547_v16, 4 }
 0x543   : > { %v6560_v10 = vshll.u32 %v6179_v40, 16  ;;  %v6818_v16 = vrot.slane %v6705_v27, 5  ;;  %v6706_v40 = vld [vmem:[#allocation3 + $0x44] sm:$0x1]  ;;  %v6718_v27 = vld [vmem:[#allocation3 + $0x74] sm:$0x1] }
 0x544   : > { %v6027_v37 = vpop.permute.xlu1 %6026  ;;  %v6539_v21 = vsel %vm9239_vm10, %v6534_v33, %v6538_v28  ;;  %v6821_v38 = vrot.slane %v6706_v40, 5 }
 0x545   : > { %6111 = vst.msk [vmem:[#allocation5 + $0x2c] sm:$0xf] %vm1999_vm2, %v6027_v37  ;;  %v6553_v37 = vsel %vm9239_vm10, %v6548_v34, %v6552_v56  ;;  %v6562_v39 = vrot.slane %v6560_v10, 5  ;;  %v8842_v34 = vrot.slane %v6704_v63, 9 }
 0x546   : > { %6608 = vrot.lane.b32.xlu2 %v6457_v36, %s9120_s10  ;;  %6610 = vrot.lane.b32.xlu0 %v6467_v5, %s9120_s10  ;;  %v6696_v36 = vld [vmem:[#allocation3 + $0x1c] sm:$0xf]  ;;  %v8838_v5 = vrot.slane %v6692_v26, 9 }
 0x547   : > { %v6563_v55 = vsel %vm9239_vm10, %v6558_v54, %v6562_v39  ;;  %v6797_v2 = vrot.slane %v6696_v36, 5  ;;  %v8843_v54 = vrot.slane %v6707_v30, 9  ;;  %v6710_v36 = vld [vmem:[#allocation3 + $0x54] sm:$0xe] }
 0x548   : > { %v6047_v52 = vpop.permute.xlu2 %6046  ;;  %v6791_v18 = vsel %vm9656_vm14, %v8838_v5, %v6790_v3  ;;  %v6709_v3 = vld [vmem:[#allocation3 + $0x50] sm:$0x1] }
 0x549   : > { %6121 = vst.msk [vmem:[#allocation5 + $0x54] sm:$0xf] %vm1999_vm2, %v6047_v52  ;;  %v6031_v45 = vpop.permute.xlu0 %6030  ;;  %v6695_v52 = vld [vmem:[#allocation3 + $0x18] sm:$0xe]  ;;  %v6799_v13 = vrot.slane %v6797_v2, 4 }
 0x54a   : > { %6612 = vrot.lane.b32.xlu1 %v6481_v19, %s9120_s10  ;;  %6113 = vst.msk [vmem:[#allocation5 + $0x34] sm:$0xf] %vm1999_vm2, %v6031_v45  ;;  %v6793_v19 = vrot.slane %v6694_v24, 5  ;;  %v6699_v45 = vld [vmem:[#allocation3 + $0x28] sm:$0xf]  ;;  %v8839_v60 = vrot.slane %v6695_v52, 9 }
 0x54b   : > { %v6801_v8 = vsel %vm9656_vm14, %v6799_v13, %v6800_v9  ;;  %v6804_v15 = vrot.slane %v6699_v45, 5  ;;  %v6715_v9 = vld [vmem:[#allocation3 + $0x68] sm:$0x1] }
 0x54c   : > { %v6033_v61 = vpop.permute.xlu1 %6032  ;;  %v6794_v41 = vsel %vm9656_vm14, %v6792_v42, %v6793_v19  ;;  %v6798_v59 = vsel %vm9656_vm14, %v8839_v60, %v6797_v2  ;;  %v6828_v42 = vrot.slane %v6709_v3, 5  ;;  %v8844_v2 = vrot.slane %v6710_v36, 9  ;;  %v6713_v60 = vld [vmem:[#allocation3 + $0x60] sm:$0xe]  ;;  %v7245_v3 = vld [vmem:[#allocation3 + $0x78] sm:$0xf] }
 0x54d   : > { %6114 = vst.msk [vmem:[#allocation5 + $0x38] sm:$0xf] %vm1999_vm2, %v6033_v61  ;;  %v6702_v61 = vld [vmem:[#allocation3 + $0x34] sm:$0xf]  ;;  %v6806_v22 = vrot.slane %v6804_v15, 4 }
 0x54e   : > { %6614 = vrot.lane.b32.xlu2 %v6491_v47, %s9120_s10  ;;  %6616 = vrot.lane.b32.xlu0 %v6505_v14, %s9120_s10  ;;  %v8840_v47 = vrot.slane %v6698_v32, 9  ;;  %v6811_v57 = vrot.slane %v6702_v61, 5  ;;  %v6842_v61 = vrot.slane %v6715_v9, 5 }
 0x550   : > { %v6053_v20 = vpop.permute.xlu2 %6052  ;;  %v6805_v23 = vsel %vm9656_vm14, %v8840_v47, %v6804_v15  ;;  %v6813_v33 = vrot.slane %v6811_v57, 4  ;;  %v8845_v15 = vrot.slane %v6713_v60, 9 }
 0x551   : > { %6124 = vst.msk [vmem:[#allocation5 + $0x60] sm:$0xf] %vm1999_vm2, %v6053_v20  ;;  %v6037_v44 = vpop.permute.xlu0 %6036  ;;  %v6703_v20 = vld [vmem:[#allocation3 + $0x38] sm:$0x1] }
 0x552   : > { %6618 = vrot.lane.b32.xlu1 %v6515_v46, %s9120_s10  ;;  %6116 = vst.msk [vmem:[#allocation5 + $0x40] sm:$0xf] %vm1999_vm2, %v6037_v44  ;;  %v6808_v46 = vsel %vm9656_vm14, %v6806_v22, %v6807_v48  ;;  %v6812_v44 = vsel %vm9656_vm14, %v8841_v35, %v6811_v57  ;;  %v6814_v56 = vrot.slane %v6703_v20, 5  ;;  %v6719_v48 = vld [vmem:[#allocation3 + $0x78] sm:$0xe] }
 0x554   : > { %v6039_v31 = vpop.permute.xlu1 %6038  ;;  %v6815_v28 = vsel %vm9656_vm14, %v6813_v33, %v6814_v56  ;;  %v6849_v33 = vrot.slane %v6718_v27, 5  ;;  %v7806_v27 = vld [vmem:[#allocation3 + $0x7c] sm:$0xf] }
 0x555   : > { %6117 = vst.msk [vmem:[#allocation5 + $0x44] sm:$0xf] %vm1999_vm2, %v6039_v31 }
 0x556   : > { %6620 = vrot.lane.b32.xlu2 %v6529_v58, %s9120_s10  ;;  %6622 = vrot.lane.b32.xlu0 %v6539_v21, %s9120_s10  ;;  %v6820_v58 = vrot.slane %v6818_v16, 4  ;;  %v6708_v21 = vld [vmem:[#allocation3 + $0x4c] sm:$0xf] }
 0x558   : > { %v6059_v53 = vpop.permute.xlu2 %6058  ;;  %v6822_v26 = vsel %vm9656_vm14, %v6820_v58, %v6821_v38  ;;  %v6724_v38 = vld [vmem:[#allocation3 + $0x8c] sm:$0x1] }
 0x559   : > { %6127 = vst.msk [vmem:[#allocation5 + $0x6c] sm:$0xf] %vm1999_vm2, %v6059_v53  ;;  %v6043_v0 = vpop.permute.xlu0 %6042  ;;  %v6819_v53 = vsel %vm9656_vm14, %v8842_v34, %v6818_v16  ;;  %v8847_v16 = vrot.slane %v6719_v48, 9  ;;  %v6722_v34 = vld [vmem:[#allocation3 + $0x84] sm:$0xe] }
 0x55a   : > { %6624 = vrot.lane.b32.xlu1 %v6553_v37, %s9120_s10  ;;  %6119 = vst.msk [vmem:[#allocation5 + $0x4c] sm:$0xf] %vm1999_vm2, %v6043_v0  ;;  %v6825_v37 = vrot.slane %v6708_v21, 5  ;;  %v6711_v0 = vld [vmem:[#allocation3 + $0x58] sm:$0xf] }
 0x55c   : > { %v6045_v17 = vpop.permute.xlu1 %6044  ;;  %v6826_v5 = vsel %vm9656_vm14, %v8843_v54, %v6825_v37  ;;  %v6827_v24 = vrot.slane %v6825_v37, 4  ;;  %v8848_v37 = vrot.slane %v6722_v34, 9 }
 0x55d   : > { %6120 = vst.msk [vmem:[#allocation5 + $0x50] sm:$0xf] %vm1999_vm2, %v6045_v17 }
 0x55e   : > { %6626 = vrot.lane.b32.xlu2 %v6563_v55, %s9120_s10  ;;  %6900 = vrot.lane.b32.xlu0 %v6791_v18, %s9121_s11  ;;  %v6832_v55 = vrot.slane %v6711_v0, 5  ;;  %v6714_v18 = vld [vmem:[#allocation3 + $0x64] sm:$0xf]  ;;  %v6829_v52 = vsel %vm9656_vm14, %v6827_v24, %v6828_v42  ;;  %v6863_v0 = vrot.slane %v6724_v38, 5  ;;  %v7246_v24 = vld [vmem:[#allocation3 + $0x7c] sm:$0xf] }
 0x55f   : > { %v7462_v42 = vshrl.u32 %v7245_v3, 16  ;;  %v7475_v60 = vshrl.u32 %v7246_v24, 16 }
 0x560   : > { %v6065_v43 = vpop.permute.xlu2 %6064  ;;  %v6833_v62 = vsel %vm9656_vm14, %v8844_v2, %v6832_v55  ;;  %v7465_v2 = vshll.u32 %v7245_v3, 16 }
 0x561   : > { %6130 = vst.msk [vmem:[#allocation5 + $0x78] sm:$0xf] %vm1999_vm2, %v6065_v43  ;;  %v6049_v7 = vpop.permute.xlu0 %6048  ;;  %v6712_v43 = vld [vmem:[#allocation3 + $0x5c] sm:$0x1] }
 0x562   : > { %6902 = vrot.lane.b32.xlu1 %v6794_v41, %s9121_s11  ;;  %6122 = vst.msk [vmem:[#allocation5 + $0x58] sm:$0xf] %vm1999_vm2, %v6049_v7  ;;  %v6834_v41 = vrot.slane %v6832_v55, 4  ;;  %v6839_v7 = vrot.slane %v6714_v18, 5  ;;  %v6835_v13 = vrot.slane %v6712_v43, 5 }
 0x563   : > { %v11852_v55 = vld [vmem:[#allocation3 + $0xa0] sm:$0xf]  ;;  %v6727_v43 = vld [vmem:[#allocation3 + $0x98] sm:$0x1] }
 0x564   : > { %v6051_v25 = vpop.permute.xlu1 %6050  ;;  %v6840_v29 = vsel %vm9656_vm14, %v8845_v15, %v6839_v7  ;;  %v6870_v9 = vrot.slane %v6727_v43, 5  ;;  %v7782_v43 = vld [vmem:[#allocation3 + $0x1c] sm:$0xf] }
 0x565   : > { %6123 = vst.msk [vmem:[#allocation5 + $0x5c] sm:$0xf] %vm1999_vm2, %v6051_v25  ;;  %v6836_v25 = vsel %vm9656_vm14, %v6834_v41, %v6835_v13 }
 0x566   : > { %6904 = vrot.lane.b32.xlu2 %v6798_v59, %s9121_s11  ;;  %6906 = vrot.lane.b32.xlu0 %v6801_v8, %s9121_s11  ;;  %v6841_v59 = vrot.slane %v6839_v7, 4  ;;  %v6717_v8 = vld [vmem:[#allocation3 + $0x70] sm:$0xf] }
 0x568   : > { %v6567_v14 = vpop.permute.xlu2 %6566  ;;  %v6843_v12 = vsel %vm9656_vm14, %v6841_v59, %v6842_v61  ;;  %v7467_v59 = vrot.slane %v7465_v2, 5 }
 0x569   : > { %6661 = vst.msk [vmem:[#allocation5 + $0x4] sm:$0xf] %vm2560_vm4, %v6567_v14  ;;  %v6055_v11 = vpop.permute.xlu0 %6054  ;;  %v6716_v14 = vld [vmem:[#allocation3 + $0x6c] sm:$0xe] }
 0x56a   : > { %6908 = vrot.lane.b32.xlu1 %v6805_v23, %s9121_s11  ;;  %6125 = vst.msk [vmem:[#allocation5 + $0x64] sm:$0xf] %vm1999_vm2, %v6055_v11  ;;  %v6846_v23 = vrot.slane %v6717_v8, 5  ;;  %v6720_v11 = vld [vmem:[#allocation3 + $0x7c] sm:$0xf]  ;;  %v8846_v22 = vrot.slane %v6716_v14, 9 }
 0x56b   : > { %v7477_v14 = vrot.slane %v7475_v60, 4 }
 0x56c   : > { %v6057_v51 = vpop.permute.xlu1 %6056  ;;  %v6847_v35 = vsel %vm9656_vm14, %v8846_v22, %v6846_v23  ;;  %v6848_v20 = vrot.slane %v6846_v23, 4  ;;  %v7247_v23 = vld [vmem:[#allocation3 + $0x80] sm:$0x1] }
 0x56d   : > { %6126 = vst.msk [vmem:[#allocation5 + $0x68] sm:$0xf] %vm1999_vm2, %v6057_v51 }
 0x56e   : > { %6910 = vrot.lane.b32.xlu2 %v6808_v46, %s9121_s11  ;;  %6912 = vrot.lane.b32.xlu0 %v6812_v44, %s9121_s11  ;;  %v6853_v46 = vrot.slane %v6720_v11, 5  ;;  %v6723_v44 = vld [vmem:[#allocation3 + $0x88] sm:$0xf]  ;;  %v6850_v63 = vsel %vm9656_vm14, %v6848_v20, %v6849_v33  ;;  %v7045_v11 = vld [vmem:[#allocation3 + $0x78] sm:$0xf] }
 0x56f   : > { %v7221_v20 = vld [vmem:[#allocation3 + $0x18] sm:$0xf] }
 0x570   : > { %v6573_v49 = vpop.permute.xlu2 %6572  ;;  %v6854_v40 = vsel %vm9656_vm14, %v8847_v16, %v6853_v46  ;;  %v7935_v16 = vrot.slane %v7806_v27, 5 }
 0x571   : > { %6664 = vst.msk [vmem:[#allocation5 + $0x10] sm:$0xf] %vm2560_vm4, %v6573_v49  ;;  %v6061_v31 = vpop.permute.xlu0 %6060  ;;  %v6721_v49 = vld [vmem:[#allocation3 + $0x80] sm:$0x1] }
 0x572   : > { %6914 = vrot.lane.b32.xlu1 %v6815_v28, %s9121_s11  ;;  %6128 = vst.msk [vmem:[#allocation5 + $0x70] sm:$0xf] %vm1999_vm2, %v6061_v31  ;;  %v6855_v28 = vrot.slane %v6853_v46, 4  ;;  %v6860_v31 = vrot.slane %v6723_v44, 5  ;;  %v6856_v58 = vrot.slane %v6721_v49, 5  ;;  %v7937_v38 = vrot.slane %v7935_v16, 4 }
 0x573   : > { %v7046_v46 = vld [vmem:[#allocation3 + $0x7c] sm:$0xf] }
 0x574   : > { %v6063_v10 = vpop.permute.xlu1 %6062  ;;  %v6861_v36 = vsel %vm9656_vm14, %v8848_v37, %v6860_v31 }
 0x575   : > { %6129 = vst.msk [vmem:[#allocation5 + $0x74] sm:$0xf] %vm1999_vm2, %v6063_v10  ;;  %v6857_v10 = vsel %vm9656_vm14, %v6855_v28, %v6856_v58  ;;  %v7807_v58 = vld [vmem:[#allocation3 + $0x80] sm:$0x1] }
 0x576   : > { %6916 = vrot.lane.b32.xlu2 %v6819_v53, %s9121_s11  ;;  %6918 = vrot.lane.b32.xlu0 %v6822_v26, %s9121_s11  ;;  %v6862_v53 = vrot.slane %v6860_v31, 4  ;;  %v6726_v26 = vld [vmem:[#allocation3 + $0x94] sm:$0xf]  ;;  %v7805_v31 = vld [vmem:[#allocation3 + $0x78] sm:$0xe] }
 0x578   : > { %v6579_v39 = vpop.permute.xlu2 %6578 }
 0x579   : > { %6667 = vst.msk [vmem:[#allocation5 + $0x1c] sm:$0xf] %vm2560_vm4, %v6579_v39  ;;  %v6067_v17 = vpop.permute.xlu0 %6066  ;;  %v6725_v39 = vld [vmem:[#allocation3 + $0x90] sm:$0xe] }
 0x57a   : > { %6920 = vrot.lane.b32.xlu1 %v6826_v5, %s9121_s11  ;;  %6131 = vst.msk [vmem:[#allocation5 + $0x7c] sm:$0xf] %vm1999_vm2, %v6067_v17  ;;  %v6864_v5 = vsel %vm9656_vm14, %v6862_v53, %v6863_v0  ;;  %v6867_v17 = vrot.slane %v6726_v26, 5  ;;  %v8849_v18 = vrot.slane %v6725_v39, 9  ;;  %v8862_v53 = vrot.slane %v7805_v31, 9 }
 0x57b   : > { %v7938_v26 = vrot.slane %v7807_v58, 5  ;;  %v7809_v31 = vld [vmem:[#allocation3 + $0x88] sm:$0xf] }
 0x57c   : > { %v6565_v19 = vpop.permute.xlu1 %6564  ;;  %v6868_v41 = vsel %vm9656_vm14, %v8849_v18, %v6867_v17  ;;  %v6869_v13 = vrot.slane %v6867_v17, 4  ;;  %v7936_v39 = vsel %vm9656_vm14, %v8862_v53, %v7935_v16  ;;  %v7223_v18 = vld [vmem:[#allocation3 + $0x20] sm:$0x1] }
 0x57d   : > { %6660 = vst.msk [vmem:[#allocation5] sm:$0xf] %vm2560_vm4, %v6565_v19  ;;  %v7939_v3 = vsel %vm9656_vm14, %v7937_v38, %v7938_v26  ;;  %v7224_v38 = vld [vmem:[#allocation3 + $0x24] sm:$0xf]  ;;  %v7942_v26 = vrot.slane %v7809_v31, 5 }
 0x57e   : > { %6922 = vrot.lane.b32.xlu2 %v6829_v52, %s9121_s11  ;;  %6924 = vrot.lane.b32.xlu0 %v6833_v62, %s9121_s11  ;;  %v6728_v52 = vld [vmem:[#allocation3 + $0x9c] sm:$0xe]  ;;  %v7471_v62 = vshll.u32 %v7246_v24, 16  ;;  %v6871_v15 = vsel %vm9656_vm14, %v6869_v13, %v6870_v9 }
 0x57f   : > { %v7030_v13 = vld [vmem:[#allocation3 + $0x1c] sm:$0xf] }
 0x580   : > { %v6585_v45 = vpop.permute.xlu2 %6584 }
 0x581   : > { %6670 = vst.msk [vmem:[#allocation5 + $0x28] sm:$0xf] %vm2560_vm4, %v6585_v45  ;;  %v6569_v32 = vpop.permute.xlu0 %6568  ;;  %v6874_v45 = vrot.slane %v11852_v55, 5 }
 0x582   : > { %6926 = vrot.lane.b32.xlu1 %v6836_v25, %s9121_s11  ;;  %6662 = vst.msk [vmem:[#allocation5 + $0x8] sm:$0xf] %vm2560_vm4, %v6569_v32  ;;  %v8850_v25 = vrot.slane %v6728_v52, 9  ;;  %v7464_v32 = vrot.slane %v7462_v42, 4  ;;  %v7029_v42 = vld [vmem:[#allocation3 + $0x18] sm:$0xf] }
 0x584   : > { %v6571_v47 = vpop.permute.xlu1 %6570  ;;  %v6875_v61 = vsel %vm9656_vm14, %v8850_v25, %v6874_v45  ;;  %v7879_v25 = vrot.slane %v7782_v43, 5 }
 0x585   : > { %6663 = vst.msk [vmem:[#allocation5 + $0xc] sm:$0xf] %vm2560_vm4, %v6571_v47  ;;  %v7473_v47 = vrot.slane %v7471_v62, 5  ;;  %v7289_v62 = vshll.u32 %v7223_v18, 16  ;;  %v7944_v18 = vrot.slane %v7942_v26, 4 }
 0x586   : > { %6928 = vrot.lane.b32.xlu2 %v6840_v29, %s9121_s11  ;;  %6930 = vrot.lane.b32.xlu0 %v6843_v12, %s9121_s11  ;;  %v7468_v29 = vor.u32 %v7467_v59, %v7464_v32  ;;  %v7249_v32 = vld [vmem:[#allocation3 + $0x88] sm:$0xf] }
 0x587   : > { %v7291_v59 = vrot.slane %v7289_v62, 5 }
 0x588   : > { %v6591_v57 = vpop.permute.xlu2 %6590  ;;  %v7469_v48 = vrot.slane %v7468_v29, 4 }
 0x589   : > { %6673 = vst.msk [vmem:[#allocation5 + $0x34] sm:$0xf] %vm2560_vm4, %v6591_v57  ;;  %v6575_v51 = vpop.permute.xlu0 %6574  ;;  %v7478_v57 = vor.u32 %v7477_v14, %v7473_v47  ;;  %v7783_v14 = vld [vmem:[#allocation3 + $0x20] sm:$0x1] }
 0x58a   : > { %6932 = vrot.lane.b32.xlu1 %v6847_v35, %s9121_s11  ;;  %6665 = vst.msk [vmem:[#allocation5 + $0x14] sm:$0xf] %vm2560_vm4, %v6575_v51  ;;  %v7481_v35 = vshll.u32 %v7247_v23, 16  ;;  %v7474_v44 = vsel %vm9239_vm10, %v7469_v48, %v7473_v47  ;;  %v7781_v47 = vld [vmem:[#allocation3 + $0x18] sm:$0xe]  ;;  %v7881_v23 = vrot.slane %v7879_v25, 4 }
 0x58b   : > { %v7479_v33 = vrot.slane %v7478_v57, 4  ;;  %v8854_v57 = vrot.slane %v7781_v47, 9  ;;  %v7882_v27 = vrot.slane %v7783_v14, 5  ;;  %v7785_v47 = vld [vmem:[#allocation3 + $0x28] sm:$0xf] }
 0x58c   : > { %v6577_v56 = vpop.permute.xlu1 %6576  ;;  %v7483_v49 = vrot.slane %v7481_v35, 5 }
 0x58d   : > { %6666 = vst.msk [vmem:[#allocation5 + $0x18] sm:$0xf] %vm2560_vm4, %v6577_v56  ;;  %v7222_v56 = vld [vmem:[#allocation3 + $0x1c] sm:$0xf] }
 0x58e   : > { %6934 = vrot.lane.b32.xlu2 %v6850_v63, %s9121_s11  ;;  %6936 = vrot.lane.b32.xlu0 %v6854_v40, %s9121_s11  ;;  %v7270_v63 = vshrl.u32 %v7221_v20, 16  ;;  %v7273_v40 = vshll.u32 %v7221_v20, 16  ;;  %v7880_v20 = vsel %vm9656_vm14, %v8854_v57, %v7879_v25 }
 0x590   : > { %v6597_v21 = vpop.permute.xlu2 %6596  ;;  %v7272_v37 = vrot.slane %v7270_v63, 4  ;;  %v7275_v0 = vrot.slane %v7273_v40, 5  ;;  %v7047_v63 = vld [vmem:[#allocation3 + $0x84] sm:$0xf] }
 0x591   : > { %6676 = vst.msk [vmem:[#allocation5 + $0x40] sm:$0xf] %vm2560_vm4, %v6597_v21  ;;  %v6581_v30 = vpop.permute.xlu0 %6580  ;;  %v7484_v21 = vsel %vm9239_vm10, %v7479_v33, %v7483_v49  ;;  %v7250_v49 = vld [vmem:[#allocation3 + $0x8c] sm:$0x1] }
 0x592   : > { %6938 = vrot.lane.b32.xlu1 %v6857_v10, %s9121_s11  ;;  %6668 = vst.msk [vmem:[#allocation5 + $0x20] sm:$0xf] %vm2560_vm4, %v6581_v30  ;;  %v7279_v10 = vshll.u32 %v7222_v56, 16  ;;  %v7283_v30 = vshrl.u32 %v7222_v56, 16  ;;  %v7276_v17 = vor.u32 %v7275_v0, %v7272_v37  ;;  %v7225_v37 = vld [vmem:[#allocation3 + $0x28] sm:$0xf] }
 0x594   : > { %v6583_v54 = vpop.permute.xlu1 %6582  ;;  %v7277_v52 = vrot.slane %v7276_v17, 4 }
 0x595   : > { %6669 = vst.msk [vmem:[#allocation5 + $0x24] sm:$0xf] %vm2560_vm4, %v6583_v54 }
 0x596   : > { %6940 = vrot.lane.b32.xlu2 %v6861_v36, %s9121_s11  ;;  %6942 = vrot.lane.b32.xlu0 %v6864_v5, %s9121_s11  ;;  %v7281_v36 = vrot.slane %v7279_v10, 5  ;;  %v7285_v5 = vrot.slane %v7283_v30, 4  ;;  %v7048_v10 = vld [vmem:[#allocation3 + $0x88] sm:$0xf] }
 0x598   : > { %v6603_v19 = vpop.permute.xlu2 %6602  ;;  %v7282_v60 = vsel %vm9239_vm10, %v7277_v52, %v7281_v36 }
 0x599   : > { %6679 = vst.msk [vmem:[#allocation5 + $0x4c] sm:$0xf] %vm2560_vm4, %v6603_v19  ;;  %v6587_v7 = vpop.permute.xlu0 %6586  ;;  %v7286_v19 = vor.u32 %v7285_v5, %v7281_v36  ;;  %v7808_v36 = vld [vmem:[#allocation3 + $0x84] sm:$0xe]  ;;  %v7810_v5 = vld [vmem:[#allocation3 + $0x8c] sm:$0x1] }
 0x59a   : > { %6944 = vrot.lane.b32.xlu1 %v6868_v41, %s9121_s11  ;;  %6671 = vst.msk [vmem:[#allocation5 + $0x2c] sm:$0xf] %vm2560_vm4, %v6587_v7  ;;  %v7248_v7 = vld [vmem:[#allocation3 + $0x84] sm:$0xf]  ;;  %v7945_v43 = vrot.slane %v7810_v5, 5 }
 0x59b   : > { %v7287_v9 = vrot.slane %v7286_v19, 4  ;;  %v8863_v19 = vrot.slane %v7808_v36, 9  ;;  %v7812_v36 = vld [vmem:[#allocation3 + $0x94] sm:$0xf] }
 0x59c   : > { %v6589_v8 = vpop.permute.xlu1 %6588 }
 0x59d   : > { %6672 = vst.msk [vmem:[#allocation5 + $0x30] sm:$0xf] %vm2560_vm4, %v6589_v8  ;;  %v7486_v8 = vshrl.u32 %v7248_v7, 16  ;;  %v7292_v29 = vsel %vm9239_vm10, %v7287_v9, %v7291_v59  ;;  %v7226_v59 = vld [vmem:[#allocation3 + $0x2c] sm:$0x1] }
 0x59e   : > { %6946 = vrot.lane.b32.xlu2 %v6871_v15, %s9121_s11  ;;  %6948 = vrot.lane.b32.xlu0 %v6875_v61, %s9121_s11  ;;  %v7489_v15 = vshll.u32 %v7248_v7, 16  ;;  %v7943_v7 = vsel %vm9656_vm14, %v8863_v19, %v7942_v26 }
 0x59f   : > { %v7488_v48 = vrot.slane %v7486_v8, 4  ;;  %v7031_v8 = vld [vmem:[#allocation3 + $0x24] sm:$0xf] }
 0x5a0   : > { %v6609_v12 = vpop.permute.xlu2 %6608  ;;  %v7491_v35 = vrot.slane %v7489_v15, 5 }
 0x5a1   : > { %6682 = vst.msk [vmem:[#allocation5 + $0x58] sm:$0xf] %vm2560_vm4, %v6609_v12  ;;  %v6593_v22 = vpop.permute.xlu0 %6592 }
 0x5a2   : > { %7125 = vrot.lane.b32.xlu1 %v7045_v11, %s9122_s12  ;;  %6674 = vst.msk [vmem:[#allocation5 + $0x38] sm:$0xf] %vm2560_vm4, %v6593_v22  ;;  %v7495_v11 = vshll.u32 %v7249_v32, 16  ;;  %v7499_v22 = vshrl.u32 %v7249_v32, 16  ;;  %v7492_v16 = vor.u32 %v7491_v35, %v7488_v48  ;;  %v7252_v48 = vld [vmem:[#allocation3 + $0x94] sm:$0xf] }
 0x5a4   : > { %v6595_v51 = vpop.permute.xlu1 %6594  ;;  %v7501_v33 = vrot.slane %v7499_v22, 4  ;;  %v7493_v58 = vrot.slane %v7492_v16, 4 }
 0x5a5   : > { %6675 = vst.msk [vmem:[#allocation5 + $0x3c] sm:$0xf] %vm2560_vm4, %v6595_v51 }
 0x5a6   : > { %7127 = vrot.lane.b32.xlu2 %v7046_v46, %s9122_s12  ;;  %7685 = vrot.lane.b32.xlu0 %v7474_v44, %s9123_s13  ;;  %v7883_v46 = vsel %vm9656_vm14, %v7881_v23, %v7882_v27  ;;  %v7497_v44 = vrot.slane %v7495_v11, 5  ;;  %v7251_v23 = vld [vmem:[#allocation3 + $0x90] sm:$0xf]  ;;  %v7032_v11 = vld [vmem:[#allocation3 + $0x28] sm:$0xf]  ;;  %v7886_v27 = vrot.slane %v7785_v47, 5 }
 0x5a8   : > { %v6615_v28 = vpop.permute.xlu2 %6614  ;;  %v7498_v30 = vsel %vm9239_vm10, %v7493_v58, %v7497_v44 }
 0x5a9   : > { %6685 = vst.msk [vmem:[#allocation5 + $0x64] sm:$0xf] %vm2560_vm4, %v6615_v28  ;;  %v6599_v34 = vpop.permute.xlu0 %6598  ;;  %v7502_v28 = vor.u32 %v7501_v33, %v7497_v44  ;;  %v7784_v44 = vld [vmem:[#allocation3 + $0x24] sm:$0xe]  ;;  %v7786_v33 = vld [vmem:[#allocation3 + $0x2c] sm:$0x1] }
 0x5aa   : > { %7687 = vrot.lane.b32.xlu1 %v7484_v21, %s9123_s13  ;;  %6677 = vst.msk [vmem:[#allocation5 + $0x44] sm:$0xf] %vm2560_vm4, %v6599_v34  ;;  %v7505_v21 = vshll.u32 %v7250_v49, 16  ;;  %v7888_v49 = vrot.slane %v7886_v27, 4  ;;  %v7889_v31 = vrot.slane %v7786_v33, 5 }
 0x5ab   : > { %v7503_v53 = vrot.slane %v7502_v28, 4  ;;  %v8855_v28 = vrot.slane %v7784_v44, 9  ;;  %v7788_v44 = vld [vmem:[#allocation3 + $0x34] sm:$0xf] }
 0x5ac   : > { %v6601_v54 = vpop.permute.xlu1 %6600  ;;  %v7507_v0 = vrot.slane %v7505_v21, 5 }
 0x5ad   : > { %6678 = vst.msk [vmem:[#allocation5 + $0x48] sm:$0xf] %vm2560_vm4, %v6601_v54  ;;  %v7294_v54 = vshrl.u32 %v7224_v38, 16 }
 0x5ae   : > { %8021 = vrot.lane.b32.xlu2 %v7936_v39, %s9124_s14  ;;  %8023 = vrot.lane.b32.xlu0 %v7939_v3, %s9124_s14  ;;  %v7297_v39 = vshll.u32 %v7224_v38, 16  ;;  %v7508_v17 = vsel %vm9239_vm10, %v7503_v53, %v7507_v0  ;;  %v7887_v38 = vsel %vm9656_vm14, %v8855_v28, %v7886_v27  ;;  %v7253_v0 = vld [vmem:[#allocation3 + $0x98] sm:$0x1] }
 0x5af   : > { %v7296_v52 = vrot.slane %v7294_v54, 4  ;;  %v7049_v54 = vld [vmem:[#allocation3 + $0x90] sm:$0xf] }
 0x5b0   : > { %v6621_v24 = vpop.permute.xlu2 %6620  ;;  %v7299_v62 = vrot.slane %v7297_v39, 5 }
 0x5b1   : > { %6688 = vst.msk [vmem:[#allocation5 + $0x70] sm:$0xf] %vm2560_vm4, %v6621_v24  ;;  %v6605_v2 = vpop.permute.xlu0 %6604 }
 0x5b2   : > { %7093 = vrot.lane.b32.xlu1 %v7029_v42, %s9122_s12  ;;  %6680 = vst.msk [vmem:[#allocation5 + $0x50] sm:$0xf] %vm2560_vm4, %v6605_v2  ;;  %v7303_v42 = vshll.u32 %v7225_v37, 16  ;;  %v7307_v2 = vshrl.u32 %v7225_v37, 16  ;;  %v7300_v25 = vor.u32 %v7299_v62, %v7296_v52  ;;  %v7228_v52 = vld [vmem:[#allocation3 + $0x34] sm:$0xf] }
 0x5b4   : > { %v6607_v41 = vpop.permute.xlu1 %6606  ;;  %v7309_v9 = vrot.slane %v7307_v2, 4  ;;  %v7301_v14 = vrot.slane %v7300_v25, 4 }
 0x5b5   : > { %6681 = vst.msk [vmem:[#allocation5 + $0x54] sm:$0xf] %vm2560_vm4, %v6607_v41 }
 0x5b6   : > { %7095 = vrot.lane.b32.xlu2 %v7030_v13, %s9122_s12  ;;  %7653 = vrot.lane.b32.xlu0 %v7282_v60, %s9123_s13  ;;  %v7946_v13 = vsel %vm9656_vm14, %v7944_v18, %v7945_v43  ;;  %v7305_v60 = vrot.slane %v7303_v42, 5  ;;  %v7227_v18 = vld [vmem:[#allocation3 + $0x30] sm:$0xf]  ;;  %v7050_v42 = vld [vmem:[#allocation3 + $0x94] sm:$0xf]  ;;  %v7949_v43 = vrot.slane %v7812_v36, 5 }
 0x5b8   : > { %v6627_v61 = vpop.permute.xlu2 %6626  ;;  %v7306_v22 = vsel %vm9239_vm10, %v7301_v14, %v7305_v60 }
 0x5b9   : > { %6691 = vst.msk [vmem:[#allocation5 + $0x7c] sm:$0xf] %vm2560_vm4, %v6627_v61  ;;  %v6611_v12 = vpop.permute.xlu0 %6610  ;;  %v7310_v61 = vor.u32 %v7309_v9, %v7305_v60  ;;  %v7811_v60 = vld [vmem:[#allocation3 + $0x90] sm:$0xe]  ;;  %v7813_v9 = vld [vmem:[#allocation3 + $0x98] sm:$0x1] }
 0x5ba   : > { %7655 = vrot.lane.b32.xlu1 %v7292_v29, %s9123_s13  ;;  %6683 = vst.msk [vmem:[#allocation5 + $0x5c] sm:$0xf] %vm2560_vm4, %v6611_v12  ;;  %v7313_v29 = vshll.u32 %v7226_v59, 16  ;;  %v7951_v59 = vrot.slane %v7949_v43, 4  ;;  %v7952_v47 = vrot.slane %v7813_v9, 5 }
 0x5bb   : > { %v7311_v57 = vrot.slane %v7310_v61, 4  ;;  %v8864_v61 = vrot.slane %v7811_v60, 9  ;;  %v8153_v60 = vld [vmem:[%s12463_s4 + $0x10] sm:$0x3]  ;;  %v7815_v9 = vld [vmem:[#allocation3 + $0xa0] sm:$0xf] }
 0x5bc   : > { %v6613_v51 = vpop.permute.xlu1 %6612  ;;  %v7315_v35 = vrot.slane %v7313_v29, 5 }
 0x5bd   : > { %6684 = vst.msk [vmem:[#allocation5 + $0x60] sm:$0xf] %vm2560_vm4, %v6613_v51  ;;  %v7510_v51 = vshrl.u32 %v7251_v23, 16 }
 0x5be   : > { %7989 = vrot.lane.b32.xlu2 %v7880_v20, %s9124_s14  ;;  %7991 = vrot.lane.b32.xlu0 %v7883_v46, %s9124_s14  ;;  %v7513_v20 = vshll.u32 %v7251_v23, 16  ;;  %v7316_v16 = vsel %vm9239_vm10, %v7311_v57, %v7315_v35  ;;  %v7950_v23 = vsel %vm9656_vm14, %v8864_v61, %v7949_v43  ;;  %v7229_v35 = vld [vmem:[#allocation3 + $0x38] sm:$0x1] }
 0x5bf   : > { %v7512_v58 = vrot.slane %v7510_v51, 4  ;;  %v7033_v51 = vld [vmem:[#allocation3 + $0x30] sm:$0xf] }
 0x5c0   : > { %v6905_v56 = vpop.permute.xlu2 %6904  ;;  %v7515_v21 = vrot.slane %v7513_v20, 5 }
 0x5c1   : > { %6998 = vst.msk [vmem:[#allocation5 + $0x8] sm:$0xf] %vm2897_vm5, %v6905_v56  ;;  %v6617_v40 = vpop.permute.xlu0 %6616 }
 0x5c2   : > { %7129 = vrot.lane.b32.xlu1 %v7047_v63, %s9122_s12  ;;  %6686 = vst.msk [vmem:[#allocation5 + $0x68] sm:$0xf] %vm2560_vm4, %v6617_v40  ;;  %v7519_v63 = vshll.u32 %v7252_v48, 16  ;;  %v7523_v40 = vshrl.u32 %v7252_v48, 16  ;;  %v7516_v26 = vor.u32 %v7515_v21, %v7512_v58  ;;  %v7255_v58 = vld [vmem:[#allocation3 + $0xa0] sm:$0xf] }
 0x5c4   : > { %v6619_v34 = vpop.permute.xlu1 %6618  ;;  %v7525_v53 = vrot.slane %v7523_v40, 4  ;;  %v7517_v5 = vrot.slane %v7516_v26, 4 }
 0x5c5   : > { %6687 = vst.msk [vmem:[#allocation5 + $0x6c] sm:$0xf] %vm2560_vm4, %v6619_v34 }
 0x5c6   : > { %7131 = vrot.lane.b32.xlu2 %v7048_v10, %s9122_s12  ;;  %7689 = vrot.lane.b32.xlu0 %v7498_v30, %s9123_s13  ;;  %v7890_v10 = vsel %vm9656_vm14, %v7888_v49, %v7889_v31  ;;  %v7521_v30 = vrot.slane %v7519_v63, 5  ;;  %v7254_v49 = vld [vmem:[#allocation3 + $0x9c] sm:$0xf]  ;;  %v7034_v63 = vld [vmem:[#allocation3 + $0x34] sm:$0xf]  ;;  %v7893_v31 = vrot.slane %v7788_v44, 5 }
 0x5c8   : > { %v6911_v3 = vpop.permute.xlu2 %6910  ;;  %v7522_v2 = vsel %vm9239_vm10, %v7517_v5, %v7521_v30 }
 0x5c9   : > { %7001 = vst.msk [vmem:[#allocation5 + $0x14] sm:$0xf] %vm2897_vm5, %v6911_v3  ;;  %v6623_v24 = vpop.permute.xlu0 %6622  ;;  %v7526_v3 = vor.u32 %v7525_v53, %v7521_v30  ;;  %v7787_v30 = vld [vmem:[#allocation3 + $0x30] sm:$0xe]  ;;  %v7789_v53 = vld [vmem:[#allocation3 + $0x38] sm:$0x1] }
 0x5ca   : > { %7691 = vrot.lane.b32.xlu1 %v7508_v17, %s9123_s13  ;;  %6689 = vst.msk [vmem:[#allocation5 + $0x74] sm:$0xf] %vm2560_vm4, %v6623_v24  ;;  %v7529_v17 = vshll.u32 %v7253_v0, 16  ;;  %v7895_v0 = vrot.slane %v7893_v31, 4  ;;  %v7896_v36 = vrot.slane %v7789_v53, 5 }
 0x5cb   : > { %v7527_v19 = vrot.slane %v7526_v3, 4  ;;  %v8856_v3 = vrot.slane %v7787_v30, 9 }
 0x5cc   : > { %v6625_v41 = vpop.permute.xlu1 %6624  ;;  %v7531_v62 = vrot.slane %v7529_v17, 5 }
 0x5cd   : > { %6690 = vst.msk [vmem:[#allocation5 + $0x78] sm:$0xf] %vm2560_vm4, %v6625_v41  ;;  %v7318_v41 = vshrl.u32 %v7227_v18, 16 }
 0x5ce   : > { %8025 = vrot.lane.b32.xlu2 %v7943_v7, %s9124_s14  ;;  %8027 = vrot.lane.b32.xlu0 %v7946_v13, %s9124_s14  ;;  %v7321_v7 = vshll.u32 %v7227_v18, 16  ;;  %v7532_v25 = vsel %vm9239_vm10, %v7527_v19, %v7531_v62  ;;  %v7894_v18 = vsel %vm9656_vm14, %v8856_v3, %v7893_v31  ;;  %v7256_v62 = vld [vmem:[#allocation3 + $0xa4] sm:$0x1]  ;;  %v8996_v31 = vld [vmem:[%s12463_s4] sm:$0xff] }
 0x5cf   : > { %v7320_v14 = vrot.slane %v7318_v41, 4  ;;  %v7051_v41 = vld [vmem:[#allocation3 + $0x9c] sm:$0xf] }
 0x5d0   : > { %v6917_v32 = vpop.permute.xlu2 %6916  ;;  %v7323_v29 = vrot.slane %v7321_v7, 5 }
 0x5d1   : > { %7004 = vst.msk [vmem:[#allocation5 + $0x20] sm:$0xf] %vm2897_vm5, %v6917_v32  ;;  %v6901_v15 = vpop.permute.xlu0 %6900 }
 0x5d2   : > { %7097 = vrot.lane.b32.xlu1 %v7031_v8, %s9122_s12  ;;  %6996 = vst.msk [vmem:[#allocation5] sm:$0xf] %vm2897_vm5, %v6901_v15  ;;  %v7327_v8 = vshll.u32 %v7228_v52, 16  ;;  %v7331_v15 = vshrl.u32 %v7228_v52, 16  ;;  %v7324_v27 = vor.u32 %v7323_v29, %v7320_v14 }
 0x5d4   : > { %v6903_v12 = vpop.permute.xlu1 %6902  ;;  %v7333_v57 = vrot.slane %v7331_v15, 4  ;;  %v7325_v33 = vrot.slane %v7324_v27, 4  ;;  %v7230_v15 = vld [vmem:[#allocation3 + $0x3c] sm:$0xf] }
 0x5d5   : > { %6997 = vst.msk [vmem:[#allocation5 + $0x4] sm:$0xf] %vm2897_vm5, %v6903_v12  ;;  %v7345_v27 = vshll.u32 %v7230_v15, 16 }
 0x5d6   : > { %7099 = vrot.lane.b32.xlu2 %v7032_v11, %s9122_s12  ;;  %7657 = vrot.lane.b32.xlu0 %v7306_v22, %s9123_s13  ;;  %v7953_v11 = vsel %vm9656_vm14, %v7951_v59, %v7952_v47  ;;  %v7329_v22 = vrot.slane %v7327_v8, 5  ;;  %v7553_v59 = vshll.u32 %v7256_v62, 16  ;;  %v7052_v47 = vld [vmem:[#allocation3 + $0xa0] sm:$0xf]  ;;  %v7257_v62 = vld [vmem:[#allocation3 + $0xa8] sm:$0xf] }
 0x5d8   : > { %v6923_v46 = vpop.permute.xlu2 %6922  ;;  %v7330_v40 = vsel %vm9239_vm10, %v7325_v33, %v7329_v22 }
 0x5d9   : > { %7007 = vst.msk [vmem:[#allocation5 + $0x2c] sm:$0xf] %vm2897_vm5, %v6923_v46  ;;  %v6907_v56 = vpop.permute.xlu0 %6906  ;;  %v7334_v46 = vor.u32 %v7333_v57, %v7329_v22  ;;  %v7555_v22 = vrot.slane %v7553_v59, 5  ;;  %v7342_v57 = vshrl.u32 %v7230_v15, 16  ;;  %v7561_v59 = vshll.u32 %v7257_v62, 16 }
 0x5da   : > { %7659 = vrot.lane.b32.xlu1 %v7316_v16, %s9123_s13  ;;  %6999 = vst.msk [vmem:[#allocation5 + $0xc] sm:$0xf] %vm2897_vm5, %v6907_v56  ;;  %v7337_v16 = vshll.u32 %v7229_v35, 16 }
 0x5db   : > { %v7335_v28 = vrot.slane %v7334_v46, 4 }
 0x5dc   : > { %v6909_v34 = vpop.permute.xlu1 %6908  ;;  %v7339_v21 = vrot.slane %v7337_v16, 5 }
 0x5dd   : > { %7000 = vst.msk [vmem:[#allocation5 + $0x10] sm:$0xf] %vm2897_vm5, %v6909_v34  ;;  %v7534_v34 = vshrl.u32 %v7254_v49, 16 }
 0x5de   : > { %7993 = vrot.lane.b32.xlu2 %v7887_v38, %s9124_s14  ;;  %7995 = vrot.lane.b32.xlu0 %v7890_v10, %s9124_s14  ;;  %v7537_v38 = vshll.u32 %v7254_v49, 16  ;;  %v7340_v26 = vsel %vm9239_vm10, %v7335_v28, %v7339_v21  ;;  %v7347_v28 = vrot.slane %v7345_v27, 5 }
 0x5df   : > { %v7536_v5 = vrot.slane %v7534_v34, 4 }
 0x5e0   : > { %v6929_v37 = vpop.permute.xlu2 %6928  ;;  %v7539_v17 = vrot.slane %v7537_v38, 5 }
 0x5e1   : > { %7010 = vst.msk [vmem:[#allocation5 + $0x38] sm:$0xf] %vm2897_vm5, %v6929_v37  ;;  %v6913_v39 = vpop.permute.xlu0 %6912 }
 0x5e2   : > { %7133 = vrot.lane.b32.xlu1 %v7049_v54, %s9122_s12  ;;  %7002 = vst.msk [vmem:[#allocation5 + $0x18] sm:$0xf] %vm2897_vm5, %v6913_v39  ;;  %v7543_v54 = vshll.u32 %v7255_v58, 16  ;;  %v7547_v39 = vshrl.u32 %v7255_v58, 16  ;;  %v7540_v43 = vor.u32 %v7539_v17, %v7536_v5  ;;  %v7036_v17 = vld [vmem:[#allocation3 + $0x40] sm:$0xf] }
 0x5e4   : > { %v6915_v24 = vpop.permute.xlu1 %6914  ;;  %v7549_v19 = vrot.slane %v7547_v39, 4  ;;  %v7791_v39 = vld [vmem:[#allocation3 + $0x40] sm:$0xf] }
 0x5e5   : > { %7003 = vst.msk [vmem:[#allocation5 + $0x1c] sm:$0xf] %vm2897_vm5, %v6915_v24 }
 0x5e6   : > { %7135 = vrot.lane.b32.xlu2 %v7050_v42, %s9122_s12  ;;  %7693 = vrot.lane.b32.xlu0 %v7522_v2, %s9123_s13  ;;  %v7897_v42 = vsel %vm9656_vm14, %v7895_v0, %v7896_v36  ;;  %v7545_v2 = vrot.slane %v7543_v54, 5 }
 0x5e8   : > { %v6935_v13 = vpop.permute.xlu2 %6934 }
 0x5e9   : > { %7013 = vst.msk [vmem:[#allocation5 + $0x44] sm:$0xf] %vm2897_vm5, %v6935_v13  ;;  %v6919_v32 = vpop.permute.xlu0 %6918  ;;  %v7550_v13 = vor.u32 %v7549_v19, %v7545_v2  ;;  %v7790_v19 = vld [vmem:[#allocation3 + $0x3c] sm:$0xe] }
 0x5ea   : > { %7695 = vrot.lane.b32.xlu1 %v7532_v25, %s9123_s13  ;;  %7005 = vst.msk [vmem:[#allocation5 + $0x24] sm:$0xf] %vm2897_vm5, %v6919_v32  ;;  %v8243_v25 = vunpack.c.l.b16 %v8153_v60  ;;  %v7541_v32 = vrot.slane %v7540_v43, 4  ;;  %v8857_v60 = vrot.slane %v7790_v19, 9 }
 0x5eb   : > { %v7551_v29 = vrot.slane %v7550_v13, 4 }
 0x5ec   : > { %v6921_v12 = vpop.permute.xlu1 %6920  ;;  %v8246_v61 = vpack.c.b16 %v8243_v25, %v8243_v25  ;;  %v7546_v14 = vsel %vm9239_vm10, %v7541_v32, %v7545_v2  ;;  %v7558_v32 = vshrl.u32 %v7257_v62, 16 }
 0x5ed   : > { %7006 = vst.msk [vmem:[#allocation5 + $0x28] sm:$0xf] %vm2897_vm5, %v6921_v12  ;;  %v7956_v12 = vrot.slane %v7815_v9, 5  ;;  %v7556_v46 = vsel %vm9239_vm10, %v7551_v29, %v7555_v22  ;;  %v7258_v9 = vld [vmem:[#allocation3 + $0xac] sm:$0xf]  ;;  %v7563_v22 = vrot.slane %v7561_v59, 5 }
 0x5ee   : > { %8029 = vrot.lane.b32.xlu2 %v7950_v23, %s9124_s14  ;;  %8031 = vrot.lane.b32.xlu0 %v7953_v11, %s9124_s14  ;;  %v7231_v23 = vld [vmem:[#allocation3 + $0x40] sm:$0xf]  ;;  %v8298_v11 = vsel %vm12480_vm0, %v8246_v61, 0  ;;  %v6730_v61 = vld [vmem:[#allocation3 + $0xa4] sm:$0x1]  ;;  %v7567_v29 = vshll.u32 %v7258_v9, 16 }
 0x5ef   : > { %9080 = vmatpush.bf16.msra.mxu3 %v8298_v11  ;;  %8305 = vmatpush.bf16.msra.mxu1 %v8298_v11  ;;  %v7958_v33 = vrot.slane %v7956_v12, 4  ;;  %v7351_v16 = vshll.u32 %v7231_v23, 16  ;;  %v7560_v11 = vrot.slane %v7558_v32, 4  ;;  %v7794_v32 = vld [vmem:[#allocation3 + $0x4c] sm:$0xf] }
 0x5f0   : > { %v6941_v48 = vpop.permute.xlu2 %6940 }
 0x5f1   : > { %7016 = vst.msk [vmem:[#allocation5 + $0x50] sm:$0xf] %vm2897_vm5, %v6941_v48  ;;  %v6925_v20 = vpop.permute.xlu0 %6924  ;;  %v8997_v48 = vld [vmem:[%s12463_s4 + $0x8] sm:$0xff]  ;;  %v7353_v38 = vrot.slane %v7351_v16, 5  ;;  %v7564_v55 = vor.u32 %v7563_v22, %v7560_v11  ;;  %v7818_v16 = vld [vmem:[#allocation3 + $0xac] sm:$0xf] }
 0x5f2   : > { %7101 = vrot.lane.b32.xlu1 %v7033_v51, %s9122_s12  ;;  %7008 = vst.msk [vmem:[#allocation5 + $0x30] sm:$0xf] %vm2897_vm5, %v6925_v20  ;;  %v7814_v51 = vld [vmem:[#allocation3 + $0x9c] sm:$0xe]  ;;  %v7816_v20 = vld [vmem:[#allocation3 + $0xa4] sm:$0x1] }
 0x5f3   : > { %v8865_v49 = vrot.slane %v7814_v51, 9  ;;  %9081 = vmatpush.bf16.msra.mxu3 %v8997_v48  ;;  %8306 = vmatpush.bf16.msra.mxu1 %v8997_v48  ;;  %v6732_v11 = vld [vmem:[#allocation3 + $0xac] sm:$0xf] }
 0x5f4   : > { %v6927_v56 = vpop.permute.xlu1 %6926 }
 0x5f5   : > { %7009 = vst.msk [vmem:[#allocation5 + $0x34] sm:$0xf] %vm2897_vm5, %v6927_v56  ;;  %v7355_v56 = vshrl.u32 %v7231_v23, 16  ;;  %v7957_v21 = vsel %vm9656_vm14, %v8865_v49, %v7956_v12  ;;  %v7571_v12 = vshrl.u32 %v7258_v9, 16  ;;  %v6877_v23 = vrot.slane %v6730_v61, 5 }
 0x5f6   : > { %7103 = vrot.lane.b32.xlu2 %v7034_v63, %s9122_s12  ;;  %7661 = vrot.lane.b32.xlu0 %v7330_v40, %s9123_s13  ;;  %v7959_v63 = vrot.slane %v7816_v20, 5  ;;  %v7344_v40 = vrot.slane %v7342_v57, 4  ;;  %v7259_v20 = vld [vmem:[#allocation3 + $0xb0] sm:$0x1]  ;;  %v7038_v9 = vld [vmem:[#allocation3 + $0x4c] sm:$0xf] }
 0x5f7   : > { %9082 = vmatpush.bf16.msra.mxu3 %v8996_v31  ;;  %8307 = vmatpush.bf16.msra.mxu1 %v8996_v31  ;;  %v7573_v51 = vrot.slane %v7571_v12, 4  ;;  %v7577_v49 = vshll.u32 %v7259_v20, 16  ;;  %v7793_v61 = vld [vmem:[#allocation3 + $0x48] sm:$0xe]  ;;  %v6881_v20 = vrot.slane %v6732_v11, 5 }
 0x5f8   : > { %v6947_v10 = vpop.permute.xlu2 %6946  ;;  %v7960_v34 = vsel %vm9656_vm14, %v7958_v33, %v7959_v63  ;;  %v7348_v30 = vor.u32 %v7347_v28, %v7344_v40  ;;  %v7817_v40 = vld [vmem:[#allocation3 + $0xa8] sm:$0xe] }
 0x5f9   : > { %7019 = vst.msk [vmem:[#allocation5 + $0x5c] sm:$0xf] %vm2897_vm5, %v6947_v10  ;;  %v6931_v37 = vpop.permute.xlu0 %6930  ;;  %v7357_v10 = vrot.slane %v7355_v56, 4  ;;  %v7565_v56 = vrot.slane %v7564_v55, 4  ;;  %v7233_v28 = vld [vmem:[#allocation3 + $0x48] sm:$0xf] }
 0x5fa   : > { %7663 = vrot.lane.b32.xlu1 %v7340_v26, %s9123_s13  ;;  %7011 = vst.msk [vmem:[#allocation5 + $0x3c] sm:$0xf] %vm2897_vm5, %v6931_v37  ;;  %v7232_v26 = vld [vmem:[#allocation3 + $0x44] sm:$0x1]  ;;  %v7035_v37 = vld [vmem:[#allocation3 + $0x3c] sm:$0xf] }
 0x5fb   : > { %v7358_v54 = vor.u32 %v7357_v10, %v7353_v38  ;;  %v7349_v3 = vrot.slane %v7348_v30, 4  ;;  %v7361_v36 = vshll.u32 %v7232_v26, 16  ;;  %v7234_v10 = vld [vmem:[#allocation3 + $0x4c] sm:$0xf]  ;;  %v7579_v30 = vrot.slane %v7577_v49, 5 }
 0x5fc   : > { %v6933_v24 = vpop.permute.xlu1 %6932  ;;  %v7366_v26 = vshrl.u32 %v7233_v28, 16  ;;  %v6731_v49 = vld [vmem:[#allocation3 + $0xa8] sm:$0xe] }
 0x5fd   : > { %7012 = vst.msk [vmem:[#allocation5 + $0x40] sm:$0xf] %vm2897_vm5, %v6933_v24  ;;  %v7354_v24 = vsel %vm9239_vm10, %v7349_v3, %v7353_v38  ;;  %v7363_v2 = vrot.slane %v7361_v36, 5  ;;  %v7963_v38 = vrot.slane %v7818_v16, 5 }
 0x5fe   : > { %7997 = vrot.lane.b32.xlu2 %v7894_v18, %s9124_s14  ;;  %7999 = vrot.lane.b32.xlu0 %v7897_v42, %s9124_s14  ;;  %v7359_v18 = vrot.slane %v7358_v54, 4  ;;  %v7900_v42 = vrot.slane %v7791_v39, 5  ;;  %v7819_v54 = vld [vmem:[#allocation3 + $0xb0] sm:$0x1]  ;;  %v7375_v39 = vshll.u32 %v7234_v10, 16 }
 0x600   : > { %v7128_v52 = vpop.permute.xlu2 %7127  ;;  %v7902_v13 = vrot.slane %v7900_v42, 4  ;;  %v7901_v15 = vsel %vm9656_vm14, %v8857_v60, %v7900_v42  ;;  %v7037_v60 = vld [vmem:[#allocation3 + $0x48] sm:$0xf] }
 0x601   : > { %7206 = vst.msk [vmem:[#allocation5 + $0x44] sm:$0xf] %vm3091_vm7, %v7128_v52  ;;  %v6937_v7 = vpop.permute.xlu0 %6936  ;;  %v7792_v52 = vld [vmem:[#allocation3 + $0x44] sm:$0x1] }
 0x602   : > { %7137 = vrot.lane.b32.xlu1 %v7051_v41, %s9122_s12  ;;  %7014 = vst.msk [vmem:[#allocation5 + $0x48] sm:$0xf] %vm2897_vm5, %v6937_v7  ;;  %v7364_v41 = vsel %vm9239_vm10, %v7359_v18, %v7363_v2  ;;  %v7903_v25 = vrot.slane %v7792_v52, 5  ;;  %v7368_v18 = vrot.slane %v7366_v26, 4  ;;  %v7377_v52 = vrot.slane %v7375_v39, 5 }
 0x604   : > { %v6939_v8 = vpop.permute.xlu1 %6938 }
 0x605   : > { %7015 = vst.msk [vmem:[#allocation5 + $0x4c] sm:$0xf] %vm2897_vm5, %v6939_v8 }
 0x606   : > { %7139 = vrot.lane.b32.xlu2 %v7052_v47, %s9122_s12  ;;  %7697 = vrot.lane.b32.xlu0 %v7546_v14, %s9123_s13  ;;  %v7904_v47 = vsel %vm9656_vm14, %v7902_v13, %v7903_v25  ;;  %v6876_v14 = vrot.slane %v6874_v45, 4  ;;  %v7235_v13 = vld [vmem:[#allocation3 + $0x50] sm:$0x1] }
 0x608   : > { %v8022_v35 = vpop.permute.xlu2 %8021  ;;  %v6878_v27 = vsel %vm9656_vm14, %v6876_v14, %v6877_v23  ;;  %v7907_v23 = vrot.slane %v7794_v32, 5 }
 0x609   : > { %v6943_v44 = vpop.permute.xlu0 %6942 }
 0x60a   : > { %7699 = vrot.lane.b32.xlu1 %v7556_v46, %s9123_s13  ;;  %7017 = vst.msk [vmem:[#allocation5 + $0x54] sm:$0xf] %vm2897_vm5, %v6943_v44  ;;  %v7053_v46 = vld [vmem:[#allocation3 + $0xa8] sm:$0xf]  ;;  %v7054_v44 = vld [vmem:[#allocation3 + $0xac] sm:$0xf] }
 0x60c   : > { %v6945_v58 = vpop.permute.xlu1 %6944 }
 0x60d   : > { %7018 = vst.msk [vmem:[#allocation5 + $0x58] sm:$0xf] %vm2897_vm5, %v6945_v58 }
 0x60e   : > { %8033 = vrot.lane.b32.xlu2 %v7957_v21, %s9124_s14  ;;  %8035 = vrot.lane.b32.xlu0 %v7960_v34, %s9124_s14 }
 0x610   : > { %v7096_v53 = vpop.permute.xlu2 %7095 }
 0x611   : > { %7190 = vst.msk [vmem:[#allocation5 + $0x4] sm:$0xf] %vm3091_vm7, %v7096_v53  ;;  %v6949_v0 = vpop.permute.xlu0 %6948  ;;  %v8866_v53 = vrot.slane %v7817_v40, 9 }
 0x612   : > { %7105 = vrot.lane.b32.xlu1 %v7035_v37, %s9122_s12  ;;  %7020 = vst.msk [vmem:[#allocation5 + $0x60] sm:$0xf] %vm2897_vm5, %v6949_v0  ;;  %v7369_v37 = vshll.u32 %v7233_v28, 16 }
 0x613   : > { %v7964_v36 = vsel %vm9656_vm14, %v8866_v53, %v7963_v38 }
 0x614   : > { %v7126_v5 = vpop.permute.xlu1 %7125  ;;  %v7371_v42 = vrot.slane %v7369_v37, 5 }
 0x615   : > { %7205 = vst.msk [vmem:[#allocation5 + $0x40] sm:$0xf] %vm3091_vm7, %v7126_v5  ;;  %v7965_v5 = vrot.slane %v7963_v38, 4 }
 0x616   : > { %7107 = vrot.lane.b32.xlu2 %v7036_v17, %s9122_s12  ;;  %7665 = vrot.lane.b32.xlu0 %v7354_v24, %s9123_s13  ;;  %v7379_v17 = vshrl.u32 %v7234_v10, 16  ;;  %v7966_v24 = vrot.slane %v7819_v54, 5 }
 0x618   : > { %v7990_v43 = vpop.permute.xlu2 %7989  ;;  %v7967_v19 = vsel %vm9656_vm14, %v7965_v5, %v7966_v24  ;;  %v7381_v62 = vrot.slane %v7379_v17, 4  ;;  %v7055_v5 = vld [vmem:[#allocation3 + $0xb4] sm:$0xf] }
 0x619   : > { %v7686_v7 = vpop.permute.xlu0 %7685 }
 0x61a   : > { %7667 = vrot.lane.b32.xlu1 %v7364_v41, %s9123_s13  ;;  %7765 = vst.msk [vmem:[#allocation5 + $0x40] sm:$0xf] %vm3652_vm8, %v7686_v7  ;;  %v7372_v41 = vor.u32 %v7371_v42, %v7368_v18  ;;  %v7382_v25 = vor.u32 %v7381_v62, %v7377_v52  ;;  %v7821_v42 = vld [vmem:[#allocation3 + $0xb8] sm:$0xf] }
 0x61b   : > { %8101 = vst.msk [vmem:[#allocation5 + $0x40] sm:$0xf] %vm3989_vm13, %v8022_v35  ;;  %v7569_v35 = vrot.slane %v7567_v29, 5  ;;  %v7056_v62 = vld [vmem:[#allocation3 + $0xb8] sm:$0xf] }
 0x61c   : > { %v7688_v8 = vpop.permute.xlu1 %7687  ;;  %v7373_v59 = vrot.slane %v7372_v41, 4  ;;  %v7383_v12 = vrot.slane %v7382_v25, 4 }
 0x61d   : > { %7766 = vst.msk [vmem:[#allocation5 + $0x44] sm:$0xf] %vm3652_vm8, %v7688_v8  ;;  %v7574_v33 = vor.u32 %v7573_v51, %v7569_v35  ;;  %v7570_v31 = vsel %vm9239_vm10, %v7565_v56, %v7569_v35  ;;  %v7385_v8 = vshll.u32 %v7235_v13, 16  ;;  %v7260_v35 = vld [vmem:[#allocation3 + $0xb4] sm:$0xf]  ;;  %v7970_v13 = vrot.slane %v7821_v42, 5 }
 0x61e   : > { %8001 = vrot.lane.b32.xlu2 %v7901_v15, %s9124_s14  ;;  %8003 = vrot.lane.b32.xlu0 %v7904_v47, %s9124_s14  ;;  %v7378_v47 = vsel %vm9239_vm10, %v7373_v59, %v7377_v52  ;;  %v7585_v16 = vshll.u32 %v7260_v35, 16  ;;  %v7236_v52 = vld [vmem:[#allocation3 + $0x54] sm:$0xf] }
 0x61f   : > { %v7575_v34 = vrot.slane %v7574_v33, 4  ;;  %v7387_v22 = vrot.slane %v7385_v8, 5  ;;  %v7582_v33 = vshrl.u32 %v7260_v35, 16  ;;  %v7390_v25 = vshrl.u32 %v7236_v52, 16  ;;  %v7820_v8 = vld [vmem:[#allocation3 + $0xb4] sm:$0xe] }
 0x620   : > { %v7132_v57 = vpop.permute.xlu2 %7131  ;;  %v7393_v32 = vshll.u32 %v7236_v52, 16 }
 0x621   : > { %7208 = vst.msk [vmem:[#allocation5 + $0x4c] sm:$0xf] %vm3091_vm7, %v7132_v57  ;;  %v8024_v48 = vpop.permute.xlu0 %8023  ;;  %v7580_v3 = vsel %vm9239_vm10, %v7575_v34, %v7579_v30  ;;  %v8858_v57 = vrot.slane %v7793_v61, 9  ;;  %v7388_v51 = vsel %vm9239_vm10, %v7383_v12, %v7387_v22  ;;  %v8851_v34 = vrot.slane %v6731_v49, 9  ;;  %v7797_v49 = vld [vmem:[#allocation3 + $0x58] sm:$0xf] }
 0x622   : > { %6950 = vrot.lane.b32.xlu1 %v6878_v27, %s9121_s11  ;;  %8102 = vst.msk [vmem:[#allocation5 + $0x44] sm:$0xf] %vm3989_vm13, %v8024_v48  ;;  %v7795_v48 = vld [vmem:[#allocation3 + $0x50] sm:$0x1]  ;;  %v7584_v10 = vrot.slane %v7582_v33, 4  ;;  %v7587_v30 = vrot.slane %v7585_v16, 5 }
 0x623   : > { %v7908_v55 = vsel %vm9656_vm14, %v8858_v57, %v7907_v23  ;;  %v6882_v26 = vsel %vm9656_vm14, %v8851_v34, %v6881_v20  ;;  %v7392_v22 = vrot.slane %v7390_v25, 4  ;;  %v7395_v57 = vrot.slane %v7393_v32, 5 }
 0x624   : > { %v7094_v45 = vpop.permute.xlu1 %7093  ;;  %v7588_v39 = vor.u32 %v7587_v30, %v7584_v10  ;;  %v7798_v10 = vld [vmem:[#allocation3 + $0x5c] sm:$0x1] }
 0x625   : > { %7189 = vst.msk [vmem:[#allocation5] sm:$0xf] %vm3091_vm7, %v7094_v45  ;;  %v7909_v45 = vrot.slane %v7907_v23, 4  ;;  %v8867_v23 = vrot.slane %v7820_v8, 9 }
 0x626   : > { %7141 = vrot.lane.b32.xlu2 %v7053_v46, %s9122_s12  ;;  %7143 = vrot.lane.b32.xlu0 %v7054_v44, %s9122_s12  ;;  %v7261_v46 = vld [vmem:[#allocation3 + $0xb8] sm:$0xf]  ;;  %v7910_v44 = vrot.slane %v7795_v48, 5 }
 0x627   : > { %v7971_v48 = vsel %vm9656_vm14, %v8867_v23, %v7970_v13  ;;  %v7057_v23 = vld [vmem:[#allocation3 + $0xc0] sm:$0xf] }
 0x628   : > { %v8026_v63 = vpop.permute.xlu2 %8025  ;;  %v7911_v40 = vsel %vm9656_vm14, %v7909_v45, %v7910_v44  ;;  %v7396_v45 = vor.u32 %v7395_v57, %v7392_v22  ;;  %v7039_v44 = vld [vmem:[#allocation3 + $0x54] sm:$0xf] }
 0x629   : > { %v7654_v58 = vpop.permute.xlu0 %7653  ;;  %v8988_v21 = vld [vmem:[#allocation5 + $0x40] sm:$0xff] }
 0x62a   : > { %7701 = vrot.lane.b32.xlu1 %v7570_v31, %s9123_s13  ;;  %7749 = vst.msk [vmem:[#allocation5] sm:$0xf] %vm3652_vm8, %v7654_v58  ;;  %8950 = vmatmul.msk.bf16.vlgmr.msra.gmra.mxu3 %vm4154_vm12, %v8988_v21  ;;  %v6883_v31 = vrot.slane %v6881_v20, 4  ;;  %v7591_v58 = vshll.u32 %v7261_v46, 16  ;;  %v7595_v21 = vshrl.u32 %v7261_v46, 16 }
 0x62b   : > { %8085 = vst.msk [vmem:[#allocation5] sm:$0xf] %vm3989_vm13, %v7990_v43  ;;  %v7238_v46 = vld [vmem:[#allocation3 + $0x5c] sm:$0x1] }
 0x62c   : > { %v7656_v0 = vpop.permute.xlu1 %7655  ;;  %v7597_v54 = vrot.slane %v7595_v21, 4 }
 0x62d   : > { %7750 = vst.msk [vmem:[#allocation5 + $0x4] sm:$0xf] %vm3652_vm8, %v7656_v0  ;;  %v7593_v0 = vrot.slane %v7591_v58, 5  ;;  %v7040_v58 = vld [vmem:[#allocation3 + $0x58] sm:$0xf] }
 0x62e   : > { %7703 = vrot.lane.b32.xlu2 %v7580_v3, %s9123_s13  ;;  %8037 = vrot.lane.b32.xlu0 %v7964_v36, %s9124_s14  ;;  %v7262_v36 = vld [vmem:[#allocation3 + $0xbc] sm:$0x1] }
 0x62f   : > { %v7598_v18 = vor.u32 %v7597_v54, %v7593_v0 }
 0x630   : > { %v7100_v2 = vpop.permute.xlu2 %7099 }
 0x631   : > { %7192 = vst.msk [vmem:[#allocation5 + $0xc] sm:$0xf] %vm3091_vm7, %v7100_v2  ;;  %v7992_v43 = vpop.permute.xlu0 %7991  ;;  %v7589_v2 = vrot.slane %v7588_v39, 4  ;;  %v7917_v39 = vrot.slane %v7798_v10, 5 }
 0x632   : > { %8039 = vrot.lane.b32.xlu1 %v7967_v19, %s9124_s14  ;;  %8086 = vst.msk [vmem:[#allocation5 + $0x4] sm:$0xf] %vm3989_vm13, %v7992_v43  ;;  %v7601_v19 = vshll.u32 %v7262_v36, 16  ;;  %v7263_v36 = vld [vmem:[#allocation3 + $0xc0] sm:$0xf] }
 0x633   : > { %v7594_v41 = vsel %vm9239_vm10, %v7589_v2, %v7593_v0 }
 0x634   : > { %v7130_v7 = vpop.permute.xlu1 %7129 }
 0x635   : > { %7207 = vst.msk [vmem:[#allocation5 + $0x48] sm:$0xf] %vm3091_vm7, %v7130_v7  ;;  %v7599_v7 = vrot.slane %v7598_v18, 4 }
 0x636   : > { %7109 = vrot.lane.b32.xlu2 %v7037_v60, %s9122_s12  ;;  %7111 = vrot.lane.b32.xlu0 %v7038_v9, %s9122_s12  ;;  %v7237_v60 = vld [vmem:[#allocation3 + $0x58] sm:$0xf]  ;;  %v7603_v9 = vrot.slane %v7601_v19, 5  ;;  %v7606_v19 = vshrl.u32 %v7263_v36, 16 }
 0x637   : > { %v7403_v12 = vshrl.u32 %v7237_v60, 16 }
 0x638   : > { %v7994_v15 = vpop.permute.xlu2 %7993  ;;  %v7604_v61 = vsel %vm9239_vm10, %v7599_v7, %v7603_v9 }
 0x639   : > { %v7690_v14 = vpop.permute.xlu0 %7689  ;;  %v8980_v29 = vld [vmem:[#allocation5] sm:$0xff] }
 0x63a   : > { %7669 = vrot.lane.b32.xlu1 %v7378_v47, %s9123_s13  ;;  %7767 = vst.msk [vmem:[#allocation5 + $0x48] sm:$0xf] %vm3652_vm8, %v7690_v14  ;;  %8942 = vmatmul.msk.bf16.vlgmr.msra.gmra.mxu1 %vm4154_vm12, %v8980_v29  ;;  %v7972_v14 = vrot.slane %v7970_v13, 4  ;;  %v7399_v29 = vshll.u32 %v7237_v60, 16  ;;  %v6736_v60 = vld [vmem:[#allocation3 + $0xbc] sm:$0x1] }
 0x63b   : > { %8103 = vst.msk [vmem:[#allocation5 + $0x48] sm:$0xf] %vm3989_vm13, %v8026_v63  ;;  %v6733_v63 = vld [vmem:[#allocation3 + $0xb0] sm:$0x1] }
 0x63c   : > { %v7692_v27 = vpop.permute.xlu1 %7691  ;;  %v6884_v38 = vrot.slane %v6733_v63, 5  ;;  %v7397_v63 = vrot.slane %v7396_v45, 4 }
 0x63d   : > { %7768 = vst.msk [vmem:[#allocation5 + $0x4c] sm:$0xf] %vm3652_vm8, %v7692_v27 }
 0x63e   : > { %7671 = vrot.lane.b32.xlu2 %v7388_v51, %s9123_s13  ;;  %8005 = vrot.lane.b32.xlu0 %v7908_v55, %s9124_s14  ;;  %v6885_v37 = vsel %vm9656_vm14, %v6883_v31, %v6884_v38  ;;  %v7401_v51 = vrot.slane %v7399_v29, 5  ;;  %v7405_v55 = vrot.slane %v7403_v12, 4  ;;  %v7914_v31 = vrot.slane %v7797_v49, 5  ;;  %v7796_v38 = vld [vmem:[#allocation3 + $0x54] sm:$0xe] }
 0x63f   : > { %v8859_v54 = vrot.slane %v7796_v38, 9 }
 0x640   : > { %v7136_v56 = vpop.permute.xlu2 %7135  ;;  %v7402_v21 = vsel %vm9239_vm10, %v7397_v63, %v7401_v51 }
 0x641   : > { %7210 = vst.msk [vmem:[#allocation5 + $0x54] sm:$0xf] %vm3091_vm7, %v7136_v56  ;;  %v8028_v28 = vpop.permute.xlu0 %8027  ;;  %v7406_v56 = vor.u32 %v7405_v55, %v7401_v51  ;;  %v7915_v18 = vsel %vm9656_vm14, %v8859_v54, %v7914_v31 }
 0x642   : > { %8007 = vrot.lane.b32.xlu1 %v7911_v40, %s9124_s14  ;;  %8104 = vst.msk [vmem:[#allocation5 + $0x4c] sm:$0xf] %vm3989_vm13, %v8028_v28  ;;  %v7409_v40 = vshll.u32 %v7238_v46, 16  ;;  %v7823_v46 = vld [vmem:[#allocation3 + $0xc0] sm:$0xe] }
 0x643   : > { %v7407_v34 = vrot.slane %v7406_v56, 4 }
 0x644   : > { %v7098_v53 = vpop.permute.xlu1 %7097  ;;  %v7411_v30 = vrot.slane %v7409_v40, 5 }
 0x645   : > { %7191 = vst.msk [vmem:[#allocation5 + $0x8] sm:$0xf] %vm3091_vm7, %v7098_v53 }
 0x646   : > { %6952 = vrot.lane.b32.xlu2 %v6882_v26, %s9121_s11  ;;  %6954 = vrot.lane.b32.xlu0 %v6885_v37, %s9121_s11  ;;  %v7916_v26 = vrot.slane %v7914_v31, 4  ;;  %v7412_v37 = vsel %vm9239_vm10, %v7407_v34, %v7411_v30 }
 0x648   : > { %v8030_v3 = vpop.permute.xlu2 %8029  ;;  %v7918_v42 = vsel %vm9656_vm14, %v7916_v26, %v7917_v39 }
 0x649   : > { %v7658_v17 = vpop.permute.xlu0 %7657  ;;  %v8989_v24 = vld [vmem:[#allocation5 + $0x48] sm:$0xff] }
 0x64a   : > { %7145 = vrot.lane.b32.xlu1 %v7055_v5, %s9122_s12  ;;  %7751 = vst.msk [vmem:[#allocation5 + $0x8] sm:$0xf] %vm3652_vm8, %v7658_v17  ;;  %8951 = vmatmul.msk.bf16.gmra.mxu3 %vm4154_vm12, %v8989_v24  ;;  %v7264_v5 = vld [vmem:[#allocation3 + $0xc4] sm:$0xf]  ;;  %v6734_v17 = vld [vmem:[#allocation3 + $0xb4] sm:$0xe] }
 0x64b   : > { %8087 = vst.msk [vmem:[#allocation5 + $0x8] sm:$0xf] %vm3989_vm13, %v7994_v15  ;;  %v7822_v15 = vld [vmem:[#allocation3 + $0xbc] sm:$0x1]  ;;  %v7615_v52 = vshll.u32 %v7264_v5, 16 }
 0x64c   : > { %v7660_v43 = vpop.permute.xlu1 %7659  ;;  %v7973_v11 = vrot.slane %v7822_v15, 5 }
 0x64d   : > { %7752 = vst.msk [vmem:[#allocation5 + $0xc] sm:$0xf] %vm3652_vm8, %v7660_v43  ;;  %v7609_v43 = vshll.u32 %v7263_v36, 16  ;;  %v7617_v15 = vrot.slane %v7615_v52, 5 }
 0x64e   : > { %7147 = vrot.lane.b32.xlu2 %v7056_v62, %s9122_s12  ;;  %7705 = vrot.lane.b32.xlu0 %v7594_v41, %s9123_s13  ;;  %v7974_v35 = vsel %vm9656_vm14, %v7972_v14, %v7973_v11  ;;  %v7619_v62 = vshrl.u32 %v7264_v5, 16  ;;  %v8852_v41 = vrot.slane %v6734_v17, 9  ;;  %v6891_v14 = vrot.slane %v6736_v60, 5  ;;  %v7241_v17 = vld [vmem:[#allocation3 + $0x68] sm:$0x1] }
 0x64f   : > { %v7611_v8 = vrot.slane %v7609_v43, 5  ;;  %v7433_v52 = vshll.u32 %v7241_v17, 16  ;;  %v7800_v60 = vld [vmem:[#allocation3 + $0x64] sm:$0xf] }
 0x650   : > { %v7104_v59 = vpop.permute.xlu2 %7103 }
 0x651   : > { %7194 = vst.msk [vmem:[#allocation5 + $0x14] sm:$0xf] %vm3091_vm7, %v7104_v59  ;;  %v7996_v47 = vpop.permute.xlu0 %7995  ;;  %v7608_v59 = vrot.slane %v7606_v19, 4 }
 0x652   : > { %7707 = vrot.lane.b32.xlu1 %v7604_v61, %s9123_s13  ;;  %8088 = vst.msk [vmem:[#allocation5 + $0xc] sm:$0xf] %vm3989_vm13, %v7996_v47  ;;  %v7621_v61 = vrot.slane %v7619_v62, 4  ;;  %v7265_v47 = vld [vmem:[#allocation3 + $0xc8] sm:$0x1] }
 0x653   : > { %v7612_v11 = vor.u32 %v7611_v8, %v7608_v59  ;;  %v7625_v57 = vshll.u32 %v7265_v47, 16  ;;  %v7799_v59 = vld [vmem:[#allocation3 + $0x60] sm:$0xe] }
 0x654   : > { %v7134_v27 = vpop.permute.xlu1 %7133  ;;  %v7622_v22 = vor.u32 %v7621_v61, %v7617_v15  ;;  %v7921_v61 = vrot.slane %v7800_v60, 5  ;;  %v6737_v47 = vld [vmem:[#allocation3 + $0xc0] sm:$0xe] }
 0x655   : > { %7209 = vst.msk [vmem:[#allocation5 + $0x50] sm:$0xf] %vm3091_vm7, %v7134_v27  ;;  %v7613_v55 = vrot.slane %v7612_v11, 4 }
 0x656   : > { %8041 = vrot.lane.b32.xlu2 %v7971_v48, %s9124_s14  ;;  %8043 = vrot.lane.b32.xlu0 %v7974_v35, %s9124_s14  ;;  %v7058_v48 = vld [vmem:[#allocation3 + $0xc4] sm:$0xf]  ;;  %v7623_v45 = vrot.slane %v7622_v22, 4 }
 0x657   : > { %v7240_v35 = vld [vmem:[#allocation3 + $0x64] sm:$0xf]  ;;  %v7618_v63 = vsel %vm9239_vm10, %v7613_v55, %v7617_v15  ;;  %v8853_v55 = vrot.slane %v6737_v47, 9 }
 0x658   : > { %v7998_v20 = vpop.permute.xlu2 %7997  ;;  %v7423_v56 = vshll.u32 %v7240_v35, 16  ;;  %v7427_v49 = vshrl.u32 %v7240_v35, 16 }
 0x659   : > { %v7694_v33 = vpop.permute.xlu0 %7693  ;;  %v8981_v16 = vld [vmem:[#allocation5 + $0x8] sm:$0xff] }
 0x65a   : > { %7113 = vrot.lane.b32.xlu1 %v7039_v44, %s9122_s12  ;;  %7769 = vst.msk [vmem:[#allocation5 + $0x50] sm:$0xf] %vm3652_vm8, %v7694_v33  ;;  %8943 = vmatmul.msk.bf16.gmra.mxu1 %vm4154_vm12, %v8981_v16  ;;  %v7824_v44 = vld [vmem:[#allocation3 + $0xc4] sm:$0xf]  ;;  %v7239_v16 = vld [vmem:[#allocation3 + $0x60] sm:$0xf] }
 0x65b   : > { %8105 = vst.msk [vmem:[#allocation5 + $0x50] sm:$0xf] %vm3989_vm13, %v8030_v3  ;;  %v6735_v3 = vld [vmem:[#allocation3 + $0xb8] sm:$0xf]  ;;  %v7977_v31 = vrot.slane %v7824_v44, 5  ;;  %v7414_v38 = vshrl.u32 %v7239_v16, 16 }
 0x65c   : > { %v7696_v28 = vpop.permute.xlu1 %7695  ;;  %v6888_v2 = vrot.slane %v6735_v3, 5  ;;  %v7417_v10 = vshll.u32 %v7239_v16, 16  ;;  %v7429_v3 = vrot.slane %v7427_v49, 4 }
 0x65d   : > { %7770 = vst.msk [vmem:[#allocation5 + $0x54] sm:$0xf] %vm3652_vm8, %v7696_v28  ;;  %v8868_v28 = vrot.slane %v7823_v46, 9  ;;  %v7979_v54 = vrot.slane %v7977_v31, 4  ;;  %v7416_v1 = vrot.slane %v7414_v38, 4 }
 0x65e   : > { %7115 = vrot.lane.b32.xlu2 %v7040_v58, %s9122_s12  ;;  %7673 = vrot.lane.b32.xlu0 %v7402_v21, %s9123_s13  ;;  %v6889_v13 = vsel %vm9656_vm14, %v8852_v41, %v6888_v2  ;;  %v6890_v9 = vrot.slane %v6888_v2, 4  ;;  %v4458_v58 = vld [vmem:[#allocation3 + $0xcc] sm:$0x1]  ;;  %v7825_v21 = vld [vmem:[#allocation3 + $0xc8] sm:$0x1]  ;;  %v7419_v36 = vrot.slane %v7417_v10, 5 }
 0x65f   : > { %v4459_v34 = vsel %vm9177_vm3, 0, %v4458_v58  ;;  %v7978_v26 = vsel %vm9656_vm14, %v8868_v28, %v7977_v31  ;;  %v7980_v39 = vrot.slane %v7825_v21, 5  ;;  %v4512_v2 = vld [vmem:[#allocation3 + $0xd4] sm:$0x1]  ;;  %v7042_v41 = vld [vmem:[#allocation3 + $0x64] sm:$0xf] }
 0x660   : > { %v7140_v53 = vpop.permute.xlu2 %7139  ;;  %v6892_v12 = vsel %vm9656_vm14, %v6890_v9, %v6891_v14  ;;  %4460 = vst [vmem:[#allocation3 + $0xcc] sm:$0x1] %v4459_v34  ;;  %v4513_v19 = vsel %vm9190_vm6, 0, %v4512_v2  ;;  %v7420_v43 = vor.u32 %v7419_v36, %v7416_v1  ;;  %v6738_v14 = vld [vmem:[#allocation3 + $0xc4] sm:$0xf]  ;;  %vm8589_vm3 = vcmask 31744  }
 0x661   : > { %7212 = vst.msk [vmem:[#allocation5 + $0x5c] sm:$0xf] %vm3091_vm7, %v7140_v53  ;;  %v8032_v0 = vpop.permute.xlu0 %8031  ;;  %v7425_v53 = vrot.slane %v7423_v56, 5  ;;  %v6739_v46 = vld [vmem:[#allocation3 + $0xc8] sm:$0x1] }
 0x662   : > { %7675 = vrot.lane.b32.xlu1 %v7412_v37, %s9123_s13  ;;  %8106 = vst.msk [vmem:[#allocation5 + $0x54] sm:$0xf] %vm3989_vm13, %v8032_v0  ;;  %v7421_v9 = vrot.slane %v7420_v43, 4  ;;  %v6898_v31 = vrot.slane %v6739_v46, 5  ;;  %v7827_v36 = vld [vmem:[#allocation3 + $0xd0] sm:$0xf] }
 0x663   : > { %4514 = vst [vmem:[#allocation3 + $0xd4] sm:$0x1] %v4513_v19  ;;  %v7242_v2 = vld [vmem:[#allocation3 + $0x6c] sm:$0xf] }
 0x664   : > { %v7102_v24 = vpop.permute.xlu1 %7101  ;;  %v7426_v8 = vsel %vm9239_vm10, %v7421_v9, %v7425_v53 }
 0x665   : > { %7193 = vst.msk [vmem:[#allocation5 + $0x10] sm:$0xf] %vm3091_vm7, %v7102_v24  ;;  %v7981_v24 = vsel %vm9656_vm14, %v7979_v54, %v7980_v39 }
 0x666   : > { %8009 = vrot.lane.b32.xlu2 %v7915_v18, %s9124_s14  ;;  %8011 = vrot.lane.b32.xlu0 %v7918_v42, %s9124_s14  ;;  %v7041_v18 = vld [vmem:[#allocation3 + $0x60] sm:$0xf]  ;;  %v7430_v42 = vor.u32 %v7429_v3, %v7425_v53  ;;  %v7826_v3 = vld [vmem:[#allocation3 + $0xcc] sm:$0xe] }
 0x667   : > { %v7266_v6 = vld [vmem:[#allocation3 + $0xcc] sm:$0xf] }
 0x668   : > { %v12136_v7 = vpop.permute.xlu2 %8033  ;;  %v7633_v11 = vshll.u32 %v7266_v6, 16 }
 0x669   : > { %v7662_v25 = vpop.permute.xlu0 %7661  ;;  %v8990_v32 = vld [vmem:[#allocation5 + $0x50] sm:$0xff] }
 0x66a   : > { %6956 = vrot.lane.b32.xlu1 %v6889_v13, %s9121_s11  ;;  %7753 = vst.msk [vmem:[#allocation5 + $0x10] sm:$0xf] %vm3652_vm8, %v7662_v25  ;;  %8952 = vmatmul.msk.bf16.gmra.mxu3 %vm4154_vm12, %v8990_v32  ;;  %v7431_v13 = vrot.slane %v7430_v42, 4  ;;  %v7435_v25 = vrot.slane %v7433_v52, 5  ;;  %v7268_v10 = vld [vmem:[#allocation3 + $0xd4] sm:$0x1] }
 0x66b   : > { %8089 = vst.msk [vmem:[#allocation5 + $0x10] sm:$0xf] %vm3989_vm13, %v7998_v20  ;;  %v7627_v20 = vrot.slane %v7625_v57, 5  ;;  %v7267_v57 = vld [vmem:[#allocation3 + $0xd0] sm:$0xf]  ;;  %v7649_v39 = vshll.u32 %v7268_v10, 16 }
 0x66c   : > { %v7664_v29 = vpop.permute.xlu1 %7663  ;;  %v7436_v15 = vsel %vm9239_vm10, %v7431_v13, %v7435_v25  ;;  %v7639_v16 = vshll.u32 %v7267_v57, 16  ;;  %v7643_v56 = vshrl.u32 %v7267_v57, 16  ;;  %v7984_v42 = vrot.slane %v7827_v36, 5  ;;  %v7828_v43 = vld [vmem:[#allocation3 + $0xd4] sm:$0x1] }
 0x66d   : > { %7754 = vst.msk [vmem:[#allocation5 + $0x14] sm:$0xf] %vm3652_vm8, %v7664_v29  ;;  %v7628_v40 = vsel %vm9239_vm10, %v7623_v45, %v7627_v20  ;;  %v8860_v29 = vrot.slane %v7799_v59, 9  ;;  %v6895_v45 = vrot.slane %v6738_v14, 5  ;;  %v7441_v13 = vshll.u32 %v7242_v2, 16 }
 0x66e   : > { %6958 = vrot.lane.b32.xlu2 %v6892_v12, %s9121_s11  ;;  %7149 = vrot.lane.b32.xlu0 %v7057_v23, %s9122_s12  ;;  %v7801_v12 = vld [vmem:[#allocation3 + $0x68] sm:$0x1]  ;;  %v7630_v23 = vshrl.u32 %v7266_v6, 16  ;;  %v7641_v21 = vrot.slane %v7639_v16, 5  ;;  %v7645_v34 = vrot.slane %v7643_v56, 4  ;;  %v7986_v25 = vrot.slane %v7984_v42, 4 }
 0x66f   : > { %v7924_v20 = vrot.slane %v7801_v12, 5  ;;  %v6897_v28 = vrot.slane %v6895_v45, 4  ;;  %v7443_v47 = vrot.slane %v7441_v13, 5  ;;  %v7244_v57 = vld [vmem:[#allocation3 + $0x74] sm:$0x1] }
 0x670   : > { %v7108_v27 = vpop.permute.xlu2 %7107  ;;  %v7632_v44 = vrot.slane %v7630_v23, 4  ;;  %v7646_v54 = vor.u32 %v7645_v34, %v7641_v21  ;;  %v7802_v16 = vld [vmem:[#allocation3 + $0x6c] sm:$0xe] }
 0x671   : > { %7196 = vst.msk [vmem:[#allocation5 + $0x1c] sm:$0xf] %vm3091_vm7, %v7108_v27  ;;  %v8000_v51 = vpop.permute.xlu0 %7999  ;;  %v7922_v27 = vsel %vm9656_vm14, %v8860_v29, %v7921_v61 }
 0x672   : > { %7151 = vrot.lane.b32.xlu1 %v7058_v48, %s9122_s12  ;;  %8090 = vst.msk [vmem:[#allocation5 + $0x14] sm:$0xf] %vm3989_vm13, %v8000_v51  ;;  %v7923_v51 = vrot.slane %v7921_v61, 4 }
 0x674   : > { %v7138_v33 = vpop.permute.xlu1 %7137 }
 0x675   : > { %7211 = vst.msk [vmem:[#allocation5 + $0x58] sm:$0xf] %vm3091_vm7, %v7138_v33  ;;  %v7635_v33 = vrot.slane %v7633_v11, 5 }
 0x676   : > { %7709 = vrot.lane.b32.xlu2 %v7618_v63, %s9123_s13  ;;  %7711 = vrot.lane.b32.xlu0 %v7628_v40, %s9123_s13  ;;  %v7925_v63 = vsel %vm9656_vm14, %v7923_v51, %v7924_v20  ;;  %v6896_v40 = vsel %vm9656_vm14, %v8853_v55, %v6895_v45  ;;  %v7803_v51 = vld [vmem:[#allocation3 + $0x70] sm:$0xf]  ;;  %v7457_v45 = vshll.u32 %v7244_v57, 16 }
 0x677   : > { %v7636_v58 = vor.u32 %v7635_v33, %v7632_v44  ;;  %v7928_v56 = vrot.slane %v7803_v51, 5  ;;  %v9070_v57 = vld [vmem:[%s9202_s29 + $0x48] sm:$0xff]  }
 0x678   : > { %v12161_v30 = vpop.permute.xlu2 %8001 }
 0x679   : > { %v7698_v37 = vpop.permute.xlu0 %7697  ;;  %v8982_v0 = vld [vmem:[#allocation5 + $0x10] sm:$0xff]  ;;  %v7930_v10 = vrot.slane %v7928_v56, 4 }
 0x67a   : > { %8045 = vrot.lane.b32.xlu1 %v7978_v26, %s9124_s14  ;;  %7771 = vst.msk [vmem:[#allocation5 + $0x58] sm:$0xf] %vm3652_vm8, %v7698_v37  ;;  %8944 = vmatmul.msk.bf16.gmra.mxu1 %vm4154_vm12, %v8982_v0  ;;  %v7060_v26 = vld [vmem:[#allocation3 + $0xd0] sm:$0xf]  ;;  %v7059_v37 = vld [vmem:[#allocation3 + $0xcc] sm:$0xf] }
 0x67b   : > { %8107 = vst.msk [vmem:[#allocation5 + $0x58] sm:$0xf] %vm3989_vm13, %v12136_v7  ;;  %v7637_v0 = vrot.slane %v7636_v58, 4  ;;  %v9069_v58 = vld [vmem:[%s9202_s29 + $0x40] sm:$0xff]  }
 0x67c   : > { %v7700_v5 = vpop.permute.xlu1 %7699 }
 0x67d   : > { %7772 = vst.msk [vmem:[#allocation5 + $0x5c] sm:$0xf] %vm3652_vm8, %v7700_v5  ;;  %v8869_v5 = vrot.slane %v7826_v3, 9  ;;  %v7642_v17 = vsel %vm9239_vm10, %v7637_v0, %v7641_v21  ;;  %v7804_v21 = vld [vmem:[#allocation3 + $0x74] sm:$0x1] }
 0x67e   : > { %8047 = vrot.lane.b32.xlu2 %v7981_v24, %s9124_s14  ;;  %7117 = vrot.lane.b32.xlu0 %v7041_v18, %s9122_s12  ;;  %v7647_v24 = vrot.slane %v7646_v54, 4  ;;  %v7651_v18 = vrot.slane %v7649_v39, 5 }
 0x67f   : > { %v7985_v9 = vsel %vm9656_vm14, %v8869_v5, %v7984_v42 }
 0x680   : > { %v7142_v62 = vpop.permute.xlu2 %7141  ;;  %v7652_v60 = vsel %vm9239_vm10, %v7647_v24, %v7651_v18  ;;  %v9033_v24 = vunpack.c.h.bf16 %v9069_v58 }
 0x681   : > { %7213 = vst.msk [vmem:[#allocation5 + $0x60] sm:$0xf] %vm3091_vm7, %v7142_v62  ;;  %v8036_v7 = vpop.permute.xlu0 %8035 }
 0x682   : > { %7119 = vrot.lane.b32.xlu1 %v7042_v41, %s9122_s12  ;;  %8108 = vst.msk [vmem:[#allocation5 + $0x5c] sm:$0xf] %vm3989_vm13, %v8036_v7  ;;  %v7243_v41 = vld [vmem:[#allocation3 + $0x70] sm:$0xf]  ;;  %v7438_v7 = vshrl.u32 %v7242_v2, 16 }
 0x683   : > { %v7447_v6 = vshll.u32 %v7243_v41, 16 }
 0x684   : > { %v7106_v32 = vpop.permute.xlu1 %7105  ;;  %v7440_v61 = vrot.slane %v7438_v7, 4 }
 0x685   : > { %7195 = vst.msk [vmem:[#allocation5 + $0x18] sm:$0xf] %vm3091_vm7, %v7106_v32  ;;  %v7987_v32 = vrot.slane %v7828_v43, 5  ;;  %v7449_v12 = vrot.slane %v7447_v6, 5 }
 0x686   : > { %7677 = vrot.lane.b32.xlu2 %v7426_v8, %s9123_s13  ;;  %7679 = vrot.lane.b32.xlu0 %v7436_v15, %s9123_s13  ;;  %v7451_v8 = vshrl.u32 %v7243_v41, 16  ;;  %v7444_v11 = vor.u32 %v7443_v47, %v7440_v61 }
 0x687   : > { %v7988_v15 = vsel %vm9656_vm14, %v7986_v25, %v7987_v32 }
 0x688   : > { %v7704_v22 = vpop.permute.xlu2 %7703  ;;  %v7453_v23 = vrot.slane %v7451_v8, 4  ;;  %v7445_v55 = vrot.slane %v7444_v11, 4 }
 0x689   : > { %v7666_v48 = vpop.permute.xlu0 %7665  ;;  %v8991_v35 = vld [vmem:[#allocation5 + $0x58] sm:$0xff] }
 0x68a   : > { %8013 = vrot.lane.b32.xlu1 %v7922_v27, %s9124_s14  ;;  %7755 = vst.msk [vmem:[#allocation5 + $0x18] sm:$0xf] %vm3652_vm8, %v7666_v48  ;;  %8953 = vmatmul.msk.bf16.gmra.mxu3 %vm4154_vm12, %v8991_v35  ;;  %v7043_v27 = vld [vmem:[#allocation3 + $0x6c] sm:$0xf]  ;;  %v7044_v48 = vld [vmem:[#allocation3 + $0x70] sm:$0xf]  ;;  %v7454_v35 = vor.u32 %v7453_v23, %v7449_v12  ;;  %v7450_v46 = vsel %vm9239_vm10, %v7445_v55, %v7449_v12 }
 0x68b   : > { %8091 = vst.msk [vmem:[#allocation5 + $0x18] sm:$0xf] %vm3989_vm13, %v12161_v30  ;;  %v6899_v30 = vsel %vm9656_vm14, %v6897_v28, %v6898_v31  ;;  %v8861_v31 = vrot.slane %v7802_v16, 9 }
 0x68c   : > { %v7668_v49 = vpop.permute.xlu1 %7667  ;;  %v7455_v33 = vrot.slane %v7454_v35, 4 }
 0x68d   : > { %7756 = vst.msk [vmem:[#allocation5 + $0x1c] sm:$0xf] %vm3652_vm8, %v7668_v49  ;;  %v7459_v49 = vrot.slane %v7457_v45, 5 }
 0x68e   : > { %8015 = vrot.lane.b32.xlu2 %v7925_v63, %s9124_s14  ;;  %6960 = vrot.lane.b32.xlu0 %v6896_v40, %s9121_s11  ;;  %v12238_v63 = vld [vmem:[%s12464_s5] ss:$0 sm:$0xff] }
 0x68f   : > { %v7460_v34 = vsel %vm9239_vm10, %v7455_v33, %v7459_v49  ;;  %v9037_v49 = vunpack.c.h.bf16 %v9070_v57 }
 0x690   : > { %v7110_v38 = vpop.permute.xlu2 %7109 }
 0x691   : > { %7197 = vst.msk [vmem:[#allocation5 + $0x20] sm:$0xf] %vm3091_vm7, %v7110_v38  ;;  %v8004_v53 = vpop.permute.xlu0 %8003  ;;  %v12247_v38 = vld [vmem:[%s12465_s6] ss:$0 sm:$0xff] }
 0x692   : > { %6962 = vrot.lane.b32.xlu1 %v6899_v30, %s9121_s11  ;;  %8092 = vst.msk [vmem:[#allocation5 + $0x1c] sm:$0xf] %vm3989_vm13, %v8004_v53  ;;  %v7929_v30 = vsel %vm9656_vm14, %v8861_v31, %v7928_v56  ;;  %v9062_v56 = vld [vmem:[%s9202_s29 + $0x8] sm:$0xff]  }
 0x694   : > { %v6951_v1 = vpop.permute.xlu1 %6950 }
 0x695   : > { %7021 = vst.msk [vmem:[#allocation5 + $0x64] sm:$0xf] %vm2897_vm5, %v6951_v1 }
 0x696   : > { %7153 = vrot.lane.b32.xlu2 %v7059_v37, %s9122_s12  ;;  %7155 = vrot.lane.b32.xlu0 %v7060_v26, %s9122_s12  ;;  %v9032_v26 = vunpack.c.l.bf16 %v9069_v58  ;;  %v7931_v37 = vrot.slane %v7804_v21, 5 }
 0x698   : > { %v7672_v19 = vpop.permute.xlu2 %7671  ;;  %v7932_v39 = vsel %vm9656_vm14, %v7930_v10, %v7931_v37 }
 0x699   : > { %v7144_v52 = vpop.permute.xlu0 %7143  ;;  %v8983_v62 = vld [vmem:[#allocation5 + $0x18] sm:$0xff] }
 0x69a   : > { %7713 = vrot.lane.b32.xlu1 %v7642_v17, %s9123_s13  ;;  %7214 = vst.msk [vmem:[#allocation5 + $0x64] sm:$0xf] %vm3091_vm7, %v7144_v52  ;;  %8945 = vmatmul.msk.bf16.gmra.mxu1 %vm4154_vm12, %v8983_v62  ;;  %v9000_v52 = vunpack.c.l.bf16 %v8999_v4 }
 0x69b   : > { %7774 = vst.msk [vmem:[#allocation5 + $0x64] sm:$0xf] %vm3652_vm8, %v7704_v22 }
 0x69c   : > { %v7702_v59 = vpop.permute.xlu1 %7701 }
 0x69d   : > { %7773 = vst.msk [vmem:[#allocation5 + $0x60] sm:$0xf] %vm3652_vm8, %v7702_v59 }
 0x69e   : > { %7715 = vrot.lane.b32.xlu2 %v7652_v60, %s9123_s13  ;;  %8049 = vrot.lane.b32.xlu0 %v7985_v9, %s9124_s14 }
 0x6a0   : > { %v6953_v14 = vpop.permute.xlu2 %6952 }
 0x6a1   : > { %7022 = vst.msk [vmem:[#allocation5 + $0x68] sm:$0xf] %vm2897_vm5, %v6953_v14  ;;  %v8038_v29 = vpop.permute.xlu0 %8037 }
 0x6a2   : > { %8051 = vrot.lane.b32.xlu1 %v7988_v15, %s9124_s14  ;;  %8109 = vst.msk [vmem:[#allocation5 + $0x60] sm:$0xf] %vm3989_vm13, %v8038_v29  ;;  %v9001_v15 = vunpack.c.h.bf16 %v8999_v4 }
 0x6a4   : > { %v8040_v22 = vpop.permute.xlu1 %8039 }
 0x6a5   : > { %8110 = vst.msk [vmem:[#allocation5 + $0x64] sm:$0xf] %vm3989_vm13, %v8040_v22 }
 0x6a6   : > { %7121 = vrot.lane.b32.xlu2 %v7043_v27, %s9122_s12  ;;  %7123 = vrot.lane.b32.xlu0 %v7044_v48, %s9122_s12  ;;  %v9036_v48 = vunpack.c.l.bf16 %v9070_v57 }
 0x6a8   : > { %v7148_v20 = vpop.permute.xlu2 %7147 }
 0x6a9   : > { %v7112_v44 = vpop.permute.xlu0 %7111 }
 0x6aa   : > { %7681 = vrot.lane.b32.xlu1 %v7450_v46, %s9123_s13  ;;  %7198 = vst.msk [vmem:[#allocation5 + $0x24] sm:$0xf] %vm3091_vm7, %v7112_v44 }
 0x6ab   : > { %7758 = vst.msk [vmem:[#allocation5 + $0x24] sm:$0xf] %vm3652_vm8, %v7672_v19 }
 0x6ac   : > { %v7670_v40 = vpop.permute.xlu1 %7669  ;;  %v8992_v28 = vld [vmem:[#allocation5 + $0x60] sm:$0xff] }
 0x6ad   : > { %7757 = vst.msk [vmem:[#allocation5 + $0x20] sm:$0xf] %vm3652_vm8, %v7670_v40  ;;  %8954 = vmatmul.msk.bf16.gmra.mxu3 %vm4154_vm12, %v8992_v28  ;;  %v8349_v53 = vpop.f32.mrf.mxu3 }
 0x6ae   : > { %7683 = vrot.lane.b32.xlu2 %v7460_v34, %s9123_s13  ;;  %8017 = vrot.lane.b32.xlu0 %v7929_v30, %s9124_s14  ;;  %v8473_v50 = vmul.f32 %v12238_v63, %v8349_v53  ;;  %v9004_v34 = vunpack.c.l.bf16 %v9062_v56 }
 0x6b0   : > { %v8042_v0 = vpop.permute.xlu2 %8041  ;;  %v8509_v54 = vadd.f32 %v12247_v38, %v8473_v50 }
 0x6b1   : > { %v8006_v3 = vpop.permute.xlu0 %8005 }
 0x6b2   : > { %8019 = vrot.lane.b32.xlu1 %v7932_v39, %s9124_s14  ;;  %8093 = vst.msk [vmem:[#allocation5 + $0x20] sm:$0xf] %vm3989_vm13, %v8006_v3  ;;  %v8541_v1 = vadd.f32 %v9032_v26, %v8509_v54 }
 0x6b4   : > { %v8008_v36 = vpop.permute.xlu1 %8007  ;;  %v8573_v5 = vmax.f32 %v8541_v1, 0.0  ;;  %v9005_v1 = vunpack.c.h.bf16 %v9062_v56 }
 0x6b5   : > { %8094 = vst.msk [vmem:[#allocation5 + $0x24] sm:$0xf] %vm3989_vm13, %v8008_v36  ;;  %v8351_v17 = vpop.f32.mrf.mxu3 }
 0x6b6   : > { %8606 = vst.msk [vmem:[%s12264_s15 + $0x80] sm:$0xff] %vm8589_vm3, %v8573_v5  ;;  %v8474_v18 = vmul.f32 %v12238_v63, %v8351_v17 }
 0x6b7   : > { %v8309_v2 = vpop.f32.mrf.mxu1 }
 0x6b8   : > { %v7116_v42 = vpop.permute.xlu2 %7115  ;;  %v8510_v19 = vadd.f32 %v12247_v38, %v8474_v18  ;;  %v8457_v62 = vmul.f32 %v12238_v63, %v8309_v2 }
 0x6b9   : > { %7200 = vst.msk [vmem:[#allocation5 + $0x2c] sm:$0xf] %vm3091_vm7, %v7116_v42  ;;  %v6955_v43 = vpop.permute.xlu0 %6954 }
 0x6ba   : > { %7023 = vst.msk [vmem:[#allocation5 + $0x6c] sm:$0xf] %vm2897_vm5, %v6955_v43  ;;  %v8542_v41 = vadd.f32 %v9033_v24, %v8510_v19  ;;  %v8493_v7 = vadd.f32 %v12247_v38, %v8457_v62  ;;  %v9071_v43 = vld [vmem:[%s9202_s29 + $0x50] sm:$0xff]  }
 0x6bb   : > { %7216 = vst.msk [vmem:[#allocation5 + $0x6c] sm:$0xf] %vm3091_vm7, %v7148_v20  ;;  %v9040_v62 = vunpack.c.l.bf16 %v9071_v43 }
 0x6bc   : > { %v7146_v13 = vpop.permute.xlu1 %7145  ;;  %v8984_v60 = vld [vmem:[#allocation5 + $0x20] sm:$0xff]  ;;  %v8574_v9 = vmax.f32 %v8542_v41, 0.0  ;;  %v8525_v25 = vadd.f32 %v9000_v52, %v8493_v7 }
 0x6bd   : > { %7215 = vst.msk [vmem:[#allocation5 + $0x68] sm:$0xf] %vm3091_vm7, %v7146_v13  ;;  %8946 = vmatmul.msk.bf16.gmra.mxu1 %vm4154_vm12, %v8984_v60 }
 0x6be   : > { %8607 = vst.msk [vmem:[%s12264_s15 + $0x88] sm:$0xff] %vm8589_vm3, %v8574_v9  ;;  %v8557_v32 = vmax.f32 %v8525_v25, 0.0 }
 0x6bf   : > { %v8311_v6 = vpop.f32.mrf.mxu1 }
 0x6c0   : > { %v8010_v59 = vpop.permute.xlu2 %8009  ;;  %8590 = vst.msk [vmem:[%s12264_s15] sm:$0xff] %vm8589_vm3, %v8557_v32  ;;  %v8458_v61 = vmul.f32 %v12238_v63, %v8311_v6 }
 0x6c1   : > { %v7706_v8 = vpop.permute.xlu0 %7705 }
 0x6c2   : > { %7775 = vst.msk [vmem:[#allocation5 + $0x68] sm:$0xf] %vm3652_vm8, %v7706_v8  ;;  %v8494_v47 = vadd.f32 %v12247_v38, %v8458_v61  ;;  %v9063_v8 = vld [vmem:[%s9202_s29 + $0x10] sm:$0xff]  }
 0x6c3   : > { %8111 = vst.msk [vmem:[#allocation5 + $0x68] sm:$0xf] %vm3989_vm13, %v8042_v0 }
 0x6c4   : > { %v7708_v14 = vpop.permute.xlu1 %7707  ;;  %v8526_v29 = vadd.f32 %v9001_v15, %v8494_v47  ;;  %v9041_v15 = vunpack.c.h.bf16 %v9071_v43 }
 0x6c5   : > { %7776 = vst.msk [vmem:[#allocation5 + $0x6c] sm:$0xf] %vm3652_vm8, %v7708_v14 }
 0x6c6   : > { %v8558_v12 = vmax.f32 %v8526_v29, 0.0 }
 0x6c8   : > { %v6959_v23 = vpop.permute.xlu2 %6958  ;;  %8591 = vst.msk [vmem:[%s12264_s15 + $0x8] sm:$0xff] %vm8589_vm3, %v8558_v12 }
 0x6c9   : > { %v8044_v11 = vpop.permute.xlu0 %8043  ;;  %7025 = vst.msk [vmem:[#allocation5 + $0x74] sm:$0xf] %vm2897_vm5, %v6959_v23  ;;  %v9008_v23 = vunpack.c.l.bf16 %v9063_v8 }
 0x6ca   : > { %8112 = vst.msk [vmem:[#allocation5 + $0x6c] sm:$0xf] %vm3989_vm13, %v8044_v11 }
 0x6cc   : > { %v7114_v22 = vpop.permute.xlu1 %7113 }
 0x6cd   : > { %7199 = vst.msk [vmem:[#allocation5 + $0x28] sm:$0xf] %vm3091_vm7, %v7114_v22  ;;  %v8354_v27 = vpop.f32.mrf.mxu3 }
 0x6ce   : > { %v8475_v35 = vmul.f32 %v12238_v63, %v8354_v27 }
 0x6d0   : > { %v7710_v51 = vpop.permute.xlu2 %7709  ;;  %v8511_v55 = vadd.f32 %v12247_v38, %v8475_v35 }
 0x6d1   : > { %v7674_v45 = vpop.permute.xlu0 %7673  ;;  %v8993_v20 = vld [vmem:[#allocation5 + $0x68] sm:$0xff] }
 0x6d2   : > { %7759 = vst.msk [vmem:[#allocation5 + $0x28] sm:$0xf] %vm3652_vm8, %v7674_v45  ;;  %v8543_v46 = vadd.f32 %v9036_v48, %v8511_v55  ;;  %8955 = vmatmul.msk.bf16.gmra.mxu3 %vm4154_vm12, %v8993_v20 }
 0x6d3   : > { %8095 = vst.msk [vmem:[#allocation5 + $0x28] sm:$0xf] %vm3989_vm13, %v8010_v59 }
 0x6d4   : > { %v7676_v44 = vpop.permute.xlu1 %7675  ;;  %v8575_v33 = vmax.f32 %v8543_v46, 0.0  ;;  %v9009_v46 = vunpack.c.h.bf16 %v9063_v8  ;;  %v9073_v8 = vld [vmem:[%s9202_s29 + $0x60] sm:$0xff]  }
 0x6d5   : > { %7760 = vst.msk [vmem:[#allocation5 + $0x2c] sm:$0xf] %vm3652_vm8, %v7676_v44  ;;  %v8356_v16 = vpop.f32.mrf.mxu3 }
 0x6d6   : > { %8608 = vst.msk [vmem:[%s12264_s15 + $0x90] sm:$0xff] %vm8589_vm3, %v8575_v33  ;;  %v8476_v40 = vmul.f32 %v12238_v63, %v8356_v16 }
 0x6d7   : > { %v8314_v31 = vpop.f32.mrf.mxu1 }
 0x6d8   : > { %v8048_v28 = vpop.permute.xlu2 %8047  ;;  %v8512_v58 = vadd.f32 %v12247_v38, %v8476_v40  ;;  %v8459_v10 = vmul.f32 %v12238_v63, %v8314_v31 }
 0x6d9   : > { %v8012_v21 = vpop.permute.xlu0 %8011 }
 0x6da   : > { %8096 = vst.msk [vmem:[#allocation5 + $0x2c] sm:$0xf] %vm3989_vm13, %v8012_v21  ;;  %v8544_v30 = vadd.f32 %v9037_v49, %v8512_v58  ;;  %v8495_v53 = vadd.f32 %v12247_v38, %v8459_v10  ;;  %v9072_v58 = vld [vmem:[%s9202_s29 + $0x58] sm:$0xff]  }
 0x6dc   : > { %v6957_v26 = vpop.permute.xlu1 %6956  ;;  %v8576_v50 = vmax.f32 %v8544_v30, 0.0  ;;  %v8527_v37 = vadd.f32 %v9004_v34, %v8495_v53  ;;  %v9044_v34 = vunpack.c.l.bf16 %v9072_v58 }
 0x6dd   : > { %7024 = vst.msk [vmem:[#allocation5 + $0x70] sm:$0xf] %vm2897_vm5, %v6957_v26 }
 0x6de   : > { %8609 = vst.msk [vmem:[%s12264_s15 + $0x98] sm:$0xff] %vm8589_vm3, %v8576_v50  ;;  %v8559_v0 = vmax.f32 %v8527_v37, 0.0 }
 0x6df   : > { %v8316_v39 = vpop.f32.mrf.mxu1 }
 0x6e0   : > { %v7678_v54 = vpop.permute.xlu2 %7677  ;;  %8592 = vst.msk [vmem:[%s12264_s15 + $0x10] sm:$0xff] %vm8589_vm3, %v8559_v0  ;;  %v8460_v36 = vmul.f32 %v12238_v63, %v8316_v39  ;;  %v9045_v39 = vunpack.c.h.bf16 %v9072_v58 }
 0x6e1   : > { %v7150_v3 = vpop.permute.xlu0 %7149  ;;  %v8985_v5 = vld [vmem:[#allocation5 + $0x28] sm:$0xff] }
 0x6e2   : > { %7217 = vst.msk [vmem:[#allocation5 + $0x70] sm:$0xf] %vm3091_vm7, %v7150_v3  ;;  %v8496_v17 = vadd.f32 %v12247_v38, %v8460_v36  ;;  %8947 = vmatmul.msk.bf16.gmra.mxu1 %vm4154_vm12, %v8985_v5 }
 0x6e3   : > { %7777 = vst.msk [vmem:[#allocation5 + $0x70] sm:$0xf] %vm3652_vm8, %v7710_v51 }
 0x6e4   : > { %v7152_v4 = vpop.permute.xlu1 %7151  ;;  %v8528_v24 = vadd.f32 %v9005_v1, %v8496_v17 }
 0x6e5   : > { %7218 = vst.msk [vmem:[#allocation5 + $0x74] sm:$0xf] %vm3091_vm7, %v7152_v4 }
 0x6e6   : > { %v8560_v18 = vmax.f32 %v8528_v24, 0.0 }
 0x6e8   : > { %v8016_v42 = vpop.permute.xlu2 %8015  ;;  %8593 = vst.msk [vmem:[%s12264_s15 + $0x18] sm:$0xff] %vm8589_vm3, %v8560_v18 }
 0x6e9   : > { %v7712_v2 = vpop.permute.xlu0 %7711 }
 0x6ea   : > { %7778 = vst.msk [vmem:[#allocation5 + $0x74] sm:$0xf] %vm3652_vm8, %v7712_v2 }
 0x6eb   : > { %8114 = vst.msk [vmem:[#allocation5 + $0x74] sm:$0xf] %vm3989_vm13, %v8048_v28 }
 0x6ec   : > { %v8046_v19 = vpop.permute.xlu1 %8045 }
 0x6ed   : > { %8113 = vst.msk [vmem:[#allocation5 + $0x70] sm:$0xf] %vm3989_vm13, %v8046_v19  ;;  %v8359_v52 = vpop.f32.mrf.mxu3 }
 0x6ee   : > { %v8477_v41 = vmul.f32 %v12238_v63, %v8359_v52 }
 0x6f0   : > { %v7154_v7 = vpop.permute.xlu2 %7153  ;;  %v8513_v13 = vadd.f32 %v12247_v38, %v8477_v41 }
 0x6f1   : > { %v7118_v60 = vpop.permute.xlu0 %7117 }
 0x6f2   : > { %7201 = vst.msk [vmem:[#allocation5 + $0x30] sm:$0xf] %vm3091_vm7, %v7118_v60  ;;  %v8545_v9 = vadd.f32 %v9040_v62, %v8513_v13 }
 0x6f3   : > { %7761 = vst.msk [vmem:[#allocation5 + $0x30] sm:$0xf] %vm3652_vm8, %v7678_v54  ;;  %v9064_v54 = vld [vmem:[%s9202_s29 + $0x18] sm:$0xff]  }
 0x6f4   : > { %v7120_v25 = vpop.permute.xlu1 %7119  ;;  %v8994_v32 = vld [vmem:[#allocation5 + $0x70] sm:$0xff]  ;;  %v8577_v59 = vmax.f32 %v8545_v9, 0.0  ;;  %v9012_v17 = vunpack.c.l.bf16 %v9064_v54  ;;  %v9013_v13 = vunpack.c.h.bf16 %v9064_v54 }
 0x6f5   : > { %7202 = vst.msk [vmem:[#allocation5 + $0x34] sm:$0xf] %vm3091_vm7, %v7120_v25  ;;  %8956 = vmatmul.msk.bf16.gmra.mxu3 %vm4154_vm12, %v8994_v32  ;;  %v8361_v6 = vpop.f32.mrf.mxu3 }
 0x6f6   : > { %8610 = vst.msk [vmem:[%s12264_s15 + $0xa0] sm:$0xff] %vm8589_vm3, %v8577_v59  ;;  %v8478_v61 = vmul.f32 %v12238_v63, %v8361_v6 }
 0x6f7   : > { %v8319_v14 = vpop.f32.mrf.mxu1 }
 0x6f8   : > { %v7716_v47 = vpop.permute.xlu2 %7715  ;;  %v8514_v29 = vadd.f32 %v12247_v38, %v8478_v61  ;;  %v8461_v11 = vmul.f32 %v12238_v63, %v8319_v14  ;;  %v9048_v61 = vunpack.c.l.bf16 %v9073_v8 }
 0x6f9   : > { %v7680_v12 = vpop.permute.xlu0 %7679 }
 0x6fa   : > { %7762 = vst.msk [vmem:[#allocation5 + $0x34] sm:$0xf] %vm3652_vm8, %v7680_v12  ;;  %v8546_v22 = vadd.f32 %v9041_v15, %v8514_v29  ;;  %v8497_v57 = vadd.f32 %v12247_v38, %v8461_v11  ;;  %v9065_v11 = vld [vmem:[%s9202_s29 + $0x20] sm:$0xff]  }
 0x6fb   : > { %8098 = vst.msk [vmem:[#allocation5 + $0x34] sm:$0xf] %vm3989_vm13, %v8016_v42 }
 0x6fc   : > { %v8014_v27 = vpop.permute.xlu1 %8013  ;;  %v8578_v48 = vmax.f32 %v8546_v22, 0.0  ;;  %v8529_v35 = vadd.f32 %v9008_v23, %v8497_v57  ;;  %v9049_v22 = vunpack.c.h.bf16 %v9073_v8 }
 0x6fd   : > { %8097 = vst.msk [vmem:[#allocation5 + $0x30] sm:$0xf] %vm3989_vm13, %v8014_v27 }
 0x6fe   : > { %8611 = vst.msk [vmem:[%s12264_s15 + $0xa8] sm:$0xff] %vm8589_vm3, %v8578_v48  ;;  %v8561_v51 = vmax.f32 %v8529_v35, 0.0  ;;  %v9016_v35 = vunpack.c.l.bf16 %v9065_v11 }
 0x6ff   : > { %v8321_v45 = vpop.f32.mrf.mxu1 }
 0x700   : > { %v7122_v55 = vpop.permute.xlu2 %7121  ;;  %8594 = vst.msk [vmem:[%s12264_s15 + $0x20] sm:$0xff] %vm8589_vm3, %v8561_v51  ;;  %v8462_v44 = vmul.f32 %v12238_v63, %v8321_v45 }
 0x701   : > { %v6961_v20 = vpop.permute.xlu0 %6960  ;;  %7203 = vst.msk [vmem:[#allocation5 + $0x38] sm:$0xf] %vm3091_vm7, %v7122_v55 }
 0x702   : > { %7026 = vst.msk [vmem:[#allocation5 + $0x78] sm:$0xf] %vm2897_vm5, %v6961_v20  ;;  %v8498_v33 = vadd.f32 %v12247_v38, %v8462_v44 }
 0x703   : > { %7219 = vst.msk [vmem:[#allocation5 + $0x78] sm:$0xf] %vm3091_vm7, %v7154_v7 }
 0x704   : > { %v6963_v16 = vpop.permute.xlu1 %6962  ;;  %v8986_v56 = vld [vmem:[#allocation5 + $0x30] sm:$0xff]  ;;  %v8530_v49 = vadd.f32 %v9009_v46, %v8498_v33 }
 0x705   : > { %7027 = vst.msk [vmem:[#allocation5 + $0x7c] sm:$0xf] %vm2897_vm5, %v6963_v16  ;;  %8948 = vmatmul.msk.bf16.gmra.mxu1 %vm4154_vm12, %v8986_v56  ;;  %v9017_v16 = vunpack.c.h.bf16 %v9065_v11 }
 0x706   : > { %v8562_v40 = vmax.f32 %v8530_v49, 0.0 }
 0x708   : > { %8595 = vst.msk [vmem:[%s12264_s15 + $0x28] sm:$0xff] %vm8589_vm3, %v8562_v40  ;;  %v7684_v24 = vpop.permute.xlu2 %7683 }
 0x709   : > { %v7156_v28 = vpop.permute.xlu0 %7155 }
 0x70a   : > { %7220 = vst.msk [vmem:[#allocation5 + $0x7c] sm:$0xf] %vm3091_vm7, %v7156_v28 }
 0x70b   : > { %7780 = vst.msk [vmem:[#allocation5 + $0x7c] sm:$0xf] %vm3652_vm8, %v7716_v47 }
 0x70c   : > { %v7714_v31 = vpop.permute.xlu1 %7713 }
 0x70d   : > { %7779 = vst.msk [vmem:[#allocation5 + $0x78] sm:$0xf] %vm3652_vm8, %v7714_v31  ;;  %v8364_v21 = vpop.f32.mrf.mxu3  ;;  %v9074_v31 = vld [vmem:[%s9202_s29 + $0x68] sm:$0xff]  }
 0x70e   : > { %v8479_v10 = vmul.f32 %v12238_v63, %v8364_v21  ;;  %v9052_v21 = vunpack.c.l.bf16 %v9074_v31 }
 0x710   : > { %v8515_v30 = vadd.f32 %v12247_v38, %v8479_v10 }
 0x711   : > { %v8050_v53 = vpop.permute.xlu0 %8049 }
 0x712   : > { %8115 = vst.msk [vmem:[#allocation5 + $0x78] sm:$0xf] %vm3989_vm13, %v8050_v53  ;;  %v8547_v26 = vadd.f32 %v9044_v34, %v8515_v30 }
 0x714   : > { %v8052_v50 = vpop.permute.xlu1 %8051  ;;  %v8579_v37 = vmax.f32 %v8547_v26, 0.0  ;;  %v9066_v26 = vld [vmem:[%s9202_s29 + $0x28] sm:$0xff]  }
 0x715   : > { %8116 = vst.msk [vmem:[#allocation5 + $0x7c] sm:$0xf] %vm3989_vm13, %v8052_v50  ;;  %v8366_v0 = vpop.f32.mrf.mxu3 }
 0x716   : > { %8612 = vst.msk [vmem:[%s12264_s15 + $0xb0] sm:$0xff] %vm8589_vm3, %v8579_v37  ;;  %v8480_v3 = vmul.f32 %v12238_v63, %v8366_v0  ;;  %v9053_v37 = vunpack.c.h.bf16 %v9074_v31 }
 0x717   : > { %v8324_v1 = vpop.f32.mrf.mxu1 }
 0x718   : > { %v8516_v36 = vadd.f32 %v12247_v38, %v8480_v3  ;;  %v8463_v4 = vmul.f32 %v12238_v63, %v8324_v1 }
 0x719   : > { %v7124_v5 = vpop.permute.xlu0 %7123 }
 0x71a   : > { %7204 = vst.msk [vmem:[#allocation5 + $0x3c] sm:$0xf] %vm3091_vm7, %v7124_v5  ;;  %v8548_v18 = vadd.f32 %v9045_v39, %v8516_v36  ;;  %v8499_v42 = vadd.f32 %v12247_v38, %v8463_v4  ;;  %v9020_v39 = vunpack.c.l.bf16 %v9066_v26 }
 0x71b   : > { %7764 = vst.msk [vmem:[#allocation5 + $0x3c] sm:$0xf] %vm3652_vm8, %v7684_v24 }
 0x71c   : > { %v7682_v2 = vpop.permute.xlu1 %7681  ;;  %v8995_v19 = vld [vmem:[#allocation5 + $0x78] sm:$0xff]  ;;  %v8580_v43 = vmax.f32 %v8548_v18, 0.0  ;;  %v8531_v52 = vadd.f32 %v9012_v17, %v8499_v42  ;;  %v9021_v42 = vunpack.c.h.bf16 %v9066_v26 }
 0x71d   : > { %7763 = vst.msk [vmem:[#allocation5 + $0x38] sm:$0xf] %vm3652_vm8, %v7682_v2  ;;  %8957 = vmatmul.msk.bf16.gmra.mxu3 %vm4154_vm12, %v8995_v19 }
 0x71e   : > { %8613 = vst.msk [vmem:[%s12264_s15 + $0xb8] sm:$0xff] %vm8589_vm3, %v8580_v43  ;;  %v8563_v62 = vmax.f32 %v8531_v52, 0.0 }
 0x71f   : > { %v8326_v41 = vpop.f32.mrf.mxu1 }
 0x720   : > { %8596 = vst.msk [vmem:[%s12264_s15 + $0x30] sm:$0xff] %vm8589_vm3, %v8563_v62  ;;  %v8464_v60 = vmul.f32 %v12238_v63, %v8326_v41  ;;  %v9075_v62 = vld [vmem:[%s9202_s29 + $0x70] sm:$0xff]  }
 0x721   : > { %v8018_v7 = vpop.permute.xlu0 %8017 }
 0x722   : > { %8099 = vst.msk [vmem:[#allocation5 + $0x38] sm:$0xf] %vm3989_vm13, %v8018_v7  ;;  %v8500_v9 = vadd.f32 %v12247_v38, %v8464_v60  ;;  %v9056_v7 = vunpack.c.l.bf16 %v9075_v62 }
 0x724   : > { %v8020_v25 = vpop.permute.xlu1 %8019  ;;  %v8532_v32 = vadd.f32 %v9013_v13, %v8500_v9 }
 0x725   : > { %8100 = vst.msk [vmem:[#allocation5 + $0x3c] sm:$0xf] %vm3989_vm13, %v8020_v25 }
 0x726   : > { %v8564_v59 = vmax.f32 %v8532_v32, 0.0 }
 0x728   : > { %8597 = vst.msk [vmem:[%s12264_s15 + $0x38] sm:$0xff] %vm8589_vm3, %v8564_v59  ;;  %v9067_v59 = vld [vmem:[%s9202_s29 + $0x30] sm:$0xff]  }
 0x72c   : > { %v8987_v6 = vld [vmem:[#allocation5 + $0x38] sm:$0xff] }
 0x72d   : > { %8949 = vmatmul.msk.bf16.gmra.mxu1 %vm4154_vm12, %v8987_v6  ;;  %v9057_v6 = vunpack.c.h.bf16 %v9075_v62 }
 0x730   : > { %v8369_v15 = vpop.f32.mrf.mxu3 }
 0x731   : > { %v8481_v47 = vmul.f32 %v12238_v63, %v8369_v15 }
 0x733   : > { %v8517_v14 = vadd.f32 %v12247_v38, %v8481_v47  ;;  %v9024_v47 = vunpack.c.l.bf16 %v9067_v59 }
 0x735   : > { %v8549_v29 = vadd.f32 %v9048_v61, %v8517_v14 }
 0x737   : > { %v8581_v12 = vmax.f32 %v8549_v29, 0.0 }
 0x738   : > { %v8371_v23 = vpop.f32.mrf.mxu3 }
 0x739   : > { %8614 = vst.msk [vmem:[%s12264_s15 + $0xc0] sm:$0xff] %vm8589_vm3, %v8581_v12  ;;  %v8482_v57 = vmul.f32 %v12238_v63, %v8371_v23 }
 0x73a   : > { %v8329_v27 = vpop.f32.mrf.mxu1 }
 0x73b   : > { %v8518_v48 = vadd.f32 %v12247_v38, %v8482_v57  ;;  %v8465_v51 = vmul.f32 %v12238_v63, %v8329_v27  ;;  %v9025_v27 = vunpack.c.h.bf16 %v9067_v59 }
 0x73d   : > { %v8550_v55 = vadd.f32 %v9049_v22, %v8518_v48  ;;  %v8501_v45 = vadd.f32 %v12247_v38, %v8465_v51 }
 0x73f   : > { %v8582_v20 = vmax.f32 %v8550_v55, 0.0  ;;  %v8533_v46 = vadd.f32 %v9016_v35, %v8501_v45  ;;  %v9076_v45 = vld [vmem:[%s9202_s29 + $0x78] sm:$0xff]  }
 0x741   : > { %8615 = vst.msk [vmem:[%s12264_s15 + $0xc8] sm:$0xff] %vm8589_vm3, %v8582_v20  ;;  %v8565_v44 = vmax.f32 %v8533_v46, 0.0  ;;  %v9060_v46 = vunpack.c.l.bf16 %v9076_v45 }
 0x742   : > { %v8331_v33 = vpop.f32.mrf.mxu1 }
 0x743   : > { %8598 = vst.msk [vmem:[%s12264_s15 + $0x40] sm:$0xff] %vm8589_vm3, %v8565_v44  ;;  %v8466_v56 = vmul.f32 %v12238_v63, %v8331_v33 }
 0x745   : > { %v8502_v49 = vadd.f32 %v12247_v38, %v8466_v56 }
 0x747   : > { %v8534_v40 = vadd.f32 %v9017_v16, %v8502_v49 }
 0x749   : > { %v8566_v28 = vmax.f32 %v8534_v40, 0.0  ;;  %v9068_v40 = vld [vmem:[%s9202_s29 + $0x38] sm:$0xff]  }
 0x74b   : > { %8599 = vst.msk [vmem:[%s12264_s15 + $0x48] sm:$0xff] %vm8589_vm3, %v8566_v28  ;;  %v9061_v28 = vunpack.c.h.bf16 %v9076_v45 }
 0x755   : > { %v8374_v58 = vpop.f32.mrf.mxu3 }
 0x756   : > { %v8483_v34 = vmul.f32 %v12238_v63, %v8374_v58 }
 0x758   : > { %v8519_v10 = vadd.f32 %v12247_v38, %v8483_v34  ;;  %v9028_v34 = vunpack.c.l.bf16 %v9068_v40 }
 0x75a   : > { %v8551_v30 = vadd.f32 %v9052_v21, %v8519_v10 }
 0x75c   : > { %v8583_v53 = vmax.f32 %v8551_v30, 0.0 }
 0x75d   : > { %v8376_v50 = vpop.f32.mrf.mxu3 }
 0x75e   : > { %8616 = vst.msk [vmem:[%s12264_s15 + $0xd0] sm:$0xff] %vm8589_vm3, %v8583_v53  ;;  %v8484_v0 = vmul.f32 %v12238_v63, %v8376_v50 }
 0x75f   : > { %v8334_v54 = vpop.f32.mrf.mxu1 }
 0x760   : > { %v8467_v3 = vmul.f32 %v12238_v63, %v8334_v54  ;;  %v8520_v1 = vadd.f32 %v12247_v38, %v8484_v0  ;;  %v9029_v54 = vunpack.c.h.bf16 %v9068_v40 }
 0x762   : > { %v8503_v36 = vadd.f32 %v12247_v38, %v8467_v3  ;;  %v8552_v5 = vadd.f32 %v9053_v37, %v8520_v1 }
 0x764   : > { %v8535_v17 = vadd.f32 %v9020_v39, %v8503_v36  ;;  %v8584_v4 = vmax.f32 %v8552_v5, 0.0 }
 0x766   : > { %v8567_v24 = vmax.f32 %v8535_v17, 0.0  ;;  %8617 = vst.msk [vmem:[%s12264_s15 + $0xd8] sm:$0xff] %vm8589_vm3, %v8584_v4 }
 0x767   : > { %v8336_v18 = vpop.f32.mrf.mxu1 }
 0x768   : > { %8600 = vst.msk [vmem:[%s12264_s15 + $0x50] sm:$0xff] %vm8589_vm3, %v8567_v24  ;;  %v8468_v2 = vmul.f32 %v12238_v63, %v8336_v18 }
 0x76a   : > { %v8504_v19 = vadd.f32 %v12247_v38, %v8468_v2 }
 0x76c   : > { %v8536_v43 = vadd.f32 %v9021_v42, %v8504_v19 }
 0x76e   : > { %v8568_v52 = vmax.f32 %v8536_v43, 0.0 }
 0x770   : > { %8601 = vst.msk [vmem:[%s12264_s15 + $0x58] sm:$0xff] %vm8589_vm3, %v8568_v52 }
 0x778   : > { %v8379_v41 = vpop.f32.mrf.mxu3 }
 0x779   : > { %v8485_v13 = vmul.f32 %v12238_v63, %v8379_v41 }
 0x77b   : > { %v8521_v60 = vadd.f32 %v12247_v38, %v8485_v13 }
 0x77d   : > { %v8553_v9 = vadd.f32 %v9056_v7, %v8521_v60 }
 0x77f   : > { %v8585_v25 = vmax.f32 %v8553_v9, 0.0 }
 0x780   : > { %v8381_v32 = vpop.f32.mrf.mxu3 }
 0x781   : > { %8618 = vst.msk [vmem:[%s12264_s15 + $0xe0] sm:$0xff] %vm8589_vm3, %v8585_v25  ;;  %v8486_v8 = vmul.f32 %v12238_v63, %v8381_v32 }
 0x782   : > { %v8339_v15 = vpop.f32.mrf.mxu1 }
 0x783   : > { %v8522_v61 = vadd.f32 %v12247_v38, %v8486_v8  ;;  %v8469_v14 = vmul.f32 %v12238_v63, %v8339_v15 }
 0x785   : > { %v8554_v29 = vadd.f32 %v9057_v6, %v8522_v61  ;;  %v8505_v12 = vadd.f32 %v12247_v38, %v8469_v14 }
 0x787   : > { %v8586_v23 = vmax.f32 %v8554_v29, 0.0  ;;  %v8537_v11 = vadd.f32 %v9024_v47, %v8505_v12 }
 0x789   : > { %8619 = vst.msk [vmem:[%s12264_s15 + $0xe8] sm:$0xff] %vm8589_vm3, %v8586_v23  ;;  %v8569_v22 = vmax.f32 %v8537_v11, 0.0 }
 0x78a   : > { %v8341_v57 = vpop.f32.mrf.mxu1 }
 0x78b   : > { %8602 = vst.msk [vmem:[%s12264_s15 + $0x60] sm:$0xff] %vm8589_vm3, %v8569_v22  ;;  %v8470_v48 = vmul.f32 %v12238_v63, %v8341_v57 }
 0x78d   : > { %v8506_v35 = vadd.f32 %v12247_v38, %v8470_v48 }
 0x78f   : > { %v8538_v51 = vadd.f32 %v9025_v27, %v8506_v35 }
 0x791   : > { %v8570_v55 = vmax.f32 %v8538_v51, 0.0 }
 0x793   : > { %8603 = vst.msk [vmem:[%s12264_s15 + $0x68] sm:$0xff] %vm8589_vm3, %v8570_v55 }
 0x7a0   : > { %v8384_v20 = vpop.f32.mrf.mxu3 }
 0x7a1   : > { %v8487_v44 = vmul.f32 %v12238_v63, %v8384_v20 }
 0x7a3   : > { %v8523_v33 = vadd.f32 %v12247_v38, %v8487_v44 }
 0x7a5   : > { %v8555_v16 = vadd.f32 %v9060_v46, %v8523_v33 }
 0x7a7   : > { %v8587_v56 = vmax.f32 %v8555_v16, 0.0 }
 0x7a8   : > { %v8386_v49 = vpop.f32.mrf.mxu3 }
 0x7a9   : > { %8620 = vst.msk [vmem:[%s12264_s15 + $0xf0] sm:$0xff] %vm8589_vm3, %v8587_v56  ;;  %v8488_v31 = vmul.f32 %v12238_v63, %v8386_v49 }
 0x7aa   : > { %v8344_v58 = vpop.f32.mrf.mxu1 }
 0x7ab   : > { %v8524_v21 = vadd.f32 %v12247_v38, %v8488_v31  ;;  %v8471_v10 = vmul.f32 %v12238_v63, %v8344_v58 }
 0x7ad   : > { %v8556_v30 = vadd.f32 %v9061_v28, %v8524_v21  ;;  %v8507_v53 = vadd.f32 %v12247_v38, %v8471_v10 }
 0x7af   : > { %v8588_v26 = vmax.f32 %v8556_v30, 0.0  ;;  %v8539_v50 = vadd.f32 %v9028_v34, %v8507_v53 }
 0x7b1   : > { %8621 = vst.msk [vmem:[%s12264_s15 + $0xf8] sm:$0xff] %vm8589_vm3, %v8588_v26  ;;  %v8571_v37 = vmax.f32 %v8539_v50, 0.0 }
 0x7b2   : > { %v8346_v0 = vpop.f32.mrf.mxu1 }
 0x7b3   : > { %8604 = vst.msk [vmem:[%s12264_s15 + $0x70] sm:$0xff] %vm8589_vm3, %v8571_v37  ;;  %v8472_v39 = vmul.f32 %v12238_v63, %v8346_v0 }
 0x7b5   : > { %v8508_v3 = vadd.f32 %v12247_v38, %v8472_v39 }
 0x7b7   : > { %v8540_v1 = vadd.f32 %v9029_v54, %v8508_v3 }
 0x7b9   : > { %v8572_v36 = vmax.f32 %v8540_v1, 0.0 }
 0x7bb   : > { %8605 = vst.msk [vmem:[%s12264_s15 + $0x78] sm:$0xff] %vm8589_vm3, %v8572_v36 }
 0x7bc PF: > { %s17_s24 = sadd.s32 1, %s9114_s24  }
 0x7bd   : > { %p14_p4 = scmp.ge.s32.totalorder %s17_s24, 4  }
 0x7bf   :  { %16 = sbr.rel (!%p14_p4) target bundleno = 1 (0x1), region = 84 }

</bundles_post_ra>
